<compile_context>
chip_gen: v7x
topology: tpu7x:2x2x1
jax: 0.10.0
libtpu: 0.0.40
codegen_flags: <defaults>
</compile_context>

<pallas_src>
import jax
import jax.numpy as jnp
from jax.experimental import pallas as pl
from jax.experimental.pallas import tpu as pltpu


# ---------------------------------------------------------------------------
# Fixed LeNet-5 geometry (32x32 input -> 16*5*5 = 400 fc features)
# ---------------------------------------------------------------------------
_H = _W = 32
_K = 5
_C1, _C2 = 6, 16
_HID0, _HID1 = 120, 84

# Kernel blocking constants.
_BLK = 8                    # images per grid step (stacked along sublanes)
_R = 32                     # rows per image in every activation buffer
_S = _BLK * _R              # rows per block (256)
_PAD = 8                    # zero slack rows so shifted slices stay in bounds

# Lane widths of the activation stages (lane = (column, channel) packing).
_LC1 = 28 * _C1             # conv1 out: lane = 6*j   + c   (j  in 0..27) -> 168
_LP1 = 12 * 13 + _C1        # pool1 out: lane = 12*j1 + c   (j1 in 0..13) -> 162
_LC2 = 10 * _C2             # conv2 out: lane = 16*j2 + c2  (j2 in 0..9)  -> 160
_LM2 = 32 * 4 + _C2         # pool2 out: lane = 32*j3 + c2  (j3 in 0..4)  -> 144


# ---------------------------------------------------------------------------
# The fused Pallas kernel (8 images per grid step)
# ---------------------------------------------------------------------------
def _lenet5_kernel(x_ref, a1_ref, bn1_ref, a2_ref, bn2_ref, a0_ref, fb_ref,
                   fw1_ref, fw2_ref, out_ref,
                   c1_ref, p1_ref, c2_ref, m2_ref, g_ref):
    f32 = jnp.float32

    # Zero the slack rows once per step (they are read by the shifted slices
    # below for garbage output rows, but are never written by the main stores).
    c1_ref[pl.ds(_S, _PAD), :] = jnp.zeros((_PAD, _LC1), f32)
    p1_ref[pl.ds(_S, _PAD), :] = jnp.zeros((_PAD, _LP1), f32)
    c2_ref[pl.ds(_S, _PAD), :] = jnp.zeros((_PAD, _LC2), f32)

    # ---- conv1 (5x5 valid) + BN + ReLU: 5 row-shifted banded matmuls ------
    # Valid outputs of image b live at rows 32*b + i (i in 0..27).
    acc = jnp.dot(x_ref[pl.ds(0, _S), :], a1_ref[0], preferred_element_type=f32)
    for di in range(1, _K):
        acc = acc + jnp.dot(x_ref[pl.ds(di, _S), :], a1_ref[di],
                            preferred_element_type=f32)
    c1_ref[pl.ds(0, _S), :] = jnp.maximum(
        acc * bn1_ref[pl.ds(0, 1), :] + bn1_ref[pl.ds(1, 1), :], 0.0)

    # ---- maxpool1 (2x2/2): rows (i, i+1) x lane groups (j, j+1) of 6 ch ----
    # Valid pooled values at rows 32*b + 2*i1, lanes 12*j1 + c.
    p1_ref[pl.ds(0, _S), :] = jnp.maximum(
        jnp.maximum(c1_ref[pl.ds(0, _S), pl.ds(0, _LP1)],
                    c1_ref[pl.ds(1, _S), pl.ds(0, _LP1)]),
        jnp.maximum(c1_ref[pl.ds(0, _S), pl.ds(_C1, _LP1)],
                    c1_ref[pl.ds(1, _S), pl.ds(_C1, _LP1)]))

    # ---- conv2 (5x5 valid) + BN + ReLU on the stride-2 pooled grid ---------
    # Row shifts are 2*di; the lane-direction band and the zeroing of unused
    # pool1 lanes are folded into a2.  Valid outputs at rows 32*b + 2*i2.
    acc = jnp.dot(p1_ref[pl.ds(0, _S), :], a2_ref[0], preferred_element_type=f32)
    for di in range(1, _K):
        acc = acc + jnp.dot(p1_ref[pl.ds(2 * di, _S), :], a2_ref[di],
                            preferred_element_type=f32)
    c2_ref[pl.ds(0, _S), :] = jnp.maximum(
        acc * bn2_ref[pl.ds(0, 1), :] + bn2_ref[pl.ds(1, 1), :], 0.0)

    # ---- maxpool2: rows (r, r+2) x lane groups (j2, j2+1) of 16 channels ---
    # Valid pooled values at rows 32*b + 4*i3, lanes 32*j3 + c2.
    m2_ref[...] = jnp.maximum(
        jnp.maximum(c2_ref[pl.ds(0, _S), pl.ds(0, _LM2)],
                    c2_ref[pl.ds(2, _S), pl.ds(0, _LM2)]),
        jnp.maximum(c2_ref[pl.ds(0, _S), pl.ds(_C2, _LM2)],
                    c2_ref[pl.ds(2, _S), pl.ds(_C2, _LM2)]))

    # ---- gather the 5 valid pooled rows of every image into (BLK,144) slabs
    for i3 in range(_K):
        for b in range(_BLK):
            g_ref[pl.ds(i3 * _BLK + b, 1), :] = \
                m2_ref[pl.ds(_R * b + 4 * i3, 1), :]

    # ---- fc(400->120) as 5 (BLK,144)x(144,120) matmuls (NCHW flatten order
    # and the unused lanes folded into a0), then relu -> fc1 -> relu -> fc2 --
    h = jnp.dot(g_ref[pl.ds(0, _BLK), :], a0_ref[0], preferred_element_type=f32)
    for i3 in range(1, _K):
        h = h + jnp.dot(g_ref[pl.ds(i3 * _BLK, _BLK), :], a0_ref[i3],
                        preferred_element_type=f32)
    h = jnp.maximum(h + fb_ref[pl.ds(0, 1), pl.ds(0, _HID0)], 0.0)
    h = jnp.maximum(
        jnp.dot(h, fw1_ref[...], preferred_element_type=f32)
        + fb_ref[pl.ds(1, 1), pl.ds(0, _HID1)], 0.0)
    nc = out_ref.shape[1]
    out_ref[...] = (jnp.dot(h, fw2_ref[...], preferred_element_type=f32)
                    + fb_ref[pl.ds(2, 1), pl.ds(0, nc)])


# ---------------------------------------------------------------------------
# Parameter setup / offline weight transforms / wrapper
# ---------------------------------------------------------------------------
def init_params(key, in_channels, num_classes):
    ks = jax.random.split(key, 18)

    def u(k, shape, fan_in):
        bound = 1.0 / jnp.sqrt(fan_in)
        return jax.random.uniform(k, shape, jnp.float32, -bound, bound)

    p = {}
    p["w1"] = u(ks[0], (_C1, in_channels, _K, _K), in_channels * _K * _K)
    p["b1"] = u(ks[1], (_C1,), in_channels * _K * _K)
    p["bn1_g"] = 1.0 + 0.1 * jax.random.normal(ks[2], (_C1,), jnp.float32)
    p["bn1_b"] = 0.1 * jax.random.normal(ks[3], (_C1,), jnp.float32)
    p["bn1_m"] = 0.1 * jax.random.normal(ks[4], (_C1,), jnp.float32)
    p["bn1_v"] = 1.0 + 0.1 * jnp.abs(jax.random.normal(ks[5], (_C1,), jnp.float32))
    p["w2"] = u(ks[6], (_C2, _C1, _K, _K), _C1 * _K * _K)
    p["b2"] = u(ks[7], (_C2,), _C1 * _K * _K)
    p["bn2_g"] = 1.0 + 0.1 * jax.random.normal(ks[8], (_C2,), jnp.float32)
    p["bn2_b"] = 0.1 * jax.random.normal(ks[9], (_C2,), jnp.float32)
    p["bn2_m"] = 0.1 * jax.random.normal(ks[10], (_C2,), jnp.float32)
    p["bn2_v"] = 1.0 + 0.1 * jnp.abs(jax.random.normal(ks[11], (_C2,), jnp.float32))
    # Linear weights stored transposed: (in, out)
    p["fw0"] = u(ks[12], (400, _HID0), 400)
    p["fb0"] = u(ks[13], (1, _HID0), 400)
    p["fw1"] = u(ks[14], (_HID0, _HID1), _HID0)
    p["fb1"] = u(ks[15], (1, _HID1), _HID0)
    p["fw2"] = u(ks[16], (_HID1, num_classes), _HID1)
    p["fb2"] = u(ks[17], (1, num_classes), _HID1)
    return p


def _fold_bn(gamma, beta, mean, var, bias, eps=1e-5):
    scale = gamma / jnp.sqrt(var + eps)
    shift = beta + (bias - mean) * scale
    return scale, shift


def _band(n_out, n_in):
    # band[dj, j, j_out] = 1.0 iff j == j_out + dj  (valid-conv column band)
    j = jnp.arange(n_in)
    jo = jnp.arange(n_out)
    dj = jnp.arange(_K)
    return (j[None, :, None] ==
            jo[None, None, :] + dj[:, None, None]).astype(jnp.float32)


@jax.jit
def lenet5_forward(params, x_nchw):
    p = params
    B, cin, H, W = x_nchw.shape
    assert H == _H and W == _W, "LeNet-5 expects 32x32 inputs"
    num_classes = p["fw2"].shape[1]
    assert num_classes <= 128
    wc = W * cin

    nb = (B + _BLK - 1) // _BLK
    bp = nb * _BLK

    # --- input: NCHW -> rows = (image, row i), lanes = (col j, channel) -----
    xh = jnp.transpose(x_nchw, (0, 2, 3, 1)).reshape(B, H, wc)
    xh = jnp.pad(xh, ((0, bp - B), (0, 0), (0, 0)))
    xh = xh.reshape(nb, _S, wc)
    xh = jnp.pad(xh, ((0, 0), (0, _PAD), (0, 0)))      # 8 zero tail rows/block
    xflat = xh.reshape(nb * (_S + _PAD), wc)

    # --- conv1 as banded (block-Toeplitz) matmul weights A1[di] -------------
    wt1 = jnp.transpose(p["w1"], (2, 3, 1, 0))                  # (kh,kw,cin,6)
    a1 = jnp.einsum("ejo,dehc->djhoc", _band(28, _W), wt1)      # (5,32,cin,28,6)
    a1 = a1.reshape(_K, _W * cin, _LC1)

    # --- conv2 weights on the strided pool1 lane grid (zeros kill the unused
    #     odd-column / padded-channel lanes) ---------------------------------
    wt2 = jnp.transpose(p["w2"], (2, 3, 1, 0))                  # (kh,kw,6,16)
    a2 = jnp.einsum("ejo,dehc->djhoc", _band(10, 14), wt2)      # (5,14,6,10,16)
    a2 = jnp.pad(a2, ((0, 0), (0, 0), (0, 6), (0, 0), (0, 0)))  # ch 6 -> 12
    a2 = a2.reshape(_K, 14 * 12, _LC2)[:, :_LP1, :]             # (5,162,160)

    # --- fc(400->120) per-pooled-row weights on the pool2 lane grid ---------
    a0 = p["fw0"].reshape(_C2, _K, _K, _HID0)                   # (c2,i3,j3,n)
    a0 = jnp.transpose(a0, (1, 2, 0, 3))                        # (i3,j3,c2,n)
    a0 = jnp.pad(a0, ((0, 0), (0, 0), (0, 32 - _C2), (0, 0)))   # c2 16 -> 32
    a0 = a0.reshape(_K, _K * 32, _HID0)[:, :_LM2, :]            # (5,144,120)

    # --- BN (+conv bias) folded to per-lane scale/shift ----------------------
    s1, t1 = _fold_bn(p["bn1_g"], p["bn1_b"], p["bn1_m"], p["bn1_v"], p["b1"])
    s2, t2 = _fold_bn(p["bn2_g"], p["bn2_b"], p["bn2_m"], p["bn2_v"], p["b2"])
    bn1 = jnp.stack([jnp.tile(s1, 28), jnp.tile(t1, 28)])       # (2, 168)
    bn2 = jnp.stack([jnp.tile(s2, 10), jnp.tile(t2, 10)])       # (2, 160)

    # --- fc biases packed into one (3, 128) tile -----------------------------
    fb = jnp.zeros((3, 128), jnp.float32)
    fb = fb.at[0, :_HID0].set(p["fb0"][0])
    fb = fb.at[1, :_HID1].set(p["fb1"][0])
    fb = fb.at[2, :num_classes].set(p["fb2"][0])

    grid_spec = pltpu.PrefetchScalarGridSpec(
        num_scalar_prefetch=0,
        grid=(nb,),
        in_specs=[
            pl.BlockSpec((_S + _PAD, wc), lambda g: (g, 0)),
            pl.BlockSpec(a1.shape, lambda g: (0, 0, 0)),
            pl.BlockSpec(bn1.shape, lambda g: (0, 0)),
            pl.BlockSpec(a2.shape, lambda g: (0, 0, 0)),
            pl.BlockSpec(bn2.shape, lambda g: (0, 0)),
            pl.BlockSpec(a0.shape, lambda g: (0, 0, 0)),
            pl.BlockSpec(fb.shape, lambda g: (0, 0)),
            pl.BlockSpec(p["fw1"].shape, lambda g: (0, 0)),
            pl.BlockSpec(p["fw2"].shape, lambda g: (0, 0)),
        ],
        out_specs=pl.BlockSpec((_BLK, num_classes), lambda g: (g, 0)),
        scratch_shapes=[
            pltpu.VMEM((_S + _PAD, _LC1), jnp.float32),   # conv1 + bn + relu
            pltpu.VMEM((_S + _PAD, _LP1), jnp.float32),   # pool1
            pltpu.VMEM((_S + _PAD, _LC2), jnp.float32),   # conv2 + bn + relu
            pltpu.VMEM((_S, _LM2), jnp.float32),          # pool2
            pltpu.VMEM((_K * _BLK, _LM2), jnp.float32),   # gathered fc rows
        ],
    )

    out = pl.pallas_call(
        _lenet5_kernel,
        out_shape=jax.ShapeDtypeStruct((bp, num_classes), jnp.float32),
        grid_spec=grid_spec,
        compiler_params=pltpu.CompilerParams(
            dimension_semantics=("parallel",)),
    )(xflat, a1, bn1, a2, bn2, a0, fb, p["fw1"], p["fw2"])
    return out[:B]


# ---------------------------------------------------------------------------
# Pure-JAX reference (correctness check)
# ---------------------------------------------------------------------------
def _reference(params, x_nchw, eps=1e-5):
    p = params

    def block(x, w, b, g, be, m, v):
        y = jax.lax.conv_general_dilated(
            x, w, (1, 1), "VALID",
            dimension_numbers=("NCHW", "OIHW", "NCHW"))
        y = y + b[None, :, None, None]
        y = g[None, :, None, None] * (y - m[None, :, None, None]) \
            / jnp.sqrt(v[None, :, None, None] + eps) + be[None, :, None, None]
        y = jnp.maximum(y, 0.0)
        B, C, H, W = y.shape
        return y.reshape(B, C, H // 2, 2, W // 2, 2).max(axis=(3, 5))

    out = block(x_nchw, p["w1"], p["b1"], p["bn1_g"], p["bn1_b"],
                p["bn1_m"], p["bn1_v"])
    out = block(out, p["w2"], p["b2"], p["bn2_g"], p["bn2_b"],
                p["bn2_m"], p["bn2_v"])
    out = out.reshape(out.shape[0], -1)
    out = jnp.maximum(out @ p["fw0"] + p["fb0"], 0.0)
    out = jnp.maximum(out @ p["fw1"] + p["fb1"], 0.0)
    return out @ p["fw2"] + p["fb2"]


if __name__ == "__main__":
    key = jax.random.PRNGKey(0)
    k_x, k_p = jax.random.split(key)

    batch, in_channels, num_classes = 2, 1, 10
    # LeNet5 geometry requires 32x32 input (fc expects 16*5*5 = 400 features)
    x = jax.random.normal(k_x, (batch, in_channels, 32, 32), jnp.float32)
    params = init_params(k_p, in_channels, num_classes)

    out = jax.block_until_ready(lenet5_forward(params, x))
    assert out.shape == (batch, num_classes), out.shape

    ref = _reference(params, x)
    err = float(jnp.max(jnp.abs(out - ref)))
    assert jnp.allclose(out, ref, rtol=2e-3, atol=2e-3), err

    print("KERNEL_OK")
</pallas_src>

<mosaic_0001>
module attributes {stable_mosaic.version = 11 : i64} {
  func.func @_lenet5_kernel(%arg0: i32, %arg1: memref<264x32xf32, #tpu.memory_space<vmem>>, %arg2: memref<5x32x168xf32, #tpu.memory_space<vmem>>, %arg3: memref<2x168xf32, #tpu.memory_space<vmem>>, %arg4: memref<5x162x160xf32, #tpu.memory_space<vmem>>, %arg5: memref<2x160xf32, #tpu.memory_space<vmem>>, %arg6: memref<5x144x120xf32, #tpu.memory_space<vmem>>, %arg7: memref<3x128xf32, #tpu.memory_space<vmem>>, %arg8: memref<120x84xf32, #tpu.memory_space<vmem>>, %arg9: memref<84x10xf32, #tpu.memory_space<vmem>>, %arg10: memref<8x10xf32, #tpu.memory_space<vmem>>, %arg11: memref<264x168xf32, #tpu.memory_space<vmem>>, %arg12: memref<264x162xf32, #tpu.memory_space<vmem>>, %arg13: memref<264x160xf32, #tpu.memory_space<vmem>>, %arg14: memref<256x144xf32, #tpu.memory_space<vmem>>, %arg15: memref<40x144xf32, #tpu.memory_space<vmem>>) attributes {dimension_semantics = [#tpu.dimension_semantics<parallel>], iteration_bounds = array<i64: 1>, scalar_prefetch = 0 : i64, scratch_operands = 5 : i64, tpu.core_type = #tpu.core_type<tc>, window_params = [{transform_indices = @transform_0, window_bounds = array<i64: 264, 32>}, {pipeline_mode = #tpu.pipeline_mode<synchronous>, transform_indices = @transform_1, window_bounds = array<i64: 5, 32, 168>}, {pipeline_mode = #tpu.pipeline_mode<synchronous>, transform_indices = @transform_2, window_bounds = array<i64: 2, 168>}, {pipeline_mode = #tpu.pipeline_mode<synchronous>, transform_indices = @transform_3, window_bounds = array<i64: 5, 162, 160>}, {pipeline_mode = #tpu.pipeline_mode<synchronous>, transform_indices = @transform_4, window_bounds = array<i64: 2, 160>}, {pipeline_mode = #tpu.pipeline_mode<synchronous>, transform_indices = @transform_5, window_bounds = array<i64: 5, 144, 120>}, {pipeline_mode = #tpu.pipeline_mode<synchronous>, transform_indices = @transform_6, window_bounds = array<i64: 3, 128>}, {pipeline_mode = #tpu.pipeline_mode<synchronous>, transform_indices = @transform_7, window_bounds = array<i64: 120, 84>}, {pipeline_mode = #tpu.pipeline_mode<synchronous>, transform_indices = @transform_8, window_bounds = array<i64: 84, 10>}, {transform_indices = @transform_9, window_bounds = array<i64: 8, 10>}]} {
    %cst = arith.constant 0.000000e+00 : f32
    %0 = vector.broadcast %cst : f32 to vector<8x168xf32>
    %c256 = arith.constant 256 : index
    %c0 = arith.constant 0 : index
    %1 = vector.load %arg11[%c256, %c0] : memref<264x168xf32, #tpu.memory_space<vmem>>, vector<8x168xf32>
    tpu.vector_store %arg11[%c256, %c0], %0 {strides = array<i32>} : memref<264x168xf32, #tpu.memory_space<vmem>>, vector<8x168xf32>,
    %cst_0 = arith.constant 0.000000e+00 : f32
    %2 = vector.broadcast %cst_0 : f32 to vector<8x162xf32>
    %c256_1 = arith.constant 256 : index
    %c0_2 = arith.constant 0 : index
    %3 = vector.load %arg12[%c256_1, %c0_2] : memref<264x162xf32, #tpu.memory_space<vmem>>, vector<8x162xf32>
    tpu.vector_store %arg12[%c256_1, %c0_2], %2 {strides = array<i32>} : memref<264x162xf32, #tpu.memory_space<vmem>>, vector<8x162xf32>,
    %cst_3 = arith.constant 0.000000e+00 : f32
    %4 = vector.broadcast %cst_3 : f32 to vector<8x160xf32>
    %c256_4 = arith.constant 256 : index
    %c0_5 = arith.constant 0 : index
    %5 = vector.load %arg13[%c256_4, %c0_5] : memref<264x160xf32, #tpu.memory_space<vmem>>, vector<8x160xf32>
    tpu.vector_store %arg13[%c256_4, %c0_5], %4 {strides = array<i32>} : memref<264x160xf32, #tpu.memory_space<vmem>>, vector<8x160xf32>,
    %c0_6 = arith.constant 0 : index
    %c0_7 = arith.constant 0 : index
    %6 = vector.load %arg1[%c0_6, %c0_7] : memref<264x32xf32, #tpu.memory_space<vmem>>, vector<256x32xf32>
    %c0_8 = arith.constant 0 : index
    %c0_9 = arith.constant 0 : index
    %c0_10 = arith.constant 0 : index
    %7 = vector.load %arg2[%c0_8, %c0_9, %c0_10] : memref<5x32x168xf32, #tpu.memory_space<vmem>>, vector<1x32x168xf32>
    %8 = vector.shape_cast %7 : vector<1x32x168xf32> to vector<32x168xf32>
    %cst_11 = arith.constant dense<0.000000e+00> : vector<256x168xf32>
    %9 = tpu.matmul %6, %8, %cst_11 {dimension_numbers = #tpu.dot_dimension_numbers<[1], [0], [0], [1], [0, 0, 1, 1], [], []>} : vector<256x32xf32>, vector<32x168xf32>, vector<256x168xf32> -> vector<256x168xf32>
    %c1 = arith.constant 1 : index
    %c0_12 = arith.constant 0 : index
    %10 = vector.load %arg1[%c1, %c0_12] : memref<264x32xf32, #tpu.memory_space<vmem>>, vector<256x32xf32>
    %c1_13 = arith.constant 1 : index
    %c0_14 = arith.constant 0 : index
    %c0_15 = arith.constant 0 : index
    %11 = vector.load %arg2[%c1_13, %c0_14, %c0_15] : memref<5x32x168xf32, #tpu.memory_space<vmem>>, vector<1x32x168xf32>
    %12 = vector.shape_cast %11 : vector<1x32x168xf32> to vector<32x168xf32>
    %cst_16 = arith.constant dense<0.000000e+00> : vector<256x168xf32>
    %13 = tpu.matmul %10, %12, %cst_16 {dimension_numbers = #tpu.dot_dimension_numbers<[1], [0], [0], [1], [0, 0, 1, 1], [], []>} : vector<256x32xf32>, vector<32x168xf32>, vector<256x168xf32> -> vector<256x168xf32>
    %14 = arith.addf %9, %13 : vector<256x168xf32>
    %c2 = arith.constant 2 : index
    %c0_17 = arith.constant 0 : index
    %15 = vector.load %arg1[%c2, %c0_17] : memref<264x32xf32, #tpu.memory_space<vmem>>, vector<256x32xf32>
    %c2_18 = arith.constant 2 : index
    %c0_19 = arith.constant 0 : index
    %c0_20 = arith.constant 0 : index
    %16 = vector.load %arg2[%c2_18, %c0_19, %c0_20] : memref<5x32x168xf32, #tpu.memory_space<vmem>>, vector<1x32x168xf32>
    %17 = vector.shape_cast %16 : vector<1x32x168xf32> to vector<32x168xf32>
    %cst_21 = arith.constant dense<0.000000e+00> : vector<256x168xf32>
    %18 = tpu.matmul %15, %17, %cst_21 {dimension_numbers = #tpu.dot_dimension_numbers<[1], [0], [0], [1], [0, 0, 1, 1], [], []>} : vector<256x32xf32>, vector<32x168xf32>, vector<256x168xf32> -> vector<256x168xf32>
    %19 = arith.addf %14, %18 : vector<256x168xf32>
    %c3 = arith.constant 3 : index
    %c0_22 = arith.constant 0 : index
    %20 = vector.load %arg1[%c3, %c0_22] : memref<264x32xf32, #tpu.memory_space<vmem>>, vector<256x32xf32>
    %c3_23 = arith.constant 3 : index
    %c0_24 = arith.constant 0 : index
    %c0_25 = arith.constant 0 : index
    %21 = vector.load %arg2[%c3_23, %c0_24, %c0_25] : memref<5x32x168xf32, #tpu.memory_space<vmem>>, vector<1x32x168xf32>
    %22 = vector.shape_cast %21 : vector<1x32x168xf32> to vector<32x168xf32>
    %cst_26 = arith.constant dense<0.000000e+00> : vector<256x168xf32>
    %23 = tpu.matmul %20, %22, %cst_26 {dimension_numbers = #tpu.dot_dimension_numbers<[1], [0], [0], [1], [0, 0, 1, 1], [], []>} : vector<256x32xf32>, vector<32x168xf32>, vector<256x168xf32> -> vector<256x168xf32>
    %24 = arith.addf %19, %23 : vector<256x168xf32>
    %c4 = arith.constant 4 : index
    %c0_27 = arith.constant 0 : index
    %25 = vector.load %arg1[%c4, %c0_27] : memref<264x32xf32, #tpu.memory_space<vmem>>, vector<256x32xf32>
    %c4_28 = arith.constant 4 : index
    %c0_29 = arith.constant 0 : index
    %c0_30 = arith.constant 0 : index
    %26 = vector.load %arg2[%c4_28, %c0_29, %c0_30] : memref<5x32x168xf32, #tpu.memory_space<vmem>>, vector<1x32x168xf32>
    %27 = vector.shape_cast %26 : vector<1x32x168xf32> to vector<32x168xf32>
    %cst_31 = arith.constant dense<0.000000e+00> : vector<256x168xf32>
    %28 = tpu.matmul %25, %27, %cst_31 {dimension_numbers = #tpu.dot_dimension_numbers<[1], [0], [0], [1], [0, 0, 1, 1], [], []>} : vector<256x32xf32>, vector<32x168xf32>, vector<256x168xf32> -> vector<256x168xf32>
    %29 = arith.addf %24, %28 : vector<256x168xf32>
    %c0_32 = arith.constant 0 : index
    %c0_33 = arith.constant 0 : index
    %30 = vector.load %arg3[%c0_32, %c0_33] : memref<2x168xf32, #tpu.memory_space<vmem>>, vector<1x168xf32>
    %31 = vector.broadcast %30 : vector<1x168xf32> to vector<256x168xf32>
    %32 = arith.mulf %29, %31 : vector<256x168xf32>
    %c1_34 = arith.constant 1 : index
    %c0_35 = arith.constant 0 : index
    %33 = vector.load %arg3[%c1_34, %c0_35] : memref<2x168xf32, #tpu.memory_space<vmem>>, vector<1x168xf32>
    %34 = vector.broadcast %33 : vector<1x168xf32> to vector<256x168xf32>
    %35 = arith.addf %32, %34 : vector<256x168xf32>
    %cst_36 = arith.constant 0.000000e+00 : f32
    %36 = vector.broadcast %cst_36 : f32 to vector<256x168xf32>
    %37 = arith.maximumf %35, %36 : vector<256x168xf32>
    %c0_37 = arith.constant 0 : index
    %c0_38 = arith.constant 0 : index
    %38 = vector.load %arg11[%c0_37, %c0_38] : memref<264x168xf32, #tpu.memory_space<vmem>>, vector<256x168xf32>
    tpu.vector_store %arg11[%c0_37, %c0_38], %37 {strides = array<i32>} : memref<264x168xf32, #tpu.memory_space<vmem>>, vector<256x168xf32>,
    %c0_39 = arith.constant 0 : index
    %c0_40 = arith.constant 0 : index
    %39 = vector.load %arg11[%c0_39, %c0_40] : memref<264x168xf32, #tpu.memory_space<vmem>>, vector<256x162xf32>
    %c1_41 = arith.constant 1 : index
    %c0_42 = arith.constant 0 : index
    %40 = vector.load %arg11[%c1_41, %c0_42] : memref<264x168xf32, #tpu.memory_space<vmem>>, vector<256x162xf32>
    %41 = arith.maximumf %39, %40 : vector<256x162xf32>
    %c0_43 = arith.constant 0 : index
    %c6 = arith.constant 6 : index
    %42 = vector.load %arg11[%c0_43, %c6] : memref<264x168xf32, #tpu.memory_space<vmem>>, vector<256x162xf32>
    %c1_44 = arith.constant 1 : index
    %c6_45 = arith.constant 6 : index
    %43 = vector.load %arg11[%c1_44, %c6_45] : memref<264x168xf32, #tpu.memory_space<vmem>>, vector<256x162xf32>
    %44 = arith.maximumf %42, %43 : vector<256x162xf32>
    %45 = arith.maximumf %41, %44 : vector<256x162xf32>
    %c0_46 = arith.constant 0 : index
    %c0_47 = arith.constant 0 : index
    %46 = vector.load %arg12[%c0_46, %c0_47] : memref<264x162xf32, #tpu.memory_space<vmem>>, vector<256x162xf32>
    tpu.vector_store %arg12[%c0_46, %c0_47], %45 {strides = array<i32>} : memref<264x162xf32, #tpu.memory_space<vmem>>, vector<256x162xf32>,
    %c0_48 = arith.constant 0 : index
    %c0_49 = arith.constant 0 : index
    %47 = vector.load %arg12[%c0_48, %c0_49] : memref<264x162xf32, #tpu.memory_space<vmem>>, vector<256x162xf32>
    %c0_50 = arith.constant 0 : index
    %c0_51 = arith.constant 0 : index
    %c0_52 = arith.constant 0 : index
    %48 = vector.load %arg4[%c0_50, %c0_51, %c0_52] : memref<5x162x160xf32, #tpu.memory_space<vmem>>, vector<1x162x160xf32>
    %49 = vector.shape_cast %48 : vector<1x162x160xf32> to vector<162x160xf32>
    %cst_53 = arith.constant dense<0.000000e+00> : vector<256x160xf32>
    %50 = tpu.matmul %47, %49, %cst_53 {dimension_numbers = #tpu.dot_dimension_numbers<[1], [0], [0], [1], [0, 0, 1, 1], [], []>} : vector<256x162xf32>, vector<162x160xf32>, vector<256x160xf32> -> vector<256x160xf32>
    %c2_54 = arith.constant 2 : index
    %c0_55 = arith.constant 0 : index
    %51 = vector.load %arg12[%c2_54, %c0_55] : memref<264x162xf32, #tpu.memory_space<vmem>>, vector<256x162xf32>
    %c1_56 = arith.constant 1 : index
    %c0_57 = arith.constant 0 : index
    %c0_58 = arith.constant 0 : index
    %52 = vector.load %arg4[%c1_56, %c0_57, %c0_58] : memref<5x162x160xf32, #tpu.memory_space<vmem>>, vector<1x162x160xf32>
    %53 = vector.shape_cast %52 : vector<1x162x160xf32> to vector<162x160xf32>
    %cst_59 = arith.constant dense<0.000000e+00> : vector<256x160xf32>
    %54 = tpu.matmul %51, %53, %cst_59 {dimension_numbers = #tpu.dot_dimension_numbers<[1], [0], [0], [1], [0, 0, 1, 1], [], []>} : vector<256x162xf32>, vector<162x160xf32>, vector<256x160xf32> -> vector<256x160xf32>
    %55 = arith.addf %50, %54 : vector<256x160xf32>
    %c4_60 = arith.constant 4 : index
    %c0_61 = arith.constant 0 : index
    %56 = vector.load %arg12[%c4_60, %c0_61] : memref<264x162xf32, #tpu.memory_space<vmem>>, vector<256x162xf32>
    %c2_62 = arith.constant 2 : index
    %c0_63 = arith.constant 0 : index
    %c0_64 = arith.constant 0 : index
    %57 = vector.load %arg4[%c2_62, %c0_63, %c0_64] : memref<5x162x160xf32, #tpu.memory_space<vmem>>, vector<1x162x160xf32>
    %58 = vector.shape_cast %57 : vector<1x162x160xf32> to vector<162x160xf32>
    %cst_65 = arith.constant dense<0.000000e+00> : vector<256x160xf32>
    %59 = tpu.matmul %56, %58, %cst_65 {dimension_numbers = #tpu.dot_dimension_numbers<[1], [0], [0], [1], [0, 0, 1, 1], [], []>} : vector<256x162xf32>, vector<162x160xf32>, vector<256x160xf32> -> vector<256x160xf32>
    %60 = arith.addf %55, %59 : vector<256x160xf32>
    %c6_66 = arith.constant 6 : index
    %c0_67 = arith.constant 0 : index
    %61 = vector.load %arg12[%c6_66, %c0_67] : memref<264x162xf32, #tpu.memory_space<vmem>>, vector<256x162xf32>
    %c3_68 = arith.constant 3 : index
    %c0_69 = arith.constant 0 : index
    %c0_70 = arith.constant 0 : index
    %62 = vector.load %arg4[%c3_68, %c0_69, %c0_70] : memref<5x162x160xf32, #tpu.memory_space<vmem>>, vector<1x162x160xf32>
    %63 = vector.shape_cast %62 : vector<1x162x160xf32> to vector<162x160xf32>
    %cst_71 = arith.constant dense<0.000000e+00> : vector<256x160xf32>
    %64 = tpu.matmul %61, %63, %cst_71 {dimension_numbers = #tpu.dot_dimension_numbers<[1], [0], [0], [1], [0, 0, 1, 1], [], []>} : vector<256x162xf32>, vector<162x160xf32>, vector<256x160xf32> -> vector<256x160xf32>
    %65 = arith.addf %60, %64 : vector<256x160xf32>
    %c8 = arith.constant 8 : index
    %c0_72 = arith.constant 0 : index
    %66 = vector.load %arg12[%c8, %c0_72] : memref<264x162xf32, #tpu.memory_space<vmem>>, vector<256x162xf32>
    %c4_73 = arith.constant 4 : index
    %c0_74 = arith.constant 0 : index
    %c0_75 = arith.constant 0 : index
    %67 = vector.load %arg4[%c4_73, %c0_74, %c0_75] : memref<5x162x160xf32, #tpu.memory_space<vmem>>, vector<1x162x160xf32>
    %68 = vector.shape_cast %67 : vector<1x162x160xf32> to vector<162x160xf32>
    %cst_76 = arith.constant dense<0.000000e+00> : vector<256x160xf32>
    %69 = tpu.matmul %66, %68, %cst_76 {dimension_numbers = #tpu.dot_dimension_numbers<[1], [0], [0], [1], [0, 0, 1, 1], [], []>} : vector<256x162xf32>, vector<162x160xf32>, vector<256x160xf32> -> vector<256x160xf32>
    %70 = arith.addf %65, %69 : vector<256x160xf32>
    %c0_77 = arith.constant 0 : index
    %c0_78 = arith.constant 0 : index
    %71 = vector.load %arg5[%c0_77, %c0_78] : memref<2x160xf32, #tpu.memory_space<vmem>>, vector<1x160xf32>
    %72 = vector.broadcast %71 : vector<1x160xf32> to vector<256x160xf32>
    %73 = arith.mulf %70, %72 : vector<256x160xf32>
    %c1_79 = arith.constant 1 : index
    %c0_80 = arith.constant 0 : index
    %74 = vector.load %arg5[%c1_79, %c0_80] : memref<2x160xf32, #tpu.memory_space<vmem>>, vector<1x160xf32>
    %75 = vector.broadcast %74 : vector<1x160xf32> to vector<256x160xf32>
    %76 = arith.addf %73, %75 : vector<256x160xf32>
    %cst_81 = arith.constant 0.000000e+00 : f32
    %77 = vector.broadcast %cst_81 : f32 to vector<256x160xf32>
    %78 = arith.maximumf %76, %77 : vector<256x160xf32>
    %c0_82 = arith.constant 0 : index
    %c0_83 = arith.constant 0 : index
    %79 = vector.load %arg13[%c0_82, %c0_83] : memref<264x160xf32, #tpu.memory_space<vmem>>, vector<256x160xf32>
    tpu.vector_store %arg13[%c0_82, %c0_83], %78 {strides = array<i32>} : memref<264x160xf32, #tpu.memory_space<vmem>>, vector<256x160xf32>,
    %c0_84 = arith.constant 0 : index
    %c0_85 = arith.constant 0 : index
    %80 = vector.load %arg13[%c0_84, %c0_85] : memref<264x160xf32, #tpu.memory_space<vmem>>, vector<256x144xf32>
    %c2_86 = arith.constant 2 : index
    %c0_87 = arith.constant 0 : index
    %81 = vector.load %arg13[%c2_86, %c0_87] : memref<264x160xf32, #tpu.memory_space<vmem>>, vector<256x144xf32>
    %82 = arith.maximumf %80, %81 : vector<256x144xf32>
    %c0_88 = arith.constant 0 : index
    %c16 = arith.constant 16 : index
    %83 = vector.load %arg13[%c0_88, %c16] : memref<264x160xf32, #tpu.memory_space<vmem>>, vector<256x144xf32>
    %c2_89 = arith.constant 2 : index
    %c16_90 = arith.constant 16 : index
    %84 = vector.load %arg13[%c2_89, %c16_90] : memref<264x160xf32, #tpu.memory_space<vmem>>, vector<256x144xf32>
    %85 = arith.maximumf %83, %84 : vector<256x144xf32>
    %86 = arith.maximumf %82, %85 : vector<256x144xf32>
    %c0_91 = arith.constant 0 : index
    %c0_92 = arith.constant 0 : index
    %87 = vector.load %arg14[%c0_91, %c0_92] : memref<256x144xf32, #tpu.memory_space<vmem>>, vector<256x144xf32>
    tpu.vector_store %arg14[%c0_91, %c0_92], %86 {strides = array<i32>} : memref<256x144xf32, #tpu.memory_space<vmem>>, vector<256x144xf32>,
    %c0_93 = arith.constant 0 : index
    %c0_94 = arith.constant 0 : index
    %88 = vector.load %arg14[%c0_93, %c0_94] : memref<256x144xf32, #tpu.memory_space<vmem>>, vector<1x144xf32>
    %c0_95 = arith.constant 0 : index
    %c0_96 = arith.constant 0 : index
    %89 = vector.load %arg15[%c0_95, %c0_96] : memref<40x144xf32, #tpu.memory_space<vmem>>, vector<1x144xf32>
    tpu.vector_store %arg15[%c0_95, %c0_96], %88 {strides = array<i32>} : memref<40x144xf32, #tpu.memory_space<vmem>>, vector<1x144xf32>,
    %c32 = arith.constant 32 : index
    %c0_97 = arith.constant 0 : index
    %90 = vector.load %arg14[%c32, %c0_97] : memref<256x144xf32, #tpu.memory_space<vmem>>, vector<1x144xf32>
    %c1_98 = arith.constant 1 : index
    %c0_99 = arith.constant 0 : index
    %91 = vector.load %arg15[%c1_98, %c0_99] : memref<40x144xf32, #tpu.memory_space<vmem>>, vector<1x144xf32>
    tpu.vector_store %arg15[%c1_98, %c0_99], %90 {strides = array<i32>} : memref<40x144xf32, #tpu.memory_space<vmem>>, vector<1x144xf32>,
    %c64 = arith.constant 64 : index
    %c0_100 = arith.constant 0 : index
    %92 = vector.load %arg14[%c64, %c0_100] : memref<256x144xf32, #tpu.memory_space<vmem>>, vector<1x144xf32>
    %c2_101 = arith.constant 2 : index
    %c0_102 = arith.constant 0 : index
    %93 = vector.load %arg15[%c2_101, %c0_102] : memref<40x144xf32, #tpu.memory_space<vmem>>, vector<1x144xf32>
    tpu.vector_store %arg15[%c2_101, %c0_102], %92 {strides = array<i32>} : memref<40x144xf32, #tpu.memory_space<vmem>>, vector<1x144xf32>,
    %c96 = arith.constant 96 : index
    %c0_103 = arith.constant 0 : index
    %94 = vector.load %arg14[%c96, %c0_103] : memref<256x144xf32, #tpu.memory_space<vmem>>, vector<1x144xf32>
    %c3_104 = arith.constant 3 : index
    %c0_105 = arith.constant 0 : index
    %95 = vector.load %arg15[%c3_104, %c0_105] : memref<40x144xf32, #tpu.memory_space<vmem>>, vector<1x144xf32>
    tpu.vector_store %arg15[%c3_104, %c0_105], %94 {strides = array<i32>} : memref<40x144xf32, #tpu.memory_space<vmem>>, vector<1x144xf32>,
    %c128 = arith.constant 128 : index
    %c0_106 = arith.constant 0 : index
    %96 = vector.load %arg14[%c128, %c0_106] : memref<256x144xf32, #tpu.memory_space<vmem>>, vector<1x144xf32>
    %c4_107 = arith.constant 4 : index
    %c0_108 = arith.constant 0 : index
    %97 = vector.load %arg15[%c4_107, %c0_108] : memref<40x144xf32, #tpu.memory_space<vmem>>, vector<1x144xf32>
    tpu.vector_store %arg15[%c4_107, %c0_108], %96 {strides = array<i32>} : memref<40x144xf32, #tpu.memory_space<vmem>>, vector<1x144xf32>,
    %c160 = arith.constant 160 : index
    %c0_109 = arith.constant 0 : index
    %98 = vector.load %arg14[%c160, %c0_109] : memref<256x144xf32, #tpu.memory_space<vmem>>, vector<1x144xf32>
    %c5 = arith.constant 5 : index
    %c0_110 = arith.constant 0 : index
    %99 = vector.load %arg15[%c5, %c0_110] : memref<40x144xf32, #tpu.memory_space<vmem>>, vector<1x144xf32>
    tpu.vector_store %arg15[%c5, %c0_110], %98 {strides = array<i32>} : memref<40x144xf32, #tpu.memory_space<vmem>>, vector<1x144xf32>,
    %c192 = arith.constant 192 : index
    %c0_111 = arith.constant 0 : index
    %100 = vector.load %arg14[%c192, %c0_111] : memref<256x144xf32, #tpu.memory_space<vmem>>, vector<1x144xf32>
    %c6_112 = arith.constant 6 : index
    %c0_113 = arith.constant 0 : index
    %101 = vector.load %arg15[%c6_112, %c0_113] : memref<40x144xf32, #tpu.memory_space<vmem>>, vector<1x144xf32>
    tpu.vector_store %arg15[%c6_112, %c0_113], %100 {strides = array<i32>} : memref<40x144xf32, #tpu.memory_space<vmem>>, vector<1x144xf32>,
    %c224 = arith.constant 224 : index
    %c0_114 = arith.constant 0 : index
    %102 = vector.load %arg14[%c224, %c0_114] : memref<256x144xf32, #tpu.memory_space<vmem>>, vector<1x144xf32>
    %c7 = arith.constant 7 : index
    %c0_115 = arith.constant 0 : index
    %103 = vector.load %arg15[%c7, %c0_115] : memref<40x144xf32, #tpu.memory_space<vmem>>, vector<1x144xf32>
    tpu.vector_store %arg15[%c7, %c0_115], %102 {strides = array<i32>} : memref<40x144xf32, #tpu.memory_space<vmem>>, vector<1x144xf32>,
    %c4_116 = arith.constant 4 : index
    %c0_117 = arith.constant 0 : index
    %104 = vector.load %arg14[%c4_116, %c0_117] : memref<256x144xf32, #tpu.memory_space<vmem>>, vector<1x144xf32>
    %c8_118 = arith.constant 8 : index
    %c0_119 = arith.constant 0 : index
    %105 = vector.load %arg15[%c8_118, %c0_119] : memref<40x144xf32, #tpu.memory_space<vmem>>, vector<1x144xf32>
    tpu.vector_store %arg15[%c8_118, %c0_119], %104 {strides = array<i32>} : memref<40x144xf32, #tpu.memory_space<vmem>>, vector<1x144xf32>,
    %c36 = arith.constant 36 : index
    %c0_120 = arith.constant 0 : index
    %106 = vector.load %arg14[%c36, %c0_120] : memref<256x144xf32, #tpu.memory_space<vmem>>, vector<1x144xf32>
    %c9 = arith.constant 9 : index
    %c0_121 = arith.constant 0 : index
    %107 = vector.load %arg15[%c9, %c0_121] : memref<40x144xf32, #tpu.memory_space<vmem>>, vector<1x144xf32>
    tpu.vector_store %arg15[%c9, %c0_121], %106 {strides = array<i32>} : memref<40x144xf32, #tpu.memory_space<vmem>>, vector<1x144xf32>,
    %c68 = arith.constant 68 : index
    %c0_122 = arith.constant 0 : index
    %108 = vector.load %arg14[%c68, %c0_122] : memref<256x144xf32, #tpu.memory_space<vmem>>, vector<1x144xf32>
    %c10 = arith.constant 10 : index
    %c0_123 = arith.constant 0 : index
    %109 = vector.load %arg15[%c10, %c0_123] : memref<40x144xf32, #tpu.memory_space<vmem>>, vector<1x144xf32>
    tpu.vector_store %arg15[%c10, %c0_123], %108 {strides = array<i32>} : memref<40x144xf32, #tpu.memory_space<vmem>>, vector<1x144xf32>,
    %c100 = arith.constant 100 : index
    %c0_124 = arith.constant 0 : index
    %110 = vector.load %arg14[%c100, %c0_124] : memref<256x144xf32, #tpu.memory_space<vmem>>, vector<1x144xf32>
    %c11 = arith.constant 11 : index
    %c0_125 = arith.constant 0 : index
    %111 = vector.load %arg15[%c11, %c0_125] : memref<40x144xf32, #tpu.memory_space<vmem>>, vector<1x144xf32>
    tpu.vector_store %arg15[%c11, %c0_125], %110 {strides = array<i32>} : memref<40x144xf32, #tpu.memory_space<vmem>>, vector<1x144xf32>,
    %c132 = arith.constant 132 : index
    %c0_126 = arith.constant 0 : index
    %112 = vector.load %arg14[%c132, %c0_126] : memref<256x144xf32, #tpu.memory_space<vmem>>, vector<1x144xf32>
    %c12 = arith.constant 12 : index
    %c0_127 = arith.constant 0 : index
    %113 = vector.load %arg15[%c12, %c0_127] : memref<40x144xf32, #tpu.memory_space<vmem>>, vector<1x144xf32>
    tpu.vector_store %arg15[%c12, %c0_127], %112 {strides = array<i32>} : memref<40x144xf32, #tpu.memory_space<vmem>>, vector<1x144xf32>,
    %c164 = arith.constant 164 : index
    %c0_128 = arith.constant 0 : index
    %114 = vector.load %arg14[%c164, %c0_128] : memref<256x144xf32, #tpu.memory_space<vmem>>, vector<1x144xf32>
    %c13 = arith.constant 13 : index
    %c0_129 = arith.constant 0 : index
    %115 = vector.load %arg15[%c13, %c0_129] : memref<40x144xf32, #tpu.memory_space<vmem>>, vector<1x144xf32>
    tpu.vector_store %arg15[%c13, %c0_129], %114 {strides = array<i32>} : memref<40x144xf32, #tpu.memory_space<vmem>>, vector<1x144xf32>,
    %c196 = arith.constant 196 : index
    %c0_130 = arith.constant 0 : index
    %116 = vector.load %arg14[%c196, %c0_130] : memref<256x144xf32, #tpu.memory_space<vmem>>, vector<1x144xf32>
    %c14 = arith.constant 14 : index
    %c0_131 = arith.constant 0 : index
    %117 = vector.load %arg15[%c14, %c0_131] : memref<40x144xf32, #tpu.memory_space<vmem>>, vector<1x144xf32>
    tpu.vector_store %arg15[%c14, %c0_131], %116 {strides = array<i32>} : memref<40x144xf32, #tpu.memory_space<vmem>>, vector<1x144xf32>,
    %c228 = arith.constant 228 : index
    %c0_132 = arith.constant 0 : index
    %118 = vector.load %arg14[%c228, %c0_132] : memref<256x144xf32, #tpu.memory_space<vmem>>, vector<1x144xf32>
    %c15 = arith.constant 15 : index
    %c0_133 = arith.constant 0 : index
    %119 = vector.load %arg15[%c15, %c0_133] : memref<40x144xf32, #tpu.memory_space<vmem>>, vector<1x144xf32>
    tpu.vector_store %arg15[%c15, %c0_133], %118 {strides = array<i32>} : memref<40x144xf32, #tpu.memory_space<vmem>>, vector<1x144xf32>,
    %c8_134 = arith.constant 8 : index
    %c0_135 = arith.constant 0 : index
    %120 = vector.load %arg14[%c8_134, %c0_135] : memref<256x144xf32, #tpu.memory_space<vmem>>, vector<1x144xf32>
    %c16_136 = arith.constant 16 : index
    %c0_137 = arith.constant 0 : index
    %121 = vector.load %arg15[%c16_136, %c0_137] : memref<40x144xf32, #tpu.memory_space<vmem>>, vector<1x144xf32>
    tpu.vector_store %arg15[%c16_136, %c0_137], %120 {strides = array<i32>} : memref<40x144xf32, #tpu.memory_space<vmem>>, vector<1x144xf32>,
    %c40 = arith.constant 40 : index
    %c0_138 = arith.constant 0 : index
    %122 = vector.load %arg14[%c40, %c0_138] : memref<256x144xf32, #tpu.memory_space<vmem>>, vector<1x144xf32>
    %c17 = arith.constant 17 : index
    %c0_139 = arith.constant 0 : index
    %123 = vector.load %arg15[%c17, %c0_139] : memref<40x144xf32, #tpu.memory_space<vmem>>, vector<1x144xf32>
    tpu.vector_store %arg15[%c17, %c0_139], %122 {strides = array<i32>} : memref<40x144xf32, #tpu.memory_space<vmem>>, vector<1x144xf32>,
    %c72 = arith.constant 72 : index
    %c0_140 = arith.constant 0 : index
    %124 = vector.load %arg14[%c72, %c0_140] : memref<256x144xf32, #tpu.memory_space<vmem>>, vector<1x144xf32>
    %c18 = arith.constant 18 : index
    %c0_141 = arith.constant 0 : index
    %125 = vector.load %arg15[%c18, %c0_141] : memref<40x144xf32, #tpu.memory_space<vmem>>, vector<1x144xf32>
    tpu.vector_store %arg15[%c18, %c0_141], %124 {strides = array<i32>} : memref<40x144xf32, #tpu.memory_space<vmem>>, vector<1x144xf32>,
    %c104 = arith.constant 104 : index
    %c0_142 = arith.constant 0 : index
    %126 = vector.load %arg14[%c104, %c0_142] : memref<256x144xf32, #tpu.memory_space<vmem>>, vector<1x144xf32>
    %c19 = arith.constant 19 : index
    %c0_143 = arith.constant 0 : index
    %127 = vector.load %arg15[%c19, %c0_143] : memref<40x144xf32, #tpu.memory_space<vmem>>, vector<1x144xf32>
    tpu.vector_store %arg15[%c19, %c0_143], %126 {strides = array<i32>} : memref<40x144xf32, #tpu.memory_space<vmem>>, vector<1x144xf32>,
    %c136 = arith.constant 136 : index
    %c0_144 = arith.constant 0 : index
    %128 = vector.load %arg14[%c136, %c0_144] : memref<256x144xf32, #tpu.memory_space<vmem>>, vector<1x144xf32>
    %c20 = arith.constant 20 : index
    %c0_145 = arith.constant 0 : index
    %129 = vector.load %arg15[%c20, %c0_145] : memref<40x144xf32, #tpu.memory_space<vmem>>, vector<1x144xf32>
    tpu.vector_store %arg15[%c20, %c0_145], %128 {strides = array<i32>} : memref<40x144xf32, #tpu.memory_space<vmem>>, vector<1x144xf32>,
    %c168 = arith.constant 168 : index
    %c0_146 = arith.constant 0 : index
    %130 = vector.load %arg14[%c168, %c0_146] : memref<256x144xf32, #tpu.memory_space<vmem>>, vector<1x144xf32>
    %c21 = arith.constant 21 : index
    %c0_147 = arith.constant 0 : index
    %131 = vector.load %arg15[%c21, %c0_147] : memref<40x144xf32, #tpu.memory_space<vmem>>, vector<1x144xf32>
    tpu.vector_store %arg15[%c21, %c0_147], %130 {strides = array<i32>} : memref<40x144xf32, #tpu.memory_space<vmem>>, vector<1x144xf32>,
    %c200 = arith.constant 200 : index
    %c0_148 = arith.constant 0 : index
    %132 = vector.load %arg14[%c200, %c0_148] : memref<256x144xf32, #tpu.memory_space<vmem>>, vector<1x144xf32>
    %c22 = arith.constant 22 : index
    %c0_149 = arith.constant 0 : index
    %133 = vector.load %arg15[%c22, %c0_149] : memref<40x144xf32, #tpu.memory_space<vmem>>, vector<1x144xf32>
    tpu.vector_store %arg15[%c22, %c0_149], %132 {strides = array<i32>} : memref<40x144xf32, #tpu.memory_space<vmem>>, vector<1x144xf32>,
    %c232 = arith.constant 232 : index
    %c0_150 = arith.constant 0 : index
    %134 = vector.load %arg14[%c232, %c0_150] : memref<256x144xf32, #tpu.memory_space<vmem>>, vector<1x144xf32>
    %c23 = arith.constant 23 : index
    %c0_151 = arith.constant 0 : index
    %135 = vector.load %arg15[%c23, %c0_151] : memref<40x144xf32, #tpu.memory_space<vmem>>, vector<1x144xf32>
    tpu.vector_store %arg15[%c23, %c0_151], %134 {strides = array<i32>} : memref<40x144xf32, #tpu.memory_space<vmem>>, vector<1x144xf32>,
    %c12_152 = arith.constant 12 : index
    %c0_153 = arith.constant 0 : index
    %136 = vector.load %arg14[%c12_152, %c0_153] : memref<256x144xf32, #tpu.memory_space<vmem>>, vector<1x144xf32>
    %c24 = arith.constant 24 : index
    %c0_154 = arith.constant 0 : index
    %137 = vector.load %arg15[%c24, %c0_154] : memref<40x144xf32, #tpu.memory_space<vmem>>, vector<1x144xf32>
    tpu.vector_store %arg15[%c24, %c0_154], %136 {strides = array<i32>} : memref<40x144xf32, #tpu.memory_space<vmem>>, vector<1x144xf32>,
    %c44 = arith.constant 44 : index
    %c0_155 = arith.constant 0 : index
    %138 = vector.load %arg14[%c44, %c0_155] : memref<256x144xf32, #tpu.memory_space<vmem>>, vector<1x144xf32>
    %c25 = arith.constant 25 : index
    %c0_156 = arith.constant 0 : index
    %139 = vector.load %arg15[%c25, %c0_156] : memref<40x144xf32, #tpu.memory_space<vmem>>, vector<1x144xf32>
    tpu.vector_store %arg15[%c25, %c0_156], %138 {strides = array<i32>} : memref<40x144xf32, #tpu.memory_space<vmem>>, vector<1x144xf32>,
    %c76 = arith.constant 76 : index
    %c0_157 = arith.constant 0 : index
    %140 = vector.load %arg14[%c76, %c0_157] : memref<256x144xf32, #tpu.memory_space<vmem>>, vector<1x144xf32>
    %c26 = arith.constant 26 : index
    %c0_158 = arith.constant 0 : index
    %141 = vector.load %arg15[%c26, %c0_158] : memref<40x144xf32, #tpu.memory_space<vmem>>, vector<1x144xf32>
    tpu.vector_store %arg15[%c26, %c0_158], %140 {strides = array<i32>} : memref<40x144xf32, #tpu.memory_space<vmem>>, vector<1x144xf32>,
    %c108 = arith.constant 108 : index
    %c0_159 = arith.constant 0 : index
    %142 = vector.load %arg14[%c108, %c0_159] : memref<256x144xf32, #tpu.memory_space<vmem>>, vector<1x144xf32>
    %c27 = arith.constant 27 : index
    %c0_160 = arith.constant 0 : index
    %143 = vector.load %arg15[%c27, %c0_160] : memref<40x144xf32, #tpu.memory_space<vmem>>, vector<1x144xf32>
    tpu.vector_store %arg15[%c27, %c0_160], %142 {strides = array<i32>} : memref<40x144xf32, #tpu.memory_space<vmem>>, vector<1x144xf32>,
    %c140 = arith.constant 140 : index
    %c0_161 = arith.constant 0 : index
    %144 = vector.load %arg14[%c140, %c0_161] : memref<256x144xf32, #tpu.memory_space<vmem>>, vector<1x144xf32>
    %c28 = arith.constant 28 : index
    %c0_162 = arith.constant 0 : index
    %145 = vector.load %arg15[%c28, %c0_162] : memref<40x144xf32, #tpu.memory_space<vmem>>, vector<1x144xf32>
    tpu.vector_store %arg15[%c28, %c0_162], %144 {strides = array<i32>} : memref<40x144xf32, #tpu.memory_space<vmem>>, vector<1x144xf32>,
    %c172 = arith.constant 172 : index
    %c0_163 = arith.constant 0 : index
    %146 = vector.load %arg14[%c172, %c0_163] : memref<256x144xf32, #tpu.memory_space<vmem>>, vector<1x144xf32>
    %c29 = arith.constant 29 : index
    %c0_164 = arith.constant 0 : index
    %147 = vector.load %arg15[%c29, %c0_164] : memref<40x144xf32, #tpu.memory_space<vmem>>, vector<1x144xf32>
    tpu.vector_store %arg15[%c29, %c0_164], %146 {strides = array<i32>} : memref<40x144xf32, #tpu.memory_space<vmem>>, vector<1x144xf32>,
    %c204 = arith.constant 204 : index
    %c0_165 = arith.constant 0 : index
    %148 = vector.load %arg14[%c204, %c0_165] : memref<256x144xf32, #tpu.memory_space<vmem>>, vector<1x144xf32>
    %c30 = arith.constant 30 : index
    %c0_166 = arith.constant 0 : index
    %149 = vector.load %arg15[%c30, %c0_166] : memref<40x144xf32, #tpu.memory_space<vmem>>, vector<1x144xf32>
    tpu.vector_store %arg15[%c30, %c0_166], %148 {strides = array<i32>} : memref<40x144xf32, #tpu.memory_space<vmem>>, vector<1x144xf32>,
    %c236 = arith.constant 236 : index
    %c0_167 = arith.constant 0 : index
    %150 = vector.load %arg14[%c236, %c0_167] : memref<256x144xf32, #tpu.memory_space<vmem>>, vector<1x144xf32>
    %c31 = arith.constant 31 : index
    %c0_168 = arith.constant 0 : index
    %151 = vector.load %arg15[%c31, %c0_168] : memref<40x144xf32, #tpu.memory_space<vmem>>, vector<1x144xf32>
    tpu.vector_store %arg15[%c31, %c0_168], %150 {strides = array<i32>} : memref<40x144xf32, #tpu.memory_space<vmem>>, vector<1x144xf32>,
    %c16_169 = arith.constant 16 : index
    %c0_170 = arith.constant 0 : index
    %152 = vector.load %arg14[%c16_169, %c0_170] : memref<256x144xf32, #tpu.memory_space<vmem>>, vector<1x144xf32>
    %c32_171 = arith.constant 32 : index
    %c0_172 = arith.constant 0 : index
    %153 = vector.load %arg15[%c32_171, %c0_172] : memref<40x144xf32, #tpu.memory_space<vmem>>, vector<1x144xf32>
    tpu.vector_store %arg15[%c32_171, %c0_172], %152 {strides = array<i32>} : memref<40x144xf32, #tpu.memory_space<vmem>>, vector<1x144xf32>,
    %c48 = arith.constant 48 : index
    %c0_173 = arith.constant 0 : index
    %154 = vector.load %arg14[%c48, %c0_173] : memref<256x144xf32, #tpu.memory_space<vmem>>, vector<1x144xf32>
    %c33 = arith.constant 33 : index
    %c0_174 = arith.constant 0 : index
    %155 = vector.load %arg15[%c33, %c0_174] : memref<40x144xf32, #tpu.memory_space<vmem>>, vector<1x144xf32>
    tpu.vector_store %arg15[%c33, %c0_174], %154 {strides = array<i32>} : memref<40x144xf32, #tpu.memory_space<vmem>>, vector<1x144xf32>,
    %c80 = arith.constant 80 : index
    %c0_175 = arith.constant 0 : index
    %156 = vector.load %arg14[%c80, %c0_175] : memref<256x144xf32, #tpu.memory_space<vmem>>, vector<1x144xf32>
    %c34 = arith.constant 34 : index
    %c0_176 = arith.constant 0 : index
    %157 = vector.load %arg15[%c34, %c0_176] : memref<40x144xf32, #tpu.memory_space<vmem>>, vector<1x144xf32>
    tpu.vector_store %arg15[%c34, %c0_176], %156 {strides = array<i32>} : memref<40x144xf32, #tpu.memory_space<vmem>>, vector<1x144xf32>,
    %c112 = arith.constant 112 : index
    %c0_177 = arith.constant 0 : index
    %158 = vector.load %arg14[%c112, %c0_177] : memref<256x144xf32, #tpu.memory_space<vmem>>, vector<1x144xf32>
    %c35 = arith.constant 35 : index
    %c0_178 = arith.constant 0 : index
    %159 = vector.load %arg15[%c35, %c0_178] : memref<40x144xf32, #tpu.memory_space<vmem>>, vector<1x144xf32>
    tpu.vector_store %arg15[%c35, %c0_178], %158 {strides = array<i32>} : memref<40x144xf32, #tpu.memory_space<vmem>>, vector<1x144xf32>,
    %c144 = arith.constant 144 : index
    %c0_179 = arith.constant 0 : index
    %160 = vector.load %arg14[%c144, %c0_179] : memref<256x144xf32, #tpu.memory_space<vmem>>, vector<1x144xf32>
    %c36_180 = arith.constant 36 : index
    %c0_181 = arith.constant 0 : index
    %161 = vector.load %arg15[%c36_180, %c0_181] : memref<40x144xf32, #tpu.memory_space<vmem>>, vector<1x144xf32>
    tpu.vector_store %arg15[%c36_180, %c0_181], %160 {strides = array<i32>} : memref<40x144xf32, #tpu.memory_space<vmem>>, vector<1x144xf32>,
    %c176 = arith.constant 176 : index
    %c0_182 = arith.constant 0 : index
    %162 = vector.load %arg14[%c176, %c0_182] : memref<256x144xf32, #tpu.memory_space<vmem>>, vector<1x144xf32>
    %c37 = arith.constant 37 : index
    %c0_183 = arith.constant 0 : index
    %163 = vector.load %arg15[%c37, %c0_183] : memref<40x144xf32, #tpu.memory_space<vmem>>, vector<1x144xf32>
    tpu.vector_store %arg15[%c37, %c0_183], %162 {strides = array<i32>} : memref<40x144xf32, #tpu.memory_space<vmem>>, vector<1x144xf32>,
    %c208 = arith.constant 208 : index
    %c0_184 = arith.constant 0 : index
    %164 = vector.load %arg14[%c208, %c0_184] : memref<256x144xf32, #tpu.memory_space<vmem>>, vector<1x144xf32>
    %c38 = arith.constant 38 : index
    %c0_185 = arith.constant 0 : index
    %165 = vector.load %arg15[%c38, %c0_185] : memref<40x144xf32, #tpu.memory_space<vmem>>, vector<1x144xf32>
    tpu.vector_store %arg15[%c38, %c0_185], %164 {strides = array<i32>} : memref<40x144xf32, #tpu.memory_space<vmem>>, vector<1x144xf32>,
    %c240 = arith.constant 240 : index
    %c0_186 = arith.constant 0 : index
    %166 = vector.load %arg14[%c240, %c0_186] : memref<256x144xf32, #tpu.memory_space<vmem>>, vector<1x144xf32>
    %c39 = arith.constant 39 : index
    %c0_187 = arith.constant 0 : index
    %167 = vector.load %arg15[%c39, %c0_187] : memref<40x144xf32, #tpu.memory_space<vmem>>, vector<1x144xf32>
    tpu.vector_store %arg15[%c39, %c0_187], %166 {strides = array<i32>} : memref<40x144xf32, #tpu.memory_space<vmem>>, vector<1x144xf32>,
    %c0_188 = arith.constant 0 : index
    %c0_189 = arith.constant 0 : index
    %168 = vector.load %arg15[%c0_188, %c0_189] : memref<40x144xf32, #tpu.memory_space<vmem>>, vector<8x144xf32>
    %c0_190 = arith.constant 0 : index
    %c0_191 = arith.constant 0 : index
    %c0_192 = arith.constant 0 : index
    %169 = vector.load %arg6[%c0_190, %c0_191, %c0_192] : memref<5x144x120xf32, #tpu.memory_space<vmem>>, vector<1x144x120xf32>
    %170 = vector.shape_cast %169 : vector<1x144x120xf32> to vector<144x120xf32>
    %cst_193 = arith.constant dense<0.000000e+00> : vector<8x120xf32>
    %171 = tpu.matmul %168, %170, %cst_193 {dimension_numbers = #tpu.dot_dimension_numbers<[1], [0], [0], [1], [0, 0, 1, 1], [], []>} : vector<8x144xf32>, vector<144x120xf32>, vector<8x120xf32> -> vector<8x120xf32>
    %c8_194 = arith.constant 8 : index
    %c0_195 = arith.constant 0 : index
    %172 = vector.load %arg15[%c8_194, %c0_195] : memref<40x144xf32, #tpu.memory_space<vmem>>, vector<8x144xf32>
    %c1_196 = arith.constant 1 : index
    %c0_197 = arith.constant 0 : index
    %c0_198 = arith.constant 0 : index
    %173 = vector.load %arg6[%c1_196, %c0_197, %c0_198] : memref<5x144x120xf32, #tpu.memory_space<vmem>>, vector<1x144x120xf32>
    %174 = vector.shape_cast %173 : vector<1x144x120xf32> to vector<144x120xf32>
    %cst_199 = arith.constant dense<0.000000e+00> : vector<8x120xf32>
    %175 = tpu.matmul %172, %174, %cst_199 {dimension_numbers = #tpu.dot_dimension_numbers<[1], [0], [0], [1], [0, 0, 1, 1], [], []>} : vector<8x144xf32>, vector<144x120xf32>, vector<8x120xf32> -> vector<8x120xf32>
    %176 = arith.addf %171, %175 : vector<8x120xf32>
    %c16_200 = arith.constant 16 : index
    %c0_201 = arith.constant 0 : index
    %177 = vector.load %arg15[%c16_200, %c0_201] : memref<40x144xf32, #tpu.memory_space<vmem>>, vector<8x144xf32>
    %c2_202 = arith.constant 2 : index
    %c0_203 = arith.constant 0 : index
    %c0_204 = arith.constant 0 : index
    %178 = vector.load %arg6[%c2_202, %c0_203, %c0_204] : memref<5x144x120xf32, #tpu.memory_space<vmem>>, vector<1x144x120xf32>
    %179 = vector.shape_cast %178 : vector<1x144x120xf32> to vector<144x120xf32>
    %cst_205 = arith.constant dense<0.000000e+00> : vector<8x120xf32>
    %180 = tpu.matmul %177, %179, %cst_205 {dimension_numbers = #tpu.dot_dimension_numbers<[1], [0], [0], [1], [0, 0, 1, 1], [], []>} : vector<8x144xf32>, vector<144x120xf32>, vector<8x120xf32> -> vector<8x120xf32>
    %181 = arith.addf %176, %180 : vector<8x120xf32>
    %c24_206 = arith.constant 24 : index
    %c0_207 = arith.constant 0 : index
    %182 = vector.load %arg15[%c24_206, %c0_207] : memref<40x144xf32, #tpu.memory_space<vmem>>, vector<8x144xf32>
    %c3_208 = arith.constant 3 : index
    %c0_209 = arith.constant 0 : index
    %c0_210 = arith.constant 0 : index
    %183 = vector.load %arg6[%c3_208, %c0_209, %c0_210] : memref<5x144x120xf32, #tpu.memory_space<vmem>>, vector<1x144x120xf32>
    %184 = vector.shape_cast %183 : vector<1x144x120xf32> to vector<144x120xf32>
    %cst_211 = arith.constant dense<0.000000e+00> : vector<8x120xf32>
    %185 = tpu.matmul %182, %184, %cst_211 {dimension_numbers = #tpu.dot_dimension_numbers<[1], [0], [0], [1], [0, 0, 1, 1], [], []>} : vector<8x144xf32>, vector<144x120xf32>, vector<8x120xf32> -> vector<8x120xf32>
    %186 = arith.addf %181, %185 : vector<8x120xf32>
    %c32_212 = arith.constant 32 : index
    %c0_213 = arith.constant 0 : index
    %187 = vector.load %arg15[%c32_212, %c0_213] : memref<40x144xf32, #tpu.memory_space<vmem>>, vector<8x144xf32>
    %c4_214 = arith.constant 4 : index
    %c0_215 = arith.constant 0 : index
    %c0_216 = arith.constant 0 : index
    %188 = vector.load %arg6[%c4_214, %c0_215, %c0_216] : memref<5x144x120xf32, #tpu.memory_space<vmem>>, vector<1x144x120xf32>
    %189 = vector.shape_cast %188 : vector<1x144x120xf32> to vector<144x120xf32>
    %cst_217 = arith.constant dense<0.000000e+00> : vector<8x120xf32>
    %190 = tpu.matmul %187, %189, %cst_217 {dimension_numbers = #tpu.dot_dimension_numbers<[1], [0], [0], [1], [0, 0, 1, 1], [], []>} : vector<8x144xf32>, vector<144x120xf32>, vector<8x120xf32> -> vector<8x120xf32>
    %191 = arith.addf %186, %190 : vector<8x120xf32>
    %c0_218 = arith.constant 0 : index
    %c0_219 = arith.constant 0 : index
    %192 = vector.load %arg7[%c0_218, %c0_219] : memref<3x128xf32, #tpu.memory_space<vmem>>, vector<1x120xf32>
    %193 = vector.broadcast %192 : vector<1x120xf32> to vector<8x120xf32>
    %194 = arith.addf %191, %193 : vector<8x120xf32>
    %cst_220 = arith.constant 0.000000e+00 : f32
    %195 = vector.broadcast %cst_220 : f32 to vector<8x120xf32>
    %196 = arith.maximumf %194, %195 : vector<8x120xf32>
    %c0_221 = arith.constant 0 : index
    %c0_222 = arith.constant 0 : index
    %197 = vector.load %arg8[%c0_221, %c0_222] : memref<120x84xf32, #tpu.memory_space<vmem>>, vector<120x84xf32>
    %cst_223 = arith.constant dense<0.000000e+00> : vector<8x84xf32>
    %198 = tpu.matmul %196, %197, %cst_223 {dimension_numbers = #tpu.dot_dimension_numbers<[1], [0], [0], [1], [0, 0, 1, 1], [], []>} : vector<8x120xf32>, vector<120x84xf32>, vector<8x84xf32> -> vector<8x84xf32>
    %c1_224 = arith.constant 1 : index
    %c0_225 = arith.constant 0 : index
    %199 = vector.load %arg7[%c1_224, %c0_225] : memref<3x128xf32, #tpu.memory_space<vmem>>, vector<1x84xf32>
    %200 = vector.broadcast %199 : vector<1x84xf32> to vector<8x84xf32>
    %201 = arith.addf %198, %200 : vector<8x84xf32>
    %cst_226 = arith.constant 0.000000e+00 : f32
    %202 = vector.broadcast %cst_226 : f32 to vector<8x84xf32>
    %203 = arith.maximumf %201, %202 : vector<8x84xf32>
    %c0_227 = arith.constant 0 : index
    %c0_228 = arith.constant 0 : index
    %204 = vector.load %arg9[%c0_227, %c0_228] : memref<84x10xf32, #tpu.memory_space<vmem>>, vector<84x10xf32>
    %cst_229 = arith.constant dense<0.000000e+00> : vector<8x10xf32>
    %205 = tpu.matmul %203, %204, %cst_229 {dimension_numbers = #tpu.dot_dimension_numbers<[1], [0], [0], [1], [0, 0, 1, 1], [], []>} : vector<8x84xf32>, vector<84x10xf32>, vector<8x10xf32> -> vector<8x10xf32>
    %c2_230 = arith.constant 2 : index
    %c0_231 = arith.constant 0 : index
    %206 = vector.load %arg7[%c2_230, %c0_231] : memref<3x128xf32, #tpu.memory_space<vmem>>, vector<1x10xf32>
    %207 = vector.broadcast %206 : vector<1x10xf32> to vector<8x10xf32>
    %208 = arith.addf %205, %207 : vector<8x10xf32>
    %c0_232 = arith.constant 0 : index
    %c0_233 = arith.constant 0 : index
    %209 = vector.load %arg10[%c0_232, %c0_233] : memref<8x10xf32, #tpu.memory_space<vmem>>, vector<8x10xf32>
    tpu.vector_store %arg10[%c0_232, %c0_233], %208 {strides = array<i32>} : memref<8x10xf32, #tpu.memory_space<vmem>>, vector<8x10xf32>,
    return
  }
  func.func @transform_0(%arg0: i32) -> (i32, i32) {
    %c0_i32 = arith.constant 0 : i32
    %c0_i32_0 = arith.constant 0 : i32
    return %arg0, %c0_i32 : i32, i32
  }
  func.func @transform_1(%arg0: i32) -> (i32, i32, i32) {
    %c0_i32 = arith.constant 0 : i32
    %c0_i32_0 = arith.constant 0 : i32
    %c0_i32_1 = arith.constant 0 : i32
    %c0_i32_2 = arith.constant 0 : i32
    return %c0_i32, %c0_i32_0, %c0_i32_1 : i32, i32, i32
  }
  func.func @transform_2(%arg0: i32) -> (i32, i32) {
    %c0_i32 = arith.constant 0 : i32
    %c0_i32_0 = arith.constant 0 : i32
    %c0_i32_1 = arith.constant 0 : i32
    return %c0_i32, %c0_i32_0 : i32, i32
  }
  func.func @transform_3(%arg0: i32) -> (i32, i32, i32) {
    %c0_i32 = arith.constant 0 : i32
    %c0_i32_0 = arith.constant 0 : i32
    %c0_i32_1 = arith.constant 0 : i32
    %c0_i32_2 = arith.constant 0 : i32
    return %c0_i32, %c0_i32_0, %c0_i32_1 : i32, i32, i32
  }
  func.func @transform_4(%arg0: i32) -> (i32, i32) {
    %c0_i32 = arith.constant 0 : i32
    %c0_i32_0 = arith.constant 0 : i32
    %c0_i32_1 = arith.constant 0 : i32
    return %c0_i32, %c0_i32_0 : i32, i32
  }
  func.func @transform_5(%arg0: i32) -> (i32, i32, i32) {
    %c0_i32 = arith.constant 0 : i32
    %c0_i32_0 = arith.constant 0 : i32
    %c0_i32_1 = arith.constant 0 : i32
    %c0_i32_2 = arith.constant 0 : i32
    return %c0_i32, %c0_i32_0, %c0_i32_1 : i32, i32, i32
  }
  func.func @transform_6(%arg0: i32) -> (i32, i32) {
    %c0_i32 = arith.constant 0 : i32
    %c0_i32_0 = arith.constant 0 : i32
    %c0_i32_1 = arith.constant 0 : i32
    return %c0_i32, %c0_i32_0 : i32, i32
  }
  func.func @transform_7(%arg0: i32) -> (i32, i32) {
    %c0_i32 = arith.constant 0 : i32
    %c0_i32_0 = arith.constant 0 : i32
    %c0_i32_1 = arith.constant 0 : i32
    return %c0_i32, %c0_i32_0 : i32, i32
  }
  func.func @transform_8(%arg0: i32) -> (i32, i32) {
    %c0_i32 = arith.constant 0 : i32
    %c0_i32_0 = arith.constant 0 : i32
    %c0_i32_1 = arith.constant 0 : i32
    return %c0_i32, %c0_i32_0 : i32, i32
  }
  func.func @transform_9(%arg0: i32) -> (i32, i32) {
    %c0_i32 = arith.constant 0 : i32
    %c0_i32_0 = arith.constant 0 : i32
    return %arg0, %c0_i32 : i32, i32
  }
}

</mosaic_0001>

<bundles_post_ra>
// kernel: tile.23
= control target key start
LH: loop header
LB: loop body
LE: loop exit
PB: predicated region body
PF: predicated region fallthrough
CT: control target
= control target key end

     0   :  { %s40_s0 = inlined_call_operand.vmem [shape: f32[6], index: 0, kind: input, shape index: {}]   ;;  %s41_s1 = inlined_call_operand.vmem [shape: f32[28,6], index: 1, kind: output, shape index: {}]  }
   0x1   :  { %v4_v0 = vld [vmem:[%s40_s0] ss:$0 sm:$0xff] }
   0x2   :  { %5 = vst [vmem:[%s41_s1] sm:$0xff] %v4_v0  ;;  %12 = vst [vmem:[%s41_s1 + $0x8] sm:$0xff] %v4_v0 }
   0x3   :  { %13 = vst [vmem:[%s41_s1 + $0x10] sm:$0xff] %v4_v0  ;;  %14 = vst [vmem:[%s41_s1 + $0x18] sm:$0xff] %v4_v0 }

// kernel: tile.28
= control target key start
LH: loop header
LB: loop body
LE: loop exit
PB: predicated region body
PF: predicated region fallthrough
CT: control target
= control target key end

     0   :  { %vm9_vm0 = vcmask 15360   ;;  %s247_s12 = smov 126   ;;  %s248_s13 = smov 114   ;;  %vm3_vm1 = vcmask 48128   ;;  %vm13_vm2 = vcmask 31744   ;;  %vm16_vm3 = vcmask 1048560   ;;  %s377_s0 = inlined_call_operand.vmem [shape: f32[28,6], index: 0, kind: input, shape index: {}]   ;;  %s378_s1 = inlined_call_operand.vmem [shape: f32[1,168], index: 1, kind: output, shape index: {}]  }
   0x1   :  { %v191_v0 = vld [vmem:[%s377_s0 + $0x15] sm:$0x1]   ;;  %v194_v3 = vld [vmem:[%s377_s0 + $0x13] sm:$0x1]   ;;  %v193_v4 = vld [vmem:[%s377_s0 + $0x14] sm:$0x1]  }
   0x2   :  { %v192_v1 = vld [vmem:[%s377_s0 + $0x15] sm:$0x1]   ;;  %26 = vrot.lane.b32.xlu1 %v194_v3, %s248_s13  ;;  %v195_v5 = vld [vmem:[%s377_s0 + $0x12] sm:$0x1]   ;;  %s249_s18 = smov 120   ;;  %s250_s19 = smov 108  }
   0x3   :  { %v10_v2 = vsel %vm9_vm0, %v192_v1, %v191_v0  ;;  %v196_v6 = vld [vmem:[%s377_s0 + $0x11] sm:$0x1]   ;;  %v197_v7 = vld [vmem:[%s377_s0 + $0x10] sm:$0x1]   ;;  %s251_s24 = smov 102   ;;  %s252_s25 = smov 96  }
   0x4   :  { %11 = vrot.lane.b32.xlu0 %v10_v2, %s247_s12  ;;  %v198_v8 = vld [vmem:[%s377_s0 + $0xf] sm:$0x1]   ;;  %v199_v9 = vld [vmem:[%s377_s0 + $0xe] sm:$0x1]   ;;  %s253_s30 = smov 90   ;;  %s254_s2 = smov 84  }
   0x5   :  { %v2_v10 = vld [vmem:[%s377_s0] sm:$0x1]   ;;  %v200_v11 = vld [vmem:[%s377_s0 + $0xd] sm:$0x1]   ;;  %v201_v12 = vld [vmem:[%s377_s0 + $0xc] sm:$0x1]  }
   0x6   :  { %32 = vrot.lane.b32.xlu1 %v195_v5, %s250_s19  ;;  %4 = vst.msk [vmem:[#allocation0] sm:$0x1] %vm3_vm1, %v2_v10   ;;  %s255_s9 = smov 78   ;;  %s256_s10 = smov 72   ;;  %v202_v13 = vld [vmem:[%s377_s0 + $0xb] sm:$0x1]  }
   0x7   :  { %v203_v14 = vld [vmem:[%s377_s0 + $0xa] sm:$0x1]   ;;  %s257_s15 = smov 66   ;;  %s258_s16 = smov 60   ;;  %v204_v15 = vld [vmem:[%s377_s0 + $0x9] sm:$0x1]  }
   0x8   :  { %20 = vrot.lane.b32.xlu0 %v193_v4, %s249_s18  ;;  %v205_v16 = vld [vmem:[%s377_s0 + $0x8] sm:$0x1]   ;;  %s259_s21 = smov 54   ;;  %s260_s22 = smov 48   ;;  %v206_v17 = vld [vmem:[%s377_s0 + $0x7] sm:$0x1]  }
   0x9   :  { %v207_v18 = vld [vmem:[%s377_s0 + $0x6] sm:$0x1]   ;;  %s261_s27 = smov 42   ;;  %s262_s28 = smov 36   ;;  %v208_v19 = vld [vmem:[%s377_s0 + $0x1b] sm:$0x1]  }
   0xa   :  { %44 = vrot.lane.b32.xlu1 %v197_v7, %s252_s25  ;;  %v209_v20 = vld [vmem:[%s377_s0 + $0x5] sm:$0x1]   ;;  %s263_s4 = smov 34   ;;  %s264_s5 = smov 30   ;;  %v210_v21 = vld [vmem:[%s377_s0 + $0x1a] sm:$0x1]  }
   0xb   :  { %v211_v22 = vld [vmem:[%s377_s0 + $0x4] sm:$0x1]   ;;  %s266_s11 = smov 24   ;;  %v212_v23 = vld [vmem:[%s377_s0 + $0x19] sm:$0x1]   ;;  %s268_s17 = smov 18  }
   0xc   :  { %38 = vrot.lane.b32.xlu0 %v196_v6, %s251_s24  ;;  %v213_v24 = vld [vmem:[%s377_s0 + $0x3] sm:$0x1]   ;;  %v214_v25 = vld [vmem:[%s377_s0 + $0x18] sm:$0x1]   ;;  %v215_v26 = vld [vmem:[%s377_s0 + $0x2] sm:$0x1]  }
   0xd   :  { %s270_s23 = smov 12   ;;  %v216_v27 = vld [vmem:[%s377_s0 + $0x17] sm:$0x1]   ;;  %v217_v28 = vld [vmem:[%s377_s0 + $0x1] sm:$0x1]   ;;  %s272_s29 = smov 6  }
   0xe   :  { %56 = vrot.lane.b32.xlu1 %v199_v9, %s254_s2  ;;  %v218_v29 = vld [vmem:[%s377_s0 + $0x16] sm:$0x1]   ;;  %s273_s0 = smov 4   ;;  %vm22_vm4 = vcmask 1032128   ;;  %vm28_vm5 = vcmask 982928   ;;  %vm34_vm6 = vcmask 933728  }
   0xf   :  { %vm40_vm7 = vcmask 884528   ;;  %vm46_vm8 = vcmask 835328   ;;  %vm52_vm9 = vcmask 786128   ;;  %vm58_vm10 = vcmask 736928  }
  0x10   :  { %50 = vrot.lane.b32.xlu0 %v198_v8, %s253_s30  ;;  %vm64_vm11 = vcmask 687728   ;;  %vm70_vm12 = vcmask 638528   ;;  %vm76_vm13 = vcmask 589328   ;;  %vm82_vm14 = vcmask 540128  }
  0x11   :  { %vm88_vm15 = vcmask 490928   ;;  %vm94_vm0 = vcmask 441728   ;;  %vm100_vm1 = vcmask 392528  }
  0x12   :  { %68 = vrot.lane.b32.xlu1 %v201_v12, %s256_s10  ;;  %s265_s10 = smov 28  }
  0x14   :  { %62 = vrot.lane.b32.xlu0 %v200_v11, %s255_s9 }
  0x16   :  { %80 = vrot.lane.b32.xlu1 %v203_v14, %s258_s16  ;;  %s267_s16 = smov 22  }
  0x18   :  { %74 = vrot.lane.b32.xlu0 %v202_v13, %s257_s15 }
  0x1a   :  { %92 = vrot.lane.b32.xlu1 %v205_v16, %s260_s22  ;;  %s269_s22 = smov 16  }
  0x1c   :  { %86 = vrot.lane.b32.xlu0 %v204_v15, %s259_s21 }
  0x1e   :  { %104 = vrot.lane.b32.xlu1 %v207_v18, %s262_s28  ;;  %s271_s28 = smov 10  }
  0x20   :  { %98 = vrot.lane.b32.xlu0 %v206_v17, %s261_s27 }
  0x22   :  { %117 = vrot.lane.b32.xlu1 %v209_v20, %s264_s5 }
  0x24   :  { %110 = vrot.lane.b32.xlu0 %v208_v19, %s263_s4 }
  0x26   :  { %130 = vrot.lane.b32.xlu1 %v211_v22, %s266_s11 }
  0x28   :  { %123 = vrot.lane.b32.xlu0 %v210_v21, %s265_s10 }
  0x2a   :  { %143 = vrot.lane.b32.xlu1 %v213_v24, %s268_s17 }
  0x2c   :  { %136 = vrot.lane.b32.xlu0 %v212_v23, %s267_s16 }
  0x2e   :  { %156 = vrot.lane.b32.xlu1 %v215_v26, %s270_s23 }
  0x30   :  { %149 = vrot.lane.b32.xlu0 %v214_v25, %s269_s22 }
  0x32   :  { %169 = vrot.lane.b32.xlu1 %v217_v28, %s272_s29 }
  0x34   :  { %162 = vrot.lane.b32.xlu0 %v216_v27, %s271_s28 }
  0x38   :  { %175 = vrot.lane.b32.xlu0 %v218_v29, %s273_s0 }
  0x74   :  { %v27_v31 = vpop.permute.xlu1 %26  }
  0x76   :  { %v12_v30 = vpop.permute.xlu0 %11  }
  0x77   :  { %15 = vst.msk [vmem:[#allocation0 + $0x8] sm:$0x1] %vm13_vm2, %v12_v30   ;;  %vm106_vm2 = vcmask 343328  }
  0x78   :  { %17 = vst.msk [vmem:[#allocation0] sm:$0x1] %vm16_vm3, %v12_v30   ;;  %v33_v33 = vpop.permute.xlu1 %32   ;;  %vm112_vm3 = vcmask 326928  }
  0x7a   :  { %v21_v32 = vpop.permute.xlu0 %20  }
  0x7b   :  { %23 = vst.msk [vmem:[#allocation0] sm:$0x1] %vm22_vm4, %v21_v32   ;;  %vm119_vm4 = vcmask 294128  }
  0x7c   :  { %29 = vst.msk [vmem:[#allocation0] sm:$0x1] %vm28_vm5, %v27_v31   ;;  %v45_v35 = vpop.permute.xlu1 %44   ;;  %vm125_vm5 = vcmask 277728  }
  0x7d   :  { %35 = vst.msk [vmem:[#allocation0] sm:$0x1] %vm34_vm6, %v33_v33   ;;  %vm132_vm6 = vcmask 244928  }
  0x7e   :  { %v39_v34 = vpop.permute.xlu0 %38  }
  0x7f   :  { %41 = vst.msk [vmem:[#allocation0] sm:$0x1] %vm40_vm7, %v39_v34   ;;  %vm138_vm7 = vcmask 228528  }
  0x80   :  { %47 = vst.msk [vmem:[#allocation0] sm:$0x1] %vm46_vm8, %v45_v35   ;;  %v57_v37 = vpop.permute.xlu1 %56   ;;  %vm145_vm8 = vcmask 195728  }
  0x82   :  { %v51_v36 = vpop.permute.xlu0 %50  }
  0x83   :  { %53 = vst.msk [vmem:[#allocation0] sm:$0x1] %vm52_vm9, %v51_v36   ;;  %vm151_vm9 = vcmask 179328  }
  0x84   :  { %59 = vst.msk [vmem:[#allocation0] sm:$0x1] %vm58_vm10, %v57_v37   ;;  %v69_v39 = vpop.permute.xlu1 %68   ;;  %vm158_vm10 = vcmask 146528  }
  0x86   :  { %v63_v38 = vpop.permute.xlu0 %62  }
  0x87   :  { %65 = vst.msk [vmem:[#allocation0] sm:$0x1] %vm64_vm11, %v63_v38   ;;  %vm164_vm11 = vcmask 130128  }
  0x88   :  { %71 = vst.msk [vmem:[#allocation0] sm:$0x1] %vm70_vm12, %v69_v39   ;;  %v81_v41 = vpop.permute.xlu1 %80   ;;  %vm171_vm12 = vcmask 97328  }
  0x8a   :  { %v75_v40 = vpop.permute.xlu0 %74  }
  0x8b   :  { %77 = vst.msk [vmem:[#allocation0] sm:$0x1] %vm76_vm13, %v75_v40   ;;  %vm177_vm13 = vcmask 80928  }
  0x8c   :  { %83 = vst.msk [vmem:[#allocation0] sm:$0x1] %vm82_vm14, %v81_v41   ;;  %v93_v43 = vpop.permute.xlu1 %92  }
  0x8e   :  { %v87_v42 = vpop.permute.xlu0 %86  }
  0x8f   :  { %89 = vst.msk [vmem:[#allocation0] sm:$0x1] %vm88_vm15, %v87_v42  }
  0x90   :  { %95 = vst.msk [vmem:[#allocation0] sm:$0x1] %vm94_vm0, %v93_v43   ;;  %v105_v45 = vpop.permute.xlu1 %104  }
  0x92   :  { %v99_v44 = vpop.permute.xlu0 %98  }
  0x93   :  { %101 = vst.msk [vmem:[#allocation0] sm:$0x1] %vm100_vm1, %v99_v44  }
  0x94   :  { %107 = vst.msk [vmem:[#allocation0] sm:$0x1] %vm106_vm2, %v105_v45   ;;  %v118_v47 = vpop.permute.xlu1 %117  }
  0x95   :  { %120 = vst.msk [vmem:[#allocation0] sm:$0x1] %vm119_vm4, %v118_v47  }
  0x96   :  { %v111_v46 = vpop.permute.xlu0 %110  }
  0x97   :  { %114 = vst.msk [vmem:[#allocation0 + $0x8] sm:$0x1] %vm112_vm3, %v111_v46  }
  0x98   :  { %v131_v49 = vpop.permute.xlu1 %130  }
  0x99   :  { %133 = vst.msk [vmem:[#allocation0] sm:$0x1] %vm132_vm6, %v131_v49  }
  0x9a   :  { %v124_v48 = vpop.permute.xlu0 %123  }
  0x9b   :  { %127 = vst.msk [vmem:[#allocation0 + $0x8] sm:$0x1] %vm125_vm5, %v124_v48  }
  0x9c   :  { %v144_v51 = vpop.permute.xlu1 %143  }
  0x9d   :  { %146 = vst.msk [vmem:[#allocation0] sm:$0x1] %vm145_vm8, %v144_v51  }
  0x9e   :  { %v137_v50 = vpop.permute.xlu0 %136  }
  0x9f   :  { %140 = vst.msk [vmem:[#allocation0 + $0x8] sm:$0x1] %vm138_vm7, %v137_v50  }
  0xa0   :  { %v157_v53 = vpop.permute.xlu1 %156  }
  0xa1   :  { %159 = vst.msk [vmem:[#allocation0] sm:$0x1] %vm158_vm10, %v157_v53  }
  0xa2   :  { %v150_v52 = vpop.permute.xlu0 %149  }
  0xa3   :  { %153 = vst.msk [vmem:[#allocation0 + $0x8] sm:$0x1] %vm151_vm9, %v150_v52  }
  0xa4   :  { %v170_v55 = vpop.permute.xlu1 %169  }
  0xa5   :  { %172 = vst.msk [vmem:[#allocation0] sm:$0x1] %vm171_vm12, %v170_v55  }
  0xa6   :  { %v163_v54 = vpop.permute.xlu0 %162  }
  0xa7   :  { %166 = vst.msk [vmem:[#allocation0 + $0x8] sm:$0x1] %vm164_vm11, %v163_v54  }
  0xaa   :  { %v176_v56 = vpop.permute.xlu0 %175  }
  0xab   :  { %179 = vst.msk [vmem:[#allocation0 + $0x8] sm:$0x1] %vm177_vm13, %v176_v56  }
  0xac   :  { %v183_v57 = vld [vmem:[#allocation0] sm:$0x1] }
  0xad   :  { %185 = vst [vmem:[%s378_s1] sm:$0x1] %v183_v57 }
  0xb2   :  { %v187_v58 = vld [vmem:[#allocation0 + $0x8] sm:$0x1] }
  0xb3   :  { %219 = vst [vmem:[%s378_s1 + $0x1] sm:$0x1] %v187_v58 }

// kernel: tile.38
= control target key start
LH: loop header
LB: loop body
LE: loop exit
PB: predicated region body
PF: predicated region fallthrough
CT: control target
= control target key end

     0   :  { %s75_s10 = smov 112   ;;  %s76_s11 = smov 80   ;;  %vm4_vm0 = vcmask 130048   ;;  %vm10_vm1 = vcmask 1048448   ;;  %vm16_vm2 = vcmask 917248   ;;  %vm22_vm3 = vcmask 786048   ;;  %s122_s0 = inlined_call_operand.vmem [shape: f32[10,16], index: 0, kind: input, shape index: {}]   ;;  %s123_s1 = inlined_call_operand.vmem [shape: f32[1,160], index: 1, kind: output, shape index: {}]  }
   0x1   :  { %v60_v0 = vld [vmem:[%s122_s0 + $0x7] sm:$0x1]   ;;  %v62_v1 = vld [vmem:[%s122_s0 + $0x5] sm:$0x1]   ;;  %v61_v2 = vld [vmem:[%s122_s0 + $0x6] sm:$0x1]  }
   0x2   :  { %8 = vrot.lane.b32.xlu0 %v60_v0, %s75_s10  ;;  %20 = vrot.lane.b32.xlu1 %v62_v1, %s76_s11  ;;  %v63_v3 = vld [vmem:[%s122_s0 + $0x4] sm:$0x1]   ;;  %s2_s16 = smov 3  ;;  %s77_s17 = smov 96   ;;  %v64_v5 = vld [vmem:[%s122_s0 + $0x3] sm:$0x1]  }
   0x3   :  { %s78_s18 = smov 64   ;;  %v3_v4 = vld [vmem:[%s122_s0] ss:$8 sm:%s2_s16]   ;;  %v65_v6 = vld [vmem:[%s122_s0 + $0x2] sm:$0x1]   ;;  %s43_s25 = smov 3 }
   0x4   :  { %5 = vst.msk [vmem:[#allocation0] ss:$8 sm:$0x3] %vm4_vm0, %v3_v4   ;;  %s79_s26 = smov 48   ;;  %s80_s27 = smov 32   ;;  %vm28_vm4 = vcmask 654848  }
   0x5   :  { %v66_v7 = vld [vmem:[%s122_s0 + $0x1] ss:$8 sm:%s43_s25]   ;;  %s81_s0 = smov 16   ;;  %vm34_vm5 = vcmask 523648   ;;  %vm40_vm6 = vcmask 392448   ;;  %vm47_vm7 = vcmask 261248  }
   0x6   :  { %14 = vrot.lane.b32.xlu0 %v61_v2, %s77_s17  ;;  %26 = vrot.lane.b32.xlu1 %v63_v3, %s78_s18 }
   0xa   :  { %32 = vrot.lane.b32.xlu0 %v64_v5, %s79_s26  ;;  %38 = vrot.lane.b32.xlu1 %v65_v6, %s80_s27 }
   0xe   :  { %45 = vrot.lane.b32.xlu0 %v66_v7, %s81_s0 }
  0x74   :  { %v9_v8 = vpop.permute.xlu0 %8   ;;  %v21_v9 = vpop.permute.xlu1 %20  }
  0x75   :  { %11 = vst.msk [vmem:[#allocation0] sm:$0x1] %vm10_vm1, %v9_v8  }
  0x78   :  { %v15_v10 = vpop.permute.xlu0 %14   ;;  %v27_v11 = vpop.permute.xlu1 %26  }
  0x79   :  { %17 = vst.msk [vmem:[#allocation0] sm:$0x1] %vm16_vm2, %v15_v10  }
  0x7a   :  { %23 = vst.msk [vmem:[#allocation0] sm:$0x1] %vm22_vm3, %v21_v9  }
  0x7b   :  { %29 = vst.msk [vmem:[#allocation0] sm:$0x1] %vm28_vm4, %v27_v11  }
  0x7c   :  { %v33_v12 = vpop.permute.xlu0 %32   ;;  %v39_v13 = vpop.permute.xlu1 %38  }
  0x7d   :  { %35 = vst.msk [vmem:[#allocation0] sm:$0x1] %vm34_vm5, %v33_v12  }
  0x7e   :  { %41 = vst.msk [vmem:[#allocation0] sm:$0x1] %vm40_vm6, %v39_v13  }
  0x80   :  { %v46_v14 = vpop.permute.xlu0 %45  }
  0x81   :  { %48 = vst.msk [vmem:[#allocation0] ss:$8 sm:$0x3] %vm47_vm7, %v46_v14  }
  0x88   :  { %v52_v15 = vld [vmem:[#allocation0] sm:$0x1]  ;;  %v56_v16 = vld [vmem:[#allocation0 + $0x8] sm:$0x1] }
  0x89   :  { %54 = vst [vmem:[%s123_s1] sm:$0x1] %v52_v15  ;;  %67 = vst [vmem:[%s123_s1 + $0x1] sm:$0x1] %v56_v16 }

// kernel: tile.33
= control target key start
LH: loop header
LB: loop body
LE: loop exit
PB: predicated region body
PF: predicated region fallthrough
CT: control target
= control target key end

     0   :  { %s28_s0 = inlined_call_operand.vmem [shape: f32[16], index: 0, kind: input, shape index: {}]   ;;  %s29_s1 = inlined_call_operand.vmem [shape: f32[10,16], index: 1, kind: output, shape index: {}]  }
   0x1   :  { %v4_v0 = vld [vmem:[%s28_s0] ss:$0 sm:$0xff] }
   0x2   :  { %5 = vst [vmem:[%s29_s1] sm:$0xff] %v4_v0  ;;  %8 = vst [vmem:[%s29_s1 + $0x8] sm:$0xff] %v4_v0 }

// kernel: lenet5_forward.1
= control target key start
LH: loop header
LB: loop body
LE: loop exit
PB: predicated region body
PF: predicated region fallthrough
CT: control target
= control target key end

     0   :  { %vm39_vm0 = vcmask 261120   ;;  %v9588_v3 = vmov 0.0   ;;  %vm33_vm1 = vcmask 326656   ;;  %vm36_vm2 = vcmask 277504   ;;  %s9589_s30 = smov 122   ;;  %s14095_s1 = inlined_call_operand.vmem [shape: f32[5,32,168], index: 1, kind: input, shape index: {}]   ;;  %s14096_s0 = inlined_call_operand.vmem [shape: f32[264,32], index: 0, kind: input, shape index: {}]   ;;  %s14097_s3 = inlined_call_operand.vmem [shape: f32[5,162,160], index: 3, kind: input, shape index: {}]   ;;  %s14098_s2 = inlined_call_operand.vmem [shape: f32[2,168], index: 2, kind: input, shape index: {}]   ;;  %s14099_s4 = inlined_call_operand.vmem [shape: f32[2,160], index: 4, kind: input, shape index: {}]   ;;  %s14100_s5 = inlined_call_operand.vmem [shape: f32[5,144,120], index: 5, kind: input, shape index: {}]   ;;  %s14101_s7 = inlined_call_operand.vmem [shape: f32[120,84], index: 7, kind: input, shape index: {}]   ;;  %s14102_s8 = inlined_call_operand.vmem [shape: f32[84,10], index: 8, kind: input, shape index: {}]   ;;  %s14103_s6 = inlined_call_operand.vmem [shape: f32[3,128], index: 6, kind: input, shape index: {}]   ;;  %s14104_s9 = inlined_call_operand.vmem [shape: f32[8,10], index: 9, kind: output, shape index: {}]  }
   0x1   :  { %v7882_v0 = vld [vmem:[%s14095_s1 + $0x48] sm:$0xff]  ;;  %v7884_v1 = vld [vmem:[%s14095_s1 + $0x58] sm:$0xff]  ;;  %v7881_v2 = vld [vmem:[%s14095_s1 + $0x40] sm:$0xff]  ;;  %282 = vmatprep.mubr.f32.mxu0 %v9588_v3  ;;  %32 = vst [vmem:[#allocation2 + $0x200] sm:$0xff] %v9588_v3  ;;  %vm2617_vm3 = vcmask 1046528   ;;  %vm3739_vm4 = vcmask 1041408  }
   0x2   :  { %35 = vst [vmem:[#allocation3 + $0x200] sm:$0xff] %v9588_v3  ;;  %38 = vst [vmem:[#allocation4 + $0x200] sm:$0xff] %v9588_v3  ;;  %v8582_v4 = vpack.c.bf16 %v7884_v1, %v7882_v0  ;;  %v7883_v5 = vld [vmem:[%s14095_s1 + $0x50] sm:$0xff]  ;;  %v7886_v6 = vld [vmem:[%s14095_s1 + $0x68] sm:$0xff]  ;;  %vm3068_vm5 = vcmask 998400   ;;  %vm3512_vm6 = vcmask 1045504  }
   0x3   :  { %40 = vst.msk [vmem:[#allocation4 + $0x208] sm:$0xff] %vm39_vm0, %v9588_v3  ;;  %v7888_v7 = vld [vmem:[%s14095_s1 + $0x78] sm:$0xff]  ;;  %v8584_v8 = vpack.c.bf16 %v7883_v5, %v7881_v2  ;;  %v7885_v10 = vld [vmem:[%s14095_s1 + $0x60] sm:$0xff]  ;;  %v7887_v11 = vld [vmem:[%s14095_s1 + $0x70] sm:$0xff]  ;;  %vm4382_vm7 = vcmask 1043456   ;;  %vm6780_vm8 = vcmask 916480  }
   0x4   :  { %v8586_v9 = vpack.c.bf16 %v7888_v7, %v7886_v6  ;;  %8583 = vmatprep.subr.bf16.mxu0 %v8582_v4  ;;  %v74_v12 = vld [vmem:[%s14095_s1 + $0x8] sm:$0xff]  ;;  %v76_v13 = vld [vmem:[%s14095_s1 + $0x18] sm:$0xff]  ;;  %v8588_v14 = vpack.c.bf16 %v7887_v11, %v7885_v10  ;;  %v73_v16 = vld [vmem:[%s14095_s1] sm:$0xff]  ;;  %vm6942_vm9 = vcmask 130048   ;;  %vm9592_vm11 = vmmov 0  }
   0x5   :  { %8585 = vmatpush1.bf16.msra.mxu0 %v8584_v8  ;;  %v8590_v15 = vpack.c.bf16 %v76_v13, %v74_v12  ;;  %v75_v17 = vld [vmem:[%s14095_s1 + $0x10] sm:$0xff]  ;;  %v81_v18 = vld [vmem:[%s14096_s0 + $0x1] sm:$0xff]  ;;  %v80_v21 = vld [vmem:[%s14095_s1 + $0x38] sm:$0xff]  ;;  %vm7707_vm12 = vcmask 982016   ;;  %vm7798_vm13 = vcmask 687104   ;;  %vm7875_vm14 = vcmask 80896  }
   0x6   :  { %8587 = vmatprep.subr.bf16.mxu0 %v8586_v9  ;;  %v8592_v19 = vpack.c.bf16 %v75_v17, %v73_v16  ;;  %v78_v20 = vld [vmem:[%s14095_s1 + $0x28] sm:$0xff]  ;;  %v77_v22 = vld [vmem:[%s14095_s1 + $0x20] sm:$0xff]  ;;  %v79_v23 = vld [vmem:[%s14095_s1 + $0x30] sm:$0xff] }
   0x7   :  { %v8594_v24 = vpack.c.bf16 %v80_v21, %v78_v20  ;;  %v82_v25 = vld [vmem:[%s14096_s0 + $0x9] sm:$0xff]  ;;  %v8596_v26 = vpack.c.bf16 %v79_v23, %v77_v22  ;;  %v83_v27 = vld [vmem:[%s14096_s0 + $0x11] sm:$0xff]  ;;  %v84_v31 = vld [vmem:[%s14096_s0 + $0x19] sm:$0xff] }
   0x8   :  { %v7954_v28 = vld [vmem:[%s14095_s1 + $0x88] sm:$0xff]  ;;  %v7956_v29 = vld [vmem:[%s14095_s1 + $0x98] sm:$0xff]  ;;  %v7953_v60 = vld [vmem:[%s14095_s1 + $0x80] sm:$0xff] }
   0x9   :  { %8589 = vmatpush1.bf16.msra.mxu0 %v8588_v14  ;;  %v8598_v30 = vpack.c.bf16 %v7956_v29, %v7954_v28  ;;  %v85_v32 = vld [vmem:[%s14096_s0 + $0x21] sm:$0xff]  ;;  %v86_v33 = vld [vmem:[%s14096_s0 + $0x29] sm:$0xff]  ;;  %v87_v34 = vld [vmem:[%s14096_s0 + $0x31] sm:$0xff] }
   0xa   :  { %8591 = vmatprep.subr.bf16.mxu0 %v8590_v15  ;;  %v88_v35 = vld [vmem:[%s14096_s0 + $0x39] sm:$0xff]  ;;  %v89_v36 = vld [vmem:[%s14096_s0 + $0x41] sm:$0xff]  ;;  %v90_v37 = vld [vmem:[%s14096_s0 + $0x49] sm:$0xff] }
   0xb   :  { %v91_v38 = vld [vmem:[%s14096_s0 + $0x51] sm:$0xff]  ;;  %v92_v39 = vld [vmem:[%s14096_s0 + $0x59] sm:$0xff]  ;;  %v93_v40 = vld [vmem:[%s14096_s0 + $0x61] sm:$0xff] }
   0xc   :  { %7889 = vmatmul.mubr.msk.f32.vlgmr.msra.gmra.mrb[0].mxu0 %vm39_vm0, %v81_v18  ;;  %v94_v41 = vld [vmem:[%s14096_s0 + $0x69] sm:$0xff]  ;;  %v95_v42 = vld [vmem:[%s14096_s0 + $0x71] sm:$0xff]  ;;  %v96_v43 = vld [vmem:[%s14096_s0 + $0x79] sm:$0xff] }
   0xd   :  { %8593 = vmatpush1.bf16.msra.mxu0 %v8592_v19  ;;  %288 = vmatprep.mubr.f32.mxu0 %v9588_v3  ;;  %v97_v44 = vld [vmem:[%s14096_s0 + $0x81] sm:$0xff]  ;;  %v98_v45 = vld [vmem:[%s14096_s0 + $0x89] sm:$0xff]  ;;  %v99_v46 = vld [vmem:[%s14096_s0 + $0x91] sm:$0xff] }
   0xe   :  { %8595 = vmatprep.subr.bf16.mxu0 %v8594_v24  ;;  %v100_v47 = vld [vmem:[%s14096_s0 + $0x99] sm:$0xff]  ;;  %v101_v48 = vld [vmem:[%s14096_s0 + $0xa1] sm:$0xff]  ;;  %v102_v49 = vld [vmem:[%s14096_s0 + $0xa9] sm:$0xff] }
   0xf   :  { %v103_v50 = vld [vmem:[%s14096_s0 + $0xb1] sm:$0xff]  ;;  %v104_v51 = vld [vmem:[%s14096_s0 + $0xb9] sm:$0xff]  ;;  %v105_v52 = vld [vmem:[%s14096_s0 + $0xc1] sm:$0xff] }
  0x10   :  { %7890 = vmatmul.mubr.msk.f32.gmra.mrb[2].mxu0 %vm39_vm0, %v82_v25  ;;  %v106_v53 = vld [vmem:[%s14096_s0 + $0xc9] sm:$0xff]  ;;  %v107_v54 = vld [vmem:[%s14096_s0 + $0xd1] sm:$0xff]  ;;  %v108_v55 = vld [vmem:[%s14096_s0 + $0xd9] sm:$0xff] }
  0x11   :  { %294 = vmatprep.mubr.f32.mxu0 %v9588_v3  ;;  %8597 = vmatpush1.bf16.msra.mxu0 %v8596_v26  ;;  %v109_v56 = vld [vmem:[%s14096_s0 + $0xe1] sm:$0xff]  ;;  %v110_v57 = vld [vmem:[%s14096_s0 + $0xe9] sm:$0xff]  ;;  %v111_v58 = vld [vmem:[%s14096_s0 + $0xf1] sm:$0xff] }
  0x12   :  { %8599 = vmatprep.subr.bf16.mxu0 %v8598_v30  ;;  %v112_v59 = vld [vmem:[%s14096_s0 + $0xf9] sm:$0xff]  ;;  %v7955_v61 = vld [vmem:[%s14095_s1 + $0x90] sm:$0xff]  ;;  %v7958_v62 = vld [vmem:[%s14095_s1 + $0xa8] sm:$0xff] }
  0x13   :  { %v7960_v63 = vld [vmem:[%s14095_s1 + $0xb8] sm:$0xff]  ;;  %v41_v0 = vld [vmem:[%s14096_s0] sm:$0xff]  ;;  %v8600_v1 = vpack.c.bf16 %v7955_v61, %v7953_v60  ;;  %v7959_v5 = vld [vmem:[%s14095_s1 + $0xb0] sm:$0xff] }
  0x14   :  { %7891 = vmatmul.mubr.msk.f32.gmra.mrb[4].mxu0 %vm39_vm0, %v83_v27  ;;  %v8602_v2 = vpack.c.bf16 %v7960_v63, %v7958_v62  ;;  %v7957_v4 = vld [vmem:[%s14095_s1 + $0xa0] sm:$0xff]  ;;  %v7994_v6 = vld [vmem:[%s14095_s1 + $0xc8] sm:$0xff]  ;;  %v7996_v7 = vld [vmem:[%s14095_s1 + $0xd8] sm:$0xff] }
  0x15   :  { %300 = vmatprep.mubr.f32.mxu0 %v9588_v3  ;;  %v42_v8 = vld [vmem:[%s14096_s0 + $0x8] sm:$0xff]  ;;  %v8604_v9 = vpack.c.bf16 %v7959_v5, %v7957_v4  ;;  %v8606_v10 = vpack.c.bf16 %v7996_v7, %v7994_v6  ;;  %v43_v11 = vld [vmem:[%s14096_s0 + $0x10] sm:$0xff]  ;;  %v44_v12 = vld [vmem:[%s14096_s0 + $0x18] sm:$0xff] }
  0x16   :  { %v45_v13 = vld [vmem:[%s14096_s0 + $0x20] sm:$0xff]  ;;  %v46_v14 = vld [vmem:[%s14096_s0 + $0x28] sm:$0xff]  ;;  %v47_v15 = vld [vmem:[%s14096_s0 + $0x30] sm:$0xff] }
  0x17   :  { %v48_v16 = vld [vmem:[%s14096_s0 + $0x38] sm:$0xff]  ;;  %v49_v17 = vld [vmem:[%s14096_s0 + $0x40] sm:$0xff]  ;;  %v50_v18 = vld [vmem:[%s14096_s0 + $0x48] sm:$0xff] }
  0x18   :  { %7892 = vmatmul.mubr.msk.f32.gmra.mrb[6].mxu0 %vm39_vm0, %v84_v31  ;;  %v51_v19 = vld [vmem:[%s14096_s0 + $0x50] sm:$0xff]  ;;  %v52_v20 = vld [vmem:[%s14096_s0 + $0x58] sm:$0xff]  ;;  %v53_v21 = vld [vmem:[%s14096_s0 + $0x60] sm:$0xff] }
  0x19   :  { %306 = vmatprep.mubr.f32.mxu0 %v9588_v3  ;;  %v54_v22 = vld [vmem:[%s14096_s0 + $0x68] sm:$0xff]  ;;  %v55_v23 = vld [vmem:[%s14096_s0 + $0x70] sm:$0xff]  ;;  %v56_v24 = vld [vmem:[%s14096_s0 + $0x78] sm:$0xff] }
  0x1a   :  { %v57_v25 = vld [vmem:[%s14096_s0 + $0x80] sm:$0xff]  ;;  %v58_v26 = vld [vmem:[%s14096_s0 + $0x88] sm:$0xff]  ;;  %v59_v27 = vld [vmem:[%s14096_s0 + $0x90] sm:$0xff] }
  0x1b   :  { %v60_v28 = vld [vmem:[%s14096_s0 + $0x98] sm:$0xff]  ;;  %v61_v29 = vld [vmem:[%s14096_s0 + $0xa0] sm:$0xff]  ;;  %v62_v30 = vld [vmem:[%s14096_s0 + $0xa8] sm:$0xff] }
  0x1c   :  { %7893 = vmatmul.mubr.msk.f32.gmra.mrb[8].mxu0 %vm39_vm0, %v85_v32  ;;  %v63_v31 = vld [vmem:[%s14096_s0 + $0xb0] sm:$0xff]  ;;  %v64_v32 = vld [vmem:[%s14096_s0 + $0xb8] sm:$0xff]  ;;  %v836_v61 = vld [vmem:[%s14096_s0 + $0x42] sm:$0xff] }
  0x1d   :  { %312 = vmatprep.mubr.f32.mxu0 %v9588_v3  ;;  %v835_v60 = vld [vmem:[%s14096_s0 + $0x3a] sm:$0xff]  ;;  %v837_v62 = vld [vmem:[%s14096_s0 + $0x4a] sm:$0xff]  ;;  %v838_v63 = vld [vmem:[%s14096_s0 + $0x52] sm:$0xff] }
  0x1e   :  { %v842_v4 = vld [vmem:[%s14096_s0 + $0x72] sm:$0xff]  ;;  %v843_v5 = vld [vmem:[%s14096_s0 + $0x7a] sm:$0xff]  ;;  %v844_v6 = vld [vmem:[%s14096_s0 + $0x82] sm:$0xff] }
  0x1f   :  { %v845_v7 = vld [vmem:[%s14096_s0 + $0x8a] sm:$0xff] }
  0x20   :  { %7894 = vmatmul.mubr.msk.f32.gmra.mrb[10].mxu0 %vm39_vm0, %v86_v33  ;;  %v65_v33 = vld [vmem:[%s14096_s0 + $0xc0] sm:$0xff] }
  0x21   :  { %318 = vmatprep.mubr.f32.mxu0 %v9588_v3 }
  0x24   :  { %7895 = vmatmul.mubr.msk.f32.gmra.mrb[12].mxu0 %vm39_vm0, %v87_v34  ;;  %v66_v34 = vld [vmem:[%s14096_s0 + $0xc8] sm:$0xff] }
  0x25   :  { %324 = vmatprep.mubr.f32.mxu0 %v9588_v3 }
  0x28   :  { %7896 = vmatmul.mubr.msk.f32.gmra.mrb[14].mxu0 %vm39_vm0, %v88_v35  ;;  %v67_v35 = vld [vmem:[%s14096_s0 + $0xd0] sm:$0xff] }
  0x29   :  { %330 = vmatprep.mubr.f32.mxu0 %v9588_v3 }
  0x2c   :  { %7897 = vmatmul.mubr.msk.f32.gmra.mrb[16].mxu0 %vm39_vm0, %v89_v36  ;;  %v68_v36 = vld [vmem:[%s14096_s0 + $0xd8] sm:$0xff] }
  0x2d   :  { %336 = vmatprep.mubr.f32.mxu0 %v9588_v3 }
  0x30   :  { %7898 = vmatmul.mubr.msk.f32.gmra.mrb[18].mxu0 %vm39_vm0, %v90_v37  ;;  %v69_v37 = vld [vmem:[%s14096_s0 + $0xe0] sm:$0xff] }
  0x31   :  { %342 = vmatprep.mubr.f32.mxu0 %v9588_v3 }
  0x34   :  { %7899 = vmatmul.mubr.msk.f32.gmra.mrb[20].mxu0 %vm39_vm0, %v91_v38  ;;  %v70_v38 = vld [vmem:[%s14096_s0 + $0xe8] sm:$0xff] }
  0x35   :  { %348 = vmatprep.mubr.f32.mxu0 %v9588_v3 }
  0x38   :  { %7900 = vmatmul.mubr.msk.f32.gmra.mrb[22].mxu0 %vm39_vm0, %v92_v39  ;;  %v71_v39 = vld [vmem:[%s14096_s0 + $0xf0] sm:$0xff] }
  0x39   :  { %354 = vmatprep.mubr.f32.mxu0 %v9588_v3 }
  0x3c   :  { %7901 = vmatmul.mubr.msk.f32.gmra.mrb[24].mxu0 %vm39_vm0, %v93_v40  ;;  %v72_v40 = vld [vmem:[%s14096_s0 + $0xf8] sm:$0xff] }
  0x3d   :  { %360 = vmatprep.mubr.f32.mxu0 %v9588_v3 }
  0x40   :  { %7902 = vmatmul.mubr.msk.f32.gmra.mrb[26].mxu0 %vm39_vm0, %v94_v41  ;;  %v7993_v41 = vld [vmem:[%s14095_s1 + $0xc0] sm:$0xff] }
  0x41   :  { %366 = vmatprep.mubr.f32.mxu0 %v9588_v3 }
  0x44   :  { %7903 = vmatmul.mubr.msk.f32.gmra.mrb[28].mxu0 %vm39_vm0, %v95_v42  ;;  %v7995_v42 = vld [vmem:[%s14095_s1 + $0xd0] sm:$0xff] }
  0x45   :  { %372 = vmatprep.mubr.f32.mxu0 %v9588_v3 }
  0x48   :  { %7904 = vmatmul.mubr.msk.f32.gmra.mrb[30].mxu0 %vm39_vm0, %v96_v43  ;;  %v7998_v43 = vld [vmem:[%s14095_s1 + $0xe8] sm:$0xff] }
  0x49   :  { %378 = vmatprep.mubr.f32.mxu0 %v9588_v3 }
  0x4c   :  { %7905 = vmatmul.mubr.msk.f32.gmra.mrb[32].mxu0 %vm39_vm0, %v97_v44  ;;  %v8000_v44 = vld [vmem:[%s14095_s1 + $0xf8] sm:$0xff] }
  0x4d   :  { %384 = vmatprep.mubr.f32.mxu0 %v9588_v3 }
  0x50   :  { %7906 = vmatmul.mubr.msk.f32.gmra.mrb[34].mxu0 %vm39_vm0, %v98_v45  ;;  %v828_v45 = vld [vmem:[%s14096_s0 + $0x2] sm:$0xff] }
  0x51   :  { %390 = vmatprep.mubr.f32.mxu0 %v9588_v3 }
  0x54   :  { %7907 = vmatmul.mubr.msk.f32.gmra.mrb[36].mxu0 %vm39_vm0, %v99_v46  ;;  %v8608_v46 = vpack.c.bf16 %v7995_v42, %v7993_v41  ;;  %v1296_v41 = vld [vmem:[%s14096_s0 + $0x53] sm:$0xff]  ;;  %v1297_v42 = vld [vmem:[%s14096_s0 + $0x5b] sm:$0xff] }
  0x55   :  { %396 = vmatprep.mubr.f32.mxu0 %v9588_v3 }
  0x58   :  { %7908 = vmatmul.mubr.msk.f32.gmra.mrb[38].mxu0 %vm39_vm0, %v100_v47  ;;  %v8610_v47 = vpack.c.bf16 %v8000_v44, %v7998_v43  ;;  %v1298_v43 = vld [vmem:[%s14096_s0 + $0x63] sm:$0xff]  ;;  %v1299_v44 = vld [vmem:[%s14096_s0 + $0x6b] sm:$0xff] }
  0x59   :  { %402 = vmatprep.mubr.f32.mxu0 %v9588_v3 }
  0x5c   :  { %7909 = vmatmul.mubr.msk.f32.gmra.mrb[40].mxu0 %vm39_vm0, %v101_v48  ;;  %v7997_v48 = vld [vmem:[%s14095_s1 + $0xe0] sm:$0xff] }
  0x5d   :  { %408 = vmatprep.mubr.f32.mxu0 %v9588_v3 }
  0x60   :  { %7910 = vmatmul.mubr.msk.f32.gmra.mrb[42].mxu0 %vm39_vm0, %v102_v49  ;;  %v7999_v49 = vld [vmem:[%s14095_s1 + $0xf0] sm:$0xff] }
  0x61   :  { %414 = vmatprep.mubr.f32.mxu0 %v9588_v3 }
  0x64   :  { %7911 = vmatmul.mubr.msk.f32.gmra.mrb[44].mxu0 %vm39_vm0, %v103_v50  ;;  %v8034_v50 = vld [vmem:[%s14095_s1 + $0x108] sm:$0xff] }
  0x65   :  { %420 = vmatprep.mubr.f32.mxu0 %v9588_v3 }
  0x68   :  { %7912 = vmatmul.mubr.msk.f32.gmra.mrb[46].mxu0 %vm39_vm0, %v104_v51  ;;  %v8036_v51 = vld [vmem:[%s14095_s1 + $0x118] sm:$0xff] }
  0x69   :  { %426 = vmatprep.mubr.f32.mxu0 %v9588_v3 }
  0x6c   :  { %7913 = vmatmul.mubr.msk.f32.gmra.mrb[48].mxu0 %vm39_vm0, %v105_v52  ;;  %v829_v52 = vld [vmem:[%s14096_s0 + $0xa] sm:$0xff] }
  0x6d   :  { %432 = vmatprep.mubr.f32.mxu0 %v9588_v3 }
  0x70   :  { %7914 = vmatmul.mubr.msk.f32.gmra.mrb[50].mxu0 %vm39_vm0, %v106_v53  ;;  %v8612_v53 = vpack.c.bf16 %v7999_v49, %v7997_v48  ;;  %v1303_v48 = vld [vmem:[%s14096_s0 + $0x8b] sm:$0xff]  ;;  %v1304_v49 = vld [vmem:[%s14096_s0 + $0x93] sm:$0xff] }
  0x71   :  { %438 = vmatprep.mubr.f32.mxu0 %v9588_v3 }
  0x74   :  { %7915 = vmatmul.mubr.msk.f32.gmra.mrb[52].mxu0 %vm39_vm0, %v107_v54  ;;  %v8614_v54 = vpack.c.bf16 %v8036_v51, %v8034_v50  ;;  %v1305_v50 = vld [vmem:[%s14096_s0 + $0x9b] sm:$0xff]  ;;  %v1306_v51 = vld [vmem:[%s14096_s0 + $0xa3] sm:$0xff] }
  0x75   :  { %444 = vmatprep.mubr.f32.mxu0 %v9588_v3 }
  0x78   :  { %7916 = vmatmul.mubr.msk.f32.gmra.mrb[54].mxu0 %vm39_vm0, %v108_v55  ;;  %v830_v55 = vld [vmem:[%s14096_s0 + $0x12] sm:$0xff] }
  0x79   :  { %450 = vmatprep.mubr.f32.mxu0 %v9588_v3 }
  0x7c   :  { %7917 = vmatmul.mubr.msk.f32.gmra.mrb[56].mxu0 %vm39_vm0, %v109_v56  ;;  %v831_v56 = vld [vmem:[%s14096_s0 + $0x1a] sm:$0xff] }
  0x7d   :  { %456 = vmatprep.mubr.f32.mxu0 %v9588_v3 }
  0x80   :  { %7918 = vmatmul.mubr.msk.f32.gmra.mrb[58].mxu0 %vm39_vm0, %v110_v57  ;;  %v832_v57 = vld [vmem:[%s14096_s0 + $0x22] sm:$0xff] }
  0x81   :  { %462 = vmatprep.mubr.f32.mxu0 %v9588_v3 }
  0x84   :  { %7919 = vmatmul.mubr.msk.f32.gmra.mrb[60].mxu0 %vm39_vm0, %v111_v58  ;;  %v833_v58 = vld [vmem:[%s14096_s0 + $0x2a] sm:$0xff] }
  0x85   :  { %468 = vmatprep.mubr.f32.mxu0 %v9588_v3 }
  0x88   :  { %7920 = vmatmul.mubr.msk.f32.gmra.mrb[62].mxu0 %vm39_vm0, %v112_v59  ;;  %v834_v59 = vld [vmem:[%s14096_s0 + $0x32] sm:$0xff] }
  0x89   :  { %635 = vmatprep.mubr.f32.mxu0 %v9588_v3 }
  0x8c   :  { %7921 = vmatmul.mubr.msk.f32.vlgmr.msra.gmra.mrb[0].mxu0 %vm39_vm0, %v41_v0  ;;  %v839_v0 = vld [vmem:[%s14096_s0 + $0x5a] sm:$0xff] }
  0x8d   :  { %8601 = vmatpush1.bf16.msra.mxu0 %v8600_v1  ;;  %641 = vmatprep.mubr.f32.mxu0 %v9588_v3  ;;  %v840_v1 = vld [vmem:[%s14096_s0 + $0x62] sm:$0xff] }
  0x8e   :  { %8603 = vmatprep.subr.bf16.mxu0 %v8602_v2  ;;  %v841_v2 = vld [vmem:[%s14096_s0 + $0x6a] sm:$0xff] }
  0x90   :  { %7922 = vmatmul.mubr.msk.f32.gmra.mrb[2].mxu0 %vm39_vm0, %v42_v8  ;;  %v846_v8 = vld [vmem:[%s14096_s0 + $0x92] sm:$0xff] }
  0x91   :  { %647 = vmatprep.mubr.f32.mxu0 %v9588_v3  ;;  %8605 = vmatpush1.bf16.msra.mxu0 %v8604_v9  ;;  %v847_v9 = vld [vmem:[%s14096_s0 + $0x9a] sm:$0xff] }
  0x92   :  { %8607 = vmatprep.subr.bf16.mxu0 %v8606_v10  ;;  %v848_v10 = vld [vmem:[%s14096_s0 + $0xa2] sm:$0xff] }
  0x94   :  { %7923 = vmatmul.mubr.msk.f32.gmra.mrb[4].mxu0 %vm39_vm0, %v43_v11  ;;  %v849_v11 = vld [vmem:[%s14096_s0 + $0xaa] sm:$0xff] }
  0x95   :  { %653 = vmatprep.mubr.f32.mxu0 %v9588_v3 }
  0x98   :  { %7924 = vmatmul.mubr.msk.f32.gmra.mrb[6].mxu0 %vm39_vm0, %v44_v12  ;;  %v850_v12 = vld [vmem:[%s14096_s0 + $0xb2] sm:$0xff] }
  0x99   :  { %659 = vmatprep.mubr.f32.mxu0 %v9588_v3 }
  0x9c   :  { %7925 = vmatmul.mubr.msk.f32.gmra.mrb[8].mxu0 %vm39_vm0, %v45_v13  ;;  %v851_v13 = vld [vmem:[%s14096_s0 + $0xba] sm:$0xff] }
  0x9d   :  { %665 = vmatprep.mubr.f32.mxu0 %v9588_v3 }
  0xa0   :  { %7926 = vmatmul.mubr.msk.f32.gmra.mrb[10].mxu0 %vm39_vm0, %v46_v14  ;;  %v852_v14 = vld [vmem:[%s14096_s0 + $0xc2] sm:$0xff] }
  0xa1   :  { %671 = vmatprep.mubr.f32.mxu0 %v9588_v3 }
  0xa4   :  { %7927 = vmatmul.mubr.msk.f32.gmra.mrb[12].mxu0 %vm39_vm0, %v47_v15  ;;  %v853_v15 = vld [vmem:[%s14096_s0 + $0xca] sm:$0xff] }
  0xa5   :  { %677 = vmatprep.mubr.f32.mxu0 %v9588_v3 }
  0xa8   :  { %7928 = vmatmul.mubr.msk.f32.gmra.mrb[14].mxu0 %vm39_vm0, %v48_v16  ;;  %v854_v16 = vld [vmem:[%s14096_s0 + $0xd2] sm:$0xff] }
  0xa9   :  { %683 = vmatprep.mubr.f32.mxu0 %v9588_v3 }
  0xac   :  { %7929 = vmatmul.mubr.msk.f32.gmra.mrb[16].mxu0 %vm39_vm0, %v49_v17  ;;  %v855_v17 = vld [vmem:[%s14096_s0 + $0xda] sm:$0xff] }
  0xad   :  { %689 = vmatprep.mubr.f32.mxu0 %v9588_v3 }
  0xb0   :  { %7930 = vmatmul.mubr.msk.f32.gmra.mrb[18].mxu0 %vm39_vm0, %v50_v18  ;;  %v856_v18 = vld [vmem:[%s14096_s0 + $0xe2] sm:$0xff] }
  0xb1   :  { %695 = vmatprep.mubr.f32.mxu0 %v9588_v3 }
  0xb4   :  { %7931 = vmatmul.mubr.msk.f32.gmra.mrb[20].mxu0 %vm39_vm0, %v51_v19  ;;  %v857_v19 = vld [vmem:[%s14096_s0 + $0xea] sm:$0xff] }
  0xb5   :  { %701 = vmatprep.mubr.f32.mxu0 %v9588_v3 }
  0xb8   :  { %7932 = vmatmul.mubr.msk.f32.gmra.mrb[22].mxu0 %vm39_vm0, %v52_v20  ;;  %v858_v20 = vld [vmem:[%s14096_s0 + $0xf2] sm:$0xff] }
  0xb9   :  { %707 = vmatprep.mubr.f32.mxu0 %v9588_v3 }
  0xbc   :  { %7933 = vmatmul.mubr.msk.f32.gmra.mrb[24].mxu0 %vm39_vm0, %v53_v21  ;;  %v859_v21 = vld [vmem:[%s14096_s0 + $0xfa] sm:$0xff] }
  0xbd   :  { %713 = vmatprep.mubr.f32.mxu0 %v9588_v3 }
  0xc0   :  { %7934 = vmatmul.mubr.msk.f32.gmra.mrb[26].mxu0 %vm39_vm0, %v54_v22  ;;  %v8033_v22 = vld [vmem:[%s14095_s1 + $0x100] sm:$0xff] }
  0xc1   :  { %719 = vmatprep.mubr.f32.mxu0 %v9588_v3 }
  0xc4   :  { %7935 = vmatmul.mubr.msk.f32.gmra.mrb[28].mxu0 %vm39_vm0, %v55_v23  ;;  %v8035_v23 = vld [vmem:[%s14095_s1 + $0x110] sm:$0xff] }
  0xc5   :  { %725 = vmatprep.mubr.f32.mxu0 %v9588_v3 }
  0xc8   :  { %7936 = vmatmul.mubr.msk.f32.gmra.mrb[30].mxu0 %vm39_vm0, %v56_v24  ;;  %v8038_v24 = vld [vmem:[%s14095_s1 + $0x128] sm:$0xff] }
  0xc9   :  { %731 = vmatprep.mubr.f32.mxu0 %v9588_v3 }
  0xcc   :  { %7937 = vmatmul.mubr.msk.f32.gmra.mrb[32].mxu0 %vm39_vm0, %v57_v25  ;;  %v8040_v25 = vld [vmem:[%s14095_s1 + $0x138] sm:$0xff] }
  0xcd   :  { %737 = vmatprep.mubr.f32.mxu0 %v9588_v3 }
  0xd0   :  { %7938 = vmatmul.mubr.msk.f32.gmra.mrb[34].mxu0 %vm39_vm0, %v58_v26  ;;  %v1286_v26 = vld [vmem:[%s14096_s0 + $0x3] sm:$0xff] }
  0xd1   :  { %743 = vmatprep.mubr.f32.mxu0 %v9588_v3 }
  0xd4   :  { %7939 = vmatmul.mubr.msk.f32.gmra.mrb[36].mxu0 %vm39_vm0, %v59_v27  ;;  %v8616_v27 = vpack.c.bf16 %v8035_v23, %v8033_v22  ;;  %v1766_v22 = vld [vmem:[%s14096_s0 + $0xb4] sm:$0xff]  ;;  %v1767_v23 = vld [vmem:[%s14096_s0 + $0xbc] sm:$0xff] }
  0xd5   :  { %749 = vmatprep.mubr.f32.mxu0 %v9588_v3 }
  0xd8   :  { %7940 = vmatmul.mubr.msk.f32.gmra.mrb[38].mxu0 %vm39_vm0, %v60_v28  ;;  %v8618_v28 = vpack.c.bf16 %v8040_v25, %v8038_v24  ;;  %v1768_v24 = vld [vmem:[%s14096_s0 + $0xc4] sm:$0xff]  ;;  %v1769_v25 = vld [vmem:[%s14096_s0 + $0xcc] sm:$0xff] }
  0xd9   :  { %755 = vmatprep.mubr.f32.mxu0 %v9588_v3 }
  0xdc   :  { %7941 = vmatmul.mubr.msk.f32.gmra.mrb[40].mxu0 %vm39_vm0, %v61_v29  ;;  %v8037_v29 = vld [vmem:[%s14095_s1 + $0x120] sm:$0xff] }
  0xdd   :  { %761 = vmatprep.mubr.f32.mxu0 %v9588_v3 }
  0xe0   :  { %7942 = vmatmul.mubr.msk.f32.gmra.mrb[42].mxu0 %vm39_vm0, %v62_v30  ;;  %v8039_v30 = vld [vmem:[%s14095_s1 + $0x130] sm:$0xff] }
  0xe1   :  { %767 = vmatprep.mubr.f32.mxu0 %v9588_v3 }
  0xe4   :  { %7943 = vmatmul.mubr.msk.f32.gmra.mrb[44].mxu0 %vm39_vm0, %v63_v31  ;;  %v1287_v31 = vld [vmem:[%s14096_s0 + $0xb] sm:$0xff] }
  0xe5   :  { %773 = vmatprep.mubr.f32.mxu0 %v9588_v3 }
  0xe8   :  { %7944 = vmatmul.mubr.msk.f32.gmra.mrb[46].mxu0 %vm39_vm0, %v64_v32  ;;  %v8620_v32 = vpack.c.bf16 %v8039_v30, %v8037_v29  ;;  %v1773_v29 = vld [vmem:[%s14096_s0 + $0xec] sm:$0xff]  ;;  %v1774_v30 = vld [vmem:[%s14096_s0 + $0xf4] sm:$0xff] }
  0xe9   :  { %779 = vmatprep.mubr.f32.mxu0 %v9588_v3 }
  0xec   :  { %7945 = vmatmul.mubr.msk.f32.gmra.mrb[48].mxu0 %vm39_vm0, %v65_v33  ;;  %v1288_v33 = vld [vmem:[%s14096_s0 + $0x13] sm:$0xff] }
  0xed   :  { %785 = vmatprep.mubr.f32.mxu0 %v9588_v3 }
  0xf0   :  { %7946 = vmatmul.mubr.msk.f32.gmra.mrb[50].mxu0 %vm39_vm0, %v66_v34  ;;  %v1289_v34 = vld [vmem:[%s14096_s0 + $0x1b] sm:$0xff] }
  0xf1   :  { %791 = vmatprep.mubr.f32.mxu0 %v9588_v3 }
  0xf4   :  { %7947 = vmatmul.mubr.msk.f32.gmra.mrb[52].mxu0 %vm39_vm0, %v67_v35  ;;  %v1290_v35 = vld [vmem:[%s14096_s0 + $0x23] sm:$0xff] }
  0xf5   :  { %797 = vmatprep.mubr.f32.mxu0 %v9588_v3 }
  0xf8   :  { %7948 = vmatmul.mubr.msk.f32.gmra.mrb[54].mxu0 %vm39_vm0, %v68_v36  ;;  %v1291_v36 = vld [vmem:[%s14096_s0 + $0x2b] sm:$0xff] }
  0xf9   :  { %803 = vmatprep.mubr.f32.mxu0 %v9588_v3 }
  0xfc   :  { %7949 = vmatmul.mubr.msk.f32.gmra.mrb[56].mxu0 %vm39_vm0, %v69_v37  ;;  %v1292_v37 = vld [vmem:[%s14096_s0 + $0x33] sm:$0xff] }
  0xfd   :  { %809 = vmatprep.mubr.f32.mxu0 %v9588_v3 }
 0x100   :  { %7950 = vmatmul.mubr.msk.f32.gmra.mrb[58].mxu0 %vm39_vm0, %v70_v38  ;;  %v1293_v38 = vld [vmem:[%s14096_s0 + $0x3b] sm:$0xff] }
 0x101   :  { %815 = vmatprep.mubr.f32.mxu0 %v9588_v3 }
 0x104   :  { %7951 = vmatmul.mubr.msk.f32.gmra.mrb[60].mxu0 %vm39_vm0, %v71_v39  ;;  %v1294_v39 = vld [vmem:[%s14096_s0 + $0x43] sm:$0xff] }
 0x105   :  { %821 = vmatprep.mubr.f32.mxu0 %v9588_v3 }
 0x108   :  { %7952 = vmatmul.mubr.msk.f32.gmra.mrb[62].mxu0 %vm39_vm0, %v72_v40  ;;  %v1295_v40 = vld [vmem:[%s14096_s0 + $0x4b] sm:$0xff] }
 0x109   :  { %1029 = vmatprep.mubr.f32.mxu0 %v9588_v3 }
 0x10c   :  { %7961 = vmatmul.mubr.msk.f32.vlgmr.msra.gmra.mrb[0].mxu0 %vm39_vm0, %v828_v45  ;;  %v1300_v45 = vld [vmem:[%s14096_s0 + $0x73] sm:$0xff] }
 0x10d   :  { %8609 = vmatpush1.bf16.msra.mxu0 %v8608_v46  ;;  %1035 = vmatprep.mubr.f32.mxu0 %v9588_v3  ;;  %v1301_v46 = vld [vmem:[%s14096_s0 + $0x7b] sm:$0xff] }
 0x10e   :  { %8611 = vmatprep.subr.bf16.mxu0 %v8610_v47  ;;  %v1302_v47 = vld [vmem:[%s14096_s0 + $0x83] sm:$0xff] }
 0x110   :  { %7962 = vmatmul.mubr.msk.f32.gmra.mrb[2].mxu0 %vm39_vm0, %v829_v52  ;;  %v1307_v52 = vld [vmem:[%s14096_s0 + $0xab] sm:$0xff] }
 0x111   :  { %1041 = vmatprep.mubr.f32.mxu0 %v9588_v3  ;;  %8613 = vmatpush1.bf16.msra.mxu0 %v8612_v53  ;;  %v1308_v53 = vld [vmem:[%s14096_s0 + $0xb3] sm:$0xff] }
 0x112   :  { %8615 = vmatprep.subr.bf16.mxu0 %v8614_v54  ;;  %v1309_v54 = vld [vmem:[%s14096_s0 + $0xbb] sm:$0xff] }
 0x114   :  { %7963 = vmatmul.mubr.msk.f32.gmra.mrb[4].mxu0 %vm39_vm0, %v830_v55  ;;  %v1310_v55 = vld [vmem:[%s14096_s0 + $0xc3] sm:$0xff] }
 0x115   :  { %1047 = vmatprep.mubr.f32.mxu0 %v9588_v3 }
 0x118   :  { %7964 = vmatmul.mubr.msk.f32.gmra.mrb[6].mxu0 %vm39_vm0, %v831_v56  ;;  %v1311_v56 = vld [vmem:[%s14096_s0 + $0xcb] sm:$0xff] }
 0x119   :  { %1053 = vmatprep.mubr.f32.mxu0 %v9588_v3 }
 0x11c   :  { %7965 = vmatmul.mubr.msk.f32.gmra.mrb[8].mxu0 %vm39_vm0, %v832_v57  ;;  %v1312_v57 = vld [vmem:[%s14096_s0 + $0xd3] sm:$0xff] }
 0x11d   :  { %1059 = vmatprep.mubr.f32.mxu0 %v9588_v3 }
 0x120   :  { %7966 = vmatmul.mubr.msk.f32.gmra.mrb[10].mxu0 %vm39_vm0, %v833_v58  ;;  %v1313_v58 = vld [vmem:[%s14096_s0 + $0xdb] sm:$0xff] }
 0x121   :  { %1065 = vmatprep.mubr.f32.mxu0 %v9588_v3 }
 0x124   :  { %7967 = vmatmul.mubr.msk.f32.gmra.mrb[12].mxu0 %vm39_vm0, %v834_v59  ;;  %v1314_v59 = vld [vmem:[%s14096_s0 + $0xe3] sm:$0xff] }
 0x125   :  { %1071 = vmatprep.mubr.f32.mxu0 %v9588_v3 }
 0x128   :  { %7968 = vmatmul.mubr.msk.f32.gmra.mrb[14].mxu0 %vm39_vm0, %v835_v60  ;;  %v1315_v60 = vld [vmem:[%s14096_s0 + $0xeb] sm:$0xff] }
 0x129   :  { %1077 = vmatprep.mubr.f32.mxu0 %v9588_v3 }
 0x12c   :  { %7969 = vmatmul.mubr.msk.f32.gmra.mrb[16].mxu0 %vm39_vm0, %v836_v61  ;;  %v1316_v61 = vld [vmem:[%s14096_s0 + $0xf3] sm:$0xff] }
 0x12d   :  { %1083 = vmatprep.mubr.f32.mxu0 %v9588_v3 }
 0x130   :  { %7970 = vmatmul.mubr.msk.f32.gmra.mrb[18].mxu0 %vm39_vm0, %v837_v62  ;;  %v1317_v62 = vld [vmem:[%s14096_s0 + $0xfb] sm:$0xff] }
 0x131   :  { %1089 = vmatprep.mubr.f32.mxu0 %v9588_v3 }
 0x134   :  { %7971 = vmatmul.mubr.msk.f32.gmra.mrb[20].mxu0 %vm39_vm0, %v838_v63  ;;  %v1744_v63 = vld [vmem:[%s14096_s0 + $0x4] sm:$0xff] }
 0x135   :  { %1095 = vmatprep.mubr.f32.mxu0 %v9588_v3 }
 0x138   :  { %7972 = vmatmul.mubr.msk.f32.gmra.mrb[22].mxu0 %vm39_vm0, %v839_v0  ;;  %v1745_v0 = vld [vmem:[%s14096_s0 + $0xc] sm:$0xff] }
 0x139   :  { %1101 = vmatprep.mubr.f32.mxu0 %v9588_v3 }
 0x13c   :  { %7973 = vmatmul.mubr.msk.f32.gmra.mrb[24].mxu0 %vm39_vm0, %v840_v1  ;;  %v1746_v1 = vld [vmem:[%s14096_s0 + $0x14] sm:$0xff] }
 0x13d   :  { %1107 = vmatprep.mubr.f32.mxu0 %v9588_v3 }
 0x140   :  { %7974 = vmatmul.mubr.msk.f32.gmra.mrb[26].mxu0 %vm39_vm0, %v841_v2  ;;  %v1747_v2 = vld [vmem:[%s14096_s0 + $0x1c] sm:$0xff] }
 0x141   :  { %1113 = vmatprep.mubr.f32.mxu0 %v9588_v3 }
 0x144   :  { %7975 = vmatmul.mubr.msk.f32.gmra.mrb[28].mxu0 %vm39_vm0, %v842_v4  ;;  %v1748_v4 = vld [vmem:[%s14096_s0 + $0x24] sm:$0xff] }
 0x145   :  { %1119 = vmatprep.mubr.f32.mxu0 %v9588_v3 }
 0x148   :  { %7976 = vmatmul.mubr.msk.f32.gmra.mrb[30].mxu0 %vm39_vm0, %v843_v5  ;;  %v1749_v5 = vld [vmem:[%s14096_s0 + $0x2c] sm:$0xff] }
 0x149   :  { %1125 = vmatprep.mubr.f32.mxu0 %v9588_v3 }
 0x14c   :  { %7977 = vmatmul.mubr.msk.f32.gmra.mrb[32].mxu0 %vm39_vm0, %v844_v6  ;;  %v1750_v6 = vld [vmem:[%s14096_s0 + $0x34] sm:$0xff] }
 0x14d   :  { %1131 = vmatprep.mubr.f32.mxu0 %v9588_v3 }
 0x150   :  { %7978 = vmatmul.mubr.msk.f32.gmra.mrb[34].mxu0 %vm39_vm0, %v845_v7  ;;  %v1751_v7 = vld [vmem:[%s14096_s0 + $0x3c] sm:$0xff] }
 0x151   :  { %1137 = vmatprep.mubr.f32.mxu0 %v9588_v3 }
 0x154   :  { %7979 = vmatmul.mubr.msk.f32.gmra.mrb[36].mxu0 %vm39_vm0, %v846_v8  ;;  %v1752_v8 = vld [vmem:[%s14096_s0 + $0x44] sm:$0xff] }
 0x155   :  { %1143 = vmatprep.mubr.f32.mxu0 %v9588_v3 }
 0x158   :  { %7980 = vmatmul.mubr.msk.f32.gmra.mrb[38].mxu0 %vm39_vm0, %v847_v9  ;;  %v1753_v9 = vld [vmem:[%s14096_s0 + $0x4c] sm:$0xff] }
 0x159   :  { %1149 = vmatprep.mubr.f32.mxu0 %v9588_v3 }
 0x15c   :  { %7981 = vmatmul.mubr.msk.f32.gmra.mrb[40].mxu0 %vm39_vm0, %v848_v10  ;;  %v1754_v10 = vld [vmem:[%s14096_s0 + $0x54] sm:$0xff] }
 0x15d   :  { %1155 = vmatprep.mubr.f32.mxu0 %v9588_v3 }
 0x160   :  { %7982 = vmatmul.mubr.msk.f32.gmra.mrb[42].mxu0 %vm39_vm0, %v849_v11  ;;  %v1755_v11 = vld [vmem:[%s14096_s0 + $0x5c] sm:$0xff] }
 0x161   :  { %1161 = vmatprep.mubr.f32.mxu0 %v9588_v3 }
 0x164   :  { %7983 = vmatmul.mubr.msk.f32.gmra.mrb[44].mxu0 %vm39_vm0, %v850_v12  ;;  %v1756_v12 = vld [vmem:[%s14096_s0 + $0x64] sm:$0xff] }
 0x165   :  { %1167 = vmatprep.mubr.f32.mxu0 %v9588_v3 }
 0x168   :  { %7984 = vmatmul.mubr.msk.f32.gmra.mrb[46].mxu0 %vm39_vm0, %v851_v13  ;;  %v1757_v13 = vld [vmem:[%s14096_s0 + $0x6c] sm:$0xff] }
 0x169   :  { %1173 = vmatprep.mubr.f32.mxu0 %v9588_v3 }
 0x16c   :  { %7985 = vmatmul.mubr.msk.f32.gmra.mrb[48].mxu0 %vm39_vm0, %v852_v14  ;;  %v1758_v14 = vld [vmem:[%s14096_s0 + $0x74] sm:$0xff] }
 0x16d   :  { %1179 = vmatprep.mubr.f32.mxu0 %v9588_v3 }
 0x170   :  { %7986 = vmatmul.mubr.msk.f32.gmra.mrb[50].mxu0 %vm39_vm0, %v853_v15  ;;  %v1759_v15 = vld [vmem:[%s14096_s0 + $0x7c] sm:$0xff] }
 0x171   :  { %1185 = vmatprep.mubr.f32.mxu0 %v9588_v3 }
 0x174   :  { %7987 = vmatmul.mubr.msk.f32.gmra.mrb[52].mxu0 %vm39_vm0, %v854_v16  ;;  %v10488_v16 = vld [vmem:[#allocation2 + $0x200] sm:$0xff] }
 0x175   :  { %1191 = vmatprep.mubr.f32.mxu0 %v9588_v3  ;;  %34 = vst.msk [vmem:[#allocation2 + $0x208] sm:$0xff] %vm33_vm1, %v10488_v16 }
 0x176   :  { %37 = vst.msk [vmem:[#allocation3 + $0x208] sm:$0xff] %vm36_vm2, %v10488_v16 }
 0x178   :  { %7988 = vmatmul.mubr.msk.f32.gmra.mrb[54].mxu0 %vm39_vm0, %v855_v17  ;;  %v1760_v17 = vld [vmem:[%s14096_s0 + $0x84] sm:$0xff] }
 0x179   :  { %1197 = vmatprep.mubr.f32.mxu0 %v9588_v3 }
 0x17c   :  { %7989 = vmatmul.mubr.msk.f32.gmra.mrb[56].mxu0 %vm39_vm0, %v856_v18  ;;  %v1762_v18 = vld [vmem:[%s14096_s0 + $0x94] sm:$0xff] }
 0x17d   :  { %1203 = vmatprep.mubr.f32.mxu0 %v9588_v3 }
 0x180   :  { %7990 = vmatmul.mubr.msk.f32.gmra.mrb[58].mxu0 %vm39_vm0, %v857_v19  ;;  %v1763_v19 = vld [vmem:[%s14096_s0 + $0x9c] sm:$0xff] }
 0x181   :  { %1209 = vmatprep.mubr.f32.mxu0 %v9588_v3 }
 0x184   :  { %7991 = vmatmul.mubr.msk.f32.gmra.mrb[60].mxu0 %vm39_vm0, %v858_v20  ;;  %v1764_v20 = vld [vmem:[%s14096_s0 + $0xa4] sm:$0xff] }
 0x185   :  { %1215 = vmatprep.mubr.f32.mxu0 %v9588_v3 }
 0x188   :  { %7992 = vmatmul.mubr.msk.f32.gmra.mrb[62].mxu0 %vm39_vm0, %v859_v21  ;;  %v1765_v21 = vld [vmem:[%s14096_s0 + $0xac] sm:$0xff] }
 0x189   :  { %1487 = vmatprep.mubr.f32.mxu0 %v9588_v3 }
 0x18c   :  { %8001 = vmatmul.mubr.msk.f32.vlgmr.msra.gmra.mrb[0].mxu0 %vm39_vm0, %v1286_v26  ;;  %v1770_v26 = vld [vmem:[%s14096_s0 + $0xd4] sm:$0xff] }
 0x18d   :  { %8617 = vmatpush1.bf16.msra.mxu0 %v8616_v27  ;;  %1493 = vmatprep.mubr.f32.mxu0 %v9588_v3  ;;  %v1771_v27 = vld [vmem:[%s14096_s0 + $0xdc] sm:$0xff] }
 0x18e   :  { %8619 = vmatprep.subr.bf16.mxu0 %v8618_v28  ;;  %v1772_v28 = vld [vmem:[%s14096_s0 + $0xe4] sm:$0xff] }
 0x190   :  { %8002 = vmatmul.mubr.msk.f32.gmra.mrb[2].mxu0 %vm39_vm0, %v1287_v31  ;;  %v1775_v31 = vld [vmem:[%s14096_s0 + $0xfc] sm:$0xff] }
 0x191   :  { %1499 = vmatprep.mubr.f32.mxu0 %v9588_v3  ;;  %8621 = vmatpush1.bf16.msra.mxu0 %v8620_v32  ;;  %v14105_v32 = vlaneseq }
 0x194   :  { %8003 = vmatmul.mubr.msk.f32.gmra.mrb[4].mxu0 %vm39_vm0, %v1288_v33  ;;  %v8075_v33 = vld [vmem:[%s14097_s3 + $0x158] sm:$0xff] }
 0x195   :  { %1505 = vmatprep.mubr.f32.mxu0 %v9588_v3 }
 0x198   :  { %8004 = vmatmul.mubr.msk.f32.gmra.mrb[6].mxu0 %vm39_vm0, %v1289_v34  ;;  %v8077_v34 = vld [vmem:[%s14097_s3 + $0x168] sm:$0xff] }
 0x199   :  { %1511 = vmatprep.mubr.f32.mxu0 %v9588_v3 }
 0x19c   :  { %8005 = vmatmul.mubr.msk.f32.gmra.mrb[8].mxu0 %vm39_vm0, %v1290_v35  ;;  %v8622_v35 = vpack.c.bf16 %v8077_v34, %v8075_v33  ;;  %v8099_v34 = vld [vmem:[%s14097_s3 + $0x218] sm:$0xff] }
 0x19d   :  { %1517 = vmatprep.mubr.f32.mxu0 %v9588_v3 }
 0x19e   :  { %8623 = vmatprep.subr.bf16.mxu1 %v8622_v35  ;;  %v8101_v35 = vld [vmem:[%s14097_s3 + $0x228] sm:$0xff] }
 0x1a0   :  { %8006 = vmatmul.mubr.msk.f32.gmra.mrb[10].mxu0 %vm39_vm0, %v1291_v36  ;;  %v8074_v36 = vld [vmem:[%s14097_s3 + $0x150] sm:$0xff] }
 0x1a1   :  { %1523 = vmatprep.mubr.f32.mxu0 %v9588_v3 }
 0x1a4   :  { %8007 = vmatmul.mubr.msk.f32.gmra.mrb[12].mxu0 %vm39_vm0, %v1292_v37  ;;  %v8076_v37 = vld [vmem:[%s14097_s3 + $0x160] sm:$0xff] }
 0x1a5   :  { %1529 = vmatprep.mubr.f32.mxu0 %v9588_v3 }
 0x1a8   :  { %8008 = vmatmul.mubr.msk.f32.gmra.mrb[14].mxu0 %vm39_vm0, %v1293_v38  ;;  %v8624_v38 = vpack.c.bf16 %v8076_v37, %v8074_v36 }
 0x1a9   :  { %1535 = vmatprep.mubr.f32.mxu0 %v9588_v3 }
 0x1aa   :  { %8625 = vmatpush1.bf16.msra.mxu1 %v8624_v38  ;;  %v8646_v38 = vpack.c.bf16 %v8101_v35, %v8099_v34  ;;  %v8113_v34 = vld [vmem:[%s14097_s3 + $0x288] sm:$0xff] }
 0x1ac   :  { %8009 = vmatmul.mubr.msk.f32.gmra.mrb[16].mxu0 %vm39_vm0, %v1294_v39  ;;  %v2205_v39 = vshrl.u32 %v14105_v32, 7 }
 0x1ad   :  { %1541 = vmatprep.mubr.f32.mxu0 %v9588_v3 }
 0x1b0   :  { %8010 = vmatmul.mubr.msk.f32.gmra.mrb[18].mxu0 %vm39_vm0, %v1295_v40  ;;  %v8079_v40 = vld [vmem:[%s14097_s3 + $0x178] sm:$0xff] }
 0x1b1   :  { %1547 = vmatprep.mubr.f32.mxu0 %v9588_v3 }
 0x1b4   :  { %8011 = vmatmul.mubr.msk.f32.gmra.mrb[20].mxu0 %vm39_vm0, %v1296_v41  ;;  %v8081_v41 = vld [vmem:[%s14097_s3 + $0x188] sm:$0xff] }
 0x1b5   :  { %1553 = vmatprep.mubr.f32.mxu0 %v9588_v3 }
 0x1b8   :  { %8012 = vmatmul.mubr.msk.f32.gmra.mrb[22].mxu0 %vm39_vm0, %v1297_v42  ;;  %v8626_v42 = vpack.c.bf16 %v8081_v41, %v8079_v40  ;;  %v8100_v40 = vld [vmem:[%s14097_s3 + $0x220] sm:$0xff] }
 0x1b9   :  { %1559 = vmatprep.mubr.f32.mxu0 %v9588_v3 }
 0x1ba   :  { %8627 = vmatprep.subr.bf16.mxu1 %v8626_v42 }
 0x1bc   :  { %8013 = vmatmul.mubr.msk.f32.gmra.mrb[24].mxu0 %vm39_vm0, %v1298_v43  ;;  %v8078_v43 = vld [vmem:[%s14097_s3 + $0x170] sm:$0xff] }
 0x1bd   :  { %1565 = vmatprep.mubr.f32.mxu0 %v9588_v3 }
 0x1c0   :  { %8014 = vmatmul.mubr.msk.f32.gmra.mrb[26].mxu0 %vm39_vm0, %v1299_v44  ;;  %v8080_v44 = vld [vmem:[%s14097_s3 + $0x180] sm:$0xff] }
 0x1c1   :  { %1571 = vmatprep.mubr.f32.mxu0 %v9588_v3 }
 0x1c4   :  { %8015 = vmatmul.mubr.msk.f32.gmra.mrb[28].mxu0 %vm39_vm0, %v1300_v45  ;;  %v8628_v45 = vpack.c.bf16 %v8080_v44, %v8078_v43 }
 0x1c5   :  { %1577 = vmatprep.mubr.f32.mxu0 %v9588_v3 }
 0x1c6   :  { %8629 = vmatpush1.bf16.msra.mxu1 %v8628_v45 }
 0x1c8   :  { %8016 = vmatmul.mubr.msk.f32.gmra.mrb[30].mxu0 %vm39_vm0, %v1301_v46  ;;  %v10597_v46 = vsub.s32 0, %v2205_v39 }
 0x1c9   :  { %1583 = vmatprep.mubr.f32.mxu0 %v9588_v3 }
 0x1ca   :  { %14185 = vst [vmem:[#allocation7_spill] sm:$0xff] %v10597_v46 }
 0x1cc   :  { %8017 = vmatmul.mubr.msk.f32.gmra.mrb[32].mxu0 %vm39_vm0, %v1302_v47  ;;  %v8083_v47 = vld [vmem:[%s14097_s3 + $0x198] sm:$0xff] }
 0x1cd   :  { %1589 = vmatprep.mubr.f32.mxu0 %v9588_v3 }
 0x1d0   :  { %8018 = vmatmul.mubr.msk.f32.gmra.mrb[34].mxu0 %vm39_vm0, %v1303_v48  ;;  %v8085_v48 = vld [vmem:[%s14097_s3 + $0x1a8] sm:$0xff] }
 0x1d1   :  { %1595 = vmatprep.mubr.f32.mxu0 %v9588_v3 }
 0x1d4   :  { %8019 = vmatmul.mubr.msk.f32.gmra.mrb[36].mxu0 %vm39_vm0, %v1304_v49  ;;  %v2202_v49 = vld [vmem:[%s14098_s2] ss:$2 sm:$0x3] }
 0x1d5   :  { %1601 = vmatprep.mubr.f32.mxu0 %v9588_v3 }
 0x1d8   :  { %8020 = vmatmul.mubr.msk.f32.gmra.mrb[38].mxu0 %vm39_vm0, %v1305_v50  ;;  %v10608_v50 = vsub.s32 1, %v2205_v39  ;;  %v8098_v39 = vld [vmem:[%s14097_s3 + $0x210] sm:$0xff] }
 0x1d9   :  { %1607 = vmatprep.mubr.f32.mxu0 %v9588_v3  ;;  %v8648_v42 = vpack.c.bf16 %v8100_v40, %v8098_v39  ;;  %v8110_v40 = vld [vmem:[%s14097_s3 + $0x270] sm:$0xff] }
 0x1da   :  { %14186 = vst [vmem:[#allocation8_spill] sm:$0xff] %v10608_v50 }
 0x1dc   :  { %8021 = vmatmul.mubr.msk.f32.gmra.mrb[40].mxu0 %vm39_vm0, %v1306_v51  ;;  %v8630_v51 = vpack.c.bf16 %v8085_v48, %v8083_v47  ;;  %v8103_v48 = vld [vmem:[%s14097_s3 + $0x238] sm:$0xff] }
 0x1dd   :  { %1613 = vmatprep.mubr.f32.mxu0 %v9588_v3 }
 0x1de   :  { %8631 = vmatprep.subr.bf16.mxu1 %v8630_v51 }
 0x1e0   :  { %8022 = vmatmul.mubr.msk.f32.gmra.mrb[42].mxu0 %vm39_vm0, %v1307_v52  ;;  %v8082_v52 = vld [vmem:[%s14097_s3 + $0x190] sm:$0xff] }
 0x1e1   :  { %1619 = vmatprep.mubr.f32.mxu0 %v9588_v3 }
 0x1e4   :  { %8023 = vmatmul.mubr.msk.f32.gmra.mrb[44].mxu0 %vm39_vm0, %v1308_v53  ;;  %v8084_v53 = vld [vmem:[%s14097_s3 + $0x1a0] sm:$0xff] }
 0x1e5   :  { %1625 = vmatprep.mubr.f32.mxu0 %v9588_v3 }
 0x1e8   :  { %8024 = vmatmul.mubr.msk.f32.gmra.mrb[46].mxu0 %vm39_vm0, %v1309_v54  ;;  %v8632_v54 = vpack.c.bf16 %v8084_v53, %v8082_v52 }
 0x1e9   :  { %1631 = vmatprep.mubr.f32.mxu0 %v9588_v3 }
 0x1ea   :  { %8633 = vmatpush1.bf16.msra.mxu1 %v8632_v54 }
 0x1ec   :  { %8025 = vmatmul.mubr.msk.f32.gmra.mrb[48].mxu0 %vm39_vm0, %v1310_v55  ;;  %v8073_v55 = vld [vmem:[%s14098_s2 + $0x1] ss:$2 sm:$0x3] }
 0x1ed   :  { %1637 = vmatprep.mubr.f32.mxu0 %v9588_v3 }
 0x1f0   :  { %8026 = vmatmul.mubr.msk.f32.gmra.mrb[50].mxu0 %vm39_vm0, %v1311_v56  ;;  %v10620_v56 = vrot.slane %v2202_v49, %v10597_v46 }
 0x1f1   :  { %1643 = vmatprep.mubr.f32.mxu0 %v9588_v3 }
 0x1f4   :  { %8027 = vmatmul.mubr.msk.f32.gmra.mrb[52].mxu0 %vm39_vm0, %v1312_v57  ;;  %v8087_v57 = vld [vmem:[%s14097_s3 + $0x1b8] sm:$0xff] }
 0x1f5   :  { %1649 = vmatprep.mubr.f32.mxu0 %v9588_v3 }
 0x1f8   :  { %8028 = vmatmul.mubr.msk.f32.gmra.mrb[54].mxu0 %vm39_vm0, %v1313_v58  ;;  %v8089_v58 = vld [vmem:[%s14097_s3 + $0x1c8] sm:$0xff] }
 0x1f9   :  { %1655 = vmatprep.mubr.f32.mxu0 %v9588_v3 }
 0x1fc   :  { %8029 = vmatmul.mubr.msk.f32.gmra.mrb[56].mxu0 %vm39_vm0, %v1314_v59  ;;  %v10629_v59 = vrot.slane %v2202_v49, %v10608_v50  ;;  %v8105_v49 = vld [vmem:[%s14097_s3 + $0x248] sm:$0xff] }
 0x1fd   :  { %1661 = vmatprep.mubr.f32.mxu0 %v9588_v3 }
 0x200   :  { %8030 = vmatmul.mubr.msk.f32.gmra.mrb[58].mxu0 %vm39_vm0, %v1315_v60  ;;  %v8634_v60 = vpack.c.bf16 %v8089_v58, %v8087_v57  ;;  %v8102_v57 = vld [vmem:[%s14097_s3 + $0x230] sm:$0xff]  ;;  %v8104_v58 = vld [vmem:[%s14097_s3 + $0x240] sm:$0xff] }
 0x201   :  { %1667 = vmatprep.mubr.f32.mxu0 %v9588_v3 }
 0x202   :  { %8635 = vmatprep.subr.bf16.mxu1 %v8634_v60 }
 0x204   :  { %8031 = vmatmul.mubr.msk.f32.gmra.mrb[60].mxu0 %vm39_vm0, %v1316_v61  ;;  %v8086_v61 = vld [vmem:[%s14097_s3 + $0x1b0] sm:$0xff] }
 0x205   :  { %1673 = vmatprep.mubr.f32.mxu0 %v9588_v3 }
 0x208   :  { %8032 = vmatmul.mubr.msk.f32.gmra.mrb[62].mxu0 %vm39_vm0, %v1317_v62  ;;  %v8088_v62 = vld [vmem:[%s14097_s3 + $0x1c0] sm:$0xff] }
 0x209   :  { %1945 = vmatprep.mubr.f32.mxu0 %v9588_v3 }
 0x20c   :  { %8041 = vmatmul.mubr.msk.f32.vlgmr.msra.gmra.mrb[0].mxu0 %vm39_vm0, %v1744_v63  ;;  %v10638_v63 = vrot.slane %v8073_v55, %v10597_v46 }
 0x20d   :  { %1951 = vmatprep.mubr.f32.mxu0 %v9588_v3 }
 0x210   :  { %8042 = vmatmul.mubr.msk.f32.gmra.mrb[2].mxu0 %vm39_vm0, %v1745_v0  ;;  %v8636_v0 = vpack.c.bf16 %v8088_v62, %v8086_v61 }
 0x211   :  { %1957 = vmatprep.mubr.f32.mxu0 %v9588_v3 }
 0x212   :  { %8637 = vmatpush1.bf16.msra.mxu1 %v8636_v0  ;;  %v8652_v0 = vpack.c.bf16 %v8104_v58, %v8102_v57 }
 0x214   :  { %8043 = vmatmul.mubr.msk.f32.gmra.mrb[4].mxu0 %vm39_vm0, %v1746_v1 }
 0x215   :  { %1963 = vmatprep.mubr.f32.mxu0 %v9588_v3 }
 0x218   :  { %8044 = vmatmul.mubr.msk.f32.gmra.mrb[6].mxu0 %vm39_vm0, %v1747_v2  ;;  %v10641_v2 = vrot.slane %v8073_v55, %v10608_v50  ;;  %v8650_v55 = vpack.c.bf16 %v8105_v49, %v8103_v48 }
 0x219   :  { %1969 = vmatprep.mubr.f32.mxu0 %v9588_v3 }
 0x21c   :  { %8045 = vmatmul.mubr.msk.f32.gmra.mrb[8].mxu0 %vm39_vm0, %v1748_v4 }
 0x21d   :  { %1975 = vmatprep.mubr.f32.mxu0 %v9588_v3 }
 0x220   :  { %8046 = vmatmul.mubr.msk.f32.gmra.mrb[10].mxu0 %vm39_vm0, %v1749_v5 }
 0x221   :  { %1981 = vmatprep.mubr.f32.mxu0 %v9588_v3 }
 0x224   :  { %8047 = vmatmul.mubr.msk.f32.gmra.mrb[12].mxu0 %vm39_vm0, %v1750_v6  ;;  %v8091_v6 = vld [vmem:[%s14097_s3 + $0x1d8] sm:$0xff] }
 0x225   :  { %1987 = vmatprep.mubr.f32.mxu0 %v9588_v3 }
 0x228   :  { %8048 = vmatmul.mubr.msk.f32.gmra.mrb[14].mxu0 %vm39_vm0, %v1751_v7  ;;  %v8093_v7 = vld [vmem:[%s14097_s3 + $0x1e8] sm:$0xff] }
 0x229   :  { %1993 = vmatprep.mubr.f32.mxu0 %v9588_v3 }
 0x22c   :  { %8049 = vmatmul.mubr.msk.f32.gmra.mrb[16].mxu0 %vm39_vm0, %v1752_v8 }
 0x22d   :  { %1999 = vmatprep.mubr.f32.mxu0 %v9588_v3 }
 0x230   :  { %8050 = vmatmul.mubr.msk.f32.gmra.mrb[18].mxu0 %vm39_vm0, %v1753_v9  ;;  %v8638_v9 = vpack.c.bf16 %v8093_v7, %v8091_v6 }
 0x231   :  { %2005 = vmatprep.mubr.f32.mxu0 %v9588_v3 }
 0x232   :  { %8639 = vmatprep.subr.bf16.mxu1 %v8638_v9 }
 0x234   :  { %8051 = vmatmul.mubr.msk.f32.gmra.mrb[20].mxu0 %vm39_vm0, %v1754_v10  ;;  %v8090_v10 = vld [vmem:[%s14097_s3 + $0x1d0] sm:$0xff] }
 0x235   :  { %2011 = vmatprep.mubr.f32.mxu0 %v9588_v3 }
 0x238   :  { %8052 = vmatmul.mubr.msk.f32.gmra.mrb[22].mxu0 %vm39_vm0, %v1755_v11  ;;  %v8092_v11 = vld [vmem:[%s14097_s3 + $0x1e0] sm:$0xff] }
 0x239   :  { %2017 = vmatprep.mubr.f32.mxu0 %v9588_v3 }
 0x23c   :  { %8053 = vmatmul.mubr.msk.f32.gmra.mrb[24].mxu0 %vm39_vm0, %v1756_v12 }
 0x23d   :  { %2023 = vmatprep.mubr.f32.mxu0 %v9588_v3 }
 0x240   :  { %8054 = vmatmul.mubr.msk.f32.gmra.mrb[26].mxu0 %vm39_vm0, %v1757_v13  ;;  %v8640_v13 = vpack.c.bf16 %v8092_v11, %v8090_v10  ;;  %v8107_v11 = vld [vmem:[%s14097_s3 + $0x258] sm:$0xff] }
 0x241   :  { %2029 = vmatprep.mubr.f32.mxu0 %v9588_v3 }
 0x242   :  { %8641 = vmatpush1.bf16.msra.mxu1 %v8640_v13  ;;  %v8109_v13 = vld [vmem:[%s14097_s3 + $0x268] sm:$0xff] }
 0x244   :  { %8055 = vmatmul.mubr.msk.f32.gmra.mrb[28].mxu0 %vm39_vm0, %v1758_v14 }
 0x245   :  { %2035 = vmatprep.mubr.f32.mxu0 %v9588_v3  ;;  %v1761_v3 = vld [vmem:[%s14096_s0 + $0x8c] sm:$0xff] }
 0x248   :  { %8056 = vmatmul.mubr.msk.f32.gmra.mrb[30].mxu0 %vm39_vm0, %v1759_v15 }
 0x249   :  { %2041 = vmatprep.mubr.f32.mxu0 %v10488_v16 }
 0x24c   :  { %8057 = vmatmul.mubr.msk.f32.gmra.mrb[32].mxu0 %vm39_vm0, %v1760_v17 }
 0x24d   :  { %2047 = vmatprep.mubr.f32.mxu0 %v10488_v16 }
 0x250   :  { %8058 = vmatmul.mubr.msk.f32.gmra.mrb[34].mxu0 %vm39_vm0, %v1761_v3 }
 0x251   :  { %2053 = vmatprep.mubr.f32.mxu0 %v10488_v16 }
 0x254   :  { %8059 = vmatmul.mubr.msk.f32.gmra.mrb[36].mxu0 %vm39_vm0, %v1762_v18 }
 0x255   :  { %2059 = vmatprep.mubr.f32.mxu0 %v10488_v16 }
 0x258   :  { %8060 = vmatmul.mubr.msk.f32.gmra.mrb[38].mxu0 %vm39_vm0, %v1763_v19  ;;  %v8095_v19 = vld [vmem:[%s14097_s3 + $0x1f8] sm:$0xff] }
 0x259   :  { %2065 = vmatprep.mubr.f32.mxu0 %v10488_v16 }
 0x25c   :  { %8061 = vmatmul.mubr.msk.f32.gmra.mrb[40].mxu0 %vm39_vm0, %v1764_v20  ;;  %v8097_v20 = vld [vmem:[%s14097_s3 + $0x208] sm:$0xff] }
 0x25d   :  { %2071 = vmatprep.mubr.f32.mxu0 %v10488_v16 }
 0x260   :  { %8062 = vmatmul.mubr.msk.f32.gmra.mrb[42].mxu0 %vm39_vm0, %v1765_v21 }
 0x261   :  { %2077 = vmatprep.mubr.f32.mxu0 %v10488_v16 }
 0x264   :  { %8063 = vmatmul.mubr.msk.f32.gmra.mrb[44].mxu0 %vm39_vm0, %v1766_v22 }
 0x265   :  { %2083 = vmatprep.mubr.f32.mxu0 %v10488_v16 }
 0x268   :  { %8064 = vmatmul.mubr.msk.f32.gmra.mrb[46].mxu0 %vm39_vm0, %v1767_v23  ;;  %v8642_v23 = vpack.c.bf16 %v8097_v20, %v8095_v19  ;;  %v8106_v19 = vld [vmem:[%s14097_s3 + $0x250] sm:$0xff]  ;;  %v8108_v20 = vld [vmem:[%s14097_s3 + $0x260] sm:$0xff] }
 0x269   :  { %2089 = vmatprep.mubr.f32.mxu0 %v10488_v16 }
 0x26a   :  { %8643 = vmatprep.subr.bf16.mxu1 %v8642_v23 }
 0x26c   :  { %8065 = vmatmul.mubr.msk.f32.gmra.mrb[48].mxu0 %vm39_vm0, %v1768_v24  ;;  %v8094_v24 = vld [vmem:[%s14097_s3 + $0x1f0] sm:$0xff] }
 0x26d   :  { %2095 = vmatprep.mubr.f32.mxu0 %v10488_v16 }
 0x270   :  { %8066 = vmatmul.mubr.msk.f32.gmra.mrb[50].mxu0 %vm39_vm0, %v1769_v25  ;;  %v8096_v25 = vld [vmem:[%s14097_s3 + $0x200] sm:$0xff] }
 0x271   :  { %2101 = vmatprep.mubr.f32.mxu0 %v10488_v16 }
 0x274   :  { %8067 = vmatmul.mubr.msk.f32.gmra.mrb[52].mxu0 %vm39_vm0, %v1770_v26 }
 0x275   :  { %2107 = vmatprep.mubr.f32.mxu0 %v10488_v16 }
 0x278   :  { %8068 = vmatmul.mubr.msk.f32.gmra.mrb[54].mxu0 %vm39_vm0, %v1771_v27  ;;  %v8644_v27 = vpack.c.bf16 %v8096_v25, %v8094_v24 }
 0x279   :  { %2113 = vmatprep.mubr.f32.mxu0 %v10488_v16 }
 0x27a   :  { %8645 = vmatpush1.bf16.msra.mxu1 %v8644_v27 }
 0x27b   :  { %8647 = vmatprep.subr.bf16.mxu1 %v8646_v38 }
 0x27c   :  { %8069 = vmatmul.mubr.msk.f32.gmra.mrb[56].mxu0 %vm39_vm0, %v1772_v28 }
 0x27d   :  { %2119 = vmatprep.mubr.f32.mxu0 %v10488_v16 }
 0x27e   :  { %8649 = vmatpush1.bf16.msra.mxu1 %v8648_v42 }
 0x27f   :  { %8651 = vmatprep.subr.bf16.mxu1 %v8650_v55 }
 0x280   :  { %8070 = vmatmul.mubr.msk.f32.gmra.mrb[58].mxu0 %vm39_vm0, %v1773_v29 }
 0x281   :  { %2125 = vmatprep.mubr.f32.mxu0 %v10488_v16 }
 0x282   :  { %8653 = vmatpush1.bf16.msra.mxu1 %v8652_v0 }
 0x284   :  { %8071 = vmatmul.mubr.msk.f32.gmra.mrb[60].mxu0 %vm39_vm0, %v1774_v30 }
 0x285   :  { %2131 = vmatprep.mubr.f32.mxu0 %v10488_v16 }
 0x288   :  { %8072 = vmatmul.mubr.msk.f32.gmra.mrb[62].mxu0 %vm39_vm0, %v1775_v31 }
 0x2df   :  { %v1947_v1 = vpop.f32.mrb[0].mxu0 }
 0x2e0   :  { %v2214_v4 = vmul.f32 %v10620_v56, %v1947_v1  ;;  %v1949_v5 = vpop.f32.mrb[1].mxu0 }
 0x2e1   :  { %v2215_v8 = vmul.f32 %v10629_v59, %v1949_v5 }
 0x2e2   :  { %v10658_v12 = vadd.f32 %v10638_v63, %v2214_v4 }
 0x2e3   :  { %v2292_v14 = vadd.f32 %v10641_v2, %v2215_v8  ;;  %v1953_v15 = vpop.f32.mrb[2].mxu0 }
 0x2e4   :  { %v2355_v17 = vmax.f32 %v10658_v12, 0.0  ;;  %v2216_v3 = vmul.f32 %v10620_v56, %v1953_v15  ;;  %v1955_v18 = vpop.f32.mrb[3].mxu0  ;;  %v8654_v12 = vpack.c.bf16 %v8109_v13, %v8107_v11 }
 0x2e5   :  { %v2356_v21 = vmax.f32 %v2292_v14, 0.0  ;;  %v2217_v22 = vmul.f32 %v10629_v59, %v1955_v18 }
 0x2e6   :  { %2419 = vst [vmem:[#allocation2] sm:$0xff] %v2355_v17  ;;  %v2293_v26 = vadd.f32 %v10638_v63, %v2216_v3  ;;  %8655 = vmatprep.subr.bf16.mxu1 %v8654_v12 }
 0x2e7   :  { %2420 = vst.msk [vmem:[#allocation2 + $0x8] sm:$0xff] %vm33_vm1, %v2356_v21  ;;  %v2294_v28 = vadd.f32 %v10641_v2, %v2217_v22  ;;  %v1959_v29 = vpop.f32.mrb[4].mxu0 }
 0x2e8   :  { %v2357_v30 = vmax.f32 %v2293_v26, 0.0  ;;  %v2218_v31 = vmul.f32 %v10620_v56, %v1959_v29  ;;  %v1961_v33 = vpop.f32.mrb[5].mxu0 }
 0x2e9   :  { %v2358_v36 = vmax.f32 %v2294_v28, 0.0  ;;  %v2219_v37 = vmul.f32 %v10629_v59, %v1961_v33  ;;  %v8111_v33 = vld [vmem:[%s14097_s3 + $0x278] sm:$0xff] }
 0x2ea   :  { %v10698_v41 = vadd.f32 %v10638_v63, %v2218_v31  ;;  %v2619_v54 = vrot.slane %v2357_v30, 1 }
 0x2eb   :  { %2422 = vst.msk [vmem:[#allocation2 + $0x18] sm:$0xff] %vm33_vm1, %v2358_v36  ;;  %v2296_v43 = vadd.f32 %v10641_v2, %v2219_v37  ;;  %v1965_v44 = vpop.f32.mrb[6].mxu0 }
 0x2ec   :  { %v2359_v16 = vmax.f32 %v10698_v41, 0.0  ;;  %v2220_v45 = vmul.f32 %v10620_v56, %v1965_v44  ;;  %v1967_v47 = vpop.f32.mrb[7].mxu0  ;;  %v8112_v41 = vld [vmem:[%s14097_s3 + $0x280] sm:$0xff] }
 0x2ed   :  { %v2360_v51 = vmax.f32 %v2296_v43, 0.0  ;;  %v2221_v52 = vmul.f32 %v10629_v59, %v1967_v47  ;;  %v2547_v53 = vld [vmem:[#allocation2] sm:$0xfe]  ;;  %v8658_v47 = vpack.c.bf16 %v8113_v34, %v8111_v33 }
 0x2ee   :  { %v10718_v60 = vadd.f32 %v10638_v63, %v2220_v45  ;;  %v2618_v61 = vrot.slane %v2547_v53, 1  ;;  %v2624_v62 = vrot.slane %v2359_v16, 1  ;;  %v2548_v9 = vld [vmem:[#allocation2 + $0x8] sm:$0xfe] }
 0x2ef   :  { %2424 = vst.msk [vmem:[#allocation2 + $0x28] sm:$0xff] %vm33_vm1, %v2360_v51  ;;  %v2298_v1 = vadd.f32 %v10641_v2, %v2221_v52  ;;  %v1971_v4 = vpop.f32.mrb[8].mxu0  ;;  %v2621_v26 = vrot.slane %v2548_v9, 1  ;;  %v2484_v37 = vld [vmem:[#allocation2 + $0x8] sm:$0xff]  ;;  %v8660_v51 = vpack.c.bf16 %v8112_v41, %v8110_v40  ;;  %v8114_v9 = vld [vmem:[%s14097_s3 + $0x290] sm:$0x3] }
 0x2f0   :  { %v2361_v5 = vmax.f32 %v10718_v60, 0.0  ;;  %v2222_v6 = vmul.f32 %v10620_v56, %v1971_v4  ;;  %v1973_v7 = vpop.f32.mrb[9].mxu0  ;;  %v2620_v8 = vsel %vm2617_vm3, %v2618_v61, %v2619_v54  ;;  %v2625_v10 = vsel %vm2617_vm3, %v2619_v54, %v2624_v62 }
 0x2f1   :  { %v2362_v14 = vmax.f32 %v2298_v1, 0.0  ;;  %v2223_v15 = vmul.f32 %v10629_v59, %v1973_v7  ;;  %v10735_v3 = vmax.f32 %v2355_v17, %v2620_v8  ;;  %v10737_v18 = vmax.f32 %v2357_v30, %v2625_v10  ;;  %v8115_v7 = vld [vmem:[%s14097_s3 + $0x298] sm:$0x3] }
 0x2f2   :  { %v10746_v21 = vadd.f32 %v10638_v63, %v2222_v6  ;;  %v2486_v22 = vld [vmem:[#allocation2 + $0x18] sm:$0xff]  ;;  %v2628_v23 = vrot.slane %v2361_v5, 1  ;;  %v8656_v17 = vpack.c.bf16 %v8108_v20, %v8106_v19 }
 0x2f3   :  { %2426 = vst.msk [vmem:[#allocation2 + $0x38] sm:$0xff] %vm33_vm1, %v2362_v14  ;;  %v2300_v24 = vadd.f32 %v10641_v2, %v2223_v15  ;;  %v1977_v25 = vpop.f32.mrb[10].mxu0  ;;  %2940 = vrot.lane.b32.xlu0 %v10735_v3, %s9589_s30  ;;  %v2622_v27 = vrot.slane %v2486_v22, 1  ;;  %2944 = vrot.lane.b32.xlu1 %v10737_v18, %s9589_s30 }
 0x2f4   :  { %v2363_v28 = vmax.f32 %v10746_v21, 0.0  ;;  %v2224_v29 = vmul.f32 %v10620_v56, %v1977_v25  ;;  %v1979_v30 = vpop.f32.mrb[11].mxu0  ;;  %v2629_v31 = vsel %vm2617_vm3, %v2624_v62, %v2628_v23  ;;  %8657 = vmatpush1.bf16.msra.mxu1 %v8656_v17  ;;  %v3360_v25 = vld [vmem:[%s14097_s3 + $0x18] sm:$0xff] }
 0x2f5   :  { %v2364_v35 = vmax.f32 %v2300_v24, 0.0  ;;  %v2225_v36 = vmul.f32 %v10629_v59, %v1979_v30  ;;  %v2623_v38 = vsel %vm2617_vm3, %v2621_v26, %v2622_v27  ;;  %v10767_v39 = vmax.f32 %v2359_v16, %v2629_v31  ;;  %8659 = vmatprep.subr.bf16.mxu1 %v8658_v47  ;;  %v3358_v24 = vld [vmem:[%s14097_s3 + $0x8] sm:$0xff] }
 0x2f6   :  { %v10776_v42 = vadd.f32 %v10638_v63, %v2224_v29  ;;  %v10778_v43 = vmax.f32 %v2484_v37, %v2623_v38  ;;  %v2488_v44 = vld [vmem:[#allocation2 + $0x28] sm:$0xff]  ;;  %v2632_v45 = vrot.slane %v2363_v28, 1  ;;  %v8662_v29 = vpack.c.bf16 %v3360_v25, %v3358_v24 }
 0x2f7   :  { %2428 = vst.msk [vmem:[#allocation2 + $0x48] sm:$0xff] %vm33_vm1, %v2364_v35  ;;  %v2302_v16 = vadd.f32 %v10641_v2, %v2225_v36  ;;  %v1983_v48 = vpop.f32.mrb[12].mxu0  ;;  %v2626_v49 = vrot.slane %v2488_v44, 1 }
 0x2f8   :  { %v2365_v52 = vmax.f32 %v10776_v42, 0.0  ;;  %v2226_v53 = vmul.f32 %v10620_v56, %v1983_v48  ;;  %v1985_v54 = vpop.f32.mrb[13].mxu0  ;;  %2942 = vrot.lane.b32.xlu0 %v10778_v43, %s9589_s30  ;;  %v2633_v55 = vsel %vm2617_vm3, %v2628_v23, %v2632_v45  ;;  %8661 = vmatpush1.bf16.msra.mxu1 %v8660_v51 }
 0x2f9   :  { %v2366_v57 = vmax.f32 %v2302_v16, 0.0  ;;  %v2227_v58 = vmul.f32 %v10629_v59, %v1985_v54  ;;  %v2627_v61 = vsel %vm2617_vm3, %v2622_v27, %v2626_v49  ;;  %v10791_v62 = vmax.f32 %v2361_v5, %v2633_v55  ;;  %8116 = vmatprep.subr.msk.mxu1 %vm3739_vm4, %v8115_v7 }
 0x2fa   :  { %v10794_v0 = vadd.f32 %v10638_v63, %v2226_v53  ;;  %v10796_v1 = vmax.f32 %v2486_v22, %v2627_v61  ;;  %v2490_v4 = vld [vmem:[#allocation2 + $0x38] sm:$0xff]  ;;  %v2636_v6 = vrot.slane %v2365_v52, 1 }
 0x2fb   :  { %2430 = vst.msk [vmem:[#allocation2 + $0x58] sm:$0xff] %vm33_vm1, %v2366_v57  ;;  %v2304_v8 = vadd.f32 %v10641_v2, %v2227_v58  ;;  %v1989_v60 = vpop.f32.mrb[14].mxu0  ;;  %v2630_v5 = vrot.slane %v2490_v4, 1 }
 0x2fc   :  { %v2367_v10 = vmax.f32 %v10794_v0, 0.0  ;;  %v2228_v11 = vmul.f32 %v10620_v56, %v1989_v60  ;;  %v1991_v13 = vpop.f32.mrb[15].mxu0  ;;  %2946 = vrot.lane.b32.xlu1 %v10796_v1, %s9589_s30  ;;  %2948 = vrot.lane.b32.xlu0 %v10767_v39, %s9589_s30  ;;  %v2637_v14 = vsel %vm2617_vm3, %v2632_v45, %v2636_v6 }
 0x2fd   :  { %v2368_v15 = vmax.f32 %v2304_v8, 0.0  ;;  %v2229_v19 = vmul.f32 %v10629_v59, %v1991_v13  ;;  %v2631_v20 = vsel %vm2617_vm3, %v2626_v49, %v2630_v5  ;;  %v10816_v21 = vmax.f32 %v2363_v28, %v2637_v14  ;;  %8117 = vmatpush1.msk.msra.mxu1 %vm3739_vm4, %v8114_v9 }
 0x2fe   :  { %v2305_v22 = vadd.f32 %v10638_v63, %v2228_v11  ;;  %v10820_v23 = vmax.f32 %v2488_v44, %v2631_v20  ;;  %v2492_v12 = vld [vmem:[#allocation2 + $0x48] sm:$0xff]  ;;  %v2640_v17 = vrot.slane %v2367_v10, 1  ;;  %8663 = vmatprep.subr.bf16.mxu1 %v8662_v29 }
 0x2ff   :  { %2432 = vst.msk [vmem:[#allocation2 + $0x68] sm:$0xff] %vm33_vm1, %v2368_v15  ;;  %v2306_v26 = vadd.f32 %v10641_v2, %v2229_v19  ;;  %v1995_v27 = vpop.f32.mrb[16].mxu0  ;;  %v2634_v28 = vrot.slane %v2492_v12, 1 }
 0x300   :  { %v2369_v30 = vmax.f32 %v2305_v22, 0.0  ;;  %v2230_v31 = vmul.f32 %v10620_v56, %v1995_v27  ;;  %v1997_v33 = vpop.f32.mrb[17].mxu0  ;;  %2950 = vrot.lane.b32.xlu1 %v10820_v23, %s9589_s30  ;;  %2952 = vrot.lane.b32.xlu0 %v10791_v62, %s9589_s30  ;;  %v2641_v34 = vsel %vm2617_vm3, %v2636_v6, %v2640_v17 }
 0x301   :  { %v2370_v35 = vmax.f32 %v2306_v26, 0.0  ;;  %v2231_v36 = vmul.f32 %v10629_v59, %v1997_v33  ;;  %v2635_v37 = vsel %vm2617_vm3, %v2630_v5, %v2634_v28  ;;  %v10838_v38 = vmax.f32 %v2365_v52, %v2641_v34 }
 0x302   :  { %v2307_v40 = vadd.f32 %v10638_v63, %v2230_v31  ;;  %v10841_v41 = vmax.f32 %v2490_v4, %v2635_v37  ;;  %v2494_v42 = vld [vmem:[#allocation2 + $0x58] sm:$0xff]  ;;  %v2644_v44 = vrot.slane %v2369_v30, 1 }
 0x303   :  { %2434 = vst.msk [vmem:[#allocation2 + $0x78] sm:$0xff] %vm33_vm1, %v2370_v35  ;;  %v2308_v45 = vadd.f32 %v10641_v2, %v2231_v36  ;;  %v2001_v47 = vpop.f32.mrb[18].mxu0  ;;  %v2638_v16 = vrot.slane %v2494_v42, 1 }
 0x304   :  { %v2371_v48 = vmax.f32 %v2307_v40, 0.0  ;;  %v2232_v49 = vmul.f32 %v10620_v56, %v2001_v47  ;;  %v2003_v51 = vpop.f32.mrb[19].mxu0  ;;  %2954 = vrot.lane.b32.xlu1 %v10841_v41, %s9589_s30  ;;  %2956 = vrot.lane.b32.xlu0 %v10816_v21, %s9589_s30  ;;  %v2645_v52 = vsel %vm2617_vm3, %v2640_v17, %v2644_v44 }
 0x305   :  { %v2372_v53 = vmax.f32 %v2308_v45, 0.0  ;;  %v2233_v54 = vmul.f32 %v10629_v59, %v2003_v51  ;;  %v2639_v55 = vsel %vm2617_vm3, %v2634_v28, %v2638_v16  ;;  %v10853_v57 = vmax.f32 %v2367_v10, %v2645_v52 }
 0x306   :  { %v2309_v58 = vadd.f32 %v10638_v63, %v2232_v49  ;;  %v10856_v61 = vmax.f32 %v2492_v12, %v2639_v55  ;;  %v2496_v0 = vld [vmem:[#allocation2 + $0x68] sm:$0xff]  ;;  %v2648_v4 = vrot.slane %v2371_v48, 1 }
 0x307   :  { %2436 = vst.msk [vmem:[#allocation2 + $0x88] sm:$0xff] %vm33_vm1, %v2372_v53  ;;  %v2310_v6 = vadd.f32 %v10641_v2, %v2233_v54  ;;  %v2007_v7 = vpop.f32.mrb[20].mxu0  ;;  %v2642_v8 = vrot.slane %v2496_v0, 1 }
 0x308   :  { %v2373_v60 = vmax.f32 %v2309_v58, 0.0  ;;  %v2234_v5 = vmul.f32 %v10620_v56, %v2007_v7  ;;  %v2009_v9 = vpop.f32.mrb[21].mxu0  ;;  %2958 = vrot.lane.b32.xlu1 %v10856_v61, %s9589_s30  ;;  %2960 = vrot.lane.b32.xlu0 %v10838_v38, %s9589_s30  ;;  %v2649_v10 = vsel %vm2617_vm3, %v2644_v44, %v2648_v4 }
 0x309   :  { %v2374_v11 = vmax.f32 %v2310_v6, 0.0  ;;  %v2235_v13 = vmul.f32 %v10629_v59, %v2009_v9  ;;  %v2643_v14 = vsel %vm2617_vm3, %v2638_v16, %v2642_v8  ;;  %v10868_v15 = vmax.f32 %v2369_v30, %v2649_v10 }
 0x30a   :  { %v2311_v19 = vadd.f32 %v10638_v63, %v2234_v5  ;;  %v10871_v20 = vmax.f32 %v2494_v42, %v2643_v14  ;;  %v2498_v22 = vld [vmem:[#allocation2 + $0x78] sm:$0xff]  ;;  %v2652_v12 = vrot.slane %v2373_v60, 1 }
 0x30b   :  { %2438 = vst.msk [vmem:[#allocation2 + $0x98] sm:$0xff] %vm33_vm1, %v2374_v11  ;;  %v2312_v17 = vadd.f32 %v10641_v2, %v2235_v13  ;;  %v2013_v24 = vpop.f32.mrb[22].mxu0  ;;  %v2646_v25 = vrot.slane %v2498_v22, 1 }
 0x30c   :  { %v2375_v26 = vmax.f32 %v2311_v19, 0.0  ;;  %v2236_v27 = vmul.f32 %v10620_v56, %v2013_v24  ;;  %v2015_v28 = vpop.f32.mrb[23].mxu0  ;;  %2962 = vrot.lane.b32.xlu1 %v10871_v20, %s9589_s30  ;;  %2964 = vrot.lane.b32.xlu0 %v10853_v57, %s9589_s30  ;;  %v2653_v29 = vsel %vm2617_vm3, %v2648_v4, %v2652_v12 }
 0x30d   :  { %v2376_v30 = vmax.f32 %v2312_v17, 0.0  ;;  %v2237_v31 = vmul.f32 %v10629_v59, %v2015_v28  ;;  %v2647_v33 = vsel %vm2617_vm3, %v2642_v8, %v2646_v25  ;;  %v10883_v34 = vmax.f32 %v2371_v48, %v2653_v29 }
 0x30e   :  { %v2313_v35 = vadd.f32 %v10638_v63, %v2236_v27  ;;  %v10886_v36 = vmax.f32 %v2496_v0, %v2647_v33  ;;  %v2500_v37 = vld [vmem:[#allocation2 + $0x88] sm:$0xff]  ;;  %v2656_v40 = vrot.slane %v2375_v26, 1 }
 0x30f   :  { %2440 = vst.msk [vmem:[#allocation2 + $0xa8] sm:$0xff] %vm33_vm1, %v2376_v30  ;;  %v2314_v42 = vadd.f32 %v10641_v2, %v2237_v31  ;;  %v2019_v44 = vpop.f32.mrb[24].mxu0  ;;  %v2650_v45 = vrot.slane %v2500_v37, 1 }
 0x310   :  { %v2377_v47 = vmax.f32 %v2313_v35, 0.0  ;;  %v2238_v16 = vmul.f32 %v10620_v56, %v2019_v44  ;;  %v2021_v49 = vpop.f32.mrb[25].mxu0  ;;  %2966 = vrot.lane.b32.xlu1 %v10886_v36, %s9589_s30  ;;  %2968 = vrot.lane.b32.xlu0 %v10868_v15, %s9589_s30  ;;  %v2657_v48 = vsel %vm2617_vm3, %v2652_v12, %v2656_v40 }
 0x311   :  { %v2378_v51 = vmax.f32 %v2314_v42, 0.0  ;;  %v2239_v52 = vmul.f32 %v10629_v59, %v2021_v49  ;;  %v2651_v53 = vsel %vm2617_vm3, %v2646_v25, %v2650_v45  ;;  %v10898_v54 = vmax.f32 %v2373_v60, %v2657_v48 }
 0x312   :  { %v2315_v55 = vadd.f32 %v10638_v63, %v2238_v16  ;;  %v10901_v58 = vmax.f32 %v2498_v22, %v2651_v53  ;;  %v2502_v0 = vld [vmem:[#allocation2 + $0x98] sm:$0xff]  ;;  %v2660_v4 = vrot.slane %v2377_v47, 1 }
 0x313   :  { %2442 = vst.msk [vmem:[#allocation2 + $0xb8] sm:$0xff] %vm33_vm1, %v2378_v51  ;;  %v2316_v6 = vadd.f32 %v10641_v2, %v2239_v52  ;;  %v2025_v7 = vpop.f32.mrb[26].mxu0  ;;  %v2654_v8 = vrot.slane %v2502_v0, 1 }
 0x314   :  { %v2379_v5 = vmax.f32 %v2315_v55, 0.0  ;;  %v2240_v9 = vmul.f32 %v10620_v56, %v2025_v7  ;;  %v2027_v10 = vpop.f32.mrb[27].mxu0  ;;  %2970 = vrot.lane.b32.xlu1 %v10901_v58, %s9589_s30  ;;  %2972 = vrot.lane.b32.xlu0 %v10883_v34, %s9589_s30  ;;  %v2661_v60 = vsel %vm2617_vm3, %v2656_v40, %v2660_v4 }
 0x315   :  { %v2380_v11 = vmax.f32 %v2316_v6, 0.0  ;;  %v2241_v13 = vmul.f32 %v10629_v59, %v2027_v10  ;;  %v2655_v14 = vsel %vm2617_vm3, %v2650_v45, %v2654_v8  ;;  %v10913_v19 = vmax.f32 %v2375_v26, %v2661_v60 }
 0x316   :  { %v2317_v22 = vadd.f32 %v10638_v63, %v2240_v9  ;;  %v10916_v12 = vmax.f32 %v2500_v37, %v2655_v14  ;;  %v2504_v17 = vld [vmem:[#allocation2 + $0xa8] sm:$0xff]  ;;  %v2664_v24 = vrot.slane %v2379_v5, 1 }
 0x317   :  { %2444 = vst.msk [vmem:[#allocation2 + $0xc8] sm:$0xff] %vm33_vm1, %v2380_v11  ;;  %v2318_v25 = vadd.f32 %v10641_v2, %v2241_v13  ;;  %v2031_v27 = vpop.f32.mrb[28].mxu0  ;;  %v2658_v28 = vrot.slane %v2504_v17, 1 }
 0x318   :  { %v2381_v29 = vmax.f32 %v2317_v22, 0.0  ;;  %v2242_v30 = vmul.f32 %v10620_v56, %v2031_v27  ;;  %v2033_v31 = vpop.f32.mrb[29].mxu0  ;;  %2974 = vrot.lane.b32.xlu1 %v10916_v12, %s9589_s30  ;;  %2976 = vrot.lane.b32.xlu0 %v10898_v54, %s9589_s30  ;;  %v2665_v26 = vsel %vm2617_vm3, %v2660_v4, %v2664_v24 }
 0x319   :  { %v2382_v33 = vmax.f32 %v2318_v25, 0.0  ;;  %v2243_v35 = vmul.f32 %v10629_v59, %v2033_v31  ;;  %v2659_v37 = vsel %vm2617_vm3, %v2654_v8, %v2658_v28  ;;  %v10928_v40 = vmax.f32 %v2377_v47, %v2665_v26 }
 0x31a   :  { %v2319_v42 = vadd.f32 %v10638_v63, %v2242_v30  ;;  %v10931_v44 = vmax.f32 %v2502_v0, %v2659_v37  ;;  %v2506_v45 = vld [vmem:[#allocation2 + $0xb8] sm:$0xff]  ;;  %v2668_v16 = vrot.slane %v2381_v29, 1 }
 0x31b   :  { %2446 = vst.msk [vmem:[#allocation2 + $0xd8] sm:$0xff] %vm33_vm1, %v2382_v33  ;;  %v2320_v49 = vadd.f32 %v10641_v2, %v2243_v35  ;;  %v2037_v48 = vpop.f32.mrb[30].mxu0  ;;  %v2662_v51 = vrot.slane %v2506_v45, 1 }
 0x31c   :  { %v2383_v52 = vmax.f32 %v2319_v42, 0.0  ;;  %v2244_v53 = vmul.f32 %v10620_v56, %v2037_v48  ;;  %v2039_v55 = vpop.f32.mrb[31].mxu0  ;;  %2978 = vrot.lane.b32.xlu1 %v10931_v44, %s9589_s30  ;;  %2980 = vrot.lane.b32.xlu0 %v10913_v19, %s9589_s30  ;;  %v2669_v47 = vsel %vm2617_vm3, %v2664_v24, %v2668_v16 }
 0x31d   :  { %v2384_v0 = vmax.f32 %v2320_v49, 0.0  ;;  %v2245_v4 = vmul.f32 %v10629_v59, %v2039_v55  ;;  %v2663_v6 = vsel %vm2617_vm3, %v2658_v28, %v2662_v51  ;;  %v10943_v7 = vmax.f32 %v2379_v5, %v2669_v47 }
 0x31e   :  { %v2321_v8 = vadd.f32 %v10638_v63, %v2244_v53  ;;  %v10946_v9 = vmax.f32 %v2504_v17, %v2663_v6  ;;  %v2508_v10 = vld [vmem:[#allocation2 + $0xc8] sm:$0xff]  ;;  %v2672_v60 = vrot.slane %v2383_v52, 1 }
 0x31f   :  { %2448 = vst.msk [vmem:[#allocation2 + $0xe8] sm:$0xff] %vm33_vm1, %v2384_v0  ;;  %v2322_v11 = vadd.f32 %v10641_v2, %v2245_v4  ;;  %v2043_v13 = vpop.f32.mrb[32].mxu0  ;;  %v2666_v14 = vrot.slane %v2508_v10, 1 }
 0x320   :  { %v2385_v22 = vmax.f32 %v2321_v8, 0.0  ;;  %v2246_v24 = vmul.f32 %v10620_v56, %v2043_v13  ;;  %v2045_v25 = vpop.f32.mrb[33].mxu0  ;;  %2982 = vrot.lane.b32.xlu1 %v10946_v9, %s9589_s30  ;;  %2984 = vrot.lane.b32.xlu0 %v10928_v40, %s9589_s30  ;;  %v2673_v5 = vsel %vm2617_vm3, %v2668_v16, %v2672_v60 }
 0x321   :  { %v2386_v17 = vmax.f32 %v2322_v11, 0.0  ;;  %v2247_v27 = vmul.f32 %v10629_v59, %v2045_v25  ;;  %v2667_v28 = vsel %vm2617_vm3, %v2662_v51, %v2666_v14  ;;  %v10958_v30 = vmax.f32 %v2381_v29, %v2673_v5 }
 0x322   :  { %v2323_v31 = vadd.f32 %v10638_v63, %v2246_v24  ;;  %v10961_v26 = vmax.f32 %v2506_v45, %v2667_v28  ;;  %v2510_v33 = vld [vmem:[#allocation2 + $0xd8] sm:$0xff]  ;;  %v2676_v35 = vrot.slane %v2385_v22, 1 }
 0x323   :  { %2450 = vst.msk [vmem:[#allocation2 + $0xf8] sm:$0xff] %vm33_vm1, %v2386_v17  ;;  %v2324_v37 = vadd.f32 %v10641_v2, %v2247_v27  ;;  %v2049_v42 = vpop.f32.mrb[34].mxu0  ;;  %v2670_v49 = vrot.slane %v2510_v33, 1 }
 0x324   :  { %v2387_v16 = vmax.f32 %v2323_v31, 0.0  ;;  %v2248_v48 = vmul.f32 %v10620_v56, %v2049_v42  ;;  %v2051_v53 = vpop.f32.mrb[35].mxu0  ;;  %2986 = vrot.lane.b32.xlu1 %v10961_v26, %s9589_s30  ;;  %2988 = vrot.lane.b32.xlu0 %v10943_v7, %s9589_s30  ;;  %v2677_v29 = vsel %vm2617_vm3, %v2672_v60, %v2676_v35 }
 0x325   :  { %v2388_v45 = vmax.f32 %v2324_v37, 0.0  ;;  %v2249_v51 = vmul.f32 %v10629_v59, %v2051_v53  ;;  %v2671_v55 = vsel %vm2617_vm3, %v2666_v14, %v2670_v49  ;;  %v10973_v47 = vmax.f32 %v2383_v52, %v2677_v29 }
 0x326   :  { %v2325_v0 = vadd.f32 %v10638_v63, %v2248_v48  ;;  %v10976_v4 = vmax.f32 %v2508_v10, %v2671_v55  ;;  %v2512_v6 = vld [vmem:[#allocation2 + $0xe8] sm:$0xff]  ;;  %v2680_v8 = vrot.slane %v2387_v16, 1 }
 0x327   :  { %2452 = vst.msk [vmem:[#allocation2 + $0x108] sm:$0xff] %vm33_vm1, %v2388_v45  ;;  %v2326_v11 = vadd.f32 %v10641_v2, %v2249_v51  ;;  %v2055_v13 = vpop.f32.mrb[36].mxu0  ;;  %v2674_v24 = vrot.slane %v2512_v6, 1 }
 0x328   :  { %v2389_v60 = vmax.f32 %v2325_v0, 0.0  ;;  %v2250_v25 = vmul.f32 %v10620_v56, %v2055_v13  ;;  %v2057_v5 = vpop.f32.mrb[37].mxu0  ;;  %2990 = vrot.lane.b32.xlu1 %v10976_v4, %s9589_s30  ;;  %2992 = vrot.lane.b32.xlu0 %v10958_v30, %s9589_s30  ;;  %v2681_v52 = vsel %vm2617_vm3, %v2676_v35, %v2680_v8 }
 0x329   :  { %v2390_v10 = vmax.f32 %v2326_v11, 0.0  ;;  %v2251_v14 = vmul.f32 %v10629_v59, %v2057_v5  ;;  %v2675_v17 = vsel %vm2617_vm3, %v2670_v49, %v2674_v24  ;;  %v10988_v27 = vmax.f32 %v2385_v22, %v2681_v52 }
 0x32a   :  { %v2327_v28 = vadd.f32 %v10638_v63, %v2250_v25  ;;  %v10991_v31 = vmax.f32 %v2510_v33, %v2675_v17  ;;  %v2514_v37 = vld [vmem:[#allocation2 + $0xf8] sm:$0xff]  ;;  %v2684_v42 = vrot.slane %v2389_v60, 1 }
 0x32b   :  { %2454 = vst.msk [vmem:[#allocation2 + $0x118] sm:$0xff] %vm33_vm1, %v2390_v10  ;;  %v2328_v48 = vadd.f32 %v10641_v2, %v2251_v14  ;;  %v2061_v53 = vpop.f32.mrb[38].mxu0  ;;  %v2678_v29 = vrot.slane %v2514_v37, 1 }
 0x32c   :  { %v2391_v35 = vmax.f32 %v2327_v28, 0.0  ;;  %v2252_v45 = vmul.f32 %v10620_v56, %v2061_v53  ;;  %v2063_v51 = vpop.f32.mrb[39].mxu0  ;;  %2994 = vrot.lane.b32.xlu1 %v10991_v31, %s9589_s30  ;;  %2996 = vrot.lane.b32.xlu0 %v10973_v47, %s9589_s30  ;;  %v2685_v22 = vsel %vm2617_vm3, %v2680_v8, %v2684_v42 }
 0x32d   :  { %v2392_v33 = vmax.f32 %v2328_v48, 0.0  ;;  %v2253_v49 = vmul.f32 %v10629_v59, %v2063_v51  ;;  %v2679_v55 = vsel %vm2617_vm3, %v2674_v24, %v2678_v29  ;;  %v11003_v0 = vmax.f32 %v2387_v16, %v2685_v22 }
 0x32e   :  { %v2329_v11 = vadd.f32 %v10638_v63, %v2252_v45  ;;  %v11006_v13 = vmax.f32 %v2512_v6, %v2679_v55  ;;  %v2516_v25 = vld [vmem:[#allocation2 + $0x108] sm:$0xff]  ;;  %v2688_v5 = vrot.slane %v2391_v35, 1 }
 0x32f   :  { %2456 = vst.msk [vmem:[#allocation2 + $0x128] sm:$0xff] %vm33_vm1, %v2392_v33  ;;  %v2330_v52 = vadd.f32 %v10641_v2, %v2253_v49  ;;  %v2067_v10 = vpop.f32.mrb[40].mxu0  ;;  %v2682_v14 = vrot.slane %v2516_v25, 1 }
 0x330   :  { %v2393_v8 = vmax.f32 %v2329_v11, 0.0  ;;  %v2254_v17 = vmul.f32 %v10620_v56, %v2067_v10  ;;  %v2069_v28 = vpop.f32.mrb[41].mxu0  ;;  %2998 = vrot.lane.b32.xlu1 %v11006_v13, %s9589_s30  ;;  %3000 = vrot.lane.b32.xlu0 %v10988_v27, %s9589_s30  ;;  %v2689_v16 = vsel %vm2617_vm3, %v2684_v42, %v2688_v5 }
 0x331   :  { %v2394_v6 = vmax.f32 %v2330_v52, 0.0  ;;  %v2255_v24 = vmul.f32 %v10629_v59, %v2069_v28  ;;  %v2683_v48 = vsel %vm2617_vm3, %v2678_v29, %v2682_v14  ;;  %v11018_v53 = vmax.f32 %v2389_v60, %v2689_v16 }
 0x332   :  { %v2331_v45 = vadd.f32 %v10638_v63, %v2254_v17  ;;  %v11021_v51 = vmax.f32 %v2514_v37, %v2683_v48  ;;  %v2518_v22 = vld [vmem:[#allocation2 + $0x118] sm:$0xff]  ;;  %v2692_v33 = vrot.slane %v2393_v8, 1 }
 0x333   :  { %14187 = vst [vmem:[#allocation9_spill] sm:$0xff] %v11018_v53  ;;  %2458 = vst.msk [vmem:[#allocation2 + $0x138] sm:$0xff] %vm33_vm1, %v2394_v6  ;;  %v2332_v49 = vadd.f32 %v10641_v2, %v2255_v24  ;;  %v2073_v55 = vpop.f32.mrb[42].mxu0  ;;  %v2686_v11 = vrot.slane %v2518_v22, 1 }
 0x334   :  { %v2395_v42 = vmax.f32 %v2331_v45, 0.0  ;;  %v2256_v52 = vmul.f32 %v10620_v56, %v2073_v55  ;;  %v2075_v10 = vpop.f32.mrb[43].mxu0  ;;  %3002 = vrot.lane.b32.xlu1 %v11021_v51, %s9589_s30  ;;  %3004 = vrot.lane.b32.xlu0 %v11003_v0, %s9589_s30  ;;  %v2693_v60 = vsel %vm2617_vm3, %v2688_v5, %v2692_v33 }
 0x335   :  { %v2396_v37 = vmax.f32 %v2332_v49, 0.0  ;;  %v2257_v29 = vmul.f32 %v10629_v59, %v2075_v10  ;;  %v2687_v17 = vsel %vm2617_vm3, %v2682_v14, %v2686_v11  ;;  %v11033_v28 = vmax.f32 %v2391_v35, %v2693_v60 }
 0x336   :  { %v2333_v16 = vadd.f32 %v10638_v63, %v2256_v52  ;;  %v11036_v6 = vmax.f32 %v2516_v25, %v2687_v17  ;;  %v2520_v24 = vld [vmem:[#allocation2 + $0x128] sm:$0xff]  ;;  %v2696_v48 = vrot.slane %v2395_v42, 1 }
 0x337   :  { %14188 = vst [vmem:[#allocation10_spill] sm:$0xff] %v11033_v28  ;;  %2460 = vst.msk [vmem:[#allocation2 + $0x148] sm:$0xff] %vm33_vm1, %v2396_v37  ;;  %v2334_v45 = vadd.f32 %v10641_v2, %v2257_v29  ;;  %v2079_v55 = vpop.f32.mrb[44].mxu0  ;;  %v2690_v32 = vrot.slane %v2520_v24, 1 }
 0x338   :  { %v2397_v5 = vmax.f32 %v2333_v16, 0.0  ;;  %v2258_v49 = vmul.f32 %v10620_v56, %v2079_v55  ;;  %v2081_v10 = vpop.f32.mrb[45].mxu0  ;;  %3006 = vrot.lane.b32.xlu1 %v11036_v6, %s9589_s30  ;;  %3008 = vrot.lane.b32.xlu0 %v11018_v53, %s9589_s30  ;;  %v2697_v35 = vsel %vm2617_vm3, %v2692_v33, %v2696_v48 }
 0x339   :  { %v2398_v25 = vmax.f32 %v2334_v45, 0.0  ;;  %v2259_v14 = vmul.f32 %v10629_v59, %v2081_v10  ;;  %v2691_v52 = vsel %vm2617_vm3, %v2686_v11, %v2690_v32  ;;  %v11048_v60 = vmax.f32 %v2393_v8, %v2697_v35 }
 0x33a   :  { %v2335_v37 = vadd.f32 %v10638_v63, %v2258_v49  ;;  %v11051_v29 = vmax.f32 %v2518_v22, %v2691_v52  ;;  %v2522_v17 = vld [vmem:[#allocation2 + $0x138] sm:$0xff]  ;;  %v2700_v16 = vrot.slane %v2397_v5, 1 }
 0x33b   :  { %14189 = vst [vmem:[#allocation11_spill] sm:$0xff] %v11048_v60  ;;  %2462 = vst.msk [vmem:[#allocation2 + $0x158] sm:$0xff] %vm33_vm1, %v2398_v25  ;;  %v2336_v55 = vadd.f32 %v10641_v2, %v2259_v14  ;;  %v2085_v50 = vpop.f32.mrb[46].mxu0  ;;  %v2694_v46 = vrot.slane %v2522_v17, 1 }
 0x33c   :  { %v2399_v33 = vmax.f32 %v2335_v37, 0.0  ;;  %v2260_v45 = vmul.f32 %v10620_v56, %v2085_v50  ;;  %v2087_v10 = vpop.f32.mrb[47].mxu0  ;;  %3010 = vrot.lane.b32.xlu1 %v11051_v29, %s9589_s30  ;;  %3012 = vrot.lane.b32.xlu0 %v11033_v28, %s9589_s30  ;;  %v2701_v8 = vsel %vm2617_vm3, %v2696_v48, %v2700_v16 }
 0x33d   :  { %v2400_v22 = vmax.f32 %v2336_v55, 0.0  ;;  %v2261_v11 = vmul.f32 %v10629_v59, %v2087_v10  ;;  %v2695_v49 = vsel %vm2617_vm3, %v2690_v32, %v2694_v46  ;;  %v11063_v35 = vmax.f32 %v2395_v42, %v2701_v8 }
 0x33e   :  { %v2337_v25 = vadd.f32 %v10638_v63, %v2260_v45  ;;  %v11066_v14 = vmax.f32 %v2520_v24, %v2695_v49  ;;  %v2524_v50 = vld [vmem:[#allocation2 + $0x148] sm:$0xff]  ;;  %v2704_v52 = vrot.slane %v2399_v33, 1 }
 0x33f   :  { %14190 = vst [vmem:[#allocation12_spill] sm:$0xff] %v11063_v35  ;;  %2464 = vst.msk [vmem:[#allocation2 + $0x168] sm:$0xff] %vm33_vm1, %v2400_v22  ;;  %v2338_v37 = vadd.f32 %v10641_v2, %v2261_v11  ;;  %v2091_v28 = vpop.f32.mrb[48].mxu0  ;;  %v2698_v53 = vrot.slane %v2524_v50, 1 }
 0x340   :  { %14191 = vst [vmem:[#allocation13_spill] sm:$0xff] %v11066_v14  ;;  %v2401_v48 = vmax.f32 %v2337_v25, 0.0  ;;  %v2262_v55 = vmul.f32 %v10620_v56, %v2091_v28  ;;  %v2093_v10 = vpop.f32.mrb[49].mxu0  ;;  %3014 = vrot.lane.b32.xlu1 %v11066_v14, %s9589_s30  ;;  %3016 = vrot.lane.b32.xlu0 %v11048_v60, %s9589_s30  ;;  %v2705_v32 = vsel %vm2617_vm3, %v2700_v16, %v2704_v52 }
 0x341   :  { %v2402_v42 = vmax.f32 %v2338_v37, 0.0  ;;  %v2263_v24 = vmul.f32 %v10629_v59, %v2093_v10  ;;  %v2699_v45 = vsel %vm2617_vm3, %v2694_v46, %v2698_v53  ;;  %v11078_v8 = vmax.f32 %v2397_v5, %v2705_v32 }
 0x342   :  { %v2339_v22 = vadd.f32 %v10638_v63, %v2262_v55  ;;  %v11081_v11 = vmax.f32 %v2522_v17, %v2699_v45  ;;  %v2526_v28 = vld [vmem:[#allocation2 + $0x158] sm:$0xff]  ;;  %v2708_v49 = vrot.slane %v2401_v48, 1 }
 0x343   :  { %14192 = vst [vmem:[#allocation14_spill] sm:$0xff] %v11078_v8  ;;  %2466 = vst.msk [vmem:[#allocation2 + $0x178] sm:$0xff] %vm33_vm1, %v2402_v42  ;;  %v2340_v25 = vadd.f32 %v10641_v2, %v2263_v24  ;;  %v2097_v60 = vpop.f32.mrb[50].mxu0  ;;  %v2702_v14 = vrot.slane %v2526_v28, 1 }
 0x344   :  { %14193 = vst [vmem:[#allocation15_spill] sm:$0xff] %v11081_v11  ;;  %v2403_v16 = vmax.f32 %v2339_v22, 0.0  ;;  %v2264_v37 = vmul.f32 %v10620_v56, %v2097_v60  ;;  %v2099_v10 = vpop.f32.mrb[51].mxu0  ;;  %3018 = vrot.lane.b32.xlu1 %v11081_v11, %s9589_s30  ;;  %3020 = vrot.lane.b32.xlu0 %v11063_v35, %s9589_s30  ;;  %v2709_v46 = vsel %vm2617_vm3, %v2704_v52, %v2708_v49 }
 0x345   :  { %v2404_v5 = vmax.f32 %v2340_v25, 0.0  ;;  %v2265_v17 = vmul.f32 %v10629_v59, %v2099_v10  ;;  %v2703_v55 = vsel %vm2617_vm3, %v2698_v53, %v2702_v14  ;;  %v11093_v32 = vmax.f32 %v2399_v33, %v2709_v46 }
 0x346   :  { %v2341_v42 = vadd.f32 %v10638_v63, %v2264_v37  ;;  %v11096_v24 = vmax.f32 %v2524_v50, %v2703_v55  ;;  %v2528_v60 = vld [vmem:[#allocation2 + $0x168] sm:$0xff]  ;;  %v2712_v45 = vrot.slane %v2403_v16, 1 }
 0x347   :  { %14194 = vst [vmem:[#allocation16_spill] sm:$0xff] %v11093_v32  ;;  %2468 = vst.msk [vmem:[#allocation2 + $0x188] sm:$0xff] %vm33_vm1, %v2404_v5  ;;  %v2342_v22 = vadd.f32 %v10641_v2, %v2265_v17  ;;  %v2103_v35 = vpop.f32.mrb[52].mxu0  ;;  %v2706_v11 = vrot.slane %v2528_v60, 1 }
 0x348   :  { %14195 = vst [vmem:[#allocation17_spill] sm:$0xff] %v11096_v24  ;;  %v2405_v52 = vmax.f32 %v2341_v42, 0.0  ;;  %v2266_v25 = vmul.f32 %v10620_v56, %v2103_v35  ;;  %v2105_v10 = vpop.f32.mrb[53].mxu0  ;;  %3022 = vrot.lane.b32.xlu1 %v11096_v24, %s9589_s30  ;;  %3024 = vrot.lane.b32.xlu0 %v11078_v8, %s9589_s30  ;;  %v2713_v53 = vsel %vm2617_vm3, %v2708_v49, %v2712_v45 }
 0x349   :  { %v2406_v33 = vmax.f32 %v2342_v22, 0.0  ;;  %v2267_v50 = vmul.f32 %v10629_v59, %v2105_v10  ;;  %v2707_v37 = vsel %vm2617_vm3, %v2702_v14, %v2706_v11  ;;  %v11108_v46 = vmax.f32 %v2401_v48, %v2713_v53 }
 0x34a   :  { %v2343_v5 = vadd.f32 %v10638_v63, %v2266_v25  ;;  %v11111_v17 = vmax.f32 %v2526_v28, %v2707_v37  ;;  %v2530_v35 = vld [vmem:[#allocation2 + $0x178] sm:$0xff]  ;;  %v2716_v55 = vrot.slane %v2405_v52, 1 }
 0x34b   :  { %14196 = vst [vmem:[#allocation18_spill] sm:$0xff] %v11108_v46  ;;  %2470 = vst.msk [vmem:[#allocation2 + $0x198] sm:$0xff] %vm33_vm1, %v2406_v33  ;;  %v2344_v42 = vadd.f32 %v10641_v2, %v2267_v50  ;;  %v2109_v8 = vpop.f32.mrb[54].mxu0  ;;  %v2710_v24 = vrot.slane %v2530_v35, 1 }
 0x34c   :  { %14197 = vst [vmem:[#allocation19_spill] sm:$0xff] %v11111_v17  ;;  %v2407_v49 = vmax.f32 %v2343_v5, 0.0  ;;  %v2268_v22 = vmul.f32 %v10620_v56, %v2109_v8  ;;  %v2111_v10 = vpop.f32.mrb[55].mxu0  ;;  %3026 = vrot.lane.b32.xlu1 %v11111_v17, %s9589_s30  ;;  %3028 = vrot.lane.b32.xlu0 %v11093_v32, %s9589_s30  ;;  %v2717_v14 = vsel %vm2617_vm3, %v2712_v45, %v2716_v55 }
 0x34d   :  { %v2408_v48 = vmax.f32 %v2344_v42, 0.0  ;;  %v2269_v28 = vmul.f32 %v10629_v59, %v2111_v10  ;;  %v2711_v25 = vsel %vm2617_vm3, %v2706_v11, %v2710_v24  ;;  %v11123_v53 = vmax.f32 %v2403_v16, %v2717_v14 }
 0x34e   :  { %v2345_v33 = vadd.f32 %v10638_v63, %v2268_v22  ;;  %v11126_v50 = vmax.f32 %v2528_v60, %v2711_v25  ;;  %v2532_v8 = vld [vmem:[#allocation2 + $0x188] sm:$0xff]  ;;  %v2720_v37 = vrot.slane %v2407_v49, 1 }
 0x34f   :  { %14198 = vst [vmem:[#allocation20_spill] sm:$0xff] %v11123_v53  ;;  %2472 = vst.msk [vmem:[#allocation2 + $0x1a8] sm:$0xff] %vm33_vm1, %v2408_v48  ;;  %v2346_v5 = vadd.f32 %v10641_v2, %v2269_v28  ;;  %v2115_v32 = vpop.f32.mrb[56].mxu0  ;;  %v2714_v17 = vrot.slane %v2532_v8, 1 }
 0x350   :  { %14199 = vst [vmem:[#allocation21_spill] sm:$0xff] %v11126_v50  ;;  %v2409_v45 = vmax.f32 %v2345_v33, 0.0  ;;  %v2270_v42 = vmul.f32 %v10620_v56, %v2115_v32  ;;  %v2117_v10 = vpop.f32.mrb[57].mxu0  ;;  %3030 = vrot.lane.b32.xlu1 %v11126_v50, %s9589_s30  ;;  %3032 = vrot.lane.b32.xlu0 %v11108_v46, %s9589_s30  ;;  %v2721_v11 = vsel %vm2617_vm3, %v2716_v55, %v2720_v37 }
 0x351   :  { %v2410_v16 = vmax.f32 %v2346_v5, 0.0  ;;  %v2271_v60 = vmul.f32 %v10629_v59, %v2117_v10  ;;  %v2715_v22 = vsel %vm2617_vm3, %v2710_v24, %v2714_v17  ;;  %v11138_v14 = vmax.f32 %v2405_v52, %v2721_v11 }
 0x352   :  { %v2347_v48 = vadd.f32 %v10638_v63, %v2270_v42  ;;  %v11141_v28 = vmax.f32 %v2530_v35, %v2715_v22  ;;  %v2534_v32 = vld [vmem:[#allocation2 + $0x198] sm:$0xff]  ;;  %v2724_v25 = vrot.slane %v2409_v45, 1 }
 0x353   :  { %14200 = vst [vmem:[#allocation22_spill] sm:$0xff] %v11138_v14  ;;  %2474 = vst.msk [vmem:[#allocation2 + $0x1b8] sm:$0xff] %vm33_vm1, %v2410_v16  ;;  %v2348_v33 = vadd.f32 %v10641_v2, %v2271_v60  ;;  %v2121_v46 = vpop.f32.mrb[58].mxu0  ;;  %v2718_v50 = vrot.slane %v2534_v32, 1 }
 0x354   :  { %14201 = vst [vmem:[#allocation23_spill] sm:$0xff] %v11141_v28  ;;  %v2411_v55 = vmax.f32 %v2347_v48, 0.0  ;;  %v2272_v5 = vmul.f32 %v10620_v56, %v2121_v46  ;;  %v2123_v10 = vpop.f32.mrb[59].mxu0  ;;  %3034 = vrot.lane.b32.xlu1 %v11141_v28, %s9589_s30  ;;  %3036 = vrot.lane.b32.xlu0 %v11123_v53, %s9589_s30  ;;  %v2725_v24 = vsel %vm2617_vm3, %v2720_v37, %v2724_v25 }
 0x355   :  { %v2412_v52 = vmax.f32 %v2348_v33, 0.0  ;;  %v2273_v35 = vmul.f32 %v10629_v59, %v2123_v10  ;;  %v2719_v42 = vsel %vm2617_vm3, %v2714_v17, %v2718_v50  ;;  %v11153_v11 = vmax.f32 %v2407_v49, %v2725_v24 }
 0x356   :  { %v2349_v16 = vadd.f32 %v10638_v63, %v2272_v5  ;;  %v11156_v60 = vmax.f32 %v2532_v8, %v2719_v42  ;;  %v2536_v46 = vld [vmem:[#allocation2 + $0x1a8] sm:$0xff]  ;;  %v2728_v22 = vrot.slane %v2411_v55, 1 }
 0x357   :  { %14202 = vst [vmem:[#allocation24_spill] sm:$0xff] %v11153_v11  ;;  %2476 = vst.msk [vmem:[#allocation2 + $0x1c8] sm:$0xff] %vm33_vm1, %v2412_v52  ;;  %v2350_v48 = vadd.f32 %v10641_v2, %v2273_v35  ;;  %v2127_v53 = vpop.f32.mrb[60].mxu0  ;;  %v2722_v28 = vrot.slane %v2536_v46, 1 }
 0x358   :  { %14203 = vst [vmem:[#allocation25_spill] sm:$0xff] %v11156_v60  ;;  %v2413_v37 = vmax.f32 %v2349_v16, 0.0  ;;  %v2274_v33 = vmul.f32 %v10620_v56, %v2127_v53  ;;  %v2129_v10 = vpop.f32.mrb[61].mxu0  ;;  %3038 = vrot.lane.b32.xlu1 %v11156_v60, %s9589_s30  ;;  %3040 = vrot.lane.b32.xlu0 %v11138_v14, %s9589_s30  ;;  %v2729_v17 = vsel %vm2617_vm3, %v2724_v25, %v2728_v22 }
 0x359   :  { %v2414_v49 = vmax.f32 %v2350_v48, 0.0  ;;  %v2275_v8 = vmul.f32 %v10629_v59, %v2129_v10  ;;  %v2723_v5 = vsel %vm2617_vm3, %v2718_v50, %v2722_v28  ;;  %v11168_v24 = vmax.f32 %v2409_v45, %v2729_v17 }
 0x35a   :  { %v2351_v52 = vadd.f32 %v10638_v63, %v2274_v33  ;;  %v11171_v35 = vmax.f32 %v2534_v32, %v2723_v5  ;;  %v2538_v53 = vld [vmem:[#allocation2 + $0x1b8] sm:$0xff]  ;;  %v2732_v42 = vrot.slane %v2413_v37, 1 }
 0x35b   :  { %2478 = vst.msk [vmem:[#allocation2 + $0x1d8] sm:$0xff] %vm33_vm1, %v2414_v49  ;;  %v2352_v16 = vadd.f32 %v10641_v2, %v2275_v8  ;;  %v2133_v14 = vpop.f32.mrb[62].mxu0  ;;  %v2726_v60 = vrot.slane %v2538_v53, 1 }
 0x35c   :  { %v2415_v25 = vmax.f32 %v2351_v52, 0.0  ;;  %v2276_v48 = vmul.f32 %v10620_v56, %v2133_v14  ;;  %v2135_v10 = vpop.f32.mrb[63].mxu0  ;;  %3042 = vrot.lane.b32.xlu1 %v11171_v35, %s9589_s30  ;;  %3044 = vrot.lane.b32.xlu0 %v11153_v11, %s9589_s30  ;;  %v2733_v50 = vsel %vm2617_vm3, %v2728_v22, %v2732_v42 }
 0x35d   :  { %v2416_v45 = vmax.f32 %v2352_v16, 0.0  ;;  %v2277_v32 = vmul.f32 %v10629_v59, %v2135_v10  ;;  %v2727_v33 = vsel %vm2617_vm3, %v2722_v28, %v2726_v60  ;;  %v11183_v17 = vmax.f32 %v2411_v55, %v2733_v50 }
 0x35e   :  { %v2353_v49 = vadd.f32 %v10638_v63, %v2276_v48  ;;  %v11186_v8 = vmax.f32 %v2536_v46, %v2727_v33  ;;  %v2540_v56 = vld [vmem:[#allocation2 + $0x1c8] sm:$0xff]  ;;  %v2736_v14 = vrot.slane %v2415_v25, 1  ;;  %v2549_v48 = vld [vmem:[#allocation2 + $0x200] sm:$0x1] }
 0x35f   :  { %2480 = vst.msk [vmem:[#allocation2 + $0x1e8] sm:$0xff] %vm33_vm1, %v2416_v45  ;;  %v2354_v5 = vadd.f32 %v10641_v2, %v2277_v32  ;;  %v2730_v52 = vrot.slane %v2540_v56, 1  ;;  %v2744_v32 = vrot.slane %v2549_v48, 1  ;;  %v2550_v33 = vld [vmem:[#allocation2 + $0x208] sm:$0x1] }
 0x360   :  { %v2417_v11 = vmax.f32 %v2353_v49, 0.0  ;;  %3046 = vrot.lane.b32.xlu1 %v11186_v8, %s9589_s30  ;;  %3048 = vrot.lane.b32.xlu0 %v11168_v24, %s9589_s30  ;;  %v2737_v59 = vsel %vm2617_vm3, %v2732_v42, %v2736_v14 }
 0x361   :  { %v2418_v28 = vmax.f32 %v2354_v5, 0.0  ;;  %v2731_v63 = vsel %vm2617_vm3, %v2726_v60, %v2730_v52  ;;  %v11196_v55 = vmax.f32 %v2413_v37, %v2737_v59 }
 0x362   :  { %v11198_v46 = vmax.f32 %v2538_v53, %v2731_v63  ;;  %v2542_v22 = vld [vmem:[#allocation2 + $0x1d8] sm:$0xff]  ;;  %v2740_v16 = vrot.slane %v2417_v11, 1 }
 0x363   :  { %2482 = vst.msk [vmem:[#allocation2 + $0x1f8] sm:$0xff] %vm33_vm1, %v2418_v28  ;;  %v2734_v2 = vrot.slane %v2542_v22, 1 }
 0x364   :  { %3050 = vrot.lane.b32.xlu1 %v11198_v46, %s9589_s30  ;;  %3052 = vrot.lane.b32.xlu0 %v11183_v17, %s9589_s30  ;;  %v2741_v42 = vsel %vm2617_vm3, %v2736_v14, %v2740_v16  ;;  %v2745_v63 = vsel %vm2617_vm3, %v2740_v16, %v2744_v32 }
 0x365   :  { %v2941_v10 = vpop.permute.xlu0 %2940  ;;  %v2735_v60 = vsel %vm2617_vm3, %v2730_v52, %v2734_v2  ;;  %v11207_v37 = vmax.f32 %v2415_v25, %v2741_v42  ;;  %v2945_v5 = vpop.permute.xlu1 %2944 }
 0x366   :  { %v11209_v53 = vmax.f32 %v2540_v56, %v2735_v60  ;;  %v2544_v50 = vld [vmem:[#allocation2 + $0x1e8] sm:$0xff]  ;;  %v2746_v56 = vrot.slane %v2550_v33, 1  ;;  %v11228_v60 = vmax.f32 %v2417_v11, %v2745_v63 }
 0x367   :  { %v2738_v45 = vrot.slane %v2544_v50, 1 }
 0x368   :  { %3054 = vrot.lane.b32.xlu1 %v11209_v53, %s9589_s30  ;;  %3056 = vrot.lane.b32.xlu0 %v11196_v55, %s9589_s30 }
 0x369   :  { %v2739_v49 = vsel %vm2617_vm3, %v2734_v2, %v2738_v45 }
 0x36a   :  { %v2943_v14 = vpop.permute.xlu0 %2942  ;;  %v11216_v52 = vmax.f32 %v2542_v22, %v2739_v49  ;;  %v2546_v25 = vld [vmem:[#allocation2 + $0x1f8] sm:$0xff] }
 0x36b   :  { %v3069_v59 = vsel %vm3068_vm5, %v2941_v10, %v2943_v14  ;;  %v3166_v28 = vmax.f32 %v10778_v43, %v2943_v14  ;;  %v2742_v42 = vrot.slane %v2546_v25, 1 }
 0x36c   :  { %v3165_v48 = vmax.f32 %v10735_v3, %v3069_v59  ;;  %3058 = vrot.lane.b32.xlu1 %v11216_v52, %s9589_s30  ;;  %3060 = vrot.lane.b32.xlu0 %v11207_v37, %s9589_s30 }
 0x36d   :  { %3230 = vst.msk [vmem:[#allocation3 + $0x8] sm:$0xff] %vm36_vm2, %v3166_v28  ;;  %v2743_v22 = vsel %vm2617_vm3, %v2738_v45, %v2742_v42  ;;  %v2747_v32 = vsel %vm2617_vm3, %v2742_v42, %v2746_v56 }
 0x36e   :  { %3229 = vst [vmem:[#allocation3] sm:$0xff] %v3165_v48  ;;  %v2947_v2 = vpop.permute.xlu1 %2946  ;;  %v2949_v10 = vpop.permute.xlu0 %2948  ;;  %v11230_v43 = vmax.f32 %v2544_v50, %v2743_v22  ;;  %v11244_v45 = vmax.f32 %v2546_v25, %v2747_v32  ;;  %v3362_v22 = vld [vmem:[%s14097_s3 + $0x28] sm:$0xff] }
 0x36f   :  { %v3070_v16 = vsel %vm3068_vm5, %v2945_v5, %v2947_v2  ;;  %v3168_v3 = vmax.f32 %v10796_v1, %v2947_v2 }
 0x370   :  { %v11236_v33 = vmax.f32 %v10737_v18, %v3070_v16  ;;  %3064 = vrot.lane.b32.xlu0 %v11228_v60, %s9589_s30  ;;  %3062 = vrot.lane.b32.xlu1 %v11230_v43, %s9589_s30 }
 0x371   :  { %3232 = vst.msk [vmem:[#allocation3 + $0x18] sm:$0xff] %vm36_vm2, %v3168_v3 }
 0x372   :  { %3231 = vst [vmem:[#allocation3 + $0x10] sm:$0xff] %v11236_v33  ;;  %v2951_v11 = vpop.permute.xlu1 %2950  ;;  %v2953_v50 = vpop.permute.xlu0 %2952  ;;  %v3514_v3 = vrot.slane %v11236_v33, 2 }
 0x373   :  { %v3071_v1 = vsel %vm3068_vm5, %v2949_v10, %v2951_v11  ;;  %v3170_v49 = vmax.f32 %v10820_v23, %v2951_v11  ;;  %v3359_v23 = vld [vmem:[%s14097_s3 + $0x10] sm:$0xff] }
 0x374   :  { %v11249_v18 = vmax.f32 %v10767_v39, %v3071_v1  ;;  %3066 = vrot.lane.b32.xlu1 %v11244_v45, %s9589_s30  ;;  %v3400_v59 = vld [vmem:[#allocation3 + $0x8] sm:$0xfc]  ;;  %v3357_v39 = vld [vmem:[%s14097_s3] sm:$0xff] }
 0x375   :  { %3234 = vst.msk [vmem:[#allocation3 + $0x28] sm:$0xff] %vm36_vm2, %v3170_v49  ;;  %v3399_v14 = vld [vmem:[#allocation3] sm:$0xfc]  ;;  %v3516_v2 = vrot.slane %v3400_v59, 2  ;;  %v8664_v32 = vpack.c.bf16 %v3359_v23, %v3357_v39 }
 0x376   :  { %3233 = vst [vmem:[#allocation3 + $0x20] sm:$0xff] %v11249_v18  ;;  %v2955_v5 = vpop.permute.xlu1 %2954  ;;  %v2957_v56 = vpop.permute.xlu0 %2956  ;;  %v3513_v48 = vrot.slane %v3399_v14, 2  ;;  %v3361_v14 = vld [vmem:[%s14097_s3 + $0x20] sm:$0xff] }
 0x377   :  { %v3072_v25 = vsel %vm3068_vm5, %v2953_v50, %v2955_v5  ;;  %v3172_v28 = vmax.f32 %v10841_v41, %v2955_v5  ;;  %v3364_v41 = vld [vmem:[%s14097_s3 + $0x38] sm:$0xff]  ;;  %v3363_v5 = vld [vmem:[%s14097_s3 + $0x30] sm:$0xff] }
 0x378   :  { %v11264_v63 = vmax.f32 %v10791_v62, %v3072_v25  ;;  %v3296_v42 = vld [vmem:[#allocation3 + $0x18] sm:$0xff]  ;;  %v8666_v49 = vpack.c.bf16 %v3364_v41, %v3362_v22  ;;  %v3515_v33 = vsel %vm3512_vm6, %v3513_v48, %v3514_v3 }
 0x379   :  { %3236 = vst.msk [vmem:[#allocation3 + $0x38] sm:$0xff] %vm36_vm2, %v3172_v28  ;;  %v3517_v10 = vrot.slane %v3296_v42, 2  ;;  %v3366_v25 = vld [vmem:[%s14097_s3 + $0x48] sm:$0xff]  ;;  %v3368_v28 = vld [vmem:[%s14097_s3 + $0x58] sm:$0xff]  ;;  %v8668_v42 = vpack.c.bf16 %v3363_v5, %v3361_v14 }
 0x37a   :  { %3235 = vst [vmem:[#allocation3 + $0x30] sm:$0xff] %v11264_v63  ;;  %v2959_v16 = vpop.permute.xlu1 %2958  ;;  %v2961_v62 = vpop.permute.xlu0 %2960  ;;  %v8670_v41 = vpack.c.bf16 %v3368_v28, %v3366_v25  ;;  %v3369_v25 = vld [vmem:[%s14097_s3 + $0x60] sm:$0xff]  ;;  %v3371_v28 = vld [vmem:[%s14097_s3 + $0x70] sm:$0xff] }
 0x37b   :  { %v3073_v11 = vsel %vm3068_vm5, %v2957_v56, %v2959_v16  ;;  %v3174_v50 = vmax.f32 %v10856_v61, %v2959_v16  ;;  %v3518_v1 = vsel %vm3512_vm6, %v3516_v2, %v3517_v10  ;;  %v3519_v61 = vrot.slane %v11249_v18, 2  ;;  %v3365_v2 = vld [vmem:[%s14097_s3 + $0x40] sm:$0xff]  ;;  %v3367_v16 = vld [vmem:[%s14097_s3 + $0x50] sm:$0xff] }
 0x37c   :  { %v11285_v59 = vmax.f32 %v10816_v21, %v3073_v11  ;;  %8118 = vmatprep.mubr.msk.f32.mxu1 %vm36_vm2, %v3518_v1  ;;  %v11289_v56 = vld [vmem:[#allocation3 + $0x28] sm:$0xff]  ;;  %v3370_v11 = vld [vmem:[%s14097_s3 + $0x68] sm:$0xff] }
 0x37d   :  { %3238 = vst.msk [vmem:[#allocation3 + $0x48] sm:$0xff] %vm36_vm2, %v3174_v50  ;;  %3811 = vmatmul.mubr.f32.vlgmr.msra.gmra.mrb[0].mxu1 %v3515_v33  ;;  %v3521_v21 = vrot.slane %v11289_v56, 2  ;;  %v3372_v50 = vld [vmem:[%s14097_s3 + $0x78] sm:$0xff] }
 0x37e   :  { %3237 = vst [vmem:[#allocation3 + $0x40] sm:$0xff] %v11285_v59  ;;  %8665 = vmatpush1.bf16.msra.mxu1 %v8664_v32  ;;  %v2963_v39 = vpop.permute.xlu1 %2962  ;;  %v2965_v23 = vpop.permute.xlu0 %2964  ;;  %v8674_v33 = vpack.c.bf16 %v3372_v50, %v3370_v11  ;;  %v3375_v11 = vld [vmem:[%s14097_s3 + $0x90] sm:$0xff] }
 0x37f   :  { %v3074_v18 = vsel %vm3068_vm5, %v2961_v62, %v2963_v39  ;;  %v3176_v48 = vmax.f32 %v10871_v20, %v2963_v39  ;;  %v3522_v22 = vsel %vm3512_vm6, %v3517_v10, %v3521_v21  ;;  %8667 = vmatprep.subr.bf16.mxu1 %v8666_v49  ;;  %v3520_v62 = vsel %vm3512_vm6, %v3514_v3, %v3519_v61 }
 0x380   :  { %v11311_v32 = vmax.f32 %v10838_v38, %v3074_v18  ;;  %8119 = vmatprep.mubr.msk.f32.mxu1 %vm36_vm2, %v3522_v22  ;;  %v11315_v20 = vld [vmem:[#allocation3 + $0x38] sm:$0xff]  ;;  %v3523_v10 = vrot.slane %v11264_v63, 2  ;;  %v8672_v49 = vpack.c.bf16 %v3367_v16, %v3365_v2  ;;  %v3376_v18 = vld [vmem:[%s14097_s3 + $0x98] sm:$0xff]  ;;  %v8676_v22 = vpack.c.bf16 %v3371_v28, %v3369_v25  ;;  %v3377_v28 = vld [vmem:[%s14097_s3 + $0xa0] sm:$0xff] }
 0x381   :  { %3240 = vst.msk [vmem:[#allocation3 + $0x58] sm:$0xff] %vm36_vm2, %v3176_v48  ;;  %3817 = vmatmul.mubr.f32.gmra.mrb[2].mxu1 %v3520_v62  ;;  %v3525_v38 = vrot.slane %v11315_v20, 2  ;;  %v3373_v62 = vld [vmem:[%s14097_s3 + $0x80] sm:$0xff] }
 0x382   :  { %3239 = vst [vmem:[#allocation3 + $0x50] sm:$0xff] %v11311_v32  ;;  %v2967_v3 = vpop.permute.xlu1 %2966  ;;  %v2969_v1 = vpop.permute.xlu0 %2968  ;;  %8669 = vmatpush1.bf16.msra.mxu1 %v8668_v42  ;;  %v3374_v42 = vld [vmem:[%s14097_s3 + $0x88] sm:$0xff] }
 0x383   :  { %v3075_v63 = vsel %vm3068_vm5, %v2965_v23, %v2967_v3  ;;  %v3178_v14 = vmax.f32 %v10886_v36, %v2967_v3  ;;  %v3526_v5 = vsel %vm3512_vm6, %v3521_v21, %v3525_v38  ;;  %8671 = vmatprep.subr.bf16.mxu1 %v8670_v41  ;;  %v3524_v23 = vsel %vm3512_vm6, %v3519_v61, %v3523_v10 }
 0x384   :  { %v11337_v39 = vmax.f32 %v10853_v57, %v3075_v63  ;;  %8120 = vmatprep.mubr.msk.f32.mxu1 %vm36_vm2, %v3526_v5  ;;  %v11341_v36 = vld [vmem:[#allocation3 + $0x48] sm:$0xff]  ;;  %v3527_v21 = vrot.slane %v11285_v59, 2  ;;  %v8678_v16 = vpack.c.bf16 %v3376_v18, %v3374_v42 }
 0x385   :  { %3242 = vst.msk [vmem:[#allocation3 + $0x68] sm:$0xff] %vm36_vm2, %v3178_v14  ;;  %3823 = vmatmul.mubr.f32.gmra.mrb[4].mxu1 %v3524_v23  ;;  %v3529_v57 = vrot.slane %v11341_v36, 2  ;;  %v8680_v14 = vpack.c.bf16 %v3375_v11, %v3373_v62  ;;  %v3379_v23 = vld [vmem:[%s14097_s3 + $0xb0] sm:$0xff]  ;;  %v3381_v11 = vld [vmem:[%s14097_s3 + $0xc0] sm:$0xff] }
 0x386   :  { %3241 = vst [vmem:[#allocation3 + $0x60] sm:$0xff] %v11337_v39  ;;  %v2971_v61 = vpop.permute.xlu1 %2970  ;;  %v2973_v48 = vpop.permute.xlu0 %2972  ;;  %8673 = vmatpush1.bf16.msra.mxu1 %v8672_v49  ;;  %v3528_v3 = vsel %vm3512_vm6, %v3523_v10, %v3527_v21  ;;  %v3380_v49 = vld [vmem:[%s14097_s3 + $0xb8] sm:$0xff] }
 0x387   :  { %v3076_v59 = vsel %vm3068_vm5, %v2969_v1, %v2971_v61  ;;  %v3180_v41 = vmax.f32 %v10901_v58, %v2971_v61  ;;  %v3530_v2 = vsel %vm3512_vm6, %v3525_v38, %v3529_v57  ;;  %8675 = vmatprep.subr.bf16.mxu1 %v8674_v33  ;;  %v3531_v38 = vrot.slane %v11311_v32, 2  ;;  %v3378_v1 = vld [vmem:[%s14097_s3 + $0xa8] sm:$0xff] }
 0x388   :  { %v11363_v50 = vmax.f32 %v10868_v15, %v3076_v59  ;;  %8121 = vmatprep.mubr.msk.f32.mxu1 %vm36_vm2, %v3530_v2  ;;  %v11367_v58 = vld [vmem:[#allocation3 + $0x58] sm:$0xff]  ;;  %v8682_v25 = vpack.c.bf16 %v3380_v49, %v3378_v1  ;;  %v8684_v59 = vpack.c.bf16 %v3379_v23, %v3377_v28  ;;  %v3385_v23 = vld [vmem:[%s14097_s3 + $0xe0] sm:$0xff] }
 0x389   :  { %3244 = vst.msk [vmem:[#allocation3 + $0x78] sm:$0xff] %vm36_vm2, %v3180_v41  ;;  %3829 = vmatmul.mubr.f32.gmra.mrb[6].mxu1 %v3528_v3  ;;  %v3533_v15 = vrot.slane %v11367_v58, 2  ;;  %v3532_v18 = vsel %vm3512_vm6, %v3527_v21, %v3531_v38  ;;  %v3382_v61 = vld [vmem:[%s14097_s3 + $0xc8] sm:$0xff]  ;;  %v3383_v3 = vld [vmem:[%s14097_s3 + $0xd0] sm:$0xff] }
 0x38a   :  { %3243 = vst [vmem:[#allocation3 + $0x70] sm:$0xff] %v11363_v50  ;;  %v2975_v10 = vpop.permute.xlu1 %2974  ;;  %v2977_v63 = vpop.permute.xlu0 %2976  ;;  %8677 = vmatpush1.bf16.msra.mxu1 %v8676_v22 }
 0x38b   :  { %v3077_v32 = vsel %vm3068_vm5, %v2973_v48, %v2975_v10  ;;  %v3182_v5 = vmax.f32 %v10916_v12, %v2975_v10  ;;  %v3534_v33 = vsel %vm3512_vm6, %v3529_v57, %v3533_v15  ;;  %8679 = vmatprep.subr.bf16.mxu1 %v8678_v16  ;;  %v3535_v57 = vrot.slane %v11337_v39, 2  ;;  %v3384_v48 = vld [vmem:[%s14097_s3 + $0xd8] sm:$0xff]  ;;  %v3386_v10 = vld [vmem:[%s14097_s3 + $0xe8] sm:$0xff] }
 0x38c   :  { %v11389_v42 = vmax.f32 %v10883_v34, %v3077_v32  ;;  %8122 = vmatprep.mubr.msk.f32.mxu1 %vm36_vm2, %v3534_v33  ;;  %v11393_v12 = vld [vmem:[#allocation3 + $0x68] sm:$0xff]  ;;  %v8686_v62 = vpack.c.bf16 %v3384_v48, %v3382_v61  ;;  %v8688_v32 = vpack.c.bf16 %v3383_v3, %v3381_v11  ;;  %v3389_v3 = vld [vmem:[%s14097_s3 + $0x100] sm:$0xff] }
 0x38d   :  { %3246 = vst.msk [vmem:[#allocation3 + $0x88] sm:$0xff] %vm36_vm2, %v3182_v5  ;;  %3835 = vmatmul.mubr.f32.gmra.mrb[8].mxu1 %v3532_v18  ;;  %v3537_v34 = vrot.slane %v11393_v12, 2  ;;  %v3536_v49 = vsel %vm3512_vm6, %v3531_v38, %v3535_v57  ;;  %v3387_v18 = vld [vmem:[%s14097_s3 + $0xf0] sm:$0xff] }
 0x38e   :  { %3245 = vst [vmem:[#allocation3 + $0x80] sm:$0xff] %v11389_v42  ;;  %v2979_v21 = vpop.permute.xlu1 %2978  ;;  %v2981_v22 = vpop.permute.xlu0 %2980  ;;  %8681 = vmatpush1.bf16.msra.mxu1 %v8680_v14 }
 0x38f   :  { %v3078_v41 = vsel %vm3068_vm5, %v2977_v63, %v2979_v21  ;;  %v3184_v2 = vmax.f32 %v10931_v44, %v2979_v21  ;;  %v3538_v16 = vsel %vm3512_vm6, %v3533_v15, %v3537_v34  ;;  %8683 = vmatprep.subr.bf16.mxu1 %v8682_v25  ;;  %v3539_v15 = vrot.slane %v11363_v50, 2  ;;  %v3388_v63 = vld [vmem:[%s14097_s3 + $0xf8] sm:$0xff]  ;;  %v3390_v21 = vld [vmem:[%s14097_s3 + $0x108] sm:$0xff] }
 0x390   :  { %v11415_v1 = vmax.f32 %v10898_v54, %v3078_v41  ;;  %8123 = vmatprep.mubr.msk.f32.mxu1 %vm36_vm2, %v3538_v16  ;;  %v11419_v44 = vld [vmem:[#allocation3 + $0x78] sm:$0xff]  ;;  %v8690_v28 = vpack.c.bf16 %v3388_v63, %v3386_v10  ;;  %v8692_v41 = vpack.c.bf16 %v3387_v18, %v3385_v23  ;;  %v3393_v18 = vld [vmem:[%s14097_s3 + $0x120] sm:$0xff] }
 0x391   :  { %3248 = vst.msk [vmem:[#allocation3 + $0x98] sm:$0xff] %vm36_vm2, %v3184_v2  ;;  %3841 = vmatmul.mubr.f32.gmra.mrb[10].mxu1 %v3536_v49  ;;  %v3541_v54 = vrot.slane %v11419_v44, 2  ;;  %v3540_v48 = vsel %vm3512_vm6, %v3535_v57, %v3539_v15  ;;  %v3391_v49 = vld [vmem:[%s14097_s3 + $0x110] sm:$0xff] }
 0x392   :  { %3247 = vst [vmem:[#allocation3 + $0x90] sm:$0xff] %v11415_v1  ;;  %v2983_v38 = vpop.permute.xlu1 %2982  ;;  %v2985_v14 = vpop.permute.xlu0 %2984  ;;  %8685 = vmatpush1.bf16.msra.mxu1 %v8684_v59 }
 0x393   :  { %v3079_v5 = vsel %vm3068_vm5, %v2981_v22, %v2983_v38  ;;  %v3186_v33 = vmax.f32 %v10946_v9, %v2983_v38  ;;  %v3542_v25 = vsel %vm3512_vm6, %v3537_v34, %v3541_v54  ;;  %8687 = vmatprep.subr.bf16.mxu1 %v8686_v62  ;;  %v3543_v34 = vrot.slane %v11389_v42, 2  ;;  %v3392_v22 = vld [vmem:[%s14097_s3 + $0x118] sm:$0xff]  ;;  %v3394_v38 = vld [vmem:[%s14097_s3 + $0x128] sm:$0xff] }
 0x394   :  { %v11441_v61 = vmax.f32 %v10913_v19, %v3079_v5  ;;  %8124 = vmatprep.mubr.msk.f32.mxu1 %vm36_vm2, %v3542_v25  ;;  %v11445_v9 = vld [vmem:[#allocation3 + $0x88] sm:$0xff]  ;;  %v8694_v11 = vpack.c.bf16 %v3392_v22, %v3390_v21  ;;  %v8696_v5 = vpack.c.bf16 %v3391_v49, %v3389_v3 }
 0x395   :  { %3250 = vst.msk [vmem:[#allocation3 + $0xa8] sm:$0xff] %vm36_vm2, %v3186_v33  ;;  %3847 = vmatmul.mubr.f32.gmra.mrb[12].mxu1 %v3540_v48  ;;  %v3545_v19 = vrot.slane %v11445_v9, 2  ;;  %v3544_v63 = vsel %vm3512_vm6, %v3539_v15, %v3543_v34  ;;  %v3395_v48 = vld [vmem:[%s14097_s3 + $0x130] sm:$0xff] }
 0x396   :  { %3249 = vst [vmem:[#allocation3 + $0xa0] sm:$0xff] %v11441_v61  ;;  %v2987_v57 = vpop.permute.xlu1 %2986  ;;  %v2989_v59 = vpop.permute.xlu0 %2988  ;;  %8689 = vmatpush1.bf16.msra.mxu1 %v8688_v32 }
 0x397   :  { %v3080_v2 = vsel %vm3068_vm5, %v2985_v14, %v2987_v57  ;;  %v3188_v16 = vmax.f32 %v10961_v26, %v2987_v57  ;;  %v3546_v62 = vsel %vm3512_vm6, %v3541_v54, %v3545_v19  ;;  %8691 = vmatprep.subr.bf16.mxu1 %v8690_v28  ;;  %v3547_v54 = vrot.slane %v11415_v1, 2  ;;  %v3396_v14 = vld [vmem:[%s14097_s3 + $0x138] sm:$0xff] }
 0x398   :  { %v11467_v10 = vmax.f32 %v10928_v40, %v3080_v2  ;;  %8125 = vmatprep.mubr.msk.f32.mxu1 %vm36_vm2, %v3546_v62  ;;  %v11471_v26 = vld [vmem:[#allocation3 + $0x98] sm:$0xff]  ;;  %v8698_v23 = vpack.c.bf16 %v3396_v14, %v3394_v38  ;;  %v8187_v38 = vld [vmem:[%s14097_s3 + $0x2b8] sm:$0xff] }
 0x399   :  { %3252 = vst.msk [vmem:[#allocation3 + $0xb8] sm:$0xff] %vm36_vm2, %v3188_v16  ;;  %3853 = vmatmul.mubr.f32.gmra.mrb[14].mxu1 %v3544_v63  ;;  %v3549_v40 = vrot.slane %v11471_v26, 2  ;;  %v3548_v22 = vsel %vm3512_vm6, %v3543_v34, %v3547_v54  ;;  %v3398_v62 = vld [vmem:[%s14097_s3 + $0x148] sm:$0x3] }
 0x39a   :  { %3251 = vst [vmem:[#allocation3 + $0xb0] sm:$0xff] %v11467_v10  ;;  %v2991_v15 = vpop.permute.xlu1 %2990  ;;  %v2993_v32 = vpop.permute.xlu0 %2992  ;;  %8693 = vmatpush1.bf16.msra.mxu1 %v8692_v41  ;;  %v3555_v63 = vrot.slane %v11467_v10, 2 }
 0x39b   :  { %v3081_v33 = vsel %vm3068_vm5, %v2989_v59, %v2991_v15  ;;  %v3190_v25 = vmax.f32 %v10976_v4, %v2991_v15  ;;  %v3550_v28 = vsel %vm3512_vm6, %v3545_v19, %v3549_v40  ;;  %8695 = vmatprep.subr.bf16.mxu1 %v8694_v11  ;;  %v3551_v19 = vrot.slane %v11441_v61, 2 }
 0x39c   :  { %v11493_v21 = vmax.f32 %v10943_v7, %v3081_v33  ;;  %8126 = vmatprep.mubr.msk.f32.mxu1 %vm36_vm2, %v3550_v28  ;;  %v11497_v4 = vld [vmem:[#allocation3 + $0xa8] sm:$0xff]  ;;  %v8700_v7 = vpack.c.bf16 %v3395_v48, %v3393_v18 }
 0x39d   :  { %3254 = vst.msk [vmem:[#allocation3 + $0xc8] sm:$0xff] %vm36_vm2, %v3190_v25  ;;  %3859 = vmatmul.mubr.f32.gmra.mrb[16].mxu1 %v3548_v22  ;;  %v3553_v57 = vrot.slane %v11497_v4, 2  ;;  %v3552_v3 = vsel %vm3512_vm6, %v3547_v54, %v3551_v19  ;;  %v3556_v28 = vsel %vm3512_vm6, %v3551_v19, %v3555_v63 }
 0x39e   :  { %3253 = vst [vmem:[#allocation3 + $0xc0] sm:$0xff] %v11493_v21  ;;  %v2995_v59 = vpop.permute.xlu1 %2994  ;;  %v2997_v41 = vpop.permute.xlu0 %2996  ;;  %8697 = vmatpush1.bf16.msra.mxu1 %v8696_v5  ;;  %v3397_v5 = vld [vmem:[%s14097_s3 + $0x140] sm:$0x3] }
 0x39f   :  { %v3082_v2 = vsel %vm3068_vm5, %v2993_v32, %v2995_v59  ;;  %v3192_v16 = vmax.f32 %v10991_v31, %v2995_v59  ;;  %v3554_v34 = vsel %vm3512_vm6, %v3549_v40, %v3553_v57  ;;  %8699 = vmatprep.subr.bf16.mxu1 %v8698_v23  ;;  %v8185_v31 = vld [vmem:[%s14097_s3 + $0x2a8] sm:$0xff] }
 0x3a0   :  { %v11510_v11 = vmax.f32 %v10958_v30, %v3082_v2  ;;  %8127 = vmatprep.mubr.msk.f32.mxu1 %vm36_vm2, %v3554_v34  ;;  %v11514_v49 = vld [vmem:[#allocation3 + $0xb8] sm:$0xff]  ;;  %v8702_v33 = vpack.c.bf16 %v8187_v38, %v8185_v31 }
 0x3a1   :  { %3256 = vst.msk [vmem:[#allocation3 + $0xd8] sm:$0xff] %vm36_vm2, %v3192_v16  ;;  %3865 = vmatmul.mubr.f32.gmra.mrb[18].mxu1 %v3552_v3  ;;  %v3557_v30 = vrot.slane %v11514_v49, 2 }
 0x3a2   :  { %3255 = vst [vmem:[#allocation3 + $0xd0] sm:$0xff] %v11510_v11  ;;  %v2999_v54 = vpop.permute.xlu1 %2998  ;;  %v3001_v14 = vpop.permute.xlu0 %3000  ;;  %8701 = vmatpush1.bf16.msra.mxu1 %v8700_v7  ;;  %v3563_v2 = vrot.slane %v11510_v11, 2 }
 0x3a3   :  { %v3083_v40 = vsel %vm3068_vm5, %v2997_v41, %v2999_v54  ;;  %v3194_v15 = vmax.f32 %v11006_v13, %v2999_v54  ;;  %v3558_v32 = vsel %vm3512_vm6, %v3553_v57, %v3557_v30  ;;  %8150 = vmatprep.subr.msk.mxu1 %vm3739_vm4, %v3398_v62  ;;  %v3559_v13 = vrot.slane %v11493_v21, 2 }
 0x3a4   :  { %v11534_v25 = vmax.f32 %v10973_v47, %v3083_v40  ;;  %8128 = vmatprep.mubr.msk.f32.mxu1 %vm36_vm2, %v3558_v32  ;;  %v11538_v23 = vld [vmem:[#allocation3 + $0xc8] sm:$0xff]  ;;  %v14204_v32 = vld [vmem:[#allocation9_spill] sm:$0xff] }
 0x3a5   :  { %3258 = vst.msk [vmem:[#allocation3 + $0xe8] sm:$0xff] %vm36_vm2, %v3194_v15  ;;  %3871 = vmatmul.mubr.f32.gmra.mrb[20].mxu1 %v3556_v28  ;;  %v3561_v18 = vrot.slane %v11538_v23, 2  ;;  %v3560_v41 = vsel %vm3512_vm6, %v3555_v63, %v3559_v13  ;;  %v3564_v31 = vsel %vm3512_vm6, %v3559_v13, %v3563_v2 }
 0x3a6   :  { %3257 = vst [vmem:[#allocation3 + $0xe0] sm:$0xff] %v11534_v25  ;;  %v3003_v48 = vpop.permute.xlu1 %3002  ;;  %v3005_v22 = vpop.permute.xlu0 %3004  ;;  %8151 = vmatpush1.msk.msra.mxu1 %vm3739_vm4, %v3397_v5 }
 0x3a7   :  { %v3084_v47 = vsel %vm3068_vm5, %v3001_v14, %v3003_v48  ;;  %v3196_v57 = vmax.f32 %v11021_v51, %v3003_v48  ;;  %v3562_v19 = vsel %vm3512_vm6, %v3557_v30, %v3561_v18  ;;  %8703 = vmatprep.subr.bf16.mxu1 %v8702_v33  ;;  %v3567_v30 = vrot.slane %v11534_v25, 2 }
 0x3a8   :  { %v11549_v59 = vmax.f32 %v10988_v27, %v3084_v47  ;;  %8129 = vmatprep.mubr.msk.f32.mxu1 %vm36_vm2, %v3562_v19  ;;  %v11553_v7 = vld [vmem:[#allocation3 + $0xd8] sm:$0xff]  ;;  %v14205_v47 = vld [vmem:[#allocation13_spill] sm:$0xff] }
 0x3a9   :  { %3260 = vst.msk [vmem:[#allocation3 + $0xf8] sm:$0xff] %vm36_vm2, %v3196_v57  ;;  %3877 = vmatmul.mubr.f32.gmra.mrb[22].mxu1 %v3560_v41  ;;  %v3565_v16 = vrot.slane %v11553_v7, 2  ;;  %v3568_v33 = vsel %vm3512_vm6, %v3563_v2, %v3567_v30  ;;  %v14206_v41 = vld [vmem:[#allocation10_spill] sm:$0xff] }
 0x3aa   :  { %3259 = vst [vmem:[#allocation3 + $0xf0] sm:$0xff] %v11549_v59  ;;  %v3007_v51 = vpop.permute.xlu1 %3006  ;;  %v3009_v34 = vpop.permute.xlu0 %3008  ;;  %v3571_v13 = vrot.slane %v11549_v59, 2 }
 0x3ab   :  { %v3085_v27 = vsel %vm3068_vm5, %v3005_v22, %v3007_v51  ;;  %v3198_v62 = vmax.f32 %v11036_v6, %v3007_v51  ;;  %v3566_v3 = vsel %vm3512_vm6, %v3561_v18, %v3565_v16 }
 0x3ac   :  { %v11563_v63 = vmax.f32 %v11003_v0, %v3085_v27  ;;  %8130 = vmatprep.mubr.msk.f32.mxu1 %vm36_vm2, %v3566_v3  ;;  %v11567_v38 = vld [vmem:[#allocation3 + $0xe8] sm:$0xff] }
 0x3ad   :  { %3262 = vst.msk [vmem:[#allocation3 + $0x108] sm:$0xff] %vm36_vm2, %v3198_v62  ;;  %3883 = vmatmul.mubr.f32.gmra.mrb[24].mxu1 %v3564_v31  ;;  %v3569_v54 = vrot.slane %v11567_v38, 2 }
 0x3ae   :  { %3261 = vst [vmem:[#allocation3 + $0x100] sm:$0xff] %v11563_v63  ;;  %v3011_v6 = vpop.permute.xlu1 %3010  ;;  %v3013_v14 = vpop.permute.xlu0 %3012 }
 0x3af   :  { %v3086_v0 = vsel %vm3068_vm5, %v3009_v34, %v3011_v6  ;;  %v3200_v40 = vmax.f32 %v11051_v29, %v3011_v6  ;;  %v3570_v15 = vsel %vm3512_vm6, %v3565_v16, %v3569_v54  ;;  %v3572_v16 = vsel %vm3512_vm6, %v3567_v30, %v3571_v13  ;;  %v14208_v30 = vld [vmem:[#allocation11_spill] sm:$0xff] }
 0x3b0   :  { %v11577_v5 = vmax.f32 %v14204_v32, %v3086_v0  ;;  %8131 = vmatprep.mubr.msk.f32.mxu1 %vm36_vm2, %v3570_v15  ;;  %v11581_v28 = vld [vmem:[#allocation3 + $0xf8] sm:$0xff]  ;;  %v3575_v34 = vrot.slane %v11563_v63, 2 }
 0x3b1   :  { %3264 = vst.msk [vmem:[#allocation3 + $0x118] sm:$0xff] %vm36_vm2, %v3200_v40  ;;  %3889 = vmatmul.mubr.f32.gmra.mrb[26].mxu1 %v3568_v33  ;;  %v3573_v18 = vrot.slane %v11581_v28, 2 }
 0x3b2   :  { %3263 = vst [vmem:[#allocation3 + $0x110] sm:$0xff] %v11577_v5  ;;  %v3015_v29 = vpop.permute.xlu1 %3014  ;;  %v3017_v48 = vpop.permute.xlu0 %3016  ;;  %v3576_v40 = vsel %vm3512_vm6, %v3571_v13, %v3575_v34  ;;  %v3579_v32 = vrot.slane %v11577_v5, 2  ;;  %v14210_v13 = vld [vmem:[#allocation12_spill] sm:$0xff] }
 0x3b3   :  { %v3087_v22 = vsel %vm3068_vm5, %v3013_v14, %v3015_v29  ;;  %v3202_v57 = vmax.f32 %v14205_v47, %v3015_v29  ;;  %v3574_v19 = vsel %vm3512_vm6, %v3569_v54, %v3573_v18  ;;  %v14207_v54 = vld [vmem:[#allocation15_spill] sm:$0xff] }
 0x3b4   :  { %v11591_v2 = vmax.f32 %v14206_v41, %v3087_v22  ;;  %8132 = vmatprep.mubr.msk.f32.mxu1 %vm36_vm2, %v3574_v19  ;;  %v11595_v51 = vld [vmem:[#allocation3 + $0x108] sm:$0xff]  ;;  %v14209_v22 = vld [vmem:[#allocation17_spill] sm:$0xff]  ;;  %v3580_v41 = vsel %vm3512_vm6, %v3575_v34, %v3579_v32 }
 0x3b5   :  { %3266 = vst.msk [vmem:[#allocation3 + $0x128] sm:$0xff] %vm36_vm2, %v3202_v57  ;;  %3895 = vmatmul.mubr.f32.gmra.mrb[28].mxu1 %v3572_v16  ;;  %v3577_v27 = vrot.slane %v11595_v51, 2  ;;  %v14213_v34 = vld [vmem:[#allocation14_spill] sm:$0xff] }
 0x3b6   :  { %3265 = vst [vmem:[#allocation3 + $0x120] sm:$0xff] %v11591_v2  ;;  %v3019_v62 = vpop.permute.xlu1 %3018  ;;  %v3021_v3 = vpop.permute.xlu0 %3020 }
 0x3b7   :  { %v3088_v31 = vsel %vm3068_vm5, %v3017_v48, %v3019_v62  ;;  %v3204_v6 = vmax.f32 %v14207_v54, %v3019_v62  ;;  %v3578_v14 = vsel %vm3512_vm6, %v3573_v18, %v3577_v27  ;;  %v3583_v62 = vrot.slane %v11591_v2, 2 }
 0x3b8   :  { %v11605_v0 = vmax.f32 %v14208_v30, %v3088_v31  ;;  %8133 = vmatprep.mubr.msk.f32.mxu1 %vm36_vm2, %v3578_v14  ;;  %v11609_v15 = vld [vmem:[#allocation3 + $0x118] sm:$0xff] }
 0x3b9   :  { %3268 = vst.msk [vmem:[#allocation3 + $0x138] sm:$0xff] %vm36_vm2, %v3204_v6  ;;  %3901 = vmatmul.mubr.f32.gmra.mrb[30].mxu1 %v3576_v40  ;;  %v3581_v33 = vrot.slane %v11609_v15, 2  ;;  %v14212_v6 = vld [vmem:[#allocation19_spill] sm:$0xff] }
 0x3ba   :  { %3267 = vst [vmem:[#allocation3 + $0x130] sm:$0xff] %v11605_v0  ;;  %v3023_v29 = vpop.permute.xlu1 %3022  ;;  %v3025_v18 = vpop.permute.xlu0 %3024 }
 0x3bb   :  { %v3089_v48 = vsel %vm3068_vm5, %v3021_v3, %v3023_v29  ;;  %v3206_v47 = vmax.f32 %v14209_v22, %v3023_v29  ;;  %v3582_v57 = vsel %vm3512_vm6, %v3577_v27, %v3581_v33  ;;  %v3584_v29 = vsel %vm3512_vm6, %v3579_v32, %v3583_v62  ;;  %v14216_v32 = vld [vmem:[#allocation16_spill] sm:$0xff] }
 0x3bc   :  { %v11619_v19 = vmax.f32 %v14210_v13, %v3089_v48  ;;  %8134 = vmatprep.mubr.msk.f32.mxu1 %vm36_vm2, %v3582_v57  ;;  %v11623_v16 = vld [vmem:[#allocation3 + $0x128] sm:$0xff]  ;;  %v3587_v22 = vrot.slane %v11605_v0, 2  ;;  %v14215_v13 = vld [vmem:[#allocation21_spill] sm:$0xff] }
 0x3bd   :  { %3270 = vst.msk [vmem:[#allocation3 + $0x148] sm:$0xff] %vm36_vm2, %v3206_v47  ;;  %3907 = vmatmul.mubr.f32.gmra.mrb[32].mxu1 %v3580_v41  ;;  %v3585_v3 = vrot.slane %v11623_v16, 2 }
 0x3be   :  { %14211 = vst [vmem:[#allocation9_spill] sm:$0xff] %v11619_v19  ;;  %3269 = vst [vmem:[#allocation3 + $0x140] sm:$0xff] %v11619_v19  ;;  %v3027_v31 = vpop.permute.xlu1 %3026  ;;  %v3029_v27 = vpop.permute.xlu0 %3028 }
 0x3bf   :  { %v3090_v54 = vsel %vm3068_vm5, %v3025_v18, %v3027_v31  ;;  %v3208_v14 = vmax.f32 %v14212_v6, %v3027_v31  ;;  %v3586_v30 = vsel %vm3512_vm6, %v3581_v33, %v3585_v3  ;;  %v3588_v6 = vsel %vm3512_vm6, %v3583_v62, %v3587_v22  ;;  %v14219_v62 = vld [vmem:[#allocation18_spill] sm:$0xff] }
 0x3c0   :  { %v11633_v40 = vmax.f32 %v14213_v34, %v3090_v54  ;;  %8135 = vmatprep.mubr.msk.f32.mxu1 %vm36_vm2, %v3586_v30  ;;  %v11637_v48 = vld [vmem:[#allocation3 + $0x138] sm:$0xff]  ;;  %v3591_v30 = vrot.slane %v11619_v19, 2 }
 0x3c1   :  { %3272 = vst.msk [vmem:[#allocation3 + $0x158] sm:$0xff] %vm36_vm2, %v3208_v14  ;;  %3913 = vmatmul.mubr.f32.gmra.mrb[34].mxu1 %v3584_v29  ;;  %v3589_v18 = vrot.slane %v11637_v48, 2 }
 0x3c2   :  { %14214 = vst [vmem:[#allocation13_spill] sm:$0xff] %v11633_v40  ;;  %3271 = vst [vmem:[#allocation3 + $0x150] sm:$0xff] %v11633_v40  ;;  %v3031_v47 = vpop.permute.xlu1 %3030  ;;  %v3033_v33 = vpop.permute.xlu0 %3032 }
 0x3c3   :  { %v3091_v57 = vsel %vm3068_vm5, %v3029_v27, %v3031_v47  ;;  %v3210_v41 = vmax.f32 %v14215_v13, %v3031_v47  ;;  %v3590_v31 = vsel %vm3512_vm6, %v3585_v3, %v3589_v18  ;;  %v14218_v47 = vld [vmem:[#allocation23_spill] sm:$0xff] }
 0x3c4   :  { %v11647_v54 = vmax.f32 %v14216_v32, %v3091_v57  ;;  %8136 = vmatprep.mubr.msk.f32.mxu1 %vm36_vm2, %v3590_v31  ;;  %v11651_v14 = vld [vmem:[#allocation3 + $0x148] sm:$0xff] }
 0x3c5   :  { %3274 = vst.msk [vmem:[#allocation3 + $0x168] sm:$0xff] %vm36_vm2, %v3210_v41  ;;  %3919 = vmatmul.mubr.f32.gmra.mrb[36].mxu1 %v3588_v6  ;;  %v3593_v27 = vrot.slane %v11651_v14, 2  ;;  %v3592_v41 = vsel %vm3512_vm6, %v3587_v22, %v3591_v30  ;;  %v3595_v6 = vrot.slane %v11633_v40, 2  ;;  %v14222_v22 = vld [vmem:[#allocation20_spill] sm:$0xff] }
 0x3c6   :  { %14217 = vst [vmem:[#allocation10_spill] sm:$0xff] %v11647_v54  ;;  %3273 = vst [vmem:[#allocation3 + $0x160] sm:$0xff] %v11647_v54  ;;  %v3035_v34 = vpop.permute.xlu1 %3034  ;;  %v3037_v3 = vpop.permute.xlu0 %3036  ;;  %v3599_v40 = vrot.slane %v11647_v54, 2 }
 0x3c7   :  { %v3092_v29 = vsel %vm3068_vm5, %v3033_v33, %v3035_v34  ;;  %v3212_v57 = vmax.f32 %v14218_v47, %v3035_v34  ;;  %v3594_v13 = vsel %vm3512_vm6, %v3589_v18, %v3593_v27  ;;  %v14221_v47 = vld [vmem:[#allocation25_spill] sm:$0xff] }
 0x3c8   :  { %v11661_v31 = vmax.f32 %v14219_v62, %v3092_v29  ;;  %8137 = vmatprep.mubr.msk.f32.mxu1 %vm36_vm2, %v3594_v13  ;;  %v11665_v32 = vld [vmem:[#allocation3 + $0x158] sm:$0xff] }
 0x3c9   :  { %3276 = vst.msk [vmem:[#allocation3 + $0x178] sm:$0xff] %vm36_vm2, %v3212_v57  ;;  %3925 = vmatmul.mubr.f32.gmra.mrb[38].mxu1 %v3592_v41  ;;  %v3597_v33 = vrot.slane %v11665_v32, 2  ;;  %v3596_v57 = vsel %vm3512_vm6, %v3591_v30, %v3595_v6  ;;  %v14223_v30 = vld [vmem:[#allocation22_spill] sm:$0xff] }
 0x3ca   :  { %14220 = vst [vmem:[#allocation15_spill] sm:$0xff] %v11661_v31  ;;  %3275 = vst [vmem:[#allocation3 + $0x170] sm:$0xff] %v11661_v31  ;;  %v3039_v34 = vpop.permute.xlu1 %3038  ;;  %v3041_v18 = vpop.permute.xlu0 %3040  ;;  %v3603_v54 = vrot.slane %v11661_v31, 2 }
 0x3cb   :  { %v3093_v29 = vsel %vm3068_vm5, %v3037_v3, %v3039_v34  ;;  %v3214_v62 = vmax.f32 %v14221_v47, %v3039_v34  ;;  %v3598_v13 = vsel %vm3512_vm6, %v3593_v27, %v3597_v33 }
 0x3cc   :  { %v11675_v19 = vmax.f32 %v14222_v22, %v3093_v29  ;;  %8138 = vmatprep.mubr.msk.f32.mxu1 %vm36_vm2, %v3598_v13  ;;  %v11679_v41 = vld [vmem:[#allocation3 + $0x168] sm:$0xff] }
 0x3cd   :  { %3278 = vst.msk [vmem:[#allocation3 + $0x188] sm:$0xff] %vm36_vm2, %v3214_v62  ;;  %3931 = vmatmul.mubr.f32.gmra.mrb[40].mxu1 %v3596_v57  ;;  %v3601_v3 = vrot.slane %v11679_v41, 2  ;;  %v3600_v62 = vsel %vm3512_vm6, %v3595_v6, %v3599_v40  ;;  %v14224_v6 = vld [vmem:[#allocation24_spill] sm:$0xff] }
 0x3ce   :  { %3277 = vst [vmem:[#allocation3 + $0x180] sm:$0xff] %v11675_v19  ;;  %v3043_v34 = vpop.permute.xlu1 %3042  ;;  %v3045_v27 = vpop.permute.xlu0 %3044  ;;  %v3607_v31 = vrot.slane %v11675_v19, 2 }
 0x3cf   :  { %v3094_v29 = vsel %vm3068_vm5, %v3041_v18, %v3043_v34  ;;  %v3216_v47 = vmax.f32 %v11171_v35, %v3043_v34  ;;  %v3602_v13 = vsel %vm3512_vm6, %v3597_v33, %v3601_v3 }
 0x3d0   :  { %v11689_v22 = vmax.f32 %v14223_v30, %v3094_v29  ;;  %8139 = vmatprep.mubr.msk.f32.mxu1 %vm36_vm2, %v3602_v13  ;;  %v11693_v57 = vld [vmem:[#allocation3 + $0x178] sm:$0xff] }
 0x3d1   :  { %3280 = vst.msk [vmem:[#allocation3 + $0x198] sm:$0xff] %vm36_vm2, %v3216_v47  ;;  %3937 = vmatmul.mubr.f32.gmra.mrb[42].mxu1 %v3600_v62  ;;  %v3605_v18 = vrot.slane %v11693_v57, 2  ;;  %v3604_v47 = vsel %vm3512_vm6, %v3599_v40, %v3603_v54 }
 0x3d2   :  { %3279 = vst [vmem:[#allocation3 + $0x190] sm:$0xff] %v11689_v22  ;;  %v3047_v35 = vpop.permute.xlu1 %3046  ;;  %v3049_v33 = vpop.permute.xlu0 %3048 }
 0x3d3   :  { %v3095_v34 = vsel %vm3068_vm5, %v3045_v27, %v3047_v35  ;;  %v3218_v29 = vmax.f32 %v11186_v8, %v3047_v35  ;;  %v3606_v13 = vsel %vm3512_vm6, %v3601_v3, %v3605_v18 }
 0x3d4   :  { %v11703_v30 = vmax.f32 %v14224_v6, %v3095_v34  ;;  %8140 = vmatprep.mubr.msk.f32.mxu1 %vm36_vm2, %v3606_v13  ;;  %v11707_v62 = vld [vmem:[#allocation3 + $0x188] sm:$0xff] }
 0x3d5   :  { %3282 = vst.msk [vmem:[#allocation3 + $0x1a8] sm:$0xff] %vm36_vm2, %v3218_v29  ;;  %3943 = vmatmul.mubr.f32.gmra.mrb[44].mxu1 %v3604_v47  ;;  %v3609_v27 = vrot.slane %v11707_v62, 2  ;;  %v3608_v29 = vsel %vm3512_vm6, %v3603_v54, %v3607_v31  ;;  %v3611_v47 = vrot.slane %v11689_v22, 2 }
 0x3d6   :  { %3281 = vst [vmem:[#allocation3 + $0x1a0] sm:$0xff] %v11703_v30  ;;  %v3051_v8 = vpop.permute.xlu1 %3050  ;;  %v3053_v3 = vpop.permute.xlu0 %3052 }
 0x3d7   :  { %v3096_v35 = vsel %vm3068_vm5, %v3049_v33, %v3051_v8  ;;  %v3220_v34 = vmax.f32 %v11198_v46, %v3051_v8  ;;  %v3610_v13 = vsel %vm3512_vm6, %v3605_v18, %v3609_v27 }
 0x3d8   :  { %v11717_v40 = vmax.f32 %v11168_v24, %v3096_v35  ;;  %8141 = vmatprep.mubr.msk.f32.mxu1 %vm36_vm2, %v3610_v13  ;;  %v11721_v6 = vld [vmem:[#allocation3 + $0x198] sm:$0xff] }
 0x3d9   :  { %3284 = vst.msk [vmem:[#allocation3 + $0x1b8] sm:$0xff] %vm36_vm2, %v3220_v34  ;;  %3949 = vmatmul.mubr.f32.gmra.mrb[46].mxu1 %v3608_v29  ;;  %v3613_v33 = vrot.slane %v11721_v6, 2  ;;  %v3612_v34 = vsel %vm3512_vm6, %v3607_v31, %v3611_v47  ;;  %v3615_v29 = vrot.slane %v11703_v30, 2 }
 0x3da   :  { %3283 = vst [vmem:[#allocation3 + $0x1b0] sm:$0xff] %v11717_v40  ;;  %v3055_v46 = vpop.permute.xlu1 %3054  ;;  %v3057_v18 = vpop.permute.xlu0 %3056 }
 0x3db   :  { %v3097_v24 = vsel %vm3068_vm5, %v3053_v3, %v3055_v46  ;;  %v3222_v8 = vmax.f32 %v11209_v53, %v3055_v46  ;;  %v3614_v35 = vsel %vm3512_vm6, %v3609_v27, %v3613_v33 }
 0x3dc   :  { %v11731_v54 = vmax.f32 %v11183_v17, %v3097_v24  ;;  %8142 = vmatprep.mubr.msk.f32.mxu1 %vm36_vm2, %v3614_v35  ;;  %v11735_v13 = vld [vmem:[#allocation3 + $0x1a8] sm:$0xff] }
 0x3dd   :  { %3286 = vst.msk [vmem:[#allocation3 + $0x1c8] sm:$0xff] %vm36_vm2, %v3222_v8  ;;  %3955 = vmatmul.mubr.f32.gmra.mrb[48].mxu1 %v3612_v34  ;;  %v3617_v3 = vrot.slane %v11735_v13, 2  ;;  %v3616_v8 = vsel %vm3512_vm6, %v3611_v47, %v3615_v29  ;;  %v3619_v34 = vrot.slane %v11717_v40, 2 }
 0x3de   :  { %3285 = vst [vmem:[#allocation3 + $0x1c0] sm:$0xff] %v11731_v54  ;;  %v3059_v53 = vpop.permute.xlu1 %3058  ;;  %v3061_v24 = vpop.permute.xlu0 %3060 }
 0x3df   :  { %v3098_v27 = vsel %vm3068_vm5, %v3057_v18, %v3059_v53  ;;  %v3224_v17 = vmax.f32 %v11216_v52, %v3059_v53  ;;  %v3618_v46 = vsel %vm3512_vm6, %v3613_v33, %v3617_v3 }
 0x3e0   :  { %v11745_v31 = vmax.f32 %v11196_v55, %v3098_v27  ;;  %8143 = vmatprep.mubr.msk.f32.mxu1 %vm36_vm2, %v3618_v46  ;;  %v11749_v35 = vld [vmem:[#allocation3 + $0x1b8] sm:$0xff]  ;;  %v3620_v27 = vsel %vm3512_vm6, %v3615_v29, %v3619_v34  ;;  %v3623_v46 = vrot.slane %v11731_v54, 2 }
 0x3e1   :  { %3288 = vst.msk [vmem:[#allocation3 + $0x1d8] sm:$0xff] %vm36_vm2, %v3224_v17  ;;  %3961 = vmatmul.mubr.f32.gmra.mrb[50].mxu1 %v3616_v8  ;;  %v3621_v18 = vrot.slane %v11749_v35, 2 }
 0x3e2   :  { %3287 = vst [vmem:[#allocation3 + $0x1d0] sm:$0xff] %v11745_v31  ;;  %v3063_v52 = vpop.permute.xlu1 %3062  ;;  %v3065_v8 = vpop.permute.xlu0 %3064 }
 0x3e3   :  { %v3099_v55 = vsel %vm3068_vm5, %v3061_v24, %v3063_v52  ;;  %v3226_v33 = vmax.f32 %v11230_v43, %v3063_v52  ;;  %v3622_v53 = vsel %vm3512_vm6, %v3617_v3, %v3621_v18 }
 0x3e4   :  { %v11759_v47 = vmax.f32 %v11207_v37, %v3099_v55  ;;  %8144 = vmatprep.mubr.msk.f32.mxu1 %vm36_vm2, %v3622_v53  ;;  %v11763_v17 = vld [vmem:[#allocation3 + $0x1c8] sm:$0xff]  ;;  %v3624_v55 = vsel %vm3512_vm6, %v3619_v34, %v3623_v46  ;;  %v3627_v53 = vrot.slane %v11745_v31, 2 }
 0x3e5   :  { %3290 = vst.msk [vmem:[#allocation3 + $0x1e8] sm:$0xff] %vm36_vm2, %v3226_v33  ;;  %3967 = vmatmul.mubr.f32.gmra.mrb[52].mxu1 %v3620_v27  ;;  %v3625_v24 = vrot.slane %v11763_v17, 2 }
 0x3e6   :  { %14225 = vst [vmem:[#allocation11_spill] sm:$0xff] %v11759_v47  ;;  %3289 = vst [vmem:[#allocation3 + $0x1e0] sm:$0xff] %v11759_v47  ;;  %v3067_v43 = vpop.permute.xlu1 %3066  ;;  %v3631_v34 = vrot.slane %v11759_v47, 2 }
 0x3e7   :  { %v3100_v37 = vsel %vm3068_vm5, %v3065_v8, %v3067_v43  ;;  %v3228_v3 = vmax.f32 %v11244_v45, %v3067_v43  ;;  %v3626_v52 = vsel %vm3512_vm6, %v3621_v18, %v3625_v24  ;;  %v3402_v43 = vld [vmem:[#allocation3 + $0x208] sm:$0x3] }
 0x3e8   :  { %v11773_v29 = vmax.f32 %v11228_v60, %v3100_v37  ;;  %8145 = vmatprep.mubr.msk.f32.mxu1 %vm36_vm2, %v3626_v52  ;;  %v11777_v33 = vld [vmem:[#allocation3 + $0x1d8] sm:$0xff]  ;;  %v3628_v60 = vsel %vm3512_vm6, %v3623_v46, %v3627_v53 }
 0x3e9   :  { %3292 = vst.msk [vmem:[#allocation3 + $0x1f8] sm:$0xff] %vm36_vm2, %v3228_v3  ;;  %3973 = vmatmul.mubr.f32.gmra.mrb[54].mxu1 %v3624_v55  ;;  %v3629_v27 = vrot.slane %v11777_v33, 2  ;;  %v3632_v3 = vsel %vm3512_vm6, %v3627_v53, %v3631_v34  ;;  %v3641_v55 = vrot.slane %v3402_v43, 2  ;;  %v8184_v53 = vld [vmem:[%s14097_s3 + $0x2a0] sm:$0xff]  ;;  %v8186_v43 = vld [vmem:[%s14097_s3 + $0x2b0] sm:$0xff] }
 0x3ea   :  { %3291 = vst [vmem:[#allocation3 + $0x1f0] sm:$0xff] %v11773_v29 }
 0x3eb   :  { %v3630_v45 = vsel %vm3512_vm6, %v3625_v24, %v3629_v27  ;;  %v3635_v24 = vrot.slane %v11773_v29, 2 }
 0x3ec   :  { %8146 = vmatprep.mubr.msk.f32.mxu1 %vm36_vm2, %v3630_v45  ;;  %v11786_v18 = vld [vmem:[#allocation3 + $0x1e8] sm:$0xff]  ;;  %v3401_v45 = vld [vmem:[#allocation3 + $0x200] sm:$0x3] }
 0x3ed   :  { %3979 = vmatmul.mubr.f32.gmra.mrb[56].mxu1 %v3628_v60  ;;  %v3633_v8 = vrot.slane %v11786_v18, 2  ;;  %v3636_v47 = vsel %vm3512_vm6, %v3631_v34, %v3635_v24  ;;  %v8189_v34 = vld [vmem:[%s14097_s3 + $0x2c8] sm:$0xff] }
 0x3ef   :  { %v3634_v37 = vsel %vm3512_vm6, %v3629_v27, %v3633_v8  ;;  %v3639_v27 = vrot.slane %v3401_v45, 2  ;;  %v8188_v45 = vld [vmem:[%s14097_s3 + $0x2c0] sm:$0xff] }
 0x3f0   :  { %8147 = vmatprep.mubr.msk.f32.mxu1 %vm36_vm2, %v3634_v37  ;;  %v11793_v52 = vld [vmem:[#allocation3 + $0x1f8] sm:$0xff] }
 0x3f1   :  { %3985 = vmatmul.mubr.f32.gmra.mrb[58].mxu1 %v3632_v3  ;;  %v3637_v46 = vrot.slane %v11793_v52, 2  ;;  %v3294_v3 = vld [vmem:[#allocation3 + $0x8] sm:$0xff] }
 0x3f3   :  { %v3638_v60 = vsel %vm3512_vm6, %v3633_v8, %v3637_v46  ;;  %v3642_v37 = vsel %vm3512_vm6, %v3637_v46, %v3641_v55  ;;  %v3640_v8 = vsel %vm3512_vm6, %v3635_v24, %v3639_v27  ;;  %v8704_v46 = vpack.c.bf16 %v8186_v43, %v8184_v53  ;;  %v8190_v24 = vld [vmem:[%s14097_s3 + $0x2d0] sm:$0xff]  ;;  %v8193_v27 = vld [vmem:[%s14097_s3 + $0x2e8] sm:$0xff] }
 0x3f4   :  { %8148 = vmatprep.mubr.msk.f32.mxu1 %vm36_vm2, %v3638_v60  ;;  %v3293_v60 = vld [vmem:[#allocation3] sm:$0xff]  ;;  %v11828_v53 = vld [vmem:[#allocation3 + $0x18] sm:$0xff]  ;;  %v8708_v43 = vpack.c.bf16 %v8190_v24, %v8188_v45  ;;  %v8196_v24 = vld [vmem:[%s14097_s3 + $0x300] sm:$0xff] }
 0x3f5   :  { %3991 = vmatmul.mubr.f32.gmra.mrb[60].mxu1 %v3636_v47  ;;  %v8191_v47 = vld [vmem:[%s14097_s3 + $0x2d8] sm:$0xff] }
 0x3f6   :  { %8149 = vmatprep.mubr.msk.f32.mxu1 %vm36_vm2, %v3642_v37  ;;  %v8706_v55 = vpack.c.bf16 %v8191_v47, %v8189_v34  ;;  %v8195_v37 = vld [vmem:[%s14097_s3 + $0x2f8] sm:$0xff]  ;;  %v8192_v34 = vld [vmem:[%s14097_s3 + $0x2e0] sm:$0xff]  ;;  %v8194_v47 = vld [vmem:[%s14097_s3 + $0x2f0] sm:$0xff] }
 0x3f9   :  { %3997 = vmatmul.mubr.f32.gmra.mrb[62].mxu1 %v3640_v8  ;;  %v8710_v8 = vpack.c.bf16 %v8195_v37, %v8193_v27  ;;  %v8198_v27 = vld [vmem:[%s14097_s3 + $0x310] sm:$0xff]  ;;  %v8201_v37 = vld [vmem:[%s14097_s3 + $0x328] sm:$0xff] }
 0x3fa   :  { %8152 = vmatprep.mubr.msk.f32.mxu1 %vm36_vm2, %v3294_v3  ;;  %v8197_v3 = vld [vmem:[%s14097_s3 + $0x308] sm:$0xff] }
 0x3fd   :  { %4139 = vmatmul.mubr.f32.vlgmr.msra.gmra.mrb[0].mxu1 %v3293_v60  ;;  %v8199_v60 = vld [vmem:[%s14097_s3 + $0x318] sm:$0xff] }
 0x3fe   :  { %8153 = vmatprep.mubr.msk.f32.mxu1 %vm36_vm2, %v11828_v53  ;;  %8705 = vmatpush1.bf16.msra.mxu1 %v8704_v46  ;;  %v11844_v46 = vld [vmem:[#allocation3 + $0x10] sm:$0xff]  ;;  %v8714_v45 = vpack.c.bf16 %v8199_v60, %v8197_v3  ;;  %v8202_v3 = vld [vmem:[%s14097_s3 + $0x330] sm:$0xff]  ;;  %v8205_v60 = vld [vmem:[%s14097_s3 + $0x348] sm:$0xff] }
 0x3ff   :  { %8707 = vmatprep.subr.bf16.mxu1 %v8706_v55  ;;  %v8712_v55 = vpack.c.bf16 %v8194_v47, %v8192_v34  ;;  %v8200_v47 = vld [vmem:[%s14097_s3 + $0x320] sm:$0xff] }
 0x401   :  { %4145 = vmatmul.mubr.f32.gmra.mrb[2].mxu1 %v11844_v46 }
 0x402   :  { %8154 = vmatprep.mubr.msk.f32.mxu1 %vm36_vm2, %v11289_v56  ;;  %8709 = vmatpush1.bf16.msra.mxu1 %v8708_v43  ;;  %v8203_v56 = vld [vmem:[%s14097_s3 + $0x338] sm:$0xff]  ;;  %v11861_v43 = vld [vmem:[#allocation3 + $0x20] sm:$0xff] }
 0x403   :  { %8711 = vmatprep.subr.bf16.mxu1 %v8710_v8  ;;  %v8716_v8 = vpack.c.bf16 %v8198_v27, %v8196_v24  ;;  %v8718_v34 = vpack.c.bf16 %v8203_v56, %v8201_v37  ;;  %v8204_v27 = vld [vmem:[%s14097_s3 + $0x340] sm:$0xff]  ;;  %v8206_v37 = vld [vmem:[%s14097_s3 + $0x350] sm:$0xff]  ;;  %v8209_v56 = vld [vmem:[%s14097_s3 + $0x368] sm:$0xff] }
 0x405   :  { %4151 = vmatmul.mubr.f32.gmra.mrb[4].mxu1 %v11861_v43 }
 0x406   :  { %8155 = vmatprep.mubr.msk.f32.mxu1 %vm36_vm2, %v11315_v20  ;;  %8713 = vmatpush1.bf16.msra.mxu1 %v8712_v55  ;;  %v8207_v20 = vld [vmem:[%s14097_s3 + $0x358] sm:$0xff]  ;;  %v11878_v55 = vld [vmem:[#allocation3 + $0x30] sm:$0xff] }
 0x407   :  { %8715 = vmatprep.subr.bf16.mxu1 %v8714_v45  ;;  %v8720_v45 = vpack.c.bf16 %v8202_v3, %v8200_v47  ;;  %v8722_v24 = vpack.c.bf16 %v8207_v20, %v8205_v60  ;;  %v8208_v3 = vld [vmem:[%s14097_s3 + $0x360] sm:$0xff]  ;;  %v8210_v60 = vld [vmem:[%s14097_s3 + $0x370] sm:$0xff]  ;;  %v8213_v20 = vld [vmem:[%s14097_s3 + $0x388] sm:$0xff] }
 0x409   :  { %4157 = vmatmul.mubr.f32.gmra.mrb[6].mxu1 %v11878_v55 }
 0x40a   :  { %8156 = vmatprep.mubr.msk.f32.mxu1 %vm36_vm2, %v11341_v36  ;;  %8717 = vmatpush1.bf16.msra.mxu1 %v8716_v8  ;;  %v8211_v36 = vld [vmem:[%s14097_s3 + $0x378] sm:$0xff]  ;;  %v11895_v8 = vld [vmem:[#allocation3 + $0x40] sm:$0xff] }
 0x40b   :  { %8719 = vmatprep.subr.bf16.mxu1 %v8718_v34  ;;  %v8724_v34 = vpack.c.bf16 %v8206_v37, %v8204_v27  ;;  %v8726_v47 = vpack.c.bf16 %v8211_v36, %v8209_v56  ;;  %v8212_v37 = vld [vmem:[%s14097_s3 + $0x380] sm:$0xff]  ;;  %v8214_v56 = vld [vmem:[%s14097_s3 + $0x390] sm:$0xff]  ;;  %v8217_v36 = vld [vmem:[%s14097_s3 + $0x3a8] sm:$0xff] }
 0x40d   :  { %4163 = vmatmul.mubr.f32.gmra.mrb[8].mxu1 %v11895_v8 }
 0x40e   :  { %8157 = vmatprep.mubr.msk.f32.mxu1 %vm36_vm2, %v11367_v58  ;;  %8721 = vmatpush1.bf16.msra.mxu1 %v8720_v45  ;;  %v8215_v58 = vld [vmem:[%s14097_s3 + $0x398] sm:$0xff]  ;;  %v11912_v45 = vld [vmem:[#allocation3 + $0x50] sm:$0xff] }
 0x40f   :  { %8723 = vmatprep.subr.bf16.mxu1 %v8722_v24  ;;  %v8728_v24 = vpack.c.bf16 %v8210_v60, %v8208_v3  ;;  %v8730_v27 = vpack.c.bf16 %v8215_v58, %v8213_v20  ;;  %v8216_v3 = vld [vmem:[%s14097_s3 + $0x3a0] sm:$0xff]  ;;  %v8218_v60 = vld [vmem:[%s14097_s3 + $0x3b0] sm:$0xff]  ;;  %v8221_v20 = vld [vmem:[%s14097_s3 + $0x3c8] sm:$0xff] }
 0x411   :  { %4169 = vmatmul.mubr.f32.gmra.mrb[10].mxu1 %v11912_v45 }
 0x412   :  { %8158 = vmatprep.mubr.msk.f32.mxu1 %vm36_vm2, %v11393_v12  ;;  %8725 = vmatpush1.bf16.msra.mxu1 %v8724_v34  ;;  %v8219_v12 = vld [vmem:[%s14097_s3 + $0x3b8] sm:$0xff]  ;;  %v8732_v34 = vpack.c.bf16 %v8214_v56, %v8212_v37  ;;  %v8263_v56 = vld [vmem:[%s14097_s3 + $0x408] sm:$0xff] }
 0x413   :  { %8727 = vmatprep.subr.bf16.mxu1 %v8726_v47  ;;  %v8734_v47 = vpack.c.bf16 %v8219_v12, %v8217_v36  ;;  %v8261_v37 = vld [vmem:[%s14097_s3 + $0x3f8] sm:$0xff]  ;;  %v8266_v36 = vld [vmem:[%s14097_s3 + $0x420] sm:$0xff] }
 0x415   :  { %4175 = vmatmul.mubr.f32.gmra.mrb[12].mxu1 %v11337_v39  ;;  %v8223_v39 = vld [vmem:[%s14097_s3 + $0x3d8] sm:$0xff] }
 0x416   :  { %8159 = vmatprep.mubr.msk.f32.mxu1 %vm36_vm2, %v11419_v44  ;;  %8729 = vmatpush1.bf16.msra.mxu1 %v8728_v24  ;;  %v8736_v44 = vpack.c.bf16 %v8218_v60, %v8216_v3  ;;  %v8738_v58 = vpack.c.bf16 %v8223_v39, %v8221_v20  ;;  %v8220_v24 = vld [vmem:[%s14097_s3 + $0x3c0] sm:$0xff]  ;;  %v8271_v3 = vld [vmem:[%s14097_s3 + $0x448] sm:$0xff] }
 0x417   :  { %8731 = vmatprep.subr.bf16.mxu1 %v8730_v27  ;;  %v8222_v27 = vld [vmem:[%s14097_s3 + $0x3d0] sm:$0xff]  ;;  %v12071_v20 = vld [vmem:[#allocation3 + $0x38] sm:$0xff] }
 0x418   :  { %v4395_v39 = vrot.slane %v12071_v20, 4 }
 0x419   :  { %4181 = vmatmul.mubr.f32.gmra.mrb[14].mxu1 %v11363_v50  ;;  %v8740_v50 = vpack.c.bf16 %v8222_v27, %v8220_v24  ;;  %v8268_v24 = vld [vmem:[%s14097_s3 + $0x430] sm:$0xff]  ;;  %v8270_v27 = vld [vmem:[%s14097_s3 + $0x440] sm:$0xff] }
 0x41a   :  { %8160 = vmatprep.mubr.msk.f32.mxu1 %vm36_vm2, %v11445_v9  ;;  %8733 = vmatpush1.bf16.msra.mxu1 %v8732_v34  ;;  %v8225_v9 = vld [vmem:[%s14097_s3 + $0x3e8] sm:$0x3]  ;;  %v4389_v34 = vrot.slane %v11861_v43, 4 }
 0x41b   :  { %8735 = vmatprep.subr.bf16.mxu1 %v8734_v47  ;;  %v8269_v47 = vld [vmem:[%s14097_s3 + $0x438] sm:$0xff] }
 0x41d   :  { %4187 = vmatmul.mubr.f32.gmra.mrb[16].mxu1 %v11389_v42  ;;  %v8224_v42 = vld [vmem:[%s14097_s3 + $0x3e0] sm:$0x3] }
 0x41e   :  { %8161 = vmatprep.mubr.msk.f32.mxu1 %vm36_vm2, %v11471_v26  ;;  %8737 = vmatpush1.bf16.msra.mxu1 %v8736_v44  ;;  %v8742_v26 = vpack.c.bf16 %v8263_v56, %v8261_v37  ;;  %v8273_v37 = vld [vmem:[%s14097_s3 + $0x458] sm:$0xff]  ;;  %v8275_v56 = vld [vmem:[%s14097_s3 + $0x468] sm:$0xff] }
 0x41f   :  { %8739 = vmatprep.subr.bf16.mxu1 %v8738_v58  ;;  %v8750_v58 = vpack.c.bf16 %v8271_v3, %v8269_v47  ;;  %v12128_v47 = vld [vmem:[#allocation3 + $0x68] sm:$0xff] }
 0x420   :  { %v4407_v3 = vrot.slane %v12128_v47, 4 }
 0x421   :  { %4193 = vmatmul.mubr.f32.gmra.mrb[18].mxu1 %v11415_v1  ;;  %v14226_v1 = vld [vmem:[#allocation9_spill] sm:$0xff] }
 0x422   :  { %8162 = vmatprep.mubr.msk.f32.mxu1 %vm36_vm2, %v11497_v4  ;;  %8741 = vmatpush1.bf16.msra.mxu1 %v8740_v50  ;;  %v4332_v4 = vld [vmem:[#allocation3 + $0x8] sm:$0xf0] }
 0x423   :  { %8226 = vmatprep.subr.msk.mxu1 %vm3739_vm4, %v8225_v9  ;;  %v4393_v9 = vrot.slane %v11878_v55, 4 }
 0x425   :  { %4199 = vmatmul.mubr.f32.gmra.mrb[20].mxu1 %v11441_v61  ;;  %v14227_v61 = vld [vmem:[#allocation13_spill] sm:$0xff] }
 0x426   :  { %8163 = vmatprep.mubr.msk.f32.mxu1 %vm36_vm2, %v11514_v49  ;;  %8227 = vmatpush1.msk.msra.mxu1 %vm3739_vm4, %v8224_v42  ;;  %v4387_v49 = vrot.slane %v11828_v53, 4 }
 0x427   :  { %8743 = vmatprep.subr.bf16.mxu1 %v8742_v26  ;;  %v12090_v26 = vld [vmem:[#allocation3 + $0x48] sm:$0xff] }
 0x429   :  { %4205 = vmatmul.mubr.f32.gmra.mrb[22].mxu1 %v11467_v10  ;;  %v14228_v10 = vld [vmem:[#allocation10_spill] sm:$0xff] }
 0x42a   :  { %8164 = vmatprep.mubr.msk.f32.mxu1 %vm36_vm2, %v11538_v23  ;;  %v4386_v23 = vrot.slane %v4332_v4, 4  ;;  %v8272_v4 = vld [vmem:[%s14097_s3 + $0x450] sm:$0xff] }
 0x42d   :  { %4211 = vmatmul.mubr.f32.gmra.mrb[24].mxu1 %v11493_v21  ;;  %v14229_v21 = vld [vmem:[#allocation15_spill] sm:$0xff] }
 0x42e   :  { %8165 = vmatprep.mubr.msk.f32.mxu1 %vm36_vm2, %v11553_v7  ;;  %v8262_v7 = vld [vmem:[%s14097_s3 + $0x400] sm:$0xff] }
 0x431   :  { %4217 = vmatmul.mubr.f32.gmra.mrb[26].mxu1 %v11510_v11  ;;  %v14230_v11 = vld [vmem:[#allocation11_spill] sm:$0xff] }
 0x432   :  { %8166 = vmatprep.mubr.msk.f32.mxu1 %vm36_vm2, %v11567_v38  ;;  %v8265_v38 = vld [vmem:[%s14097_s3 + $0x418] sm:$0xff] }
 0x435   :  { %4223 = vmatmul.mubr.f32.gmra.mrb[28].mxu1 %v11534_v25  ;;  %v4331_v25 = vld [vmem:[#allocation3] sm:$0xf0] }
 0x436   :  { %8167 = vmatprep.mubr.msk.f32.mxu1 %vm36_vm2, %v11581_v28  ;;  %v4388_v28 = vsel %vm4382_vm7, %v4386_v23, %v4387_v49  ;;  %v4397_v23 = vrot.slane %v11895_v8, 4 }
 0x439   :  { %4229 = vmatmul.mubr.f32.gmra.mrb[30].mxu1 %v11549_v59  ;;  %v8260_v59 = vld [vmem:[%s14097_s3 + $0x3f0] sm:$0xff] }
 0x43a   :  { %8168 = vmatprep.mubr.msk.f32.mxu1 %vm36_vm2, %v11595_v51 }
 0x43d   :  { %4235 = vmatmul.mubr.f32.gmra.mrb[32].mxu1 %v11563_v63  ;;  %v4383_v63 = vrot.slane %v4331_v25, 4  ;;  %v4394_v25 = vsel %vm4382_vm7, %v4389_v34, %v4393_v9 }
 0x43e   :  { %8169 = vmatprep.mubr.msk.f32.mxu1 %vm36_vm2, %v11609_v15  ;;  %v8744_v15 = vpack.c.bf16 %v8262_v7, %v8260_v59  ;;  %v8277_v59 = vld [vmem:[%s14097_s3 + $0x478] sm:$0xff]  ;;  %v8279_v7 = vld [vmem:[%s14097_s3 + $0x488] sm:$0xff] }
 0x441   :  { %4241 = vmatmul.mubr.f32.gmra.mrb[34].mxu1 %v11577_v5  ;;  %v8267_v5 = vld [vmem:[%s14097_s3 + $0x428] sm:$0xff] }
 0x442   :  { %8170 = vmatprep.mubr.msk.f32.mxu1 %vm36_vm2, %v11623_v16  ;;  %v8746_v16 = vpack.c.bf16 %v8267_v5, %v8265_v38  ;;  %v12109_v38 = vld [vmem:[#allocation3 + $0x58] sm:$0xff] }
 0x443   :  { %v4403_v5 = vrot.slane %v12109_v38, 4 }
 0x445   :  { %4247 = vmatmul.mubr.f32.gmra.mrb[36].mxu1 %v11591_v2  ;;  %v12051_v2 = vld [vmem:[#allocation3 + $0x28] sm:$0xff] }
 0x446   :  { %8171 = vmatprep.mubr.msk.f32.mxu1 %vm36_vm2, %v11637_v48  ;;  %v4391_v51 = vrot.slane %v12051_v2, 4  ;;  %v8264_v48 = vld [vmem:[%s14097_s3 + $0x410] sm:$0xff] }
 0x447   :  { %v8748_v44 = vpack.c.bf16 %v8266_v36, %v8264_v48  ;;  %v4401_v48 = vrot.slane %v11912_v45, 4  ;;  %v8281_v36 = vld [vmem:[%s14097_s3 + $0x498] sm:$0xff] }
 0x448   :  { %v4392_v60 = vsel %vm4382_vm7, %v4387_v49, %v4391_v51  ;;  %v4396_v42 = vsel %vm4382_vm7, %v4391_v51, %v4395_v39  ;;  %v8274_v49 = vld [vmem:[%s14097_s3 + $0x460] sm:$0xff]  ;;  %v8758_v51 = vpack.c.bf16 %v8279_v7, %v8277_v59  ;;  %v8289_v7 = vld [vmem:[%s14097_s3 + $0x4d8] sm:$0xff] }
 0x449   :  { %4253 = vmatmul.mubr.f32.gmra.mrb[38].mxu1 %v11605_v0  ;;  %v4384_v0 = vrot.slane %v11844_v46, 4 }
 0x44a   :  { %8172 = vmatprep.mubr.msk.f32.mxu1 %vm36_vm2, %v11651_v14 }
 0x44b   :  { %v4385_v12 = vsel %vm4382_vm7, %v4383_v63, %v4384_v0  ;;  %v4390_v50 = vsel %vm4382_vm7, %v4384_v0, %v4389_v34  ;;  %v8276_v0 = vld [vmem:[%s14097_s3 + $0x470] sm:$0xff] }
 0x44d   :  { %4259 = vmatmul.mubr.f32.gmra.mrb[40].mxu1 %v14226_v1  ;;  %v4399_v1 = vrot.slane %v12090_v26, 4 }
 0x44e   :  { %8173 = vmatprep.mubr.msk.f32.mxu1 %vm36_vm2, %v11665_v32 }
 0x44f   :  { %v4400_v63 = vsel %vm4382_vm7, %v4395_v39, %v4399_v1  ;;  %v4404_v34 = vsel %vm4382_vm7, %v4399_v1, %v4403_v5 }
 0x451   :  { %4265 = vmatmul.mubr.f32.gmra.mrb[42].mxu1 %v14227_v61  ;;  %v8752_v61 = vpack.c.bf16 %v8270_v27, %v8268_v24  ;;  %v4402_v24 = vsel %vm4382_vm7, %v4397_v23, %v4401_v48  ;;  %v12139_v27 = vld [vmem:[#allocation3 + $0x60] sm:$0xff] }
 0x452   :  { %8174 = vmatprep.mubr.msk.f32.mxu1 %vm36_vm2, %v11679_v41 }
 0x455   :  { %4271 = vmatmul.mubr.f32.gmra.mrb[44].mxu1 %v14228_v10  ;;  %v8754_v10 = vpack.c.bf16 %v8275_v56, %v8273_v37  ;;  %v8287_v37 = vld [vmem:[%s14097_s3 + $0x4c8] sm:$0xff]  ;;  %v4408_v56 = vsel %vm4382_vm7, %v4403_v5, %v4407_v3 }
 0x456   :  { %8175 = vmatprep.mubr.msk.f32.mxu1 %vm36_vm2, %v11693_v57 }
 0x459   :  { %4277 = vmatmul.mubr.f32.gmra.mrb[46].mxu1 %v14229_v21 }
 0x45a   :  { %8176 = vmatprep.mubr.msk.f32.mxu1 %vm36_vm2, %v11707_v62 }
 0x45d   :  { %4283 = vmatmul.mubr.f32.gmra.mrb[48].mxu1 %v11675_v19 }
 0x45e   :  { %8177 = vmatprep.mubr.msk.f32.mxu1 %vm36_vm2, %v11721_v6 }
 0x461   :  { %4289 = vmatmul.mubr.f32.gmra.mrb[50].mxu1 %v11689_v22 }
 0x462   :  { %8178 = vmatprep.mubr.msk.f32.mxu1 %vm36_vm2, %v11735_v13 }
 0x465   :  { %4295 = vmatmul.mubr.f32.gmra.mrb[52].mxu1 %v11703_v30 }
 0x466   :  { %8179 = vmatprep.mubr.msk.f32.mxu1 %vm36_vm2, %v11749_v35 }
 0x469   :  { %4301 = vmatmul.mubr.f32.gmra.mrb[54].mxu1 %v11717_v40 }
 0x46a   :  { %8180 = vmatprep.mubr.msk.f32.mxu1 %vm36_vm2, %v11763_v17 }
 0x46d   :  { %4307 = vmatmul.mubr.f32.gmra.mrb[56].mxu1 %v11731_v54 }
 0x46e   :  { %8181 = vmatprep.mubr.msk.f32.mxu1 %vm36_vm2, %v11777_v33 }
 0x471   :  { %4313 = vmatmul.mubr.f32.gmra.mrb[58].mxu1 %v11745_v31 }
 0x472   :  { %8182 = vmatprep.mubr.msk.f32.mxu1 %vm36_vm2, %v11786_v18 }
 0x475   :  { %4319 = vmatmul.mubr.f32.gmra.mrb[60].mxu1 %v14230_v11 }
 0x476   :  { %8183 = vmatprep.mubr.msk.f32.mxu1 %vm36_vm2, %v11793_v52 }
 0x479   :  { %4325 = vmatmul.mubr.f32.gmra.mrb[62].mxu1 %v11773_v29 }
 0x47a   :  { %8228 = vmatprep.mubr.msk.f32.mxu1 %vm36_vm2, %v4388_v28  ;;  %v8756_v28 = vpack.c.bf16 %v8274_v49, %v8272_v4  ;;  %v8284_v4 = vld [vmem:[%s14097_s3 + $0x4b0] sm:$0xff]  ;;  %v8286_v49 = vld [vmem:[%s14097_s3 + $0x4c0] sm:$0xff] }
 0x47d   :  { %4680 = vmatmul.mubr.f32.vlgmr.msra.gmra.mrb[0].mxu1 %v4385_v12  ;;  %v8283_v12 = vld [vmem:[%s14097_s3 + $0x4a8] sm:$0xff] }
 0x47e   :  { %8229 = vmatprep.mubr.msk.f32.mxu1 %vm36_vm2, %v4392_v60  ;;  %8745 = vmatpush1.bf16.msra.mxu1 %v8744_v15  ;;  %v8278_v15 = vld [vmem:[%s14097_s3 + $0x480] sm:$0xff]  ;;  %v8762_v39 = vpack.c.bf16 %v8283_v12, %v8281_v36  ;;  %v12181_v12 = vld [vmem:[#allocation3 + $0x80] sm:$0xff] }
 0x47f   :  { %8747 = vmatprep.subr.bf16.mxu1 %v8746_v16  ;;  %v4398_v16 = vsel %vm4382_vm7, %v4393_v9, %v4397_v23  ;;  %v8760_v60 = vpack.c.bf16 %v8278_v15, %v8276_v0  ;;  %v8285_v9 = vld [vmem:[%s14097_s3 + $0x4b8] sm:$0xff]  ;;  %v12160_v23 = vld [vmem:[#allocation3 + $0x70] sm:$0xff]  ;;  %v8768_v0 = vpack.c.bf16 %v8286_v49, %v8284_v4  ;;  %v8299_v4 = vld [vmem:[%s14097_s3 + $0x528] sm:$0xff] }
 0x480   :  { %v4409_v59 = vrot.slane %v12160_v23, 4 }
 0x481   :  { %4686 = vmatmul.mubr.f32.gmra.mrb[2].mxu1 %v4390_v50  ;;  %v4405_v50 = vrot.slane %v12139_v27, 4 }
 0x482   :  { %8230 = vmatprep.mubr.msk.f32.mxu1 %vm36_vm2, %v4396_v42  ;;  %8749 = vmatpush1.bf16.msra.mxu1 %v8748_v44  ;;  %v8280_v44 = vld [vmem:[%s14097_s3 + $0x490] sm:$0xff]  ;;  %v12149_v42 = vld [vmem:[#allocation3 + $0x78] sm:$0xff] }
 0x483   :  { %8751 = vmatprep.subr.bf16.mxu1 %v8750_v58  ;;  %v8282_v58 = vld [vmem:[%s14097_s3 + $0x4a0] sm:$0xff]  ;;  %v4411_v1 = vrot.slane %v12149_v42, 4  ;;  %v4410_v36 = vsel %vm4382_vm7, %v4405_v50, %v4409_v59 }
 0x485   :  { %4692 = vmatmul.mubr.f32.gmra.mrb[4].mxu1 %v4394_v25  ;;  %v4406_v25 = vsel %vm4382_vm7, %v4401_v48, %v4405_v50  ;;  %v4412_v5 = vsel %vm4382_vm7, %v4407_v3, %v4411_v1  ;;  %v8290_v48 = vld [vmem:[%s14097_s3 + $0x4e0] sm:$0xff]  ;;  %v8293_v3 = vld [vmem:[%s14097_s3 + $0x4f8] sm:$0xff] }
 0x486   :  { %8231 = vmatprep.mubr.msk.f32.mxu1 %vm36_vm2, %v4400_v63  ;;  %8753 = vmatpush1.bf16.msra.mxu1 %v8752_v61  ;;  %v8764_v61 = vpack.c.bf16 %v8282_v58, %v8280_v44  ;;  %v8291_v63 = vld [vmem:[%s14097_s3 + $0x4e8] sm:$0xff] }
 0x487   :  { %8755 = vmatprep.subr.bf16.mxu1 %v8754_v10  ;;  %v8766_v10 = vpack.c.bf16 %v8287_v37, %v8285_v9  ;;  %v8770_v15 = vpack.c.bf16 %v8291_v63, %v8289_v7  ;;  %v12191_v44 = vld [vmem:[#allocation3 + $0x98] sm:$0xff]  ;;  %v8292_v9 = vld [vmem:[%s14097_s3 + $0x4f0] sm:$0xff]  ;;  %v8294_v37 = vld [vmem:[%s14097_s3 + $0x500] sm:$0xff] }
 0x488   :  { %v4419_v58 = vrot.slane %v12191_v44, 4 }
 0x489   :  { %4698 = vmatmul.mubr.f32.gmra.mrb[6].mxu1 %v4398_v16  ;;  %v8288_v16 = vld [vmem:[%s14097_s3 + $0x4d0] sm:$0xff] }
 0x48a   :  { %8232 = vmatprep.mubr.msk.f32.mxu1 %vm36_vm2, %v4404_v34  ;;  %8757 = vmatpush1.bf16.msra.mxu1 %v8756_v28  ;;  %v12170_v28 = vld [vmem:[#allocation3 + $0x88] sm:$0xff]  ;;  %v4413_v34 = vrot.slane %v12181_v12, 4 }
 0x48b   :  { %8759 = vmatprep.subr.bf16.mxu1 %v8758_v51  ;;  %v4415_v51 = vrot.slane %v12170_v28, 4 }
 0x48d   :  { %4704 = vmatmul.mubr.f32.gmra.mrb[8].mxu1 %v4402_v24  ;;  %v8772_v24 = vpack.c.bf16 %v8290_v48, %v8288_v16  ;;  %v4420_v49 = vsel %vm4382_vm7, %v4415_v51, %v4419_v58 }
 0x48e   :  { %8233 = vmatprep.mubr.msk.f32.mxu1 %vm36_vm2, %v4408_v56  ;;  %8761 = vmatpush1.bf16.msra.mxu1 %v8760_v60  ;;  %v8295_v60 = vld [vmem:[%s14097_s3 + $0x508] sm:$0xff]  ;;  %v4414_v56 = vsel %vm4382_vm7, %v4409_v59, %v4413_v34  ;;  %v8776_v59 = vpack.c.bf16 %v8294_v37, %v8292_v9  ;;  %v8339_v9 = vld [vmem:[%s14097_s3 + $0x558] sm:$0xff] }
 0x48f   :  { %8763 = vmatprep.subr.bf16.mxu1 %v8762_v39  ;;  %v4416_v39 = vsel %vm4382_vm7, %v4411_v1, %v4415_v51  ;;  %v8774_v50 = vpack.c.bf16 %v8295_v60, %v8293_v3  ;;  %v12202_v1 = vld [vmem:[#allocation3 + $0x90] sm:$0xff] }
 0x491   :  { %4710 = vmatmul.mubr.f32.gmra.mrb[10].mxu1 %v4406_v25  ;;  %v12212_v25 = vld [vmem:[#allocation3 + $0xa8] sm:$0xff] }
 0x492   :  { %8234 = vmatprep.mubr.msk.f32.mxu1 %vm36_vm2, %v4412_v5  ;;  %8765 = vmatpush1.bf16.msra.mxu1 %v8764_v61  ;;  %v4417_v61 = vrot.slane %v12202_v1, 4  ;;  %v4423_v7 = vrot.slane %v12212_v25, 4  ;;  %v8296_v5 = vld [vmem:[%s14097_s3 + $0x510] sm:$0xff] }
 0x493   :  { %8767 = vmatprep.subr.bf16.mxu1 %v8766_v10  ;;  %v8297_v10 = vld [vmem:[%s14097_s3 + $0x518] sm:$0xff] }
 0x494   :  { %v8778_v63 = vpack.c.bf16 %v8299_v4, %v8297_v10  ;;  %v4418_v51 = vsel %vm4382_vm7, %v4413_v34, %v4417_v61  ;;  %v4424_v48 = vsel %vm4382_vm7, %v4419_v58, %v4423_v7  ;;  %v8337_v58 = vld [vmem:[%s14097_s3 + $0x548] sm:$0xff]  ;;  %v8300_v10 = vld [vmem:[%s14097_s3 + $0x530] sm:$0x3] }
 0x495   :  { %4716 = vmatmul.mubr.f32.gmra.mrb[12].mxu1 %v4410_v36  ;;  %v12227_v36 = vld [vmem:[#allocation3 + $0xb8] sm:$0xff]  ;;  %v8782_v4 = vpack.c.bf16 %v8339_v9, %v8337_v58  ;;  %v12273_v58 = vld [vmem:[#allocation3 + $0xe0] sm:$0xff] }
 0x496   :  { %8235 = vmatprep.mubr.msk.f32.mxu1 %vm36_vm2, %v4416_v39  ;;  %8769 = vmatpush1.bf16.msra.mxu1 %v8768_v0  ;;  %v8298_v0 = vld [vmem:[%s14097_s3 + $0x520] sm:$0xff]  ;;  %v4427_v3 = vrot.slane %v12227_v36, 4  ;;  %v4437_v9 = vrot.slane %v12273_v58, 4 }
 0x497   :  { %8771 = vmatprep.subr.bf16.mxu1 %v8770_v15  ;;  %v12223_v15 = vld [vmem:[#allocation3 + $0xa0] sm:$0xff]  ;;  %v8780_v60 = vpack.c.bf16 %v8298_v0, %v8296_v5  ;;  %v12258_v5 = vld [vmem:[#allocation3 + $0xd8] sm:$0xff] }
 0x498   :  { %v4421_v16 = vrot.slane %v12223_v15, 4  ;;  %v4428_v37 = vsel %vm4382_vm7, %v4423_v7, %v4427_v3  ;;  %v4435_v0 = vrot.slane %v12258_v5, 4 }
 0x499   :  { %4722 = vmatmul.mubr.f32.gmra.mrb[14].mxu1 %v4414_v56  ;;  %v12245_v56 = vld [vmem:[#allocation3 + $0xc8] sm:$0xff] }
 0x49a   :  { %8236 = vmatprep.mubr.msk.f32.mxu1 %vm36_vm2, %v4420_v49  ;;  %8773 = vmatpush1.bf16.msra.mxu1 %v8772_v24  ;;  %v4422_v39 = vsel %vm4382_vm7, %v4417_v61, %v4421_v16  ;;  %v12232_v24 = vld [vmem:[#allocation3 + $0xb0] sm:$0xff]  ;;  %v4431_v61 = vrot.slane %v12245_v56, 4 }
 0x49b   :  { %8775 = vmatprep.subr.bf16.mxu1 %v8774_v50  ;;  %v4425_v34 = vrot.slane %v12232_v24, 4  ;;  %v8301_v50 = vld [vmem:[%s14097_s3 + $0x538] sm:$0x3] }
 0x49d   :  { %4728 = vmatmul.mubr.f32.gmra.mrb[16].mxu1 %v4418_v51  ;;  %v4426_v49 = vsel %vm4382_vm7, %v4421_v16, %v4425_v34 }
 0x49e   :  { %8237 = vmatprep.mubr.msk.f32.mxu1 %vm36_vm2, %v4424_v48  ;;  %8777 = vmatpush1.bf16.msra.mxu1 %v8776_v59  ;;  %v12254_v59 = vld [vmem:[#allocation3 + $0xc0] sm:$0xff]  ;;  %v12264_v48 = vld [vmem:[#allocation3 + $0xd0] sm:$0xff] }
 0x49f   :  { %8779 = vmatprep.subr.bf16.mxu1 %v8778_v63  ;;  %v4429_v7 = vrot.slane %v12254_v59, 4  ;;  %v4432_v63 = vsel %vm4382_vm7, %v4427_v3, %v4431_v61  ;;  %v4433_v16 = vrot.slane %v12264_v48, 4 }
 0x4a1   :  { %4734 = vmatmul.mubr.f32.gmra.mrb[18].mxu1 %v4422_v39  ;;  %v4430_v51 = vsel %vm4382_vm7, %v4425_v34, %v4429_v7  ;;  %v12268_v39 = vld [vmem:[#allocation3 + $0xe8] sm:$0xff] }
 0x4a2   :  { %8238 = vmatprep.mubr.msk.f32.mxu1 %vm36_vm2, %v4428_v37  ;;  %8781 = vmatpush1.bf16.msra.mxu1 %v8780_v60  ;;  %v4436_v60 = vsel %vm4382_vm7, %v4431_v61, %v4435_v0  ;;  %v4439_v3 = vrot.slane %v12268_v39, 4  ;;  %v12277_v37 = vld [vmem:[#allocation3 + $0xf8] sm:$0xff]  ;;  %v4438_v61 = vsel %vm4382_vm7, %v4433_v16, %v4437_v9 }
 0x4a3   :  { %8302 = vmatprep.subr.msk.mxu1 %vm3739_vm4, %v8301_v50  ;;  %v4434_v50 = vsel %vm4382_vm7, %v4429_v7, %v4433_v16 }
 0x4a4   :  { %v4440_v34 = vsel %vm4382_vm7, %v4435_v0, %v4439_v3 }
 0x4a5   :  { %4740 = vmatmul.mubr.f32.gmra.mrb[20].mxu1 %v4426_v49 }
 0x4a6   :  { %8239 = vmatprep.mubr.msk.f32.mxu1 %vm36_vm2, %v4432_v63  ;;  %8303 = vmatpush1.msk.msra.mxu1 %vm3739_vm4, %v8300_v10  ;;  %v4443_v10 = vrot.slane %v12277_v37, 4  ;;  %v12286_v63 = vld [vmem:[#allocation3 + $0x108] sm:$0xff] }
 0x4a7   :  { %8783 = vmatprep.subr.bf16.mxu1 %v8782_v4  ;;  %v12282_v4 = vld [vmem:[#allocation3 + $0xf0] sm:$0xff]  ;;  %14232 = vst [vmem:[#allocation12_spill] sm:$0xff] %v12286_v63 }
 0x4a8   :  { %14231 = vst [vmem:[#allocation17_spill] sm:$0xff] %v12282_v4  ;;  %v4441_v49 = vrot.slane %v12282_v4, 4  ;;  %v4444_v7 = vsel %vm4382_vm7, %v4439_v3, %v4443_v10  ;;  %v12304_v4 = vld [vmem:[#allocation3 + $0x128] sm:$0xff] }
 0x4a9   :  { %4746 = vmatmul.mubr.f32.gmra.mrb[22].mxu1 %v4430_v51  ;;  %v4447_v51 = vrot.slane %v12286_v63, 4  ;;  %v12300_v63 = vld [vmem:[#allocation3 + $0x110] sm:$0xff]  ;;  %14235 = vst [vmem:[#allocation21_spill] sm:$0xff] %v12304_v4 }
 0x4aa   :  { %8240 = vmatprep.mubr.msk.f32.mxu1 %vm36_vm2, %v4436_v60  ;;  %v4442_v0 = vsel %vm4382_vm7, %v4437_v9, %v4441_v49  ;;  %v12291_v60 = vld [vmem:[#allocation3 + $0x100] sm:$0xff] }
 0x4ab   :  { %14233 = vst [vmem:[#allocation19_spill] sm:$0xff] %v12291_v60  ;;  %v4448_v16 = vsel %vm4382_vm7, %v4443_v10, %v4447_v51 }
 0x4ad   :  { %4752 = vmatmul.mubr.f32.gmra.mrb[24].mxu1 %v4434_v50  ;;  %v4445_v50 = vrot.slane %v12291_v60, 4  ;;  %v12313_v60 = vld [vmem:[#allocation3 + $0x138] sm:$0xff] }
 0x4ae   :  { %8241 = vmatprep.mubr.msk.f32.mxu1 %vm36_vm2, %v4440_v34  ;;  %v12295_v34 = vld [vmem:[#allocation3 + $0x118] sm:$0xff]  ;;  %14237 = vst [vmem:[#allocation23_spill] sm:$0xff] %v12313_v60 }
 0x4af   :  { %14234 = vst [vmem:[#allocation14_spill] sm:$0xff] %v12295_v34  ;;  %v4446_v3 = vsel %vm4382_vm7, %v4441_v49, %v4445_v50 }
 0x4b1   :  { %4758 = vmatmul.mubr.f32.gmra.mrb[26].mxu1 %v4438_v61  ;;  %v4451_v61 = vrot.slane %v12295_v34, 4  ;;  %v12309_v34 = vld [vmem:[#allocation3 + $0x120] sm:$0xff] }
 0x4b2   :  { %8242 = vmatprep.mubr.msk.f32.mxu1 %vm36_vm2, %v4444_v7  ;;  %v4449_v7 = vrot.slane %v12300_v63, 4  ;;  %14236 = vst [vmem:[#allocation16_spill] sm:$0xff] %v12309_v34 }
 0x4b3   :  { %v4452_v9 = vsel %vm4382_vm7, %v4447_v51, %v4451_v61 }
 0x4b4   :  { %v4450_v10 = vsel %vm4382_vm7, %v4445_v50, %v4449_v7 }
 0x4b5   :  { %4764 = vmatmul.mubr.f32.gmra.mrb[28].mxu1 %v4442_v0  ;;  %v4455_v0 = vrot.slane %v12304_v4, 4  ;;  %v12318_v4 = vld [vmem:[#allocation3 + $0x130] sm:$0xff] }
 0x4b6   :  { %8243 = vmatprep.mubr.msk.f32.mxu1 %vm36_vm2, %v4448_v16  ;;  %v4453_v16 = vrot.slane %v12309_v34, 4  ;;  %v4463_v34 = vrot.slane %v11651_v14, 4 }
 0x4b7   :  { %v4456_v49 = vsel %vm4382_vm7, %v4451_v61, %v4455_v0 }
 0x4b8   :  { %v4454_v51 = vsel %vm4382_vm7, %v4449_v7, %v4453_v16 }
 0x4b9   :  { %4770 = vmatmul.mubr.f32.gmra.mrb[30].mxu1 %v4446_v3  ;;  %v4459_v3 = vrot.slane %v12313_v60, 4 }
 0x4ba   :  { %8244 = vmatprep.mubr.msk.f32.mxu1 %vm36_vm2, %v4452_v9  ;;  %v4457_v9 = vrot.slane %v12318_v4, 4 }
 0x4bb   :  { %v4460_v50 = vsel %vm4382_vm7, %v4455_v0, %v4459_v3  ;;  %v4464_v7 = vsel %vm4382_vm7, %v4459_v3, %v4463_v34  ;;  %v12332_v0 = vld [vmem:[#allocation3 + $0x150] sm:$0xff]  ;;  %v12339_v3 = vld [vmem:[#allocation3 + $0x160] sm:$0xff] }
 0x4bc   :  { %v4458_v61 = vsel %vm4382_vm7, %v4453_v16, %v4457_v9  ;;  %v4465_v14 = vrot.slane %v12332_v0, 4 }
 0x4bd   :  { %4776 = vmatmul.mubr.f32.gmra.mrb[32].mxu1 %v4450_v10  ;;  %v12325_v10 = vld [vmem:[#allocation3 + $0x140] sm:$0xff] }
 0x4be   :  { %8245 = vmatprep.mubr.msk.f32.mxu1 %vm36_vm2, %v4456_v49  ;;  %v4461_v60 = vrot.slane %v12325_v10, 4  ;;  %v4467_v49 = vrot.slane %v11665_v32, 4  ;;  %v4469_v32 = vrot.slane %v12339_v3, 4 }
 0x4c0   :  { %v4468_v16 = vsel %vm4382_vm7, %v4463_v34, %v4467_v49  ;;  %v4473_v34 = vrot.slane %v14229_v21, 4 }
 0x4c1   :  { %4782 = vmatmul.mubr.f32.gmra.mrb[34].mxu1 %v4454_v51  ;;  %v4462_v51 = vsel %vm4382_vm7, %v4457_v9, %v4461_v60 }
 0x4c2   :  { %8246 = vmatprep.mubr.msk.f32.mxu1 %vm36_vm2, %v4460_v50  ;;  %v4471_v50 = vrot.slane %v11679_v41, 4 }
 0x4c4   :  { %v4472_v9 = vsel %vm4382_vm7, %v4467_v49, %v4471_v50  ;;  %v4483_v49 = vrot.slane %v11721_v6, 4 }
 0x4c5   :  { %4788 = vmatmul.mubr.f32.gmra.mrb[36].mxu1 %v4458_v61  ;;  %v4466_v61 = vsel %vm4382_vm7, %v4461_v60, %v4465_v14  ;;  %v4479_v60 = vrot.slane %v11707_v62, 4 }
 0x4c6   :  { %8247 = vmatprep.mubr.msk.f32.mxu1 %vm36_vm2, %v4464_v7  ;;  %v4475_v7 = vrot.slane %v11693_v57, 4 }
 0x4c7   :  { %v4484_v62 = vsel %vm4382_vm7, %v4479_v60, %v4483_v49 }
 0x4c8   :  { %v4476_v41 = vsel %vm4382_vm7, %v4471_v50, %v4475_v7  ;;  %v4480_v57 = vsel %vm4382_vm7, %v4475_v7, %v4479_v60  ;;  %v4487_v50 = vrot.slane %v11735_v13, 4  ;;  %v4489_v7 = vrot.slane %v11717_v40, 4 }
 0x4c9   :  { %4794 = vmatmul.mubr.f32.gmra.mrb[38].mxu1 %v4462_v51  ;;  %v4470_v51 = vsel %vm4382_vm7, %v4465_v14, %v4469_v32  ;;  %v4481_v14 = vrot.slane %v11689_v22, 4  ;;  %v4497_v60 = vrot.slane %v11745_v31, 4 }
 0x4ca   :  { %8248 = vmatprep.mubr.msk.f32.mxu1 %vm36_vm2, %v4468_v16  ;;  %v4474_v16 = vsel %vm4382_vm7, %v4469_v32, %v4473_v34  ;;  %v4485_v32 = vrot.slane %v11703_v30, 4  ;;  %v4488_v6 = vsel %vm4382_vm7, %v4483_v49, %v4487_v50  ;;  %v4334_v49 = vld [vmem:[#allocation3 + $0x208] sm:$0xf] }
 0x4cc   :  { %v4486_v22 = vsel %vm4382_vm7, %v4481_v14, %v4485_v32  ;;  %v4490_v30 = vsel %vm4382_vm7, %v4485_v32, %v4489_v7  ;;  %v4991_v32 = vrot.slane %v11828_v53, 6  ;;  %v8343_v53 = vld [vmem:[%s14097_s3 + $0x578] sm:$0xff] }
 0x4cd   :  { %4800 = vmatmul.mubr.f32.gmra.mrb[40].mxu1 %v4466_v61  ;;  %v4477_v61 = vrot.slane %v11675_v19, 4 }
 0x4ce   :  { %8249 = vmatprep.mubr.msk.f32.mxu1 %vm36_vm2, %v4472_v9  ;;  %v4491_v9 = vrot.slane %v11749_v35, 4 }
 0x4cf   :  { %v4478_v21 = vsel %vm4382_vm7, %v4473_v34, %v4477_v61  ;;  %v4482_v19 = vsel %vm4382_vm7, %v4477_v61, %v4481_v14  ;;  %v4493_v34 = vrot.slane %v11731_v54, 4  ;;  %v4501_v61 = vrot.slane %v14230_v11, 4 }
 0x4d0   :  { %v4492_v13 = vsel %vm4382_vm7, %v4487_v50, %v4491_v9  ;;  %v4511_v14 = vrot.slane %v4334_v49, 4 }
 0x4d1   :  { %4806 = vmatmul.mubr.f32.gmra.mrb[42].mxu1 %v4470_v51  ;;  %v4495_v51 = vrot.slane %v11763_v17, 4  ;;  %v4494_v40 = vsel %vm4382_vm7, %v4489_v7, %v4493_v34  ;;  %v4498_v54 = vsel %vm4382_vm7, %v4493_v34, %v4497_v60  ;;  %v4502_v31 = vsel %vm4382_vm7, %v4497_v60, %v4501_v61  ;;  %v8340_v60 = vld [vmem:[%s14097_s3 + $0x560] sm:$0xff] }
 0x4d2   :  { %8250 = vmatprep.mubr.msk.f32.mxu1 %vm36_vm2, %v4476_v41  ;;  %v4499_v41 = vrot.slane %v11777_v33, 4  ;;  %v4995_v34 = vrot.slane %v12051_v2, 6  ;;  %v8345_v2 = vld [vmem:[%s14097_s3 + $0x588] sm:$0xff] }
 0x4d3   :  { %v4496_v35 = vsel %vm4382_vm7, %v4491_v9, %v4495_v51  ;;  %v8336_v9 = vld [vmem:[%s14097_s3 + $0x540] sm:$0xff] }
 0x4d4   :  { %v4500_v17 = vsel %vm4382_vm7, %v4495_v51, %v4499_v41  ;;  %v8341_v51 = vld [vmem:[%s14097_s3 + $0x568] sm:$0xff] }
 0x4d5   :  { %4812 = vmatmul.mubr.f32.gmra.mrb[44].mxu1 %v4474_v16  ;;  %v4503_v16 = vrot.slane %v11786_v18, 4 }
 0x4d6   :  { %8251 = vmatprep.mubr.msk.f32.mxu1 %vm36_vm2, %v4480_v57  ;;  %v4507_v57 = vrot.slane %v11793_v52, 4 }
 0x4d7   :  { %v4504_v33 = vsel %vm4382_vm7, %v4499_v41, %v4503_v16 }
 0x4d8   :  { %v4508_v18 = vsel %vm4382_vm7, %v4503_v16, %v4507_v57  ;;  %v4512_v52 = vsel %vm4382_vm7, %v4507_v57, %v4511_v14  ;;  %v8351_v14 = vld [vmem:[%s14097_s3 + $0x5b8] sm:$0xff] }
 0x4d9   :  { %4818 = vmatmul.mubr.f32.gmra.mrb[46].mxu1 %v4478_v21  ;;  %v4505_v21 = vrot.slane %v11773_v29, 4 }
 0x4da   :  { %8252 = vmatprep.mubr.msk.f32.mxu1 %vm36_vm2, %v4484_v62  ;;  %v4333_v62 = vld [vmem:[#allocation3 + $0x200] sm:$0xf] }
 0x4db   :  { %v4506_v11 = vsel %vm4382_vm7, %v4501_v61, %v4505_v21  ;;  %v4509_v50 = vrot.slane %v4333_v62, 4  ;;  %v4996_v61 = vsel %vm3739_vm4, %v4991_v32, %v4995_v34 }
 0x4dd   :  { %4824 = vmatmul.mubr.f32.gmra.mrb[48].mxu1 %v4482_v19  ;;  %v4937_v19 = vld [vmem:[#allocation3 + $0x8] sm:$0xc0]  ;;  %v4510_v7 = vsel %vm4382_vm7, %v4505_v21, %v4509_v50 }
 0x4de   :  { %8253 = vmatprep.mubr.msk.f32.mxu1 %vm36_vm2, %v4488_v6  ;;  %v4936_v6 = vld [vmem:[#allocation3] sm:$0xc0]  ;;  %v4990_v29 = vrot.slane %v4937_v19, 6 }
 0x4e1   :  { %4830 = vmatmul.mubr.f32.gmra.mrb[50].mxu1 %v4486_v22  ;;  %v8338_v22 = vld [vmem:[%s14097_s3 + $0x550] sm:$0xff] }
 0x4e2   :  { %8254 = vmatprep.mubr.msk.f32.mxu1 %vm36_vm2, %v4492_v13  ;;  %v4987_v13 = vrot.slane %v4936_v6, 6  ;;  %v8784_v41 = vpack.c.bf16 %v8338_v22, %v8336_v9  ;;  %v5001_v6 = vrot.slane %v11895_v8, 6  ;;  %v5007_v22 = vrot.slane %v12109_v38, 6  ;;  %v8352_v8 = vld [vmem:[%s14097_s3 + $0x5c0] sm:$0xff]  ;;  %v8357_v38 = vld [vmem:[%s14097_s3 + $0x5e8] sm:$0xff] }
 0x4e5   :  { %4836 = vmatmul.mubr.f32.gmra.mrb[52].mxu1 %v4490_v30  ;;  %v4992_v30 = vsel %vm3739_vm4, %v4990_v29, %v4991_v32  ;;  %v8355_v29 = vld [vmem:[%s14097_s3 + $0x5d8] sm:$0xff] }
 0x4e6   :  { %8255 = vmatprep.mubr.msk.f32.mxu1 %vm36_vm2, %v4496_v35  ;;  %v4988_v35 = vrot.slane %v11844_v46, 6  ;;  %v8347_v46 = vld [vmem:[%s14097_s3 + $0x598] sm:$0xff] }
 0x4e7   :  { %v8790_v49 = vpack.c.bf16 %v8347_v46, %v8345_v2  ;;  %v8361_v2 = vld [vmem:[%s14097_s3 + $0x608] sm:$0xff]  ;;  %v8363_v46 = vld [vmem:[%s14097_s3 + $0x618] sm:$0xff] }
 0x4e8   :  { %v4989_v16 = vsel %vm3739_vm4, %v4987_v13, %v4988_v35 }
 0x4e9   :  { %4842 = vmatmul.mubr.f32.gmra.mrb[54].mxu1 %v4494_v40  ;;  %v8786_v40 = vpack.c.bf16 %v8343_v53, %v8341_v51  ;;  %v8354_v51 = vld [vmem:[%s14097_s3 + $0x5d0] sm:$0xff] }
 0x4ea   :  { %8256 = vmatprep.mubr.msk.f32.mxu1 %vm36_vm2, %v4500_v17  ;;  %v8342_v17 = vld [vmem:[%s14097_s3 + $0x570] sm:$0xff] }
 0x4eb   :  { %v8788_v57 = vpack.c.bf16 %v8342_v17, %v8340_v60  ;;  %v8358_v17 = vld [vmem:[%s14097_s3 + $0x5f0] sm:$0xff] }
 0x4ed   :  { %4848 = vmatmul.mubr.f32.gmra.mrb[56].mxu1 %v4498_v54  ;;  %v4993_v54 = vrot.slane %v11861_v43, 6  ;;  %v8344_v43 = vld [vmem:[%s14097_s3 + $0x580] sm:$0xff] }
 0x4ee   :  { %8257 = vmatprep.mubr.msk.f32.mxu1 %vm36_vm2, %v4504_v33  ;;  %v4999_v33 = vrot.slane %v12071_v20, 6  ;;  %v8349_v20 = vld [vmem:[%s14097_s3 + $0x5a8] sm:$0xff] }
 0x4ef   :  { %v4994_v21 = vsel %vm3739_vm4, %v4988_v35, %v4993_v54  ;;  %v8794_v19 = vpack.c.bf16 %v8351_v14, %v8349_v20  ;;  %v8365_v20 = vld [vmem:[%s14097_s3 + $0x628] sm:$0xff]  ;;  %v8367_v14 = vld [vmem:[%s14097_s3 + $0x638] sm:$0xff] }
 0x4f0   :  { %v5000_v62 = vsel %vm3739_vm4, %v4995_v34, %v4999_v33  ;;  %v8359_v34 = vld [vmem:[%s14097_s3 + $0x5f8] sm:$0xff] }
 0x4f1   :  { %4854 = vmatmul.mubr.f32.gmra.mrb[58].mxu1 %v4502_v31  ;;  %v8346_v31 = vld [vmem:[%s14097_s3 + $0x590] sm:$0xff]  ;;  %v8802_v60 = vpack.c.bf16 %v8359_v34, %v8357_v38  ;;  %v8373_v38 = vld [vmem:[%s14097_s3 + $0x668] sm:$0xff]  ;;  %v8375_v34 = vld [vmem:[%s14097_s3 + $0x678] sm:$0xff] }
 0x4f2   :  { %8258 = vmatprep.mubr.msk.f32.mxu1 %vm36_vm2, %v4508_v18  ;;  %v4997_v18 = vrot.slane %v11878_v55, 6  ;;  %v8792_v50 = vpack.c.bf16 %v8346_v31, %v8344_v43  ;;  %v8348_v55 = vld [vmem:[%s14097_s3 + $0x5a0] sm:$0xff]  ;;  %v8362_v31 = vld [vmem:[%s14097_s3 + $0x610] sm:$0xff] }
 0x4f3   :  { %v8360_v43 = vld [vmem:[%s14097_s3 + $0x600] sm:$0xff] }
 0x4f4   :  { %v4998_v32 = vsel %vm3739_vm4, %v4993_v54, %v4997_v18  ;;  %v5002_v53 = vsel %vm3739_vm4, %v4997_v18, %v5001_v6  ;;  %v5009_v54 = vrot.slane %v12139_v27, 6  ;;  %v5013_v18 = vrot.slane %v12160_v23, 6 }
 0x4f5   :  { %4860 = vmatmul.mubr.f32.gmra.mrb[60].mxu1 %v4506_v11  ;;  %v5003_v11 = vrot.slane %v12090_v26, 6  ;;  %v8353_v26 = vld [vmem:[%s14097_s3 + $0x5c8] sm:$0xff] }
 0x4f6   :  { %8259 = vmatprep.mubr.msk.f32.mxu1 %vm36_vm2, %v4512_v52  ;;  %v8350_v52 = vld [vmem:[%s14097_s3 + $0x5b0] sm:$0xff]  ;;  %v8798_v13 = vpack.c.bf16 %v8355_v29, %v8353_v26  ;;  %v8369_v26 = vld [vmem:[%s14097_s3 + $0x648] sm:$0xff]  ;;  %v8371_v29 = vld [vmem:[%s14097_s3 + $0x658] sm:$0xff] }
 0x4f7   :  { %v5004_v9 = vsel %vm3739_vm4, %v4999_v33, %v5003_v11  ;;  %v5008_v35 = vsel %vm3739_vm4, %v5003_v11, %v5007_v22  ;;  %v5015_v33 = vrot.slane %v12149_v42, 6  ;;  %v5019_v11 = vrot.slane %v12170_v28, 6 }
 0x4f9   :  { %4866 = vmatmul.mubr.f32.gmra.mrb[62].mxu1 %v4510_v7  ;;  %v8796_v7 = vpack.c.bf16 %v8350_v52, %v8348_v55  ;;  %v8364_v55 = vld [vmem:[%s14097_s3 + $0x620] sm:$0xff]  ;;  %v8366_v52 = vld [vmem:[%s14097_s3 + $0x630] sm:$0xff] }
 0x4fa   :  { %8304 = vmatprep.mubr.msk.f32.mxu1 %vm36_vm2, %v4992_v30  ;;  %v5005_v30 = vrot.slane %v11912_v45, 6  ;;  %v8356_v45 = vld [vmem:[%s14097_s3 + $0x5e0] sm:$0xff] }
 0x4fd   :  { %5284 = vmatmul.mubr.f32.vlgmr.msra.gmra.mrb[0].mxu1 %v4989_v16  ;;  %v5006_v16 = vsel %vm3739_vm4, %v5001_v6, %v5005_v30  ;;  %v5017_v6 = vrot.slane %v12181_v12, 6 }
 0x4fe   :  { %8305 = vmatprep.mubr.msk.f32.mxu1 %vm36_vm2, %v4996_v61  ;;  %8785 = vmatpush1.bf16.msra.mxu1 %v8784_v41  ;;  %v5011_v41 = vrot.slane %v12128_v47, 6 }
 0x4ff   :  { %8787 = vmatprep.subr.bf16.mxu1 %v8786_v40  ;;  %v8800_v40 = vpack.c.bf16 %v8354_v51, %v8352_v8  ;;  %v8368_v8 = vld [vmem:[%s14097_s3 + $0x640] sm:$0xff]  ;;  %v8370_v51 = vld [vmem:[%s14097_s3 + $0x650] sm:$0xff] }
 0x500   :  { %v5012_v61 = vsel %vm3739_vm4, %v5007_v22, %v5011_v41  ;;  %v5023_v22 = vrot.slane %v12191_v44, 6 }
 0x501   :  { %5290 = vmatmul.mubr.f32.gmra.mrb[2].mxu1 %v4994_v21  ;;  %v5010_v21 = vsel %vm3739_vm4, %v5005_v30, %v5009_v54  ;;  %v5021_v30 = vrot.slane %v12202_v1, 6 }
 0x502   :  { %8306 = vmatprep.mubr.msk.f32.mxu1 %vm36_vm2, %v5000_v62  ;;  %8789 = vmatpush1.bf16.msra.mxu1 %v8788_v57  ;;  %v8804_v57 = vpack.c.bf16 %v8358_v17, %v8356_v45  ;;  %v5016_v62 = vsel %vm3739_vm4, %v5011_v41, %v5015_v33  ;;  %v5027_v41 = vrot.slane %v12212_v25, 6  ;;  %v8372_v45 = vld [vmem:[%s14097_s3 + $0x660] sm:$0xff]  ;;  %v8374_v17 = vld [vmem:[%s14097_s3 + $0x670] sm:$0xff] }
 0x503   :  { %8791 = vmatprep.subr.bf16.mxu1 %v8790_v49  ;;  %v8806_v49 = vpack.c.bf16 %v8363_v46, %v8361_v2  ;;  %v5031_v46 = vrot.slane %v12227_v36, 6 }
 0x504   :  { %v5028_v2 = vsel %vm3739_vm4, %v5023_v22, %v5027_v41 }
 0x505   :  { %5296 = vmatmul.mubr.f32.gmra.mrb[4].mxu1 %v4998_v32  ;;  %v5014_v32 = vsel %vm3739_vm4, %v5009_v54, %v5013_v18  ;;  %v5025_v54 = vrot.slane %v12223_v15, 6 }
 0x506   :  { %8307 = vmatprep.mubr.msk.f32.mxu1 %vm36_vm2, %v5004_v9  ;;  %8793 = vmatpush1.bf16.msra.mxu1 %v8792_v50  ;;  %v8808_v50 = vpack.c.bf16 %v8362_v31, %v8360_v43  ;;  %v5020_v9 = vsel %vm3739_vm4, %v5015_v33, %v5019_v11  ;;  %v5032_v43 = vsel %vm3739_vm4, %v5027_v41, %v5031_v46  ;;  %v5035_v31 = vrot.slane %v12245_v56, 6 }
 0x507   :  { %8795 = vmatprep.subr.bf16.mxu1 %v8794_v19  ;;  %v8810_v19 = vpack.c.bf16 %v8367_v14, %v8365_v20  ;;  %v5026_v33 = vsel %vm3739_vm4, %v5021_v30, %v5025_v54  ;;  %v5033_v20 = vrot.slane %v12254_v59, 6 }
 0x508   :  { %v5036_v14 = vsel %vm3739_vm4, %v5031_v46, %v5035_v31 }
 0x509   :  { %5302 = vmatmul.mubr.f32.gmra.mrb[6].mxu1 %v5002_v53  ;;  %v5018_v53 = vsel %vm3739_vm4, %v5013_v18, %v5017_v6 }
 0x50a   :  { %8308 = vmatprep.mubr.msk.f32.mxu1 %vm36_vm2, %v5008_v35  ;;  %8797 = vmatpush1.bf16.msra.mxu1 %v8796_v7  ;;  %v8812_v7 = vpack.c.bf16 %v8366_v52, %v8364_v55  ;;  %v5024_v35 = vsel %vm3739_vm4, %v5019_v11, %v5023_v22  ;;  %v5043_v55 = vrot.slane %v12268_v39, 6 }
 0x50b   :  { %8799 = vmatprep.subr.bf16.mxu1 %v8798_v13  ;;  %v8814_v13 = vpack.c.bf16 %v8371_v29, %v8369_v26  ;;  %v5047_v26 = vrot.slane %v12277_v37, 6 }
 0x50d   :  { %5308 = vmatmul.mubr.f32.gmra.mrb[8].mxu1 %v5006_v16  ;;  %v5022_v16 = vsel %vm3739_vm4, %v5017_v6, %v5021_v30 }
 0x50e   :  { %8309 = vmatprep.mubr.msk.f32.mxu1 %vm36_vm2, %v5012_v61  ;;  %8801 = vmatpush1.bf16.msra.mxu1 %v8800_v40  ;;  %v8816_v40 = vpack.c.bf16 %v8370_v51, %v8368_v8  ;;  %v8820_v61 = vpack.c.bf16 %v8374_v17, %v8372_v45  ;;  %v14242_v45 = vld [vmem:[#allocation21_spill] sm:$0xff] }
 0x50f   :  { %8803 = vmatprep.subr.bf16.mxu1 %v8802_v60  ;;  %v8818_v60 = vpack.c.bf16 %v8375_v34, %v8373_v38  ;;  %v14241_v34 = vld [vmem:[#allocation14_spill] sm:$0xff]  ;;  %v5059_v17 = vrot.slane %v14242_v45, 6 }
 0x511   :  { %5314 = vmatmul.mubr.f32.gmra.mrb[10].mxu1 %v5010_v21  ;;  %v8376_v21 = vld [vmem:[%s14097_s3 + $0x680] sm:$0x3] }
 0x512   :  { %8310 = vmatprep.mubr.msk.f32.mxu1 %vm36_vm2, %v5016_v62  ;;  %8805 = vmatpush1.bf16.msra.mxu1 %v8804_v57  ;;  %v5029_v57 = vrot.slane %v12232_v24, 6  ;;  %v5039_v62 = vrot.slane %v12258_v5, 6 }
 0x513   :  { %8807 = vmatprep.subr.bf16.mxu1 %v8806_v49  ;;  %v8377_v49 = vld [vmem:[%s14097_s3 + $0x688] sm:$0x3] }
 0x514   :  { %v5030_v18 = vsel %vm3739_vm4, %v5025_v54, %v5029_v57  ;;  %v5034_v11 = vsel %vm3739_vm4, %v5029_v57, %v5033_v20  ;;  %v5044_v6 = vsel %vm3739_vm4, %v5039_v62, %v5043_v55  ;;  %v14243_v54 = vld [vmem:[#allocation16_spill] sm:$0xff] }
 0x515   :  { %5320 = vmatmul.mubr.f32.gmra.mrb[12].mxu1 %v5014_v32  ;;  %v5041_v32 = vrot.slane %v12273_v58, 6 }
 0x516   :  { %8311 = vmatprep.mubr.msk.f32.mxu1 %vm36_vm2, %v5020_v9  ;;  %8809 = vmatpush1.bf16.msra.mxu1 %v8808_v50  ;;  %v5037_v50 = vrot.slane %v12264_v48, 6  ;;  %v14238_v9 = vld [vmem:[#allocation17_spill] sm:$0xff] }
 0x517   :  { %8811 = vmatprep.subr.bf16.mxu1 %v8810_v19  ;;  %v5040_v19 = vsel %vm3739_vm4, %v5035_v31, %v5039_v62  ;;  %v5045_v22 = vrot.slane %v14238_v9, 6  ;;  %v12608_v31 = vld [vmem:[#allocation3 + $0x148] sm:$0xff]  ;;  %v12615_v62 = vld [vmem:[#allocation3 + $0x158] sm:$0xff] }
 0x518   :  { %v5038_v52 = vsel %vm3739_vm4, %v5033_v20, %v5037_v50  ;;  %v5042_v29 = vsel %vm3739_vm4, %v5037_v50, %v5041_v32  ;;  %v5065_v20 = vrot.slane %v12325_v10, 6 }
 0x519   :  { %5326 = vmatmul.mubr.f32.gmra.mrb[14].mxu1 %v5018_v53  ;;  %v5046_v51 = vsel %vm3739_vm4, %v5041_v32, %v5045_v22  ;;  %v14240_v53 = vld [vmem:[#allocation19_spill] sm:$0xff] }
 0x51a   :  { %8312 = vmatprep.mubr.msk.f32.mxu1 %vm36_vm2, %v5024_v35  ;;  %8813 = vmatpush1.bf16.msra.mxu1 %v8812_v7  ;;  %v5048_v7 = vsel %vm3739_vm4, %v5043_v55, %v5047_v26  ;;  %v5049_v30 = vrot.slane %v14240_v53, 6  ;;  %v5055_v35 = vrot.slane %v14241_v34, 6 }
 0x51b   :  { %8815 = vmatprep.subr.bf16.mxu1 %v8814_v13  ;;  %v14239_v13 = vld [vmem:[#allocation12_spill] sm:$0xff] }
 0x51c   :  { %v5051_v8 = vrot.slane %v14239_v13, 6  ;;  %v5050_v41 = vsel %vm3739_vm4, %v5045_v22, %v5049_v30  ;;  %v5060_v46 = vsel %vm3739_vm4, %v5055_v35, %v5059_v17  ;;  %v12629_v22 = vld [vmem:[#allocation3 + $0x178] sm:$0xff] }
 0x51d   :  { %5332 = vmatmul.mubr.f32.gmra.mrb[16].mxu1 %v5022_v16 }
 0x51e   :  { %8313 = vmatprep.mubr.msk.f32.mxu1 %vm36_vm2, %v5028_v2  ;;  %8817 = vmatpush1.bf16.msra.mxu1 %v8816_v40  ;;  %v5052_v38 = vsel %vm3739_vm4, %v5047_v26, %v5051_v8  ;;  %v5053_v40 = vrot.slane %v12300_v63, 6  ;;  %v5057_v2 = vrot.slane %v14243_v54, 6  ;;  %v5073_v26 = vrot.slane %v12339_v3, 6 }
 0x51f   :  { %8819 = vmatprep.subr.bf16.mxu1 %v8818_v60  ;;  %v5056_v60 = vsel %vm3739_vm4, %v5051_v8, %v5055_v35  ;;  %v12638_v35 = vld [vmem:[#allocation3 + $0x188] sm:$0xff] }
 0x520   :  { %v5054_v16 = vsel %vm3739_vm4, %v5049_v30, %v5053_v40  ;;  %v5058_v57 = vsel %vm3739_vm4, %v5053_v40, %v5057_v2 }
 0x521   :  { %5338 = vmatmul.mubr.f32.gmra.mrb[18].mxu1 %v5026_v33 }
 0x522   :  { %8314 = vmatprep.mubr.msk.f32.mxu1 %vm36_vm2, %v5032_v43  ;;  %8821 = vmatpush1.bf16.msra.mxu1 %v8820_v61  ;;  %v14244_v61 = vld [vmem:[#allocation23_spill] sm:$0xff] }
 0x523   :  { %8378 = vmatprep.subr.msk.mxu1 %vm3739_vm4, %v8377_v49  ;;  %v5063_v33 = vrot.slane %v14244_v61, 6  ;;  %v5061_v49 = vrot.slane %v12318_v4, 6 }
 0x525   :  { %5344 = vmatmul.mubr.f32.gmra.mrb[20].mxu1 %v5030_v18  ;;  %v5064_v43 = vsel %vm3739_vm4, %v5059_v17, %v5063_v33  ;;  %v5062_v18 = vsel %vm3739_vm4, %v5057_v2, %v5061_v49  ;;  %v5066_v50 = vsel %vm3739_vm4, %v5061_v49, %v5065_v20  ;;  %v12647_v2 = vld [vmem:[#allocation3 + $0x198] sm:$0xff] }
 0x526   :  { %8315 = vmatprep.mubr.msk.f32.mxu1 %vm36_vm2, %v5036_v14  ;;  %8379 = vmatpush1.msk.msra.mxu1 %vm3739_vm4, %v8376_v21  ;;  %v5067_v21 = vrot.slane %v12608_v31, 6 }
 0x528   :  { %v5068_v14 = vsel %vm3739_vm4, %v5063_v33, %v5067_v21 }
 0x529   :  { %5350 = vmatmul.mubr.f32.gmra.mrb[22].mxu1 %v5034_v11  ;;  %v5071_v11 = vrot.slane %v12615_v62, 6 }
 0x52a   :  { %8316 = vmatprep.mubr.msk.f32.mxu1 %vm36_vm2, %v5040_v19  ;;  %v5069_v19 = vrot.slane %v12332_v0, 6 }
 0x52b   :  { %v5072_v55 = vsel %vm3739_vm4, %v5067_v21, %v5071_v11  ;;  %v12656_v21 = vld [vmem:[#allocation3 + $0x1a8] sm:$0xff] }
 0x52c   :  { %v5074_v8 = vsel %vm3739_vm4, %v5069_v19, %v5073_v26 }
 0x52d   :  { %5356 = vmatmul.mubr.f32.gmra.mrb[24].mxu1 %v5038_v52  ;;  %v12622_v52 = vld [vmem:[#allocation3 + $0x168] sm:$0xff] }
 0x52e   :  { %8317 = vmatprep.mubr.msk.f32.mxu1 %vm36_vm2, %v5044_v6  ;;  %v5075_v32 = vrot.slane %v12622_v52, 6  ;;  %v5070_v6 = vsel %vm3739_vm4, %v5065_v20, %v5069_v19  ;;  %v12665_v19 = vld [vmem:[#allocation3 + $0x1b8] sm:$0xff] }
 0x531   :  { %5362 = vmatmul.mubr.f32.gmra.mrb[26].mxu1 %v5042_v29  ;;  %v5076_v29 = vsel %vm3739_vm4, %v5071_v11, %v5075_v32 }
 0x532   :  { %8318 = vmatprep.mubr.msk.f32.mxu1 %vm36_vm2, %v5048_v7  ;;  %v5079_v7 = vrot.slane %v12629_v22, 6 }
 0x535   :  { %5368 = vmatmul.mubr.f32.gmra.mrb[28].mxu1 %v5046_v51  ;;  %v12634_v51 = vld [vmem:[#allocation3 + $0x170] sm:$0xff] }
 0x536   :  { %8319 = vmatprep.mubr.msk.f32.mxu1 %vm36_vm2, %v5052_v38  ;;  %v5077_v30 = vrot.slane %v12634_v51, 6  ;;  %v5080_v38 = vsel %vm3739_vm4, %v5075_v32, %v5079_v7 }
 0x538   :  { %v5078_v40 = vsel %vm3739_vm4, %v5073_v26, %v5077_v30 }
 0x539   :  { %5374 = vmatmul.mubr.f32.gmra.mrb[30].mxu1 %v5050_v41  ;;  %v5083_v41 = vrot.slane %v12638_v35, 6 }
 0x53a   :  { %8320 = vmatprep.mubr.msk.f32.mxu1 %vm36_vm2, %v5056_v60  ;;  %v12643_v60 = vld [vmem:[#allocation3 + $0x180] sm:$0xff] }
 0x53b   :  { %v5081_v17 = vrot.slane %v12643_v60, 6 }
 0x53d   :  { %5380 = vmatmul.mubr.f32.gmra.mrb[32].mxu1 %v5054_v16  ;;  %v5084_v16 = vsel %vm3739_vm4, %v5079_v7, %v5083_v41  ;;  %v5082_v33 = vsel %vm3739_vm4, %v5077_v30, %v5081_v17  ;;  %v12674_v7 = vld [vmem:[#allocation3 + $0x1c8] sm:$0xff] }
 0x53e   :  { %8321 = vmatprep.mubr.msk.f32.mxu1 %vm36_vm2, %v5060_v46  ;;  %v5087_v46 = vrot.slane %v12647_v2, 6 }
 0x541   :  { %5386 = vmatmul.mubr.f32.gmra.mrb[34].mxu1 %v5058_v57  ;;  %v12652_v57 = vld [vmem:[#allocation3 + $0x190] sm:$0xff] }
 0x542   :  { %8322 = vmatprep.mubr.msk.f32.mxu1 %vm36_vm2, %v5064_v43  ;;  %v5085_v49 = vrot.slane %v12652_v57, 6  ;;  %v5088_v43 = vsel %vm3739_vm4, %v5083_v41, %v5087_v46 }
 0x544   :  { %v5086_v20 = vsel %vm3739_vm4, %v5081_v17, %v5085_v49  ;;  %v12683_v17 = vld [vmem:[#allocation3 + $0x1d8] sm:$0xff] }
 0x545   :  { %5392 = vmatmul.mubr.f32.gmra.mrb[36].mxu1 %v5062_v18  ;;  %v5091_v18 = vrot.slane %v12656_v21, 6 }
 0x546   :  { %8323 = vmatprep.mubr.msk.f32.mxu1 %vm36_vm2, %v5068_v14  ;;  %v12661_v14 = vld [vmem:[#allocation3 + $0x1a0] sm:$0xff] }
 0x547   :  { %v5089_v11 = vrot.slane %v12661_v14, 6 }
 0x549   :  { %5398 = vmatmul.mubr.f32.gmra.mrb[38].mxu1 %v5066_v50  ;;  %v5092_v50 = vsel %vm3739_vm4, %v5087_v46, %v5091_v18  ;;  %v5090_v32 = vsel %vm3739_vm4, %v5085_v49, %v5089_v11 }
 0x54a   :  { %8324 = vmatprep.mubr.msk.f32.mxu1 %vm36_vm2, %v5072_v55  ;;  %v5095_v55 = vrot.slane %v12665_v19, 6 }
 0x54d   :  { %5404 = vmatmul.mubr.f32.gmra.mrb[40].mxu1 %v5070_v6  ;;  %v12670_v6 = vld [vmem:[#allocation3 + $0x1b0] sm:$0xff] }
 0x54e   :  { %8325 = vmatprep.mubr.msk.f32.mxu1 %vm36_vm2, %v5076_v29  ;;  %v5093_v26 = vrot.slane %v12670_v6, 6  ;;  %v5096_v29 = vsel %vm3739_vm4, %v5091_v18, %v5095_v55  ;;  %v12692_v18 = vld [vmem:[#allocation3 + $0x1e8] sm:$0xff] }
 0x550   :  { %v5094_v30 = vsel %vm3739_vm4, %v5089_v11, %v5093_v26 }
 0x551   :  { %5410 = vmatmul.mubr.f32.gmra.mrb[42].mxu1 %v5074_v8  ;;  %v5099_v8 = vrot.slane %v12674_v7, 6 }
 0x552   :  { %8326 = vmatprep.mubr.msk.f32.mxu1 %vm36_vm2, %v5080_v38  ;;  %v12679_v38 = vld [vmem:[#allocation3 + $0x1c0] sm:$0xff] }
 0x553   :  { %v5097_v41 = vrot.slane %v12679_v38, 6 }
 0x555   :  { %5416 = vmatmul.mubr.f32.gmra.mrb[44].mxu1 %v5078_v40  ;;  %v5100_v40 = vsel %vm3739_vm4, %v5095_v55, %v5099_v8  ;;  %v5098_v46 = vsel %vm3739_vm4, %v5093_v26, %v5097_v41  ;;  %v12701_v26 = vld [vmem:[#allocation3 + $0x1f8] sm:$0xff] }
 0x556   :  { %8327 = vmatprep.mubr.msk.f32.mxu1 %vm36_vm2, %v5084_v16  ;;  %v5103_v16 = vrot.slane %v12683_v17, 6  ;;  %14246 = vst [vmem:[#allocation25_spill] sm:$0xff] %v12701_v26 }
 0x559   :  { %5422 = vmatmul.mubr.f32.gmra.mrb[46].mxu1 %v5082_v33  ;;  %v12688_v33 = vld [vmem:[#allocation3 + $0x1d0] sm:$0xff] }
 0x55a   :  { %8328 = vmatprep.mubr.msk.f32.mxu1 %vm36_vm2, %v5088_v43  ;;  %v5101_v49 = vrot.slane %v12688_v33, 6  ;;  %v5104_v43 = vsel %vm3739_vm4, %v5099_v8, %v5103_v16  ;;  %v4939_v8 = vld [vmem:[#allocation3 + $0x208] sm:$0x3f] }
 0x55c   :  { %v5102_v11 = vsel %vm3739_vm4, %v5097_v41, %v5101_v49 }
 0x55d   :  { %5428 = vmatmul.mubr.f32.gmra.mrb[48].mxu1 %v5086_v20  ;;  %v5107_v20 = vrot.slane %v12692_v18, 6 }
 0x55e   :  { %8329 = vmatprep.mubr.msk.f32.mxu1 %vm36_vm2, %v5092_v50  ;;  %v12697_v50 = vld [vmem:[#allocation3 + $0x1e0] sm:$0xff] }
 0x55f   :  { %14245 = vst [vmem:[#allocation18_spill] sm:$0xff] %v12697_v50  ;;  %v5105_v55 = vrot.slane %v12697_v50, 6 }
 0x561   :  { %5434 = vmatmul.mubr.f32.gmra.mrb[50].mxu1 %v5090_v32  ;;  %v5108_v32 = vsel %vm3739_vm4, %v5103_v16, %v5107_v20 }
 0x562   :  { %8330 = vmatprep.mubr.msk.f32.mxu1 %vm36_vm2, %v5096_v29  ;;  %v5111_v29 = vrot.slane %v12701_v26, 6  ;;  %v9573_v26 = vld [vmem:[#allocation3 + $0x18] sm:$0xff] }
 0x565   :  { %5440 = vmatmul.mubr.f32.gmra.mrb[52].mxu1 %v5094_v30  ;;  %v5106_v30 = vsel %vm3739_vm4, %v5101_v49, %v5105_v55 }
 0x566   :  { %8331 = vmatprep.mubr.msk.f32.mxu1 %vm36_vm2, %v5100_v40  ;;  %v12706_v40 = vld [vmem:[#allocation3 + $0x1f0] sm:$0xff] }
 0x567   :  { %v5109_v41 = vrot.slane %v12706_v40, 6 }
 0x569   :  { %5446 = vmatmul.mubr.f32.gmra.mrb[54].mxu1 %v5098_v46  ;;  %v5112_v46 = vsel %vm3739_vm4, %v5107_v20, %v5111_v29  ;;  %v5110_v16 = vsel %vm3739_vm4, %v5105_v55, %v5109_v41  ;;  %v9575_v20 = vld [vmem:[#allocation3 + $0x28] sm:$0xff]  ;;  %v9577_v55 = vld [vmem:[#allocation3 + $0x38] sm:$0xff] }
 0x56a   :  { %8332 = vmatprep.mubr.msk.f32.mxu1 %vm36_vm2, %v5104_v43  ;;  %v5115_v43 = vrot.slane %v4939_v8, 6  ;;  %v9576_v8 = vld [vmem:[#allocation3 + $0x20] sm:$0xff] }
 0x56d   :  { %5452 = vmatmul.mubr.f32.gmra.mrb[56].mxu1 %v5102_v11  ;;  %v4938_v11 = vld [vmem:[#allocation3 + $0x200] sm:$0x3f] }
 0x56e   :  { %8333 = vmatprep.mubr.msk.f32.mxu1 %vm36_vm2, %v5108_v32  ;;  %v5113_v50 = vrot.slane %v4938_v11, 6  ;;  %v5116_v32 = vsel %vm3739_vm4, %v5111_v29, %v5115_v43  ;;  %v9579_v29 = vld [vmem:[#allocation3 + $0x48] sm:$0xff] }
 0x570   :  { %v5114_v49 = vsel %vm3739_vm4, %v5109_v41, %v5113_v50  ;;  %v9580_v50 = vld [vmem:[#allocation3 + $0x40] sm:$0xff]  ;;  %v9581_v41 = vld [vmem:[#allocation3 + $0x58] sm:$0xff] }
 0x571   :  { %5458 = vmatmul.mubr.f32.gmra.mrb[58].mxu1 %v5106_v30  ;;  %v9574_v30 = vld [vmem:[#allocation3 + $0x10] sm:$0xff] }
 0x572   :  { %8334 = vmatprep.mubr.msk.f32.mxu1 %vm36_vm2, %v5112_v46  ;;  %v9578_v46 = vld [vmem:[#allocation3 + $0x30] sm:$0xff] }
 0x575   :  { %5464 = vmatmul.mubr.f32.gmra.mrb[60].mxu1 %v5110_v16 }
 0x576   :  { %8335 = vmatprep.mubr.msk.f32.mxu1 %vm36_vm2, %v5116_v32 }
 0x579   :  { %5470 = vmatmul.mubr.f32.gmra.mrb[62].mxu1 %v5114_v49 }
 0x57a   :  { %8380 = vmatprep.mubr.msk.f32.mxu1 %vm36_vm2, %v9573_v26  ;;  %v9582_v26 = vld [vmem:[#allocation3 + $0x50] sm:$0xff] }
 0x57d   :  { %5659 = vmatmul.mubr.f32.vlgmr.msra.gmra.mrb[0].mxu1 %v9574_v30 }
 0x57e   :  { %8381 = vmatprep.mubr.msk.f32.mxu1 %vm36_vm2, %v9575_v20 }
 0x581   :  { %5665 = vmatmul.mubr.f32.gmra.mrb[2].mxu1 %v9576_v8 }
 0x582   :  { %8382 = vmatprep.mubr.msk.f32.mxu1 %vm36_vm2, %v9577_v55 }
 0x585   :  { %5671 = vmatmul.mubr.f32.gmra.mrb[4].mxu1 %v9578_v46 }
 0x586   :  { %8383 = vmatprep.mubr.msk.f32.mxu1 %vm36_vm2, %v9579_v29 }
 0x589   :  { %5677 = vmatmul.mubr.f32.gmra.mrb[6].mxu1 %v9580_v50 }
 0x58a   :  { %8384 = vmatprep.mubr.msk.f32.mxu1 %vm36_vm2, %v9581_v41 }
 0x58d   :  { %5683 = vmatmul.mubr.f32.gmra.mrb[8].mxu1 %v9582_v26 }
 0x58e   :  { %8385 = vmatprep.mubr.msk.f32.mxu1 %vm36_vm2, %v12128_v47  ;;  %v14247_v47 = vld [vmem:[#allocation18_spill] sm:$0xff] }
 0x591   :  { %5689 = vmatmul.mubr.f32.gmra.mrb[10].mxu1 %v12139_v27  ;;  %v14248_v27 = vld [vmem:[#allocation25_spill] sm:$0xff] }
 0x592   :  { %8386 = vmatprep.mubr.msk.f32.mxu1 %vm36_vm2, %v12149_v42  ;;  %v5541_v42 = vld [vmem:[#allocation3 + $0x208] sm:$0xff] }
 0x595   :  { %5695 = vmatmul.mubr.f32.gmra.mrb[12].mxu1 %v12160_v23  ;;  %v9583_v23 = vld [vmem:[#allocation2 + $0x200] sm:$0xff] }
 0x596   :  { %8387 = vmatprep.mubr.msk.f32.mxu1 %vm36_vm2, %v12170_v28  ;;  %v5915_v28 = vld [vmem:[%s14099_s4] ss:$2 sm:$0x3] }
 0x599   :  { %5701 = vmatmul.mubr.f32.gmra.mrb[14].mxu1 %v12181_v12  ;;  %v8412_v12 = vld [vmem:[%s14099_s4 + $0x1] ss:$2 sm:$0x3]  ;;  %s9590_s4 = smov 112  }
 0x59a   :  { %8388 = vmatprep.mubr.msk.f32.mxu1 %vm36_vm2, %v12191_v44  ;;  %v14249_v44 = vld [vmem:[#allocation7_spill] sm:$0xff] }
 0x59d   :  { %5707 = vmatmul.mubr.f32.gmra.mrb[16].mxu1 %v12202_v1  ;;  %v12806_v1 = vrot.slane %v5915_v28, %v14249_v44 }
 0x59e   :  { %8389 = vmatprep.mubr.msk.f32.mxu1 %vm36_vm2, %v12212_v25  ;;  %v14250_v25 = vld [vmem:[#allocation8_spill] sm:$0xff] }
 0x5a1   :  { %5713 = vmatmul.mubr.f32.gmra.mrb[18].mxu1 %v12223_v15  ;;  %v12809_v15 = vrot.slane %v5915_v28, %v14250_v25 }
 0x5a2   :  { %8390 = vmatprep.mubr.msk.f32.mxu1 %vm36_vm2, %v12227_v36  ;;  %v12812_v36 = vrot.slane %v8412_v12, %v14249_v44 }
 0x5a5   :  { %5719 = vmatmul.mubr.f32.gmra.mrb[20].mxu1 %v12232_v24 }
 0x5a6   :  { %8391 = vmatprep.mubr.msk.f32.mxu1 %vm36_vm2, %v12245_v56  ;;  %v12815_v56 = vrot.slane %v8412_v12, %v14250_v25 }
 0x5a9   :  { %5725 = vmatmul.mubr.f32.gmra.mrb[22].mxu1 %v12254_v59 }
 0x5aa   :  { %8392 = vmatprep.mubr.msk.f32.mxu1 %vm36_vm2, %v12258_v5 }
 0x5ad   :  { %5731 = vmatmul.mubr.f32.gmra.mrb[24].mxu1 %v12264_v48 }
 0x5ae   :  { %8393 = vmatprep.mubr.msk.f32.mxu1 %vm36_vm2, %v12268_v39 }
 0x5b1   :  { %5737 = vmatmul.mubr.f32.gmra.mrb[26].mxu1 %v12273_v58 }
 0x5b2   :  { %8394 = vmatprep.mubr.msk.f32.mxu1 %vm36_vm2, %v12277_v37 }
 0x5b5   :  { %5743 = vmatmul.mubr.f32.gmra.mrb[28].mxu1 %v14238_v9 }
 0x5b6   :  { %8395 = vmatprep.mubr.msk.f32.mxu1 %vm36_vm2, %v14239_v13 }
 0x5b9   :  { %5749 = vmatmul.mubr.f32.gmra.mrb[30].mxu1 %v14240_v53 }
 0x5ba   :  { %8396 = vmatprep.mubr.msk.f32.mxu1 %vm36_vm2, %v14241_v34 }
 0x5bd   :  { %5755 = vmatmul.mubr.f32.gmra.mrb[32].mxu1 %v12300_v63 }
 0x5be   :  { %8397 = vmatprep.mubr.msk.f32.mxu1 %vm36_vm2, %v14242_v45 }
 0x5c1   :  { %5761 = vmatmul.mubr.f32.gmra.mrb[34].mxu1 %v14243_v54 }
 0x5c2   :  { %8398 = vmatprep.mubr.msk.f32.mxu1 %vm36_vm2, %v14244_v61 }
 0x5c5   :  { %5767 = vmatmul.mubr.f32.gmra.mrb[36].mxu1 %v12318_v4 }
 0x5c6   :  { %8399 = vmatprep.mubr.msk.f32.mxu1 %vm36_vm2, %v12608_v31 }
 0x5c9   :  { %5773 = vmatmul.mubr.f32.gmra.mrb[38].mxu1 %v12325_v10 }
 0x5ca   :  { %8400 = vmatprep.mubr.msk.f32.mxu1 %vm36_vm2, %v12615_v62 }
 0x5cd   :  { %5779 = vmatmul.mubr.f32.gmra.mrb[40].mxu1 %v12332_v0 }
 0x5ce   :  { %8401 = vmatprep.mubr.msk.f32.mxu1 %vm36_vm2, %v12622_v52 }
 0x5d1   :  { %5785 = vmatmul.mubr.f32.gmra.mrb[42].mxu1 %v12339_v3 }
 0x5d2   :  { %8402 = vmatprep.mubr.msk.f32.mxu1 %vm36_vm2, %v12629_v22 }
 0x5d5   :  { %5791 = vmatmul.mubr.f32.gmra.mrb[44].mxu1 %v12634_v51 }
 0x5d6   :  { %8403 = vmatprep.mubr.msk.f32.mxu1 %vm36_vm2, %v12638_v35 }
 0x5d9   :  { %5797 = vmatmul.mubr.f32.gmra.mrb[46].mxu1 %v12643_v60 }
 0x5da   :  { %8404 = vmatprep.mubr.msk.f32.mxu1 %vm36_vm2, %v12647_v2 }
 0x5dd   :  { %5803 = vmatmul.mubr.f32.gmra.mrb[48].mxu1 %v12652_v57 }
 0x5de   :  { %8405 = vmatprep.mubr.msk.f32.mxu1 %vm36_vm2, %v12656_v21 }
 0x5e1   :  { %5809 = vmatmul.mubr.f32.gmra.mrb[50].mxu1 %v12661_v14 }
 0x5e2   :  { %8406 = vmatprep.mubr.msk.f32.mxu1 %vm36_vm2, %v12665_v19 }
 0x5e5   :  { %5815 = vmatmul.mubr.f32.gmra.mrb[52].mxu1 %v12670_v6 }
 0x5e6   :  { %8407 = vmatprep.mubr.msk.f32.mxu1 %vm36_vm2, %v12674_v7 }
 0x5e9   :  { %5821 = vmatmul.mubr.f32.gmra.mrb[54].mxu1 %v12679_v38 }
 0x5ea   :  { %8408 = vmatprep.mubr.msk.f32.mxu1 %vm36_vm2, %v12683_v17 }
 0x5ed   :  { %5827 = vmatmul.mubr.f32.gmra.mrb[56].mxu1 %v12688_v33 }
 0x5ee   :  { %8409 = vmatprep.mubr.msk.f32.mxu1 %vm36_vm2, %v12692_v18 }
 0x5f1   :  { %5833 = vmatmul.mubr.f32.gmra.mrb[58].mxu1 %v14247_v47 }
 0x5f2   :  { %8410 = vmatprep.mubr.msk.f32.mxu1 %vm36_vm2, %v14248_v27 }
 0x5f5   :  { %5839 = vmatmul.mubr.f32.gmra.mrb[60].mxu1 %v12706_v40 }
 0x5f6   :  { %8411 = vmatprep.mubr.msk.f32.mxu1 %vm36_vm2, %v5541_v42 }
 0x5f9   :  { %5845 = vmatmul.mubr.f32.gmra.mrb[62].mxu1 %v9583_v23 }
 0x650   :  { %v5660_v24 = vpop.f32.mrb[0].mxu1 }
 0x651   :  { %v5927_v59 = vmul.f32 %v12806_v1, %v5660_v24  ;;  %v5662_v5 = vpop.f32.mrb[1].mxu1 }
 0x652   :  { %v5928_v48 = vmul.f32 %v12809_v15, %v5662_v5  ;;  %v8413_v5 = vld [vmem:[%s14100_s5 + $0x90] sm:$0xff] }
 0x653   :  { %v6004_v39 = vadd.f32 %v12812_v36, %v5927_v59  ;;  %v14159_v59 = vmov 0.0|0.0  }
 0x654   :  { %v6005_v58 = vadd.f32 %v12815_v56, %v5928_v48  ;;  %v5666_v37 = vpop.f32.mrb[2].mxu1  ;;  %8822 = vmatprep.subr.bf16.mxu0 %v14159_v59  ;;  %v8414_v48 = vld [vmem:[%s14100_s5 + $0x98] sm:$0xff]  ;;  %8849 = vmatprep.subr.bf16.mxu1 %v14159_v59 }
 0x655   :  { %v6068_v4 = vmax.f32 %v6004_v39, 0.0  ;;  %v5929_v63 = vmul.f32 %v12806_v1, %v5666_v37  ;;  %v5668_v10 = vpop.f32.mrb[3].mxu1 }
 0x656   :  { %v6069_v0 = vmax.f32 %v6005_v58, 0.0  ;;  %v5930_v3 = vmul.f32 %v12809_v15, %v5668_v10 }
 0x657   :  { %6132 = vst [vmem:[#allocation4] sm:$0xff] %v6068_v4  ;;  %v6006_v9 = vadd.f32 %v12812_v36, %v5929_v63 }
 0x658   :  { %6133 = vst.msk [vmem:[#allocation4 + $0x8] sm:$0xff] %vm39_vm0, %v6069_v0  ;;  %v6007_v13 = vadd.f32 %v12815_v56, %v5930_v3  ;;  %v5672_v53 = vpop.f32.mrb[4].mxu1 }
 0x659   :  { %v6070_v34 = vmax.f32 %v6006_v9, 0.0  ;;  %v5931_v45 = vmul.f32 %v12806_v1, %v5672_v53  ;;  %v5674_v54 = vpop.f32.mrb[5].mxu1 }
 0x65a   :  { %v6071_v61 = vmax.f32 %v6007_v13, 0.0  ;;  %v5932_v31 = vmul.f32 %v12809_v15, %v5674_v54 }
 0x65b   :  { %v6008_v62 = vadd.f32 %v12812_v36, %v5931_v45  ;;  %v6331_v6 = vrot.slane %v6070_v34, 2 }
 0x65c   :  { %6135 = vst.msk [vmem:[#allocation4 + $0x18] sm:$0xff] %vm39_vm0, %v6071_v61  ;;  %v6009_v52 = vadd.f32 %v12815_v56, %v5932_v31  ;;  %v5678_v22 = vpop.f32.mrb[6].mxu1 }
 0x65d   :  { %v6072_v51 = vmax.f32 %v6008_v62, 0.0  ;;  %v5933_v35 = vmul.f32 %v12806_v1, %v5678_v22  ;;  %v5680_v60 = vpop.f32.mrb[7].mxu1 }
 0x65e   :  { %v6073_v2 = vmax.f32 %v6009_v52, 0.0  ;;  %v5934_v57 = vmul.f32 %v12809_v15, %v5680_v60  ;;  %v6260_v21 = vld [vmem:[#allocation4] sm:$0xfc] }
 0x65f   :  { %6136 = vst [vmem:[#allocation4 + $0x20] sm:$0xff] %v6072_v51  ;;  %v6010_v14 = vadd.f32 %v12812_v36, %v5933_v35  ;;  %v6330_v19 = vrot.slane %v6260_v21, 2  ;;  %v12834_v7 = vrot.slane %v6072_v51, 2  ;;  %v6261_v11 = vld [vmem:[#allocation4 + $0x8] sm:$0xfc] }
 0x660   :  { %6137 = vst.msk [vmem:[#allocation4 + $0x28] sm:$0xff] %vm39_vm0, %v6073_v2  ;;  %v6011_v38 = vadd.f32 %v12815_v56, %v5934_v57  ;;  %v5684_v17 = vpop.f32.mrb[8].mxu1  ;;  %v6333_v50 = vrot.slane %v6261_v11, 2  ;;  %v6197_v28 = vld [vmem:[#allocation4 + $0x8] sm:$0xff] }
 0x661   :  { %v6074_v33 = vmax.f32 %v6010_v14, 0.0  ;;  %v5935_v18 = vmul.f32 %v12806_v1, %v5684_v17  ;;  %v5686_v40 = vpop.f32.mrb[9].mxu1  ;;  %v6332_v43 = vsel %vm3512_vm6, %v6330_v19, %v6331_v6  ;;  %v6337_v16 = vsel %vm3512_vm6, %v6331_v6, %v12834_v7 }
 0x662   :  { %v6075_v32 = vmax.f32 %v6011_v38, 0.0  ;;  %v5936_v49 = vmul.f32 %v12809_v15, %v5686_v40  ;;  %v12843_v30 = vmax.f32 %v6068_v4, %v6332_v43  ;;  %v12845_v20 = vmax.f32 %v6070_v34, %v6337_v16 }
 0x663   :  { %6138 = vst [vmem:[#allocation4 + $0x30] sm:$0xff] %v6074_v33  ;;  %v6012_v8 = vadd.f32 %v12812_v36, %v5935_v18  ;;  %v6199_v55 = vld [vmem:[#allocation4 + $0x18] sm:$0xff]  ;;  %v8823_v4 = vpack.c.bf16 %v8414_v48, %v8413_v5 }
 0x664   :  { %6139 = vst.msk [vmem:[#allocation4 + $0x38] sm:$0xff] %vm39_vm0, %v6075_v32  ;;  %v6013_v46 = vadd.f32 %v12815_v56, %v5936_v49  ;;  %v5690_v29 = vpop.f32.mrb[10].mxu1  ;;  %6652 = vrot.lane.b32.xlu0 %v12843_v30, %s9590_s4  ;;  %v6334_v41 = vrot.slane %v6199_v55, 2 }
 0x665   :  { %v6076_v26 = vmax.f32 %v6012_v8, 0.0  ;;  %v5937_v47 = vmul.f32 %v12806_v1, %v5690_v29  ;;  %v5692_v27 = vpop.f32.mrb[11].mxu1  ;;  %8824 = vmatpush1.bf16.msra.mxu0 %v8823_v4 }
 0x666   :  { %v6077_v42 = vmax.f32 %v6013_v46, 0.0  ;;  %v5938_v23 = vmul.f32 %v12809_v15, %v5692_v27  ;;  %v6335_v12 = vsel %vm3512_vm6, %v6333_v50, %v6334_v41  ;;  %8825 = vmatprep.subr.bf16.mxu0 %v14159_v59 }
 0x667   :  { %v6014_v44 = vadd.f32 %v12812_v36, %v5937_v47  ;;  %v12856_v25 = vmax.f32 %v6197_v28, %v6335_v12  ;;  %v12858_v24 = vld [vmem:[#allocation4 + $0x28] sm:$0xff]  ;;  %v12879_v34 = vrot.slane %v6076_v26, 2  ;;  %v8415_v28 = vld [vmem:[%s14100_s5 + $0xa0] sm:$0xff] }
 0x668   :  { %6141 = vst.msk [vmem:[#allocation4 + $0x48] sm:$0xff] %vm39_vm0, %v6077_v42  ;;  %v6015_v39 = vadd.f32 %v12815_v56, %v5938_v23  ;;  %v5696_v58 = vpop.f32.mrb[12].mxu1  ;;  %v14157_v37 = vrot.slane %v12858_v24, 2  ;;  %v8416_v12 = vld [vmem:[%s14100_s5 + $0xa8] sm:$0xff] }
 0x669   :  { %v6078_v63 = vmax.f32 %v6014_v44, 0.0  ;;  %v5939_v10 = vmul.f32 %v12806_v1, %v5696_v58  ;;  %6654 = vrot.lane.b32.xlu1 %v12856_v25, %s9590_s4  ;;  %v5698_v0 = vpop.f32.mrb[13].mxu1  ;;  %v8826_v4 = vpack.c.bf16 %v8416_v12, %v8415_v28 }
 0x66a   :  { %v6079_v3 = vmax.f32 %v6015_v39, 0.0  ;;  %v5940_v9 = vmul.f32 %v12809_v15, %v5698_v0  ;;  %v6339_v13 = vsel %vm3512_vm6, %v6334_v41, %v14157_v37 }
 0x66b   :  { %v6016_v53 = vadd.f32 %v12812_v36, %v5939_v10  ;;  %v6348_v45 = vrot.slane %v6078_v63, 2  ;;  %v12881_v54 = vmax.f32 %v6199_v55, %v6339_v13  ;;  %8827 = vmatpush1.bf16.msra.mxu0 %v8826_v4 }
 0x66c   :  { %6143 = vst.msk [vmem:[#allocation4 + $0x58] sm:$0xff] %vm39_vm0, %v6079_v3  ;;  %v6017_v61 = vadd.f32 %v12815_v56, %v5940_v9  ;;  %v5702_v31 = vpop.f32.mrb[14].mxu1  ;;  %8828 = vmatprep.subr.bf16.mxu0 %v14159_v59 }
 0x66d   :  { %v6080_v62 = vmax.f32 %v6016_v53, 0.0  ;;  %v5941_v52 = vmul.f32 %v12806_v1, %v5702_v31  ;;  %v5704_v22 = vpop.f32.mrb[15].mxu1  ;;  %v6349_v51 = vsel %vm3512_vm6, %v12879_v34, %v6348_v45 }
 0x66e   :  { %v6081_v35 = vmax.f32 %v6017_v61, 0.0  ;;  %v5942_v60 = vmul.f32 %v12809_v15, %v5704_v22  ;;  %v12890_v2 = vmax.f32 %v6076_v26, %v6349_v51 }
 0x66f   :  { %v6018_v57 = vadd.f32 %v12812_v36, %v5941_v52  ;;  %v6352_v21 = vrot.slane %v6080_v62, 2  ;;  %v12898_v33 = vld [vmem:[#allocation4 + $0x48] sm:$0xff] }
 0x670   :  { %6145 = vst.msk [vmem:[#allocation4 + $0x68] sm:$0xff] %vm39_vm0, %v6081_v35  ;;  %v6019_v14 = vadd.f32 %v12815_v56, %v5942_v60  ;;  %v5708_v19 = vpop.f32.mrb[16].mxu1  ;;  %6668 = vrot.lane.b32.xlu0 %v12890_v2, %s9590_s4  ;;  %v14153_v46 = vrot.slane %v12898_v33, 2 }
 0x671   :  { %v6082_v6 = vmax.f32 %v6018_v57, 0.0  ;;  %v5943_v38 = vmul.f32 %v12806_v1, %v5708_v19  ;;  %v5710_v17 = vpop.f32.mrb[17].mxu1  ;;  %v6353_v18 = vsel %vm3512_vm6, %v6348_v45, %v6352_v21 }
 0x672   :  { %v6083_v40 = vmax.f32 %v6019_v14, 0.0  ;;  %v5944_v43 = vmul.f32 %v12809_v15, %v5710_v17  ;;  %v12902_v11 = vmax.f32 %v6078_v63, %v6353_v18 }
 0x673   :  { %v6020_v16 = vadd.f32 %v12812_v36, %v5943_v38  ;;  %v6207_v32 = vld [vmem:[#allocation4 + $0x58] sm:$0xff]  ;;  %v6356_v49 = vrot.slane %v6082_v6, 2 }
 0x674   :  { %6147 = vst.msk [vmem:[#allocation4 + $0x78] sm:$0xff] %vm39_vm0, %v6083_v40  ;;  %v6021_v8 = vadd.f32 %v12815_v56, %v5944_v43  ;;  %v5714_v55 = vpop.f32.mrb[18].mxu1  ;;  %v6350_v29 = vrot.slane %v6207_v32, 2 }
 0x675   :  { %v6084_v50 = vmax.f32 %v6020_v16, 0.0  ;;  %v5945_v41 = vmul.f32 %v12806_v1, %v5714_v55  ;;  %v5716_v26 = vpop.f32.mrb[19].mxu1  ;;  %v6357_v47 = vsel %vm3512_vm6, %v6352_v21, %v6356_v49 }
 0x676   :  { %v6085_v27 = vmax.f32 %v6021_v8, 0.0  ;;  %v5946_v42 = vmul.f32 %v12809_v15, %v5716_v26  ;;  %v6351_v23 = vsel %vm3512_vm6, %v14153_v46, %v6350_v29  ;;  %v12920_v44 = vmax.f32 %v6080_v62, %v6357_v47 }
 0x677   :  { %v6022_v5 = vadd.f32 %v12812_v36, %v5945_v41  ;;  %v12924_v48 = vmax.f32 %v12898_v33, %v6351_v23  ;;  %v6360_v39 = vrot.slane %v6084_v50, 2  ;;  %v12926_v58 = vld [vmem:[#allocation4 + $0x68] sm:$0xff] }
 0x678   :  { %6149 = vst.msk [vmem:[#allocation4 + $0x88] sm:$0xff] %vm39_vm0, %v6085_v27  ;;  %v6023_v63 = vadd.f32 %v12815_v56, %v5946_v42  ;;  %v5720_v10 = vpop.f32.mrb[20].mxu1  ;;  %v14156_v0 = vrot.slane %v12926_v58, 2 }
 0x679   :  { %v6086_v3 = vmax.f32 %v6022_v5, 0.0  ;;  %v5947_v9 = vmul.f32 %v12806_v1, %v5720_v10  ;;  %6670 = vrot.lane.b32.xlu1 %v12924_v48, %s9590_s4  ;;  %v5722_v13 = vpop.f32.mrb[21].mxu1  ;;  %v6361_v53 = vsel %vm3512_vm6, %v6356_v49, %v6360_v39 }
 0x67a   :  { %v6087_v45 = vmax.f32 %v6023_v63, 0.0  ;;  %v5948_v61 = vmul.f32 %v12809_v15, %v5722_v13  ;;  %v6355_v31 = vsel %vm3512_vm6, %v6350_v29, %v14156_v0  ;;  %v12940_v62 = vmax.f32 %v6082_v6, %v6361_v53  ;;  %v8417_v53 = vld [vmem:[%s14100_s5 + $0xb0] sm:$0xff] }
 0x67b   :  { %v6024_v52 = vadd.f32 %v12812_v36, %v5947_v9  ;;  %v6364_v22 = vrot.slane %v6086_v3, 2  ;;  %v12943_v51 = vmax.f32 %v6207_v32, %v6355_v31 }
 0x67c   :  { %6151 = vst.msk [vmem:[#allocation4 + $0x98] sm:$0xff] %vm39_vm0, %v6087_v45  ;;  %v6025_v35 = vadd.f32 %v12815_v56, %v5948_v61  ;;  %v5726_v60 = vpop.f32.mrb[22].mxu1  ;;  %v8418_v45 = vld [vmem:[%s14100_s5 + $0xb8] sm:$0xff]  ;;  %v7210_v61 = vld [vmem:[%s14100_s5] sm:$0xff] }
 0x67d   :  { %v6088_v57 = vmax.f32 %v6024_v52, 0.0  ;;  %v5949_v21 = vmul.f32 %v12806_v1, %v5726_v60  ;;  %v5728_v14 = vpop.f32.mrb[23].mxu1  ;;  %v6365_v19 = vsel %vm3512_vm6, %v6360_v39, %v6364_v22 }
 0x67e   :  { %v6089_v38 = vmax.f32 %v6025_v35, 0.0  ;;  %v5950_v6 = vmul.f32 %v12809_v15, %v5728_v14  ;;  %v12950_v17 = vmax.f32 %v6084_v50, %v6365_v19  ;;  %v7211_v14 = vld [vmem:[%s14100_s5 + $0x8] sm:$0xff] }
 0x67f   :  { %v6026_v18 = vadd.f32 %v12812_v36, %v5949_v21  ;;  %v6368_v40 = vrot.slane %v6088_v57, 2  ;;  %v12958_v55 = vld [vmem:[#allocation4 + $0x88] sm:$0xff]  ;;  %v8829_v21 = vpack.c.bf16 %v8418_v45, %v8417_v53 }
 0x680   :  { %6153 = vst.msk [vmem:[#allocation4 + $0xa8] sm:$0xff] %vm39_vm0, %v6089_v38  ;;  %v6027_v43 = vadd.f32 %v12815_v56, %v5950_v6  ;;  %v5732_v16 = vpop.f32.mrb[24].mxu1  ;;  %6684 = vrot.lane.b32.xlu0 %v12950_v17, %s9590_s4  ;;  %14251 = vst [vmem:[#allocation20_spill] sm:$0xff] %v12958_v55  ;;  %v14152_v12 = vrot.slane %v12958_v55, 2  ;;  %v8850_v6 = vpack.c.bf16 %v7211_v14, %v7210_v61 }
 0x681   :  { %v6090_v32 = vmax.f32 %v6026_v18, 0.0  ;;  %v5951_v49 = vmul.f32 %v12806_v1, %v5732_v16  ;;  %v5734_v8 = vpop.f32.mrb[25].mxu1  ;;  %v6369_v29 = vsel %vm3512_vm6, %v6364_v22, %v6368_v40  ;;  %8830 = vmatpush1.bf16.msra.mxu0 %v8829_v21 }
 0x682   :  { %v6091_v50 = vmax.f32 %v6027_v43, 0.0  ;;  %v5952_v41 = vmul.f32 %v12809_v15, %v5734_v8  ;;  %v12962_v26 = vmax.f32 %v6086_v3, %v6369_v29  ;;  %8851 = vmatpush1.bf16.msra.mxu1 %v8850_v6  ;;  %8831 = vmatprep.subr.bf16.mxu0 %v14159_v59 }
 0x683   :  { %v6028_v47 = vadd.f32 %v12812_v36, %v5951_v49  ;;  %v6215_v27 = vld [vmem:[#allocation4 + $0x98] sm:$0xff]  ;;  %v6372_v42 = vrot.slane %v6090_v32, 2  ;;  %8852 = vmatprep.subr.bf16.mxu1 %v14159_v59 }
 0x684   :  { %6155 = vst.msk [vmem:[#allocation4 + $0xb8] sm:$0xff] %vm39_vm0, %v6091_v50  ;;  %v6029_v23 = vadd.f32 %v12815_v56, %v5952_v41  ;;  %v5738_v28 = vpop.f32.mrb[26].mxu1  ;;  %v6366_v5 = vrot.slane %v6215_v27, 2 }
 0x685   :  { %v6092_v39 = vmax.f32 %v6028_v47, 0.0  ;;  %v5953_v4 = vmul.f32 %v12806_v1, %v5738_v28  ;;  %v5740_v63 = vpop.f32.mrb[27].mxu1  ;;  %v6373_v10 = vsel %vm3512_vm6, %v6368_v40, %v6372_v42 }
 0x686   :  { %v6093_v3 = vmax.f32 %v6029_v23, 0.0  ;;  %v5954_v9 = vmul.f32 %v12809_v15, %v5740_v63  ;;  %v6367_v13 = vsel %vm3512_vm6, %v14152_v12, %v6366_v5  ;;  %v12983_v31 = vmax.f32 %v6088_v57, %v6373_v10 }
 0x687   :  { %v6030_v52 = vadd.f32 %v12812_v36, %v5953_v4  ;;  %v12987_v22 = vmax.f32 %v12958_v55, %v6367_v13  ;;  %v6376_v35 = vrot.slane %v6092_v39, 2  ;;  %v12989_v60 = vld [vmem:[#allocation4 + $0xa8] sm:$0xff] }
 0x688   :  { %6157 = vst.msk [vmem:[#allocation4 + $0xc8] sm:$0xff] %vm39_vm0, %v6093_v3  ;;  %v6031_v19 = vadd.f32 %v12815_v56, %v5954_v9  ;;  %v5744_v38 = vpop.f32.mrb[28].mxu1  ;;  %v14155_v57 = vrot.slane %v12989_v60, 2 }
 0x689   :  { %v6094_v18 = vmax.f32 %v6030_v52, 0.0  ;;  %v5955_v40 = vmul.f32 %v12806_v1, %v5744_v38  ;;  %6686 = vrot.lane.b32.xlu1 %v12987_v22, %s9590_s4  ;;  %v5746_v43 = vpop.f32.mrb[29].mxu1  ;;  %v6377_v16 = vsel %vm3512_vm6, %v6372_v42, %v6376_v35 }
 0x68a   :  { %v6095_v49 = vmax.f32 %v6031_v19, 0.0  ;;  %v5956_v8 = vmul.f32 %v12809_v15, %v5746_v43  ;;  %v6371_v29 = vsel %vm3512_vm6, %v6366_v5, %v14155_v57  ;;  %v13006_v50 = vmax.f32 %v6090_v32, %v6377_v16 }
 0x68b   :  { %v6032_v41 = vadd.f32 %v12812_v36, %v5955_v40  ;;  %v6380_v47 = vrot.slane %v6094_v18, 2  ;;  %v13009_v23 = vmax.f32 %v6215_v27, %v6371_v29 }
 0x68c   :  { %14252 = vst [vmem:[#allocation22_spill] sm:$0xff] %v13006_v50  ;;  %6159 = vst.msk [vmem:[#allocation4 + $0xd8] sm:$0xff] %vm39_vm0, %v6095_v49  ;;  %v6033_v42 = vadd.f32 %v12815_v56, %v5956_v8  ;;  %v5750_v28 = vpop.f32.mrb[30].mxu1 }
 0x68d   :  { %v6096_v4 = vmax.f32 %v6032_v41, 0.0  ;;  %v5957_v5 = vmul.f32 %v12806_v1, %v5750_v28  ;;  %v5752_v63 = vpop.f32.mrb[31].mxu1  ;;  %v6381_v10 = vsel %vm3512_vm6, %v6376_v35, %v6380_v47 }
 0x68e   :  { %v6097_v32 = vmax.f32 %v6033_v42, 0.0  ;;  %v5958_v3 = vmul.f32 %v12809_v15, %v5752_v63  ;;  %v13017_v9 = vmax.f32 %v6092_v39, %v6381_v10 }
 0x68f   :  { %v13020_v27 = vadd.f32 %v12812_v36, %v5957_v5  ;;  %v6384_v13 = vrot.slane %v6096_v4, 2  ;;  %v13028_v21 = vld [vmem:[#allocation4 + $0xc8] sm:$0xff] }
 0x690   :  { %6161 = vst.msk [vmem:[#allocation4 + $0xe8] sm:$0xff] %vm39_vm0, %v6097_v32  ;;  %v6035_v53 = vadd.f32 %v12815_v56, %v5958_v3  ;;  %v5756_v45 = vpop.f32.mrb[32].mxu1  ;;  %6700 = vrot.lane.b32.xlu0 %v13017_v9, %s9590_s4  ;;  %14253 = vst [vmem:[#allocation24_spill] sm:$0xff] %v13028_v21  ;;  %v14150_v8 = vrot.slane %v13028_v21, 2  ;;  %v8419_v32 = vld [vmem:[%s14100_s5 + $0xc0] sm:$0xff]  ;;  %v8420_v3 = vld [vmem:[%s14100_s5 + $0xc8] sm:$0xff] }
 0x691   :  { %v6098_v61 = vmax.f32 %v13020_v27, 0.0  ;;  %v5959_v52 = vmul.f32 %v12806_v1, %v5756_v45  ;;  %v5758_v35 = vpop.f32.mrb[33].mxu1  ;;  %v6385_v39 = vsel %vm3512_vm6, %v6380_v47, %v6384_v13  ;;  %v7212_v27 = vld [vmem:[%s14100_s5 + $0x10] sm:$0xff] }
 0x692   :  { %v6099_v14 = vmax.f32 %v6035_v53, 0.0  ;;  %v5960_v19 = vmul.f32 %v12809_v15, %v5758_v35  ;;  %v13032_v38 = vmax.f32 %v6094_v18, %v6385_v39  ;;  %v7213_v35 = vld [vmem:[%s14100_s5 + $0x18] sm:$0xff] }
 0x693   :  { %v6036_v6 = vadd.f32 %v12812_v36, %v5959_v52  ;;  %v6223_v40 = vld [vmem:[#allocation4 + $0xd8] sm:$0xff]  ;;  %v6388_v43 = vrot.slane %v6098_v61, 2  ;;  %v8832_v52 = vpack.c.bf16 %v8420_v3, %v8419_v32 }
 0x694   :  { %6163 = vst.msk [vmem:[#allocation4 + $0xf8] sm:$0xff] %vm39_vm0, %v6099_v14  ;;  %v6037_v16 = vadd.f32 %v12815_v56, %v5960_v19  ;;  %v5762_v49 = vpop.f32.mrb[34].mxu1  ;;  %v6382_v29 = vrot.slane %v6223_v40, 2 }
 0x695   :  { %v6100_v41 = vmax.f32 %v6036_v6, 0.0  ;;  %v5961_v47 = vmul.f32 %v12806_v1, %v5762_v49  ;;  %v5764_v42 = vpop.f32.mrb[35].mxu1  ;;  %v6389_v28 = vsel %vm3512_vm6, %v6384_v13, %v6388_v43  ;;  %v8853_v6 = vpack.c.bf16 %v7213_v35, %v7212_v27  ;;  %8833 = vmatpush1.bf16.msra.mxu0 %v8832_v52 }
 0x696   :  { %v6101_v18 = vmax.f32 %v6037_v16, 0.0  ;;  %v5962_v5 = vmul.f32 %v12809_v15, %v5764_v42  ;;  %v6383_v63 = vsel %vm3512_vm6, %v14150_v8, %v6382_v29  ;;  %v13044_v10 = vmax.f32 %v6096_v4, %v6389_v28  ;;  %v8421_v42 = vld [vmem:[%s14100_s5 + $0xd0] sm:$0xff]  ;;  %v8422_v28 = vld [vmem:[%s14100_s5 + $0xd8] sm:$0xff]  ;;  %8834 = vmatprep.subr.bf16.mxu0 %v14159_v59 }
 0x697   :  { %v6038_v13 = vadd.f32 %v12812_v36, %v5961_v47  ;;  %v13057_v53 = vmax.f32 %v13028_v21, %v6383_v63  ;;  %v6392_v45 = vrot.slane %v6100_v41, 2  ;;  %v13059_v4 = vld [vmem:[#allocation4 + $0xe8] sm:$0xff]  ;;  %8854 = vmatpush1.bf16.msra.mxu1 %v8853_v6  ;;  %v8835_v3 = vpack.c.bf16 %v8422_v28, %v8421_v42 }
 0x698   :  { %6165 = vst.msk [vmem:[#allocation4 + $0x108] sm:$0xff] %vm39_vm0, %v6101_v18  ;;  %v6039_v39 = vadd.f32 %v12815_v56, %v5962_v5  ;;  %v5768_v14 = vpop.f32.mrb[36].mxu1  ;;  %v14154_v19 = vrot.slane %v13059_v4, 2  ;;  %8855 = vmatprep.subr.bf16.mxu1 %v14159_v59 }
 0x699   :  { %v6102_v16 = vmax.f32 %v6038_v13, 0.0  ;;  %v5963_v49 = vmul.f32 %v12806_v1, %v5768_v14  ;;  %6702 = vrot.lane.b32.xlu1 %v13057_v53, %s9590_s4  ;;  %v5770_v47 = vpop.f32.mrb[37].mxu1  ;;  %v6393_v18 = vsel %vm3512_vm6, %v6388_v43, %v6392_v45  ;;  %8836 = vmatpush1.bf16.msra.mxu0 %v8835_v3 }
 0x69a   :  { %v6103_v5 = vmax.f32 %v6039_v39, 0.0  ;;  %v5964_v63 = vmul.f32 %v12809_v15, %v5770_v47  ;;  %v6387_v32 = vsel %vm3512_vm6, %v6382_v29, %v14154_v19  ;;  %v13086_v35 = vmax.f32 %v6098_v61, %v6393_v18  ;;  %8837 = vmatprep.subr.bf16.mxu0 %v14159_v59 }
 0x69b   :  { %v6040_v27 = vadd.f32 %v12812_v36, %v5963_v49  ;;  %v6396_v13 = vrot.slane %v6102_v16, 2  ;;  %v13083_v52 = vmax.f32 %v6223_v40, %v6387_v32 }
 0x69c   :  { %14254 = vst [vmem:[#allocation9_spill] sm:$0xff] %v13086_v35  ;;  %6167 = vst.msk [vmem:[#allocation4 + $0x118] sm:$0xff] %vm39_vm0, %v6103_v5  ;;  %v6041_v43 = vadd.f32 %v12815_v56, %v5964_v63  ;;  %v5774_v39 = vpop.f32.mrb[38].mxu1 }
 0x69d   :  { %v6104_v14 = vmax.f32 %v6040_v27, 0.0  ;;  %v5965_v29 = vmul.f32 %v12806_v1, %v5774_v39  ;;  %v5776_v6 = vpop.f32.mrb[39].mxu1  ;;  %v6397_v47 = vsel %vm3512_vm6, %v6392_v45, %v6396_v13 }
 0x69e   :  { %v6105_v49 = vmax.f32 %v6041_v43, 0.0  ;;  %v5966_v40 = vmul.f32 %v12809_v15, %v5776_v6  ;;  %v13093_v42 = vmax.f32 %v6100_v41, %v6397_v47 }
 0x69f   :  { %v6042_v61 = vadd.f32 %v12812_v36, %v5965_v29  ;;  %v6400_v28 = vrot.slane %v6104_v14, 2  ;;  %v13102_v3 = vld [vmem:[#allocation4 + $0x108] sm:$0xff] }
 0x6a0   :  { %14255 = vst [vmem:[#allocation13_spill] sm:$0xff] %v13093_v42  ;;  %6169 = vst.msk [vmem:[#allocation4 + $0x128] sm:$0xff] %vm39_vm0, %v6105_v49  ;;  %v6043_v18 = vadd.f32 %v12815_v56, %v5966_v40  ;;  %v5780_v5 = vpop.f32.mrb[40].mxu1  ;;  %6716 = vrot.lane.b32.xlu0 %v13093_v42, %s9590_s4 }
 0x6a1   :  { %v6106_v45 = vmax.f32 %v6042_v61, 0.0  ;;  %v5967_v63 = vmul.f32 %v12806_v1, %v5780_v5  ;;  %v5782_v32 = vpop.f32.mrb[41].mxu1  ;;  %14256 = vst [vmem:[#allocation10_spill] sm:$0xff] %v13102_v3  ;;  %v6401_v41 = vsel %vm3512_vm6, %v6396_v13, %v6400_v28  ;;  %v14151_v61 = vrot.slane %v13102_v3, 2 }
 0x6a2   :  { %v6107_v27 = vmax.f32 %v6043_v18, 0.0  ;;  %v5968_v43 = vmul.f32 %v12809_v15, %v5782_v32  ;;  %v13106_v39 = vmax.f32 %v6102_v16, %v6401_v41 }
 0x6a3   :  { %v6044_v29 = vadd.f32 %v12812_v36, %v5967_v63  ;;  %v6231_v6 = vld [vmem:[#allocation4 + $0x118] sm:$0xff]  ;;  %v6404_v47 = vrot.slane %v6106_v45, 2 }
 0x6a4   :  { %6171 = vst.msk [vmem:[#allocation4 + $0x138] sm:$0xff] %vm39_vm0, %v6107_v27  ;;  %v6045_v49 = vadd.f32 %v12815_v56, %v5968_v43  ;;  %v5786_v40 = vpop.f32.mrb[42].mxu1  ;;  %v6398_v5 = vrot.slane %v6231_v6, 2  ;;  %v7214_v43 = vld [vmem:[%s14100_s5 + $0x20] sm:$0xff] }
 0x6a5   :  { %v6108_v8 = vmax.f32 %v6044_v29, 0.0  ;;  %v5969_v13 = vmul.f32 %v12806_v1, %v5786_v40  ;;  %v5788_v18 = vpop.f32.mrb[43].mxu1  ;;  %v6405_v32 = vsel %vm3512_vm6, %v6400_v28, %v6404_v47  ;;  %v7215_v29 = vld [vmem:[%s14100_s5 + $0x28] sm:$0xff]  ;;  %v8423_v28 = vld [vmem:[%s14100_s5 + $0xe0] sm:$0xff] }
 0x6a6   :  { %v6109_v16 = vmax.f32 %v6045_v49, 0.0  ;;  %v5970_v41 = vmul.f32 %v12809_v15, %v5788_v18  ;;  %v6399_v63 = vsel %vm3512_vm6, %v14151_v61, %v6398_v5  ;;  %v13118_v27 = vmax.f32 %v6104_v14, %v6405_v32  ;;  %v8424_v61 = vld [vmem:[%s14100_s5 + $0xe8] sm:$0xff] }
 0x6a7   :  { %v6046_v49 = vadd.f32 %v12812_v36, %v5969_v13  ;;  %v13131_v40 = vmax.f32 %v13102_v3, %v6399_v63  ;;  %v6408_v18 = vrot.slane %v6108_v8, 2  ;;  %v13133_v14 = vld [vmem:[#allocation4 + $0x128] sm:$0xff]  ;;  %v8856_v32 = vpack.c.bf16 %v7215_v29, %v7214_v43 }
 0x6a8   :  { %6173 = vst.msk [vmem:[#allocation4 + $0x148] sm:$0xff] %vm39_vm0, %v6109_v16  ;;  %v6047_v12 = vadd.f32 %v12815_v56, %v5970_v41  ;;  %v5792_v46 = vpop.f32.mrb[44].mxu1  ;;  %v14158_v19 = vrot.slane %v13133_v14, 2  ;;  %v8838_v57 = vpack.c.bf16 %v8424_v61, %v8423_v28 }
 0x6a9   :  { %14257 = vst [vmem:[#allocation15_spill] sm:$0xff] %v13131_v40  ;;  %v6110_v13 = vmax.f32 %v6046_v49, 0.0  ;;  %v5971_v63 = vmul.f32 %v12806_v1, %v5792_v46  ;;  %6718 = vrot.lane.b32.xlu1 %v13131_v40, %s9590_s4  ;;  %v5794_v0 = vpop.f32.mrb[45].mxu1  ;;  %8857 = vmatpush1.bf16.msra.mxu1 %v8856_v32  ;;  %v6409_v43 = vsel %vm3512_vm6, %v6404_v47, %v6408_v18 }
 0x6aa   :  { %v6111_v29 = vmax.f32 %v6047_v12, 0.0  ;;  %v5972_v37 = vmul.f32 %v12809_v15, %v5794_v0  ;;  %v6403_v16 = vsel %vm3512_vm6, %v6398_v5, %v14158_v19  ;;  %8839 = vmatpush1.bf16.msra.mxu0 %v8838_v57  ;;  %v13149_v41 = vmax.f32 %v6106_v45, %v6409_v43  ;;  %8858 = vmatprep.subr.bf16.mxu1 %v14159_v59 }
 0x6ab   :  { %v6048_v46 = vadd.f32 %v12812_v36, %v5971_v63  ;;  %v6412_v61 = vrot.slane %v6110_v13, 2  ;;  %v13153_v28 = vmax.f32 %v6231_v6, %v6403_v16  ;;  %8840 = vmatprep.subr.bf16.mxu0 %v14159_v59 }
 0x6ac   :  { %14258 = vst [vmem:[#allocation11_spill] sm:$0xff] %v13149_v41  ;;  %6175 = vst.msk [vmem:[#allocation4 + $0x158] sm:$0xff] %vm39_vm0, %v6111_v29  ;;  %v6049_v0 = vadd.f32 %v12815_v56, %v5972_v37  ;;  %v5798_v12 = vpop.f32.mrb[46].mxu1 }
 0x6ad   :  { %v6112_v47 = vmax.f32 %v6048_v46, 0.0  ;;  %v5973_v5 = vmul.f32 %v12806_v1, %v5798_v12  ;;  %v5800_v57 = vpop.f32.mrb[47].mxu1  ;;  %v6413_v45 = vsel %vm3512_vm6, %v6408_v18, %v6412_v61 }
 0x6ae   :  { %v6113_v49 = vmax.f32 %v6049_v0, 0.0  ;;  %v5974_v32 = vmul.f32 %v12809_v15, %v5800_v57  ;;  %v13161_v63 = vmax.f32 %v6108_v8, %v6413_v45 }
 0x6af   :  { %v6050_v6 = vadd.f32 %v12812_v36, %v5973_v5  ;;  %v6416_v43 = vrot.slane %v6112_v47, 2  ;;  %v13169_v0 = vld [vmem:[#allocation4 + $0x148] sm:$0xff] }
 0x6b0   :  { %14259 = vst [vmem:[#allocation17_spill] sm:$0xff] %v13161_v63  ;;  %6177 = vst.msk [vmem:[#allocation4 + $0x168] sm:$0xff] %vm39_vm0, %v6113_v49  ;;  %v6051_v29 = vadd.f32 %v12815_v56, %v5974_v32  ;;  %v5804_v37 = vpop.f32.mrb[48].mxu1  ;;  %6732 = vrot.lane.b32.xlu0 %v13161_v63, %s9590_s4  ;;  %v14161_v19 = vrot.slane %v13169_v0, 2 }
 0x6b1   :  { %v6114_v16 = vmax.f32 %v6050_v6, 0.0  ;;  %v5975_v46 = vmul.f32 %v12806_v1, %v5804_v37  ;;  %v5806_v18 = vpop.f32.mrb[49].mxu1  ;;  %14260 = vst [vmem:[#allocation12_spill] sm:$0xff] %v13169_v0  ;;  %v6417_v8 = vsel %vm3512_vm6, %v6412_v61, %v6416_v43 }
 0x6b2   :  { %v6115_v12 = vmax.f32 %v6051_v29, 0.0  ;;  %v5976_v5 = vmul.f32 %v12809_v15, %v5806_v18  ;;  %v13173_v57 = vmax.f32 %v6110_v13, %v6417_v8 }
 0x6b3   :  { %v6052_v45 = vadd.f32 %v12812_v36, %v5975_v46  ;;  %v13176_v49 = vld [vmem:[#allocation4 + $0x158] sm:$0xff]  ;;  %v6420_v32 = vrot.slane %v6114_v16, 2 }
 0x6b4   :  { %6179 = vst.msk [vmem:[#allocation4 + $0x178] sm:$0xff] %vm39_vm0, %v6115_v12  ;;  %v6053_v6 = vadd.f32 %v12815_v56, %v5976_v5  ;;  %v5810_v37 = vpop.f32.mrb[50].mxu1  ;;  %v14162_v59 = vrot.slane %v13176_v49, 2 }
 0x6b5   :  { %v6116_v61 = vmax.f32 %v6052_v45, 0.0  ;;  %v5977_v29 = vmul.f32 %v12806_v1, %v5810_v37  ;;  %v5812_v18 = vpop.f32.mrb[51].mxu1  ;;  %v6421_v13 = vsel %vm3512_vm6, %v6416_v43, %v6420_v32  ;;  %v7216_v45 = vld [vmem:[%s14100_s5 + $0x30] sm:$0xff]  ;;  %v7217_v37 = vld [vmem:[%s14100_s5 + $0x38] sm:$0xff] }
 0x6b6   :  { %v6117_v8 = vmax.f32 %v6053_v6, 0.0  ;;  %v5978_v46 = vmul.f32 %v12809_v15, %v5812_v18  ;;  %v6415_v12 = vsel %vm3512_vm6, %v14161_v19, %v14162_v59  ;;  %v13190_v5 = vmax.f32 %v6112_v47, %v6421_v13  ;;  %v8425_v43 = vld [vmem:[%s14100_s5 + $0xf0] sm:$0xff]  ;;  %v8426_v13 = vld [vmem:[%s14100_s5 + $0xf8] sm:$0xff] }
 0x6b7   :  { %v6054_v6 = vadd.f32 %v12812_v36, %v5977_v29  ;;  %v13203_v18 = vmax.f32 %v13169_v0, %v6415_v12  ;;  %v6424_v19 = vrot.slane %v6116_v61, 2  ;;  %v8859_v47 = vpack.c.bf16 %v7217_v37, %v7216_v45 }
 0x6b8   :  { %6181 = vst.msk [vmem:[#allocation4 + $0x188] sm:$0xff] %vm39_vm0, %v6117_v8  ;;  %v6055_v59 = vadd.f32 %v12815_v56, %v5978_v46  ;;  %v5816_v63 = vpop.f32.mrb[52].mxu1  ;;  %v8841_v41 = vpack.c.bf16 %v8426_v13, %v8425_v43  ;;  %v14263_v8 = vmov 0.0|0.0  }
 0x6b9   :  { %14261 = vst [vmem:[#allocation19_spill] sm:$0xff] %v13203_v18  ;;  %v6118_v3 = vmax.f32 %v6054_v6, 0.0  ;;  %v5979_v35 = vmul.f32 %v12806_v1, %v5816_v63  ;;  %6734 = vrot.lane.b32.xlu1 %v13203_v18, %s9590_s4  ;;  %v5818_v29 = vpop.f32.mrb[53].mxu1  ;;  %8860 = vmatpush1.bf16.msra.mxu1 %v8859_v47  ;;  %v6425_v12 = vsel %vm3512_vm6, %v6420_v32, %v6424_v19 }
 0x6ba   :  { %v6119_v45 = vmax.f32 %v6055_v59, 0.0  ;;  %v5980_v37 = vmul.f32 %v12809_v15, %v5818_v29  ;;  %v13215_v0 = vmax.f32 %v6114_v16, %v6425_v12  ;;  %8842 = vmatpush1.bf16.msra.mxu0 %v8841_v41  ;;  %8861 = vmatprep.subr.bf16.mxu1 %v14263_v8 }
 0x6bb   :  { %v6056_v46 = vadd.f32 %v12812_v36, %v5979_v35  ;;  %v6428_v43 = vrot.slane %v6118_v3, 2  ;;  %8843 = vmatprep.subr.bf16.mxu0 %v14263_v8 }
 0x6bc   :  { %14262 = vst [vmem:[#allocation14_spill] sm:$0xff] %v13215_v0  ;;  %6183 = vst.msk [vmem:[#allocation4 + $0x198] sm:$0xff] %vm39_vm0, %v6119_v45  ;;  %v6057_v63 = vadd.f32 %v12815_v56, %v5980_v37  ;;  %v5822_v6 = vpop.f32.mrb[54].mxu1 }
 0x6bd   :  { %v6120_v47 = vmax.f32 %v6056_v46, 0.0  ;;  %v5981_v59 = vmul.f32 %v12806_v1, %v5822_v6  ;;  %v5824_v32 = vpop.f32.mrb[55].mxu1  ;;  %v6429_v16 = vsel %vm3512_vm6, %v6424_v19, %v6428_v43 }
 0x6be   :  { %v6121_v13 = vmax.f32 %v6057_v63, 0.0  ;;  %v5982_v41 = vmul.f32 %v12809_v15, %v5824_v32  ;;  %v13225_v29 = vmax.f32 %v6116_v61, %v6429_v16 }
 0x6bf   :  { %v6058_v35 = vadd.f32 %v12812_v36, %v5981_v59  ;;  %v6432_v12 = vrot.slane %v6120_v47, 2  ;;  %v13233_v63 = vld [vmem:[#allocation4 + $0x188] sm:$0xff] }
 0x6c0   :  { %14264 = vst [vmem:[#allocation21_spill] sm:$0xff] %v13225_v29  ;;  %6185 = vst.msk [vmem:[#allocation4 + $0x1a8] sm:$0xff] %vm39_vm0, %v6121_v13  ;;  %v6059_v45 = vadd.f32 %v12815_v56, %v5982_v41  ;;  %v5828_v37 = vpop.f32.mrb[56].mxu1  ;;  %6748 = vrot.lane.b32.xlu0 %v13225_v29, %s9590_s4  ;;  %v14168_v29 = vrot.slane %v13233_v63, 2 }
 0x6c1   :  { %v6122_v46 = vmax.f32 %v6058_v35, 0.0  ;;  %v5983_v6 = vmul.f32 %v12806_v1, %v5828_v37  ;;  %v5830_v19 = vpop.f32.mrb[57].mxu1  ;;  %14265 = vst [vmem:[#allocation16_spill] sm:$0xff] %v13233_v63  ;;  %v6433_v61 = vsel %vm3512_vm6, %v6428_v43, %v6432_v12 }
 0x6c2   :  { %v6123_v32 = vmax.f32 %v6059_v45, 0.0  ;;  %v5984_v59 = vmul.f32 %v12809_v15, %v5830_v19  ;;  %v13237_v16 = vmax.f32 %v6118_v3, %v6433_v61 }
 0x6c3   :  { %v6060_v13 = vadd.f32 %v12812_v36, %v5983_v6  ;;  %v13240_v41 = vld [vmem:[#allocation4 + $0x198] sm:$0xff]  ;;  %v6436_v18 = vrot.slane %v6122_v46, 2 }
 0x6c4   :  { %6187 = vst.msk [vmem:[#allocation4 + $0x1b8] sm:$0xff] %vm39_vm0, %v6123_v32  ;;  %v6061_v35 = vadd.f32 %v12815_v56, %v5984_v59  ;;  %v5834_v37 = vpop.f32.mrb[58].mxu1  ;;  %v14169_v0 = vrot.slane %v13240_v41, 2 }
 0x6c5   :  { %v6124_v43 = vmax.f32 %v6060_v13, 0.0  ;;  %v5985_v45 = vmul.f32 %v12806_v1, %v5834_v37  ;;  %v5836_v19 = vpop.f32.mrb[59].mxu1  ;;  %v6437_v3 = vsel %vm3512_vm6, %v6432_v12, %v6436_v18  ;;  %v7218_v13 = vld [vmem:[%s14100_s5 + $0x40] sm:$0xff]  ;;  %v7219_v37 = vld [vmem:[%s14100_s5 + $0x48] sm:$0xff] }
 0x6c6   :  { %v6125_v61 = vmax.f32 %v6061_v35, 0.0  ;;  %v5986_v6 = vmul.f32 %v12809_v15, %v5836_v19  ;;  %v6431_v32 = vsel %vm3512_vm6, %v14168_v29, %v14169_v0  ;;  %v13254_v59 = vmax.f32 %v6120_v47, %v6437_v3  ;;  %v8427_v12 = vld [vmem:[%s14100_s5 + $0x100] sm:$0xff]  ;;  %v8428_v3 = vld [vmem:[%s14100_s5 + $0x108] sm:$0xff]  ;;  %v7220_v0 = vld [vmem:[%s14100_s5 + $0x50] sm:$0xff] }
 0x6c7   :  { %v6062_v35 = vadd.f32 %v12812_v36, %v5985_v45  ;;  %v13267_v19 = vmax.f32 %v13233_v63, %v6431_v32  ;;  %v6440_v29 = vrot.slane %v6124_v43, 2  ;;  %v8862_v47 = vpack.c.bf16 %v7219_v37, %v7218_v13  ;;  %v7221_v45 = vld [vmem:[%s14100_s5 + $0x58] sm:$0xff] }
 0x6c8   :  { %6189 = vst.msk [vmem:[#allocation4 + $0x1c8] sm:$0xff] %vm39_vm0, %v6125_v61  ;;  %v6063_v21 = vadd.f32 %v12815_v56, %v5986_v6  ;;  %v5840_v42 = vpop.f32.mrb[60].mxu1  ;;  %v8844_v50 = vpack.c.bf16 %v8428_v3, %v8427_v12  ;;  %v8865_v55 = vpack.c.bf16 %v7221_v45, %v7220_v0  ;;  %v6262_v45 = vld [vmem:[#allocation4 + $0x200] sm:$0x3] }
 0x6c9   :  { %v6126_v32 = vmax.f32 %v6062_v35, 0.0  ;;  %v5987_v13 = vmul.f32 %v12806_v1, %v5840_v42  ;;  %6750 = vrot.lane.b32.xlu1 %v13267_v19, %s9590_s4  ;;  %v5842_v37 = vpop.f32.mrb[61].mxu1  ;;  %v6441_v63 = vsel %vm3512_vm6, %v6436_v18, %v6440_v29  ;;  %8863 = vmatpush1.bf16.msra.mxu1 %v8862_v47 }
 0x6ca   :  { %v6127_v61 = vmax.f32 %v6063_v21, 0.0  ;;  %v5988_v6 = vmul.f32 %v12809_v15, %v5842_v37  ;;  %v13285_v40 = vmax.f32 %v6122_v46, %v6441_v63  ;;  %8845 = vmatpush1.bf16.msra.mxu0 %v8844_v50  ;;  %8864 = vmatprep.subr.bf16.mxu1 %v14263_v8 }
 0x6cb   :  { %v6064_v12 = vadd.f32 %v12812_v36, %v5987_v13  ;;  %v6444_v35 = vrot.slane %v6126_v32, 2  ;;  %8846 = vmatprep.subr.bf16.mxu0 %v14263_v8 }
 0x6cc   :  { %6191 = vst.msk [vmem:[#allocation4 + $0x1d8] sm:$0xff] %vm39_vm0, %v6127_v61  ;;  %v6065_v42 = vadd.f32 %v12815_v56, %v5988_v6  ;;  %v5846_v18 = vpop.f32.mrb[62].mxu1 }
 0x6cd   :  { %v6128_v47 = vmax.f32 %v6064_v12, 0.0  ;;  %v5989_v21 = vmul.f32 %v12806_v1, %v5846_v18  ;;  %v5848_v0 = vpop.f32.mrb[63].mxu1  ;;  %v6445_v46 = vsel %vm3512_vm6, %v6440_v29, %v6444_v35  ;;  %8866 = vmatpush1.bf16.msra.mxu1 %v8865_v55  ;;  %v6456_v29 = vrot.slane %v6262_v45, 2 }
 0x6ce   :  { %v6129_v50 = vmax.f32 %v6065_v42, 0.0  ;;  %v5990_v63 = vmul.f32 %v12809_v15, %v5848_v0  ;;  %v13295_v3 = vmax.f32 %v6124_v43, %v6445_v46  ;;  %8867 = vmatprep.subr.bf16.mxu1 %v14263_v8 }
 0x6cf   :  { %v6066_v13 = vadd.f32 %v12812_v36, %v5989_v21  ;;  %v6448_v37 = vrot.slane %v6128_v47, 2  ;;  %v13303_v55 = vld [vmem:[#allocation4 + $0x1c8] sm:$0xff] }
 0x6d0   :  { %6193 = vst.msk [vmem:[#allocation4 + $0x1e8] sm:$0xff] %vm39_vm0, %v6129_v50  ;;  %v6067_v61 = vadd.f32 %v12815_v56, %v5990_v63  ;;  %6764 = vrot.lane.b32.xlu0 %v13295_v3, %s9590_s4  ;;  %v14175_v42 = vrot.slane %v13303_v55, 2  ;;  %v8429_v50 = vld [vmem:[%s14100_s5 + $0x110] sm:$0xff]  ;;  %v7222_v63 = vld [vmem:[%s14100_s5 + $0x60] sm:$0xff] }
 0x6d1   :  { %v6130_v1 = vmax.f32 %v6066_v13, 0.0  ;;  %v6449_v15 = vsel %vm3512_vm6, %v6444_v35, %v6448_v37 }
 0x6d2   :  { %v6131_v43 = vmax.f32 %v6067_v61, 0.0  ;;  %v13306_v6 = vmax.f32 %v6126_v32, %v6449_v15  ;;  %v7223_v61 = vld [vmem:[%s14100_s5 + $0x68] sm:$0xff] }
 0x6d3   :  { %v13308_v12 = vld [vmem:[#allocation4 + $0x1d8] sm:$0xff]  ;;  %v6452_v36 = vrot.slane %v6130_v1, 2 }
 0x6d4   :  { %6195 = vst.msk [vmem:[#allocation4 + $0x1f8] sm:$0xff] %vm39_vm0, %v6131_v43  ;;  %v6446_v56 = vrot.slane %v13308_v12, 2  ;;  %6656 = vrot.lane.b32.xlu0 %v12845_v20, %s9590_s4 }
 0x6d5   :  { %v6453_v18 = vsel %vm3512_vm6, %v6448_v37, %v6452_v36  ;;  %v6457_v35 = vsel %vm3512_vm6, %v6452_v36, %v6456_v29  ;;  %v8868_v29 = vpack.c.bf16 %v7223_v61, %v7222_v63  ;;  %v7224_v36 = vld [vmem:[%s14100_s5 + $0x70] sm:$0xff]  ;;  %v13381_v63 = vld [vmem:[#allocation4 + $0x168] sm:$0xff] }
 0x6d6   :  { %v6447_v32 = vsel %vm3512_vm6, %v14175_v42, %v6446_v56  ;;  %v13322_v21 = vmax.f32 %v6128_v47, %v6453_v18  ;;  %v13324_v0 = vmax.f32 %v6130_v1, %v6457_v35  ;;  %v8430_v47 = vld [vmem:[%s14100_s5 + $0x118] sm:$0xff]  ;;  %v6653_v45 = vpop.permute.xlu0 %6652  ;;  %v7226_v18 = vld [vmem:[%s14100_s5 + $0x80] sm:$0xff]  ;;  %v7227_v35 = vld [vmem:[%s14100_s5 + $0x88] sm:$0xff] }
 0x6d7   :  { %v13327_v46 = vmax.f32 %v13303_v55, %v6447_v32  ;;  %v8847_v37 = vpack.c.bf16 %v8430_v47, %v8429_v50  ;;  %8869 = vmatpush1.bf16.msra.mxu1 %v8868_v29  ;;  %v8874_v32 = vpack.c.bf16 %v7227_v35, %v7226_v18  ;;  %v14266_v50 = vlaneseq  ;;  %v13391_v61 = vld [vmem:[#allocation4 + $0x30] sm:$0xff] }
 0x6d8   :  { %6672 = vrot.lane.b32.xlu0 %v12902_v11, %s9590_s4  ;;  %8870 = vmatprep.subr.bf16.mxu1 %v14263_v8  ;;  %v8485_v47 = vld [vmem:[%s14100_s5 + $0x2b0] sm:$0xff] }
 0x6d9   :  { %6766 = vrot.lane.b32.xlu1 %v13327_v46, %s9590_s4  ;;  %8848 = vmatpush1.bf16.msra.mxu0 %v8847_v37  ;;  %vm13375_vm10 = vcmp.lt.s32.totalorder %v14266_v50, 144  ;;  %v6418_v37 = vrot.slane %v13381_v63, 2  ;;  %v13411_v50 = vld [vmem:[#allocation4 + $0x1e8] sm:$0xff] }
 0x6da   :  { %8876 = vmatprep.subr.bf16.mxu0 %v14263_v8 }
 0x6db   :  { %v6655_v13 = vpop.permute.xlu1 %6654 }
 0x6dc   :  { %v6781_v1 = vsel %vm6780_vm8, %v6653_v45, %v6655_v13  ;;  %v6878_v15 = vmax.f32 %v12856_v25, %v6655_v13  ;;  %6688 = vrot.lane.b32.xlu0 %v12962_v26, %s9590_s4  ;;  %v7225_v25 = vld [vmem:[%s14100_s5 + $0x78] sm:$0xff] }
 0x6dd   :  { %v6877_v43 = vmax.f32 %v12843_v30, %v6781_v1  ;;  %6658 = vrot.lane.b32.xlu1 %v12881_v54, %s9590_s4  ;;  %v8871_v30 = vpack.c.bf16 %v7225_v25, %v7224_v36  ;;  %v13395_v1 = vld [vmem:[#allocation4 + $0x1a8] sm:$0xff] }
 0x6de   :  { %6943 = vst.msk [vmem:[#allocation5 + $0x8] sm:$0xff] %vm6942_vm9, %v6878_v15  ;;  %v14178_v35 = vrot.slane %v13395_v1, 2 }
 0x6df   :  { %6941 = vst [vmem:[#allocation5] sm:$0xff] %v6877_v43  ;;  %8872 = vmatpush1.bf16.msra.mxu1 %v8871_v30  ;;  %v14183_v43 = vrot.slane %v13391_v61, 2  ;;  %v14269_v30 = vrot.slane %v13176_v49, 2 }
 0x6e0   :  { %6704 = vrot.lane.b32.xlu0 %v13032_v38, %s9590_s4  ;;  %8873 = vmatprep.subr.bf16.mxu1 %v14263_v8 }
 0x6e1   :  { %6674 = vrot.lane.b32.xlu1 %v12943_v51, %s9590_s4  ;;  %v6419_v18 = vsel %vm3512_vm6, %v14269_v30, %v6418_v37 }
 0x6e2   :  { %v6669_v15 = vpop.permute.xlu0 %6668 }
 0x6e3   :  { %8875 = vmatpush1.bf16.msra.mxu1 %v8874_v32 }
 0x6e4   :  { %6720 = vrot.lane.b32.xlu0 %v13106_v39, %s9590_s4  ;;  %8903 = vmatprep.subr.bf16.mxu1 %v14263_v8 }
 0x6e5   :  { %6690 = vrot.lane.b32.xlu1 %v13009_v23, %s9590_s4 }
 0x6e6   :  { %v7006_v45 = vld [vmem:[#allocation5] ss:$8 sm:$0x3]  ;;  %v7049_v13 = vld [vmem:[#allocation5 + $0x4] ss:$8 sm:$0x3] }
 0x6e7   :  { %7051 = vst.msk [vmem:[#allocation6 + $0x10] ss:$8 sm:$0x3] %vm13375_vm10, %v7049_v13  ;;  %7011 = vst.msk [vmem:[#allocation6] ss:$8 sm:$0x3] %vm13375_vm10, %v7006_v45  ;;  %v6341_v45 = vsel %vm3512_vm6, %v12834_v7, %v14183_v43 }
 0x6e8   :  { %6736 = vrot.lane.b32.xlu0 %v13173_v57, %s9590_s4 }
 0x6e9   :  { %6706 = vrot.lane.b32.xlu1 %v13083_v52, %s9590_s4 }
 0x6eb   :  { %v6671_v29 = vpop.permute.xlu1 %6670 }
 0x6ec   :  { %v6785_v36 = vsel %vm6780_vm8, %v6669_v15, %v6671_v29  ;;  %v6886_v25 = vmax.f32 %v12924_v48, %v6671_v29  ;;  %6752 = vrot.lane.b32.xlu0 %v13237_v16, %s9590_s4  ;;  %v13415_v48 = vmax.f32 %v13176_v49, %v6419_v18  ;;  %v14177_v15 = vrot.slane %v13411_v50, 2  ;;  %v13431_v49 = vld [vmem:[#allocation4 + $0x38] sm:$0xff]  ;;  %v9584_v29 = vld [vmem:[#allocation4 + $0x20] sm:$0xff] }
 0x6ed   :  { %v6885_v32 = vmax.f32 %v12890_v2, %v6785_v36  ;;  %6722 = vrot.lane.b32.xlu1 %v13153_v28, %s9590_s4  ;;  %v14270_v2 = vrot.slane %v13240_v41, 2  ;;  %v13433_v36 = vmax.f32 %v9584_v29, %v6341_v45  ;;  %v14176_v30 = vrot.slane %v13431_v49, 2  ;;  %v13448_v18 = vld [vmem:[#allocation4 + $0x78] sm:$0xff] }
 0x6ee   :  { %6951 = vst.msk [vmem:[#allocation5 + $0x48] sm:$0xff] %vm6942_vm9, %v6886_v25  ;;  %v6451_v25 = vsel %vm3512_vm6, %v6446_v56, %v14177_v15  ;;  %v14271_v56 = vrot.slane %v12858_v24, 2 }
 0x6ef   :  { %6950 = vst [vmem:[#allocation5 + $0x40] sm:$0xff] %v6885_v32  ;;  %v6435_v13 = vsel %vm3512_vm6, %v14270_v2, %v14178_v35 }
 0x6f0   :  { %6768 = vrot.lane.b32.xlu0 %v13306_v6, %s9590_s4  ;;  %v13436_v7 = vmax.f32 %v13240_v41, %v6435_v13  ;;  %v13451_v41 = vmax.f32 %v13308_v12, %v6451_v25  ;;  %v6343_v2 = vsel %vm3512_vm6, %v14271_v56, %v14176_v30  ;;  %v14181_v13 = vrot.slane %v13448_v18, 2  ;;  %v13467_v12 = vld [vmem:[#allocation4 + $0xb8] sm:$0xff] }
 0x6f1   :  { %6738 = vrot.lane.b32.xlu1 %v13415_v48, %s9590_s4  ;;  %v14272_v56 = vrot.slane %v12926_v58, 2  ;;  %v14180_v15 = vrot.slane %v13467_v12, 2  ;;  %v14273_v58 = vrot.slane %v12989_v60, 2 }
 0x6f2   :  { %v6685_v29 = vpop.permute.xlu0 %6684 }
 0x6f3   :  { %v6359_v30 = vsel %vm3512_vm6, %v14272_v56, %v14181_v13  ;;  %v13514_v56 = vld [vmem:[#allocation4 + $0x178] sm:$0xff] }
 0x6f4   :  { %6660 = vrot.lane.b32.xlu0 %v13433_v36, %s9590_s4 }
 0x6f5   :  { %6754 = vrot.lane.b32.xlu1 %v13436_v7, %s9590_s4 }
 0x6f6   :  { %v7014_v32 = vld [vmem:[#allocation5 + $0x40] ss:$8 sm:$0x3]  ;;  %v7054_v45 = vld [vmem:[#allocation5 + $0x44] ss:$8 sm:$0x3] }
 0x6f7   :  { %7056 = vst.msk [vmem:[#allocation6 + $0x11] ss:$8 sm:$0x3] %vm13375_vm10, %v7054_v45  ;;  %7016 = vst.msk [vmem:[#allocation6 + $0x1] ss:$8 sm:$0x3] %vm13375_vm10, %v7014_v32 }
 0x6f8   :  { %6676 = vrot.lane.b32.xlu0 %v12920_v44, %s9590_s4  ;;  %v9585_v45 = vld [vmem:[#allocation4 + $0x28] sm:$0xff] }
 0x6f9   :  { %6770 = vrot.lane.b32.xlu1 %v13451_v41, %s9590_s4  ;;  %v13469_v32 = vmax.f32 %v9585_v45, %v6343_v2  ;;  %v13484_v2 = vld [vmem:[#allocation4 + $0xf8] sm:$0xff] }
 0x6fb   :  { %v6687_v25 = vpop.permute.xlu1 %6686 }
 0x6fc   :  { %v6789_v42 = vsel %vm6780_vm8, %v6685_v29, %v6687_v25  ;;  %v6894_v24 = vmax.f32 %v12987_v22, %v6687_v25  ;;  %6692 = vrot.lane.b32.xlu0 %v12983_v31, %s9590_s4  ;;  %v9586_v22 = vld [vmem:[#allocation4 + $0x68] sm:$0xff]  ;;  %v6375_v25 = vsel %vm3512_vm6, %v14273_v58, %v14180_v15 }
 0x6fd   :  { %v6893_v35 = vmax.f32 %v12950_v17, %v6789_v42  ;;  %6662 = vrot.lane.b32.xlu1 %v13469_v32, %s9590_s4  ;;  %v13487_v29 = vmax.f32 %v9586_v22, %v6359_v30  ;;  %v14179_v17 = vrot.slane %v13484_v2, 2  ;;  %v13499_v42 = vld [vmem:[#allocation4 + $0x138] sm:$0xff]  ;;  %v14274_v30 = vrot.slane %v13059_v4, 2 }
 0x6fe   :  { %6959 = vst.msk [vmem:[#allocation5 + $0x88] sm:$0xff] %vm6942_vm9, %v6894_v24  ;;  %v14182_v24 = vrot.slane %v13499_v42, 2 }
 0x6ff   :  { %6958 = vst [vmem:[#allocation5 + $0x80] sm:$0xff] %v6893_v35  ;;  %v13502_v35 = vmax.f32 %v12989_v60, %v6375_v25  ;;  %v6391_v45 = vsel %vm3512_vm6, %v14274_v30, %v14179_v17  ;;  %v14275_v25 = vrot.slane %v13133_v14, 2  ;;  %v6422_v17 = vrot.slane %v13514_v56, 2 }
 0x700   :  { %6708 = vrot.lane.b32.xlu0 %v13044_v10, %s9590_s4  ;;  %v13517_v60 = vmax.f32 %v13059_v4, %v6391_v45  ;;  %v13533_v4 = vld [vmem:[#allocation4 + $0x1b8] sm:$0xff] }
 0x701   :  { %6678 = vrot.lane.b32.xlu1 %v13487_v29, %s9590_s4  ;;  %v6407_v30 = vsel %vm3512_vm6, %v14275_v25, %v14182_v24  ;;  %v6423_v25 = vsel %vm3512_vm6, %v6418_v37, %v6422_v17  ;;  %v14184_v24 = vrot.slane %v13533_v4, 2  ;;  %v14276_v37 = vrot.slane %v13391_v61, 2 }
 0x702   :  { %v6701_v45 = vpop.permute.xlu0 %6700 }
 0x704   :  { %6724 = vrot.lane.b32.xlu0 %v13118_v27, %s9590_s4 }
 0x705   :  { %6694 = vrot.lane.b32.xlu1 %v13502_v35, %s9590_s4 }
 0x706   :  { %v7019_v22 = vld [vmem:[#allocation5 + $0x80] ss:$8 sm:$0x3]  ;;  %v7059_v58 = vld [vmem:[#allocation5 + $0x84] ss:$8 sm:$0x3] }
 0x707   :  { %7061 = vst.msk [vmem:[#allocation6 + $0x12] ss:$8 sm:$0x3] %vm13375_vm10, %v7059_v58  ;;  %7021 = vst.msk [vmem:[#allocation6 + $0x2] ss:$8 sm:$0x3] %vm13375_vm10, %v7019_v22  ;;  %v13536_v22 = vmax.f32 %v13133_v14, %v6407_v30  ;;  %v6345_v30 = vsel %vm3512_vm6, %v14276_v37, %v12879_v34 }
 0x708   :  { %6740 = vrot.lane.b32.xlu0 %v13190_v5, %s9590_s4  ;;  %v13551_v14 = vld [vmem:[#allocation4 + $0x1f8] sm:$0xff]  ;;  %v14278_v34 = vrot.slane %v13411_v50, 2 }
 0x709   :  { %6710 = vrot.lane.b32.xlu1 %v13517_v60, %s9590_s4 }
 0x70b   :  { %v6703_v58 = vpop.permute.xlu1 %6702 }
 0x70c   :  { %v6793_v15 = vsel %vm6780_vm8, %v6701_v45, %v6703_v58  ;;  %v6902_v13 = vmax.f32 %v13057_v53, %v6703_v58  ;;  %6756 = vrot.lane.b32.xlu0 %v13254_v59, %s9590_s4  ;;  %v13555_v53 = vmax.f32 %v13381_v63, %v6423_v25  ;;  %v6530_v63 = vmax.f32 %v13391_v61, %v6345_v30 }
 0x70d   :  { %v6901_v43 = vmax.f32 %v13017_v9, %v6793_v15  ;;  %6726 = vrot.lane.b32.xlu1 %v13536_v22, %s9590_s4  ;;  %v14277_v9 = vrot.slane %v13395_v1, 2  ;;  %v14279_v61 = vrot.slane %v12898_v33, 2 }
 0x70e   :  { %6967 = vst.msk [vmem:[#allocation5 + $0xc8] sm:$0xff] %vm6942_vm9, %v6902_v13  ;;  %v6454_v13 = vrot.slane %v13551_v14, 2 }
 0x70f   :  { %6966 = vst [vmem:[#allocation5 + $0xc0] sm:$0xff] %v6901_v43  ;;  %v6439_v15 = vsel %vm3512_vm6, %v14277_v9, %v14184_v24 }
 0x710   :  { %6772 = vrot.lane.b32.xlu0 %v13322_v21, %s9590_s4  ;;  %v13573_v43 = vmax.f32 %v13395_v1, %v6439_v15  ;;  %v6455_v45 = vsel %vm3512_vm6, %v14278_v34, %v6454_v13  ;;  %v14280_v1 = vrot.slane %v13431_v49, 2  ;;  %v14281_v34 = vld [vmem:[#allocation15_spill] sm:$0xff] }
 0x711   :  { %6742 = vrot.lane.b32.xlu1 %v13555_v53, %s9590_s4  ;;  %v13582_v37 = vmax.f32 %v13411_v50, %v6455_v45 }
 0x712   :  { %v6347_v30 = vsel %vm3512_vm6, %v14280_v1, %v14279_v61  ;;  %v6717_v50 = vpop.permute.xlu0 %6716  ;;  %v14285_v1 = vld [vmem:[#allocation22_spill] sm:$0xff] }
 0x713   :  { %v6531_v15 = vmax.f32 %v13431_v49, %v6347_v30  ;;  %v14287_v30 = vld [vmem:[#allocation24_spill] sm:$0xff] }
 0x714   :  { %6664 = vrot.lane.b32.xlu0 %v6530_v63, %s9590_s4 }
 0x715   :  { %6758 = vrot.lane.b32.xlu1 %v13573_v43, %s9590_s4 }
 0x716   :  { %v7024_v58 = vld [vmem:[#allocation5 + $0xc0] ss:$8 sm:$0x3]  ;;  %v7064_v25 = vld [vmem:[#allocation5 + $0xc4] ss:$8 sm:$0x3] }
 0x717   :  { %7066 = vst.msk [vmem:[#allocation6 + $0x13] ss:$8 sm:$0x3] %vm13375_vm10, %v7064_v25  ;;  %7026 = vst.msk [vmem:[#allocation6 + $0x3] ss:$8 sm:$0x3] %vm13375_vm10, %v7024_v58 }
 0x718   :  { %6680 = vrot.lane.b32.xlu0 %v12940_v62, %s9590_s4  ;;  %v14282_v58 = vld [vmem:[#allocation20_spill] sm:$0xff]  ;;  %v14284_v25 = vrot.slane %v13448_v18, 2  ;;  %v14286_v62 = vld [vmem:[#allocation13_spill] sm:$0xff] }
 0x719   :  { %6774 = vrot.lane.b32.xlu1 %v13582_v37, %s9590_s4  ;;  %v14283_v33 = vrot.slane %v14282_v58, 2  ;;  %v14290_v58 = vld [vmem:[#allocation9_spill] sm:$0xff] }
 0x71b   :  { %v6719_v9 = vpop.permute.xlu1 %6718  ;;  %v6363_v61 = vsel %vm3512_vm6, %v14284_v25, %v14283_v33  ;;  %v14291_v33 = vld [vmem:[#allocation10_spill] sm:$0xff] }
 0x71c   :  { %v6797_v63 = vsel %vm6780_vm8, %v6717_v50, %v6719_v9  ;;  %v6910_v45 = vmax.f32 %v14281_v34, %v6719_v9  ;;  %6696 = vrot.lane.b32.xlu0 %v14285_v1, %s9590_s4  ;;  %v6539_v49 = vmax.f32 %v13448_v18, %v6363_v61  ;;  %v14288_v50 = vrot.slane %v14287_v30, 2  ;;  %v14294_v18 = vld [vmem:[#allocation11_spill] sm:$0xff] }
 0x71d   :  { %v6909_v24 = vmax.f32 %v14286_v62, %v6797_v63  ;;  %6666 = vrot.lane.b32.xlu1 %v6531_v15, %s9590_s4  ;;  %v14289_v9 = vrot.slane %v13467_v12, 2  ;;  %v14292_v15 = vrot.slane %v14291_v33, 2 }
 0x71e   :  { %6975 = vst.msk [vmem:[#allocation5 + $0x108] sm:$0xff] %vm6942_vm9, %v6910_v45  ;;  %v14293_v45 = vrot.slane %v13484_v2, 2 }
 0x71f   :  { %6974 = vst [vmem:[#allocation5 + $0x100] sm:$0xff] %v6909_v24  ;;  %v6379_v34 = vsel %vm3512_vm6, %v14289_v9, %v14288_v50  ;;  %v14298_v50 = vld [vmem:[#allocation14_spill] sm:$0xff] }
 0x720   :  { %6712 = vrot.lane.b32.xlu0 %v14290_v58, %s9590_s4  ;;  %v6547_v63 = vmax.f32 %v13467_v12, %v6379_v34  ;;  %v6395_v24 = vsel %vm3512_vm6, %v14293_v45, %v14292_v15  ;;  %v14295_v12 = vld [vmem:[#allocation12_spill] sm:$0xff] }
 0x721   :  { %6682 = vrot.lane.b32.xlu1 %v6539_v49, %s9590_s4  ;;  %v6555_v1 = vmax.f32 %v13484_v2, %v6395_v24  ;;  %v14296_v62 = vrot.slane %v14295_v12, 2  ;;  %v14297_v49 = vrot.slane %v13499_v42, 2  ;;  %v14300_v15 = vld [vmem:[#allocation16_spill] sm:$0xff]  ;;  %v14304_v12 = vrot.slane %v13533_v4, 2 }
 0x722   :  { %v6733_v9 = vpop.permute.xlu0 %6732  ;;  %v14301_v45 = vrot.slane %v14300_v15, 2 }
 0x723   :  { %v6411_v30 = vsel %vm3512_vm6, %v14297_v49, %v14296_v62 }
 0x724   :  { %6728 = vrot.lane.b32.xlu0 %v14294_v18, %s9590_s4  ;;  %v6563_v2 = vmax.f32 %v13499_v42, %v6411_v30  ;;  %v6427_v24 = vsel %vm3512_vm6, %v6422_v17, %v14301_v45  ;;  %v14302_v18 = vld [vmem:[#allocation17_spill] sm:$0xff] }
 0x725   :  { %6698 = vrot.lane.b32.xlu1 %v6547_v63, %s9590_s4  ;;  %v14299_v63 = vld [vmem:[#allocation19_spill] sm:$0xff]  ;;  %v6571_v42 = vmax.f32 %v13514_v56, %v6427_v24 }
 0x726   :  { %v7029_v25 = vld [vmem:[#allocation5 + $0x100] ss:$8 sm:$0x3]  ;;  %v7069_v61 = vld [vmem:[#allocation5 + $0x104] ss:$8 sm:$0x3] }
 0x727   :  { %7071 = vst.msk [vmem:[#allocation6 + $0x14] ss:$8 sm:$0x3] %vm13375_vm10, %v7069_v61  ;;  %7031 = vst.msk [vmem:[#allocation6 + $0x4] ss:$8 sm:$0x3] %vm13375_vm10, %v7029_v25 }
 0x728   :  { %6744 = vrot.lane.b32.xlu0 %v14298_v50, %s9590_s4  ;;  %v6263_v61 = vld [vmem:[#allocation4 + $0x208] sm:$0x3] }
 0x729   :  { %6714 = vrot.lane.b32.xlu1 %v6555_v1, %s9590_s4  ;;  %v14303_v1 = vrot.slane %v13303_v55, 2 }
 0x72b   :  { %v6735_v34 = vpop.permute.xlu1 %6734  ;;  %v6443_v62 = vsel %vm3512_vm6, %v14304_v12, %v14303_v1 }
 0x72c   :  { %v6801_v58 = vsel %vm6780_vm8, %v6733_v9, %v6735_v34  ;;  %v6918_v33 = vmax.f32 %v14299_v63, %v6735_v34  ;;  %6760 = vrot.lane.b32.xlu0 %v13285_v40, %s9590_s4  ;;  %v6458_v40 = vrot.slane %v6263_v61, 2  ;;  %v6579_v17 = vmax.f32 %v13533_v4, %v6443_v62  ;;  %v14305_v9 = vld [vmem:[#allocation21_spill] sm:$0xff] }
 0x72d   :  { %v6917_v25 = vmax.f32 %v14302_v18, %v6801_v58  ;;  %6730 = vrot.lane.b32.xlu1 %v6563_v2, %s9590_s4 }
 0x72e   :  { %6983 = vst.msk [vmem:[#allocation5 + $0x148] sm:$0xff] %vm6942_vm9, %v6918_v33  ;;  %v6459_v49 = vsel %vm3512_vm6, %v6454_v13, %v6458_v40 }
 0x72f   :  { %6982 = vst [vmem:[#allocation5 + $0x140] sm:$0xff] %v6917_v25  ;;  %v6587_v55 = vmax.f32 %v13551_v14, %v6459_v49 }
 0x730   :  { %6776 = vrot.lane.b32.xlu0 %v13324_v0, %s9590_s4 }
 0x731   :  { %6746 = vrot.lane.b32.xlu1 %v6571_v42, %s9590_s4 }
 0x732   :  { %v6749_v0 = vpop.permute.xlu0 %6748 }
 0x735   :  { %6762 = vrot.lane.b32.xlu1 %v6579_v17, %s9590_s4 }
 0x736   :  { %v7034_v30 = vld [vmem:[#allocation5 + $0x140] ss:$8 sm:$0x3]  ;;  %v7074_v56 = vld [vmem:[#allocation5 + $0x144] ss:$8 sm:$0x3] }
 0x737   :  { %7076 = vst.msk [vmem:[#allocation6 + $0x15] ss:$8 sm:$0x3] %vm13375_vm10, %v7074_v56  ;;  %7036 = vst.msk [vmem:[#allocation6 + $0x5] ss:$8 sm:$0x3] %vm13375_vm10, %v7034_v30 }
 0x739   :  { %6778 = vrot.lane.b32.xlu1 %v6587_v55, %s9590_s4 }
 0x73b   :  { %v6751_v50 = vpop.permute.xlu1 %6750 }
 0x73c   :  { %v6805_v4 = vsel %vm6780_vm8, %v6749_v0, %v6751_v50  ;;  %v6926_v13 = vmax.f32 %v13267_v19, %v6751_v50 }
 0x73d   :  { %v6925_v34 = vmax.f32 %v14305_v9, %v6805_v4 }
 0x73e   :  { %6991 = vst.msk [vmem:[#allocation5 + $0x188] sm:$0xff] %vm6942_vm9, %v6926_v13  ;;  %v8453_v13 = vld [vmem:[%s14100_s5 + $0x1b8] sm:$0xff] }
 0x73f   :  { %6990 = vst [vmem:[#allocation5 + $0x180] sm:$0xff] %v6925_v34 }
 0x742   :  { %v6765_v14 = vpop.permute.xlu0 %6764 }
 0x746   :  { %v7039_v2 = vld [vmem:[#allocation5 + $0x180] ss:$8 sm:$0x3]  ;;  %v7079_v58 = vld [vmem:[#allocation5 + $0x184] ss:$8 sm:$0x3]  ;;  %v6657_v63 = vpop.permute.xlu0 %6656 }
 0x747   :  { %7081 = vst.msk [vmem:[#allocation6 + $0x16] ss:$8 sm:$0x3] %vm13375_vm10, %v7079_v58  ;;  %7041 = vst.msk [vmem:[#allocation6 + $0x6] ss:$8 sm:$0x3] %vm13375_vm10, %v7039_v2 }
 0x748   :  { %v8435_v2 = vld [vmem:[%s14100_s5 + $0x130] sm:$0xff]  ;;  %v8436_v58 = vld [vmem:[%s14100_s5 + $0x138] sm:$0xff] }
 0x74a   :  { %v6673_v33 = vpop.permute.xlu0 %6672 }
 0x74b   :  { %v6767_v15 = vpop.permute.xlu1 %6766 }
 0x74c   :  { %v6809_v45 = vsel %vm6780_vm8, %v6765_v14, %v6767_v15  ;;  %v6934_v19 = vmax.f32 %v13327_v46, %v6767_v15 }
 0x74d   :  { %v6933_v24 = vmax.f32 %v13295_v3, %v6809_v45 }
 0x74e   :  { %6999 = vst.msk [vmem:[#allocation5 + $0x1c8] sm:$0xff] %vm6942_vm9, %v6934_v19  ;;  %v6689_v18 = vpop.permute.xlu0 %6688 }
 0x74f   :  { %6998 = vst [vmem:[#allocation5 + $0x1c0] sm:$0xff] %v6933_v24  ;;  %v6659_v25 = vpop.permute.xlu1 %6658 }
 0x750   :  { %v6782_v61 = vsel %vm6780_vm8, %v6657_v63, %v6659_v25  ;;  %v6880_v42 = vmax.f32 %v12881_v54, %v6659_v25  ;;  %v8454_v63 = vld [vmem:[%s14100_s5 + $0x1c0] sm:$0xff] }
 0x751   :  { %v6879_v1 = vmax.f32 %v12845_v20, %v6782_v61 }
 0x752   :  { %6945 = vst.msk [vmem:[#allocation5 + $0x18] sm:$0xff] %vm6942_vm9, %v6880_v42  ;;  %v6705_v12 = vpop.permute.xlu0 %6704 }
 0x753   :  { %6944 = vst [vmem:[#allocation5 + $0x10] sm:$0xff] %v6879_v1  ;;  %v6675_v62 = vpop.permute.xlu1 %6674 }
 0x754   :  { %v6786_v46 = vsel %vm6780_vm8, %v6673_v33, %v6675_v62  ;;  %v6888_v3 = vmax.f32 %v12943_v51, %v6675_v62  ;;  %v8455_v33 = vld [vmem:[%s14100_s5 + $0x1c8] sm:$0xff] }
 0x755   :  { %v6887_v40 = vmax.f32 %v12902_v11, %v6786_v46  ;;  %v8433_v11 = vld [vmem:[%s14100_s5 + $0x120] sm:$0xff] }
 0x756   :  { %v7044_v17 = vld [vmem:[#allocation5 + $0x1c0] ss:$8 sm:$0x3]  ;;  %v7084_v49 = vld [vmem:[#allocation5 + $0x1c4] ss:$8 sm:$0x3]  ;;  %v6721_v30 = vpop.permute.xlu0 %6720 }
 0x757   :  { %6953 = vst.msk [vmem:[#allocation5 + $0x58] sm:$0xff] %vm6942_vm9, %v6888_v3  ;;  %6952 = vst [vmem:[#allocation5 + $0x50] sm:$0xff] %v6887_v40  ;;  %v6691_v54 = vpop.permute.xlu1 %6690  ;;  %v8437_v46 = vld [vmem:[%s14100_s5 + $0x140] sm:$0xff] }
 0x758   :  { %7086 = vst.msk [vmem:[#allocation6 + $0x17] ss:$8 sm:$0x3] %vm13375_vm10, %v7084_v49  ;;  %7046 = vst.msk [vmem:[#allocation6 + $0x7] ss:$8 sm:$0x3] %vm13375_vm10, %v7044_v17  ;;  %v6790_v20 = vsel %vm6780_vm8, %v6689_v18, %v6691_v54  ;;  %v6896_v56 = vmax.f32 %v13009_v23, %v6691_v54  ;;  %v8880_v17 = vpack.c.bf16 %v8436_v58, %v8435_v2 }
 0x759   :  { %v6895_v51 = vmax.f32 %v12962_v26, %v6790_v20  ;;  %v8434_v26 = vld [vmem:[%s14100_s5 + $0x128] sm:$0xff]  ;;  %v8452_v23 = vld [vmem:[%s14100_s5 + $0x1b0] sm:$0xff]  ;;  %v8907_v49 = vpack.c.bf16 %v8455_v33, %v8454_v63  ;;  %v8457_v20 = vld [vmem:[%s14100_s5 + $0x1d8] sm:$0xff] }
 0x75a   :  { %v7089_v55 = vld [vmem:[#allocation5 + $0x10] ss:$8 sm:$0x3]  ;;  %v7129_v0 = vld [vmem:[#allocation5 + $0x14] ss:$8 sm:$0x3]  ;;  %v6737_v50 = vpop.permute.xlu0 %6736  ;;  %v8904_v45 = vpack.c.bf16 %v8453_v13, %v8452_v23 }
 0x75b   :  { %6961 = vst.msk [vmem:[#allocation5 + $0x98] sm:$0xff] %vm6942_vm9, %v6896_v56  ;;  %6960 = vst [vmem:[#allocation5 + $0x90] sm:$0xff] %v6895_v51  ;;  %v6707_v4 = vpop.permute.xlu1 %6706  ;;  %v8456_v54 = vld [vmem:[%s14100_s5 + $0x1d0] sm:$0xff]  ;;  %v8441_v58 = vld [vmem:[%s14100_s5 + $0x160] sm:$0xff] }
 0x75c   :  { %7091 = vst.msk [vmem:[#allocation6 + $0x20] ss:$8 sm:$0x3] %vm13375_vm10, %v7089_v55  ;;  %7131 = vst.msk [vmem:[#allocation6 + $0x30] ss:$8 sm:$0x3] %vm13375_vm10, %v7129_v0  ;;  %v6794_v9 = vsel %vm6780_vm8, %v6705_v12, %v6707_v4  ;;  %v6904_v34 = vmax.f32 %v13083_v52, %v6707_v4  ;;  %v8910_v23 = vpack.c.bf16 %v8457_v20, %v8456_v54 }
 0x75d   :  { %v6903_v14 = vmax.f32 %v13032_v38, %v6794_v9  ;;  %v8877_v38 = vpack.c.bf16 %v8434_v26, %v8433_v11  ;;  %v8439_v55 = vld [vmem:[%s14100_s5 + $0x150] sm:$0xff]  ;;  %v8459_v9 = vld [vmem:[%s14100_s5 + $0x1e8] sm:$0xff] }
 0x75e   :  { %v7094_v15 = vld [vmem:[#allocation5 + $0x50] ss:$8 sm:$0x3]  ;;  %v7134_v52 = vld [vmem:[#allocation5 + $0x54] ss:$8 sm:$0x3]  ;;  %v6753_v19 = vpop.permute.xlu0 %6752 }
 0x75f   :  { %6969 = vst.msk [vmem:[#allocation5 + $0xd8] sm:$0xff] %vm6942_vm9, %v6904_v34  ;;  %6968 = vst [vmem:[#allocation5 + $0xd0] sm:$0xff] %v6903_v14  ;;  %v7229_v24 = vld [vmem:[#allocation6 + $0x18] sm:$0xff]  ;;  %v7209_v18 = vld [vmem:[#allocation6 + $0x8] sm:$0xff]  ;;  %v6723_v25 = vpop.permute.xlu1 %6722 }
 0x760   :  { %7096 = vst.msk [vmem:[#allocation6 + $0x21] ss:$8 sm:$0x3] %vm13375_vm10, %v7094_v15  ;;  %7136 = vst.msk [vmem:[#allocation6 + $0x31] ss:$8 sm:$0x3] %vm13375_vm10, %v7134_v52  ;;  %8431 = vmatprep.mubr.msk.f32.mxu0 %vm6942_vm9, %v7229_v24  ;;  %8432 = vmatprep.mubr.msk.f32.mxu1 %vm6942_vm9, %v7209_v18  ;;  %v6798_v42 = vsel %vm6780_vm8, %v6721_v30, %v6723_v25  ;;  %v6912_v1 = vmax.f32 %v13153_v28, %v6723_v25 }
 0x761   :  { %v7228_v61 = vld [vmem:[#allocation6 + $0x10] sm:$0xff]  ;;  %v7208_v12 = vld [vmem:[#allocation6] sm:$0xff]  ;;  %v6911_v62 = vmax.f32 %v13106_v39, %v6798_v42  ;;  %v8438_v28 = vld [vmem:[%s14100_s5 + $0x148] sm:$0xff] }
 0x762   :  { %7317 = vmatmul.mubr.f32.vlgmr.msra.gmra.mrb[64].mxu0 %v7228_v61  ;;  %7390 = vmatmul.mubr.f32.vlgmr.msra.gmra.mrb[64].mxu1 %v7208_v12  ;;  %v7099_v3 = vld [vmem:[#allocation5 + $0x90] ss:$8 sm:$0x3]  ;;  %v7139_v40 = vld [vmem:[#allocation5 + $0x94] ss:$8 sm:$0x3]  ;;  %v6769_v30 = vpop.permute.xlu0 %6768  ;;  %v8883_v26 = vpack.c.bf16 %v8438_v28, %v8437_v46 }
 0x763   :  { %6977 = vst.msk [vmem:[#allocation5 + $0x118] sm:$0xff] %vm6942_vm9, %v6912_v1  ;;  %8878 = vmatpush1.bf16.msra.mxu0 %v8877_v38  ;;  %8905 = vmatpush1.bf16.msra.mxu1 %v8904_v45  ;;  %6976 = vst [vmem:[#allocation5 + $0x110] sm:$0xff] %v6911_v62  ;;  %v6739_v39 = vpop.permute.xlu1 %6738  ;;  %v8460_v45 = vld [vmem:[%s14100_s5 + $0x1f0] sm:$0xff] }
 0x764   :  { %7101 = vst.msk [vmem:[#allocation6 + $0x22] ss:$8 sm:$0x3] %vm13375_vm10, %v7099_v3  ;;  %7141 = vst.msk [vmem:[#allocation6 + $0x32] ss:$8 sm:$0x3] %vm13375_vm10, %v7139_v40  ;;  %8879 = vmatprep.subr.bf16.mxu0 %v14263_v8  ;;  %8906 = vmatprep.subr.bf16.mxu1 %v14263_v8  ;;  %v6802_v56 = vsel %vm6780_vm8, %v6737_v50, %v6739_v39  ;;  %v6920_v51 = vmax.f32 %v13415_v48, %v6739_v39 }
 0x765   :  { %v6919_v11 = vmax.f32 %v13173_v57, %v6802_v56  ;;  %v8440_v48 = vld [vmem:[%s14100_s5 + $0x158] sm:$0xff]  ;;  %v8458_v50 = vld [vmem:[%s14100_s5 + $0x1e0] sm:$0xff]  ;;  %v8443_v61 = vld [vmem:[%s14100_s5 + $0x170] sm:$0xff] }
 0x766   :  { %v7104_v0 = vld [vmem:[#allocation5 + $0xd0] ss:$8 sm:$0x3]  ;;  %v7144_v4 = vld [vmem:[#allocation5 + $0xd4] ss:$8 sm:$0x3]  ;;  %v6661_v13 = vpop.permute.xlu0 %6660  ;;  %v8886_v15 = vpack.c.bf16 %v8440_v48, %v8439_v55  ;;  %v8913_v52 = vpack.c.bf16 %v8459_v9, %v8458_v50 }
 0x767   :  { %6985 = vst.msk [vmem:[#allocation5 + $0x158] sm:$0xff] %vm6942_vm9, %v6920_v51  ;;  %8881 = vmatpush1.bf16.msra.mxu0 %v8880_v17  ;;  %8908 = vmatpush1.bf16.msra.mxu1 %v8907_v49  ;;  %6984 = vst [vmem:[#allocation5 + $0x150] sm:$0xff] %v6919_v11  ;;  %v6755_v57 = vpop.permute.xlu1 %6754  ;;  %v8462_v3 = vld [vmem:[%s14100_s5 + $0x200] sm:$0xff]  ;;  %v8463_v40 = vld [vmem:[%s14100_s5 + $0x208] sm:$0xff] }
 0x768   :  { %7106 = vst.msk [vmem:[#allocation6 + $0x23] ss:$8 sm:$0x3] %vm13375_vm10, %v7104_v0  ;;  %7146 = vst.msk [vmem:[#allocation6 + $0x33] ss:$8 sm:$0x3] %vm13375_vm10, %v7144_v4  ;;  %8882 = vmatprep.subr.bf16.mxu0 %v14263_v8  ;;  %8909 = vmatprep.subr.bf16.mxu1 %v14263_v8  ;;  %v6806_v34 = vsel %vm6780_vm8, %v6753_v19, %v6755_v57  ;;  %v6928_v14 = vmax.f32 %v13436_v7, %v6755_v57 }
 0x769   :  { %v6927_v2 = vmax.f32 %v13237_v16, %v6806_v34  ;;  %v8442_v7 = vld [vmem:[%s14100_s5 + $0x168] sm:$0xff]  ;;  %v8461_v19 = vld [vmem:[%s14100_s5 + $0x1f8] sm:$0xff]  ;;  %v8445_v39 = vld [vmem:[%s14100_s5 + $0x180] sm:$0xff]  ;;  %v8919_v56 = vpack.c.bf16 %v8463_v40, %v8462_v3 }
 0x76a   :  { %v7109_v63 = vld [vmem:[#allocation5 + $0x110] ss:$8 sm:$0x3]  ;;  %v7149_v33 = vld [vmem:[#allocation5 + $0x114] ss:$8 sm:$0x3]  ;;  %v6677_v38 = vpop.permute.xlu0 %6676  ;;  %v8889_v12 = vpack.c.bf16 %v8442_v7, %v8441_v58  ;;  %v8916_v62 = vpack.c.bf16 %v8461_v19, %v8460_v45 }
 0x76b   :  { %6993 = vst.msk [vmem:[#allocation5 + $0x198] sm:$0xff] %vm6942_vm9, %v6928_v14  ;;  %8884 = vmatpush1.bf16.msra.mxu0 %v8883_v26  ;;  %8911 = vmatpush1.bf16.msra.mxu1 %v8910_v23  ;;  %6992 = vst [vmem:[#allocation5 + $0x190] sm:$0xff] %v6927_v2  ;;  %v6771_v16 = vpop.permute.xlu1 %6770  ;;  %v8464_v11 = vld [vmem:[%s14100_s5 + $0x210] sm:$0xff]  ;;  %v8465_v55 = vld [vmem:[%s14100_s5 + $0x218] sm:$0xff] }
 0x76c   :  { %7111 = vst.msk [vmem:[#allocation6 + $0x24] ss:$8 sm:$0x3] %vm13375_vm10, %v7109_v63  ;;  %7151 = vst.msk [vmem:[#allocation6 + $0x34] ss:$8 sm:$0x3] %vm13375_vm10, %v7149_v33  ;;  %8885 = vmatprep.subr.bf16.mxu0 %v14263_v8  ;;  %8912 = vmatprep.subr.bf16.mxu1 %v14263_v8  ;;  %v6810_v24 = vsel %vm6780_vm8, %v6769_v30, %v6771_v16  ;;  %v6936_v18 = vmax.f32 %v13451_v41, %v6771_v16 }
 0x76d   :  { %v6935_v25 = vmax.f32 %v13306_v6, %v6810_v24  ;;  %v8444_v41 = vld [vmem:[%s14100_s5 + $0x178] sm:$0xff]  ;;  %v8447_v23 = vld [vmem:[%s14100_s5 + $0x190] sm:$0xff]  ;;  %v8922_v50 = vpack.c.bf16 %v8465_v55, %v8464_v11  ;;  %v8466_v34 = vld [vmem:[%s14100_s5 + $0x220] sm:$0xff] }
 0x76e   :  { %v7114_v42 = vld [vmem:[#allocation5 + $0x150] ss:$8 sm:$0x3]  ;;  %v7154_v1 = vld [vmem:[#allocation5 + $0x154] ss:$8 sm:$0x3]  ;;  %v6693_v46 = vpop.permute.xlu0 %6692  ;;  %v8892_v20 = vpack.c.bf16 %v8444_v41, %v8443_v61 }
 0x76f   :  { %7001 = vst.msk [vmem:[#allocation5 + $0x1d8] sm:$0xff] %vm6942_vm9, %v6936_v18  ;;  %8887 = vmatpush1.bf16.msra.mxu0 %v8886_v15  ;;  %8914 = vmatpush1.bf16.msra.mxu1 %v8913_v52  ;;  %7000 = vst [vmem:[#allocation5 + $0x1d0] sm:$0xff] %v6935_v25  ;;  %v6663_v6 = vpop.permute.xlu1 %6662  ;;  %v8467_v14 = vld [vmem:[%s14100_s5 + $0x228] sm:$0xff]  ;;  %v8468_v7 = vld [vmem:[%s14100_s5 + $0x230] sm:$0xff] }
 0x770   :  { %7116 = vst.msk [vmem:[#allocation6 + $0x25] ss:$8 sm:$0x3] %vm13375_vm10, %v7114_v42  ;;  %7156 = vst.msk [vmem:[#allocation6 + $0x35] ss:$8 sm:$0x3] %vm13375_vm10, %v7154_v1  ;;  %8888 = vmatprep.subr.bf16.mxu0 %v14263_v8  ;;  %8915 = vmatprep.subr.bf16.mxu1 %v14263_v8  ;;  %v6783_v17 = vsel %vm6780_vm8, %v6661_v13, %v6663_v6  ;;  %v6882_v49 = vmax.f32 %v13469_v32, %v6663_v6 }
 0x771   :  { %v6881_v30 = vmax.f32 %v13433_v36, %v6783_v17  ;;  %v8446_v32 = vld [vmem:[%s14100_s5 + $0x188] sm:$0xff]  ;;  %v8925_v52 = vpack.c.bf16 %v8467_v14, %v8466_v34  ;;  %v8469_v45 = vld [vmem:[%s14100_s5 + $0x238] sm:$0xff] }
 0x772   :  { %v7119_v28 = vld [vmem:[#allocation5 + $0x190] ss:$8 sm:$0x3]  ;;  %v7159_v54 = vld [vmem:[#allocation5 + $0x194] ss:$8 sm:$0x3]  ;;  %v6709_v51 = vpop.permute.xlu0 %6708  ;;  %v8895_v48 = vpack.c.bf16 %v8446_v32, %v8445_v39 }
 0x773   :  { %6947 = vst.msk [vmem:[#allocation5 + $0x28] sm:$0xff] %vm6942_vm9, %v6882_v49  ;;  %8890 = vmatpush1.bf16.msra.mxu0 %v8889_v12  ;;  %8917 = vmatpush1.bf16.msra.mxu1 %v8916_v62  ;;  %6946 = vst [vmem:[#allocation5 + $0x20] sm:$0xff] %v6881_v30  ;;  %v6679_v36 = vpop.permute.xlu1 %6678  ;;  %v8928_v12 = vpack.c.bf16 %v8469_v45, %v8468_v7  ;;  %v8484_v7 = vld [vmem:[%s14100_s5 + $0x2a8] sm:$0xff] }
 0x774   :  { %7121 = vst.msk [vmem:[#allocation6 + $0x26] ss:$8 sm:$0x3] %vm13375_vm10, %v7119_v28  ;;  %7161 = vst.msk [vmem:[#allocation6 + $0x36] ss:$8 sm:$0x3] %vm13375_vm10, %v7159_v54  ;;  %8891 = vmatprep.subr.bf16.mxu0 %v14263_v8  ;;  %8918 = vmatprep.subr.bf16.mxu1 %v14263_v8  ;;  %v6787_v0 = vsel %vm6780_vm8, %v6677_v38, %v6679_v36  ;;  %v6890_v4 = vmax.f32 %v13487_v29, %v6679_v36 }
 0x775   :  { %v6889_v26 = vmax.f32 %v12920_v44, %v6787_v0  ;;  %v8448_v29 = vld [vmem:[%s14100_s5 + $0x198] sm:$0xff]  ;;  %v8449_v38 = vld [vmem:[%s14100_s5 + $0x1a0] sm:$0xff] }
 0x776   :  { %v7124_v13 = vld [vmem:[#allocation5 + $0x1d0] ss:$8 sm:$0x3]  ;;  %v7164_v57 = vld [vmem:[#allocation5 + $0x1d4] ss:$8 sm:$0x3]  ;;  %v6725_v9 = vpop.permute.xlu0 %6724  ;;  %v8898_v15 = vpack.c.bf16 %v8448_v29, %v8447_v23 }
 0x777   :  { %6955 = vst.msk [vmem:[#allocation5 + $0x68] sm:$0xff] %vm6942_vm9, %v6890_v4  ;;  %8893 = vmatpush1.bf16.msra.mxu0 %v8892_v20  ;;  %8920 = vmatpush1.bf16.msra.mxu1 %v8919_v56  ;;  %6954 = vst [vmem:[#allocation5 + $0x60] sm:$0xff] %v6889_v26  ;;  %v6695_v44 = vpop.permute.xlu1 %6694 }
 0x778   :  { %7126 = vst.msk [vmem:[#allocation6 + $0x27] ss:$8 sm:$0x3] %vm13375_vm10, %v7124_v13  ;;  %7166 = vst.msk [vmem:[#allocation6 + $0x37] ss:$8 sm:$0x3] %vm13375_vm10, %v7164_v57  ;;  %8894 = vmatprep.subr.bf16.mxu0 %v14263_v8  ;;  %8921 = vmatprep.subr.bf16.mxu1 %v14263_v8  ;;  %v6791_v2 = vsel %vm6780_vm8, %v6693_v46, %v6695_v44  ;;  %v6898_v58 = vmax.f32 %v13502_v35, %v6695_v44 }
 0x779   :  { %v6897_v63 = vmax.f32 %v12983_v31, %v6791_v2  ;;  %v8450_v35 = vld [vmem:[%s14100_s5 + $0x1a8] sm:$0xff]  ;;  %v8479_v2 = vld [vmem:[%s14100_s5 + $0x280] sm:$0xff] }
 0x77a   :  { %v7169_v33 = vld [vmem:[#allocation5 + $0x20] ss:$8 sm:$0x3]  ;;  %6963 = vst.msk [vmem:[#allocation5 + $0xa8] sm:$0xff] %vm6942_vm9, %v6898_v58  ;;  %v6741_v16 = vpop.permute.xlu0 %6740  ;;  %v8901_v1 = vpack.c.bf16 %v8450_v35, %v8449_v38  ;;  %v8472_v46 = vld [vmem:[%s14100_s5 + $0x248] sm:$0xff]  ;;  %v8483_v35 = vld [vmem:[%s14100_s5 + $0x2a0] sm:$0xff] }
 0x77b   :  { %8896 = vmatpush1.bf16.msra.mxu0 %v8895_v48  ;;  %8923 = vmatpush1.bf16.msra.mxu1 %v8922_v50  ;;  %7171 = vst.msk [vmem:[#allocation6 + $0x40] ss:$8 sm:$0x3] %vm13375_vm10, %v7169_v33  ;;  %6962 = vst [vmem:[#allocation5 + $0xa0] sm:$0xff] %v6897_v63  ;;  %v6711_v31 = vpop.permute.xlu1 %6710  ;;  %v8477_v48 = vld [vmem:[%s14100_s5 + $0x270] sm:$0xff] }
 0x77c   :  { %8897 = vmatprep.subr.bf16.mxu0 %v14263_v8  ;;  %8924 = vmatprep.subr.bf16.mxu1 %v14263_v8  ;;  %v6795_v19 = vsel %vm6780_vm8, %v6709_v51, %v6711_v31  ;;  %v6906_v24 = vmax.f32 %v13517_v60, %v6711_v31  ;;  %v8481_v33 = vld [vmem:[%s14100_s5 + $0x290] sm:$0xff] }
 0x77d   :  { %v6905_v18 = vmax.f32 %v13044_v10, %v6795_v19  ;;  %v8471_v10 = vld [vmem:[%s14100_s5 + $0x240] sm:$0xff]  ;;  %v8949_v19 = vpack.c.bf16 %v8484_v7, %v8483_v35 }
 0x77e   :  { %v7174_v25 = vld [vmem:[#allocation5 + $0x60] ss:$8 sm:$0x3]  ;;  %6971 = vst.msk [vmem:[#allocation5 + $0xe8] sm:$0xff] %vm6942_vm9, %v6906_v24  ;;  %v6757_v62 = vpop.permute.xlu0 %6756  ;;  %v8931_v17 = vpack.c.bf16 %v8472_v46, %v8471_v10 }
 0x77f   :  { %8899 = vmatpush1.bf16.msra.mxu0 %v8898_v15  ;;  %8926 = vmatpush1.bf16.msra.mxu1 %v8925_v52  ;;  %v7396_v61 = vld [vmem:[#allocation6 + $0x28] sm:$0xff]  ;;  %v7491_v42 = vld [vmem:[#allocation6 + $0x38] sm:$0xff]  ;;  %7176 = vst.msk [vmem:[#allocation6 + $0x41] ss:$8 sm:$0x3] %vm13375_vm10, %v7174_v25  ;;  %6970 = vst [vmem:[#allocation5 + $0xe0] sm:$0xff] %v6905_v18  ;;  %v6727_v60 = vpop.permute.xlu1 %6726 }
 0x780   :  { %8900 = vmatprep.subr.bf16.mxu0 %v14263_v8  ;;  %8451 = vmatprep.mubr.msk.f32.mxu0 %vm6942_vm9, %v7396_v61  ;;  %v6799_v6 = vsel %vm6780_vm8, %v6725_v9, %v6727_v60  ;;  %v6914_v41 = vmax.f32 %v13536_v22, %v6727_v60  ;;  %v8473_v22 = vld [vmem:[%s14100_s5 + $0x250] sm:$0xff]  ;;  %v7490_v28 = vld [vmem:[#allocation6 + $0x30] sm:$0xff]  ;;  %v8482_v15 = vld [vmem:[%s14100_s5 + $0x298] sm:$0xff] }
 0x781   :  { %8927 = vmatprep.subr.bf16.mxu1 %v14263_v8  ;;  %8470 = vmatprep.mubr.msk.f32.mxu1 %vm6942_vm9, %v7491_v42  ;;  %v6913_v3 = vmax.f32 %v13118_v27, %v6799_v6  ;;  %v8474_v27 = vld [vmem:[%s14100_s5 + $0x258] sm:$0xff]  ;;  %v7395_v39 = vld [vmem:[#allocation6 + $0x20] sm:$0xff] }
 0x782   :  { %v7179_v40 = vld [vmem:[#allocation5 + $0xa0] ss:$8 sm:$0x3]  ;;  %6979 = vst.msk [vmem:[#allocation5 + $0x128] sm:$0xff] %vm6942_vm9, %v6914_v41  ;;  %v6773_v49 = vpop.permute.xlu0 %6772  ;;  %v8934_v36 = vpack.c.bf16 %v8474_v27, %v8473_v22 }
 0x783   :  { %8902 = vmatpush1.bf16.msra.mxu0 %v8901_v1  ;;  %8929 = vmatpush1.bf16.msra.mxu1 %v8928_v12  ;;  %7181 = vst.msk [vmem:[#allocation6 + $0x42] ss:$8 sm:$0x3] %vm13375_vm10, %v7179_v40  ;;  %6978 = vst [vmem:[#allocation5 + $0x120] sm:$0xff] %v6913_v3  ;;  %v6743_v30 = vpop.permute.xlu1 %6742  ;;  %v8486_v18 = vld [vmem:[%s14100_s5 + $0x2b8] sm:$0xff]  ;;  %v8487_v12 = vld [vmem:[%s14100_s5 + $0x2c0] sm:$0xff] }
 0x784   :  { %8930 = vmatprep.subr.bf16.mxu0 %v14263_v8  ;;  %8957 = vmatprep.subr.bf16.mxu1 %v14263_v8  ;;  %v6803_v54 = vsel %vm6780_vm8, %v6741_v16, %v6743_v30  ;;  %v6922_v20 = vmax.f32 %v13555_v53, %v6743_v30  ;;  %v8475_v53 = vld [vmem:[%s14100_s5 + $0x260] sm:$0xff]  ;;  %v8946_v16 = vpack.c.bf16 %v8482_v15, %v8481_v33  ;;  %v7689_v30 = vld [vmem:[%s14101_s7 + $0x10] sm:$0xff]  ;;  %v7690_v27 = vld [vmem:[%s14101_s7 + $0x18] sm:$0xff] }
 0x785   :  { %v6921_v56 = vmax.f32 %v13190_v5, %v6803_v54  ;;  %v8476_v5 = vld [vmem:[%s14100_s5 + $0x268] sm:$0xff]  ;;  %v8952_v61 = vpack.c.bf16 %v8486_v18, %v8485_v47 }
 0x786   :  { %7484 = vmatmul.mubr.f32.vlgmr.msra.gmra.mrb[66].mxu0 %v7395_v39  ;;  %7579 = vmatmul.mubr.f32.vlgmr.msra.gmra.mrb[66].mxu1 %v7490_v28  ;;  %v7184_v51 = vld [vmem:[#allocation5 + $0xe0] ss:$8 sm:$0x3]  ;;  %6987 = vst.msk [vmem:[#allocation5 + $0x168] sm:$0xff] %vm6942_vm9, %v6922_v20  ;;  %v6665_v32 = vpop.permute.xlu0 %6664  ;;  %v8937_v23 = vpack.c.bf16 %v8476_v5, %v8475_v53  ;;  %v8961_v39 = vpack.c.bf16 %v7690_v27, %v7689_v30  ;;  %v7691_v28 = vld [vmem:[%s14101_s7 + $0x20] sm:$0xff]  ;;  %v7692_v54 = vld [vmem:[%s14101_s7 + $0x28] sm:$0xff] }
 0x787   :  { %8932 = vmatpush1.bf16.msra.mxu0 %v8931_v17  ;;  %7186 = vst.msk [vmem:[#allocation6 + $0x43] ss:$8 sm:$0x3] %vm13375_vm10, %v7184_v51  ;;  %6986 = vst [vmem:[#allocation5 + $0x160] sm:$0xff] %v6921_v56  ;;  %v6759_v11 = vpop.permute.xlu1 %6758  ;;  %v7687_v17 = vld [vmem:[%s14101_s7] sm:$0xff]  ;;  %v8964_v20 = vpack.c.bf16 %v7692_v54, %v7691_v28  ;;  %v7693_v56 = vld [vmem:[%s14101_s7 + $0x30] sm:$0xff] }
 0x788   :  { %8933 = vmatprep.subr.bf16.mxu0 %v14263_v8  ;;  %v6807_v55 = vsel %vm6780_vm8, %v6757_v62, %v6759_v11  ;;  %v6930_v0 = vmax.f32 %v13573_v43, %v6759_v11  ;;  %v8488_v62 = vld [vmem:[%s14100_s5 + $0x2c8] sm:$0xff]  ;;  %v7694_v51 = vld [vmem:[%s14101_s7 + $0x38] sm:$0xff]  ;;  %v7695_v32 = vld [vmem:[%s14101_s7 + $0x40] sm:$0xff] }
 0x789   :  { %v6929_v4 = vmax.f32 %v13254_v59, %v6807_v55  ;;  %v8478_v59 = vld [vmem:[%s14100_s5 + $0x278] sm:$0xff]  ;;  %v8955_v60 = vpack.c.bf16 %v8488_v62, %v8487_v12  ;;  %v7696_v11 = vld [vmem:[%s14101_s7 + $0x48] sm:$0xff]  ;;  %v7697_v5 = vld [vmem:[%s14101_s7 + $0x50] sm:$0xff] }
 0x78a   :  { %v7189_v26 = vld [vmem:[#allocation5 + $0x120] ss:$8 sm:$0x3]  ;;  %6995 = vst.msk [vmem:[#allocation5 + $0x1a8] sm:$0xff] %vm6942_vm9, %v6930_v0  ;;  %v6681_v13 = vpop.permute.xlu0 %6680  ;;  %v8940_v29 = vpack.c.bf16 %v8478_v59, %v8477_v48  ;;  %v8970_v53 = vpack.c.bf16 %v7696_v11, %v7695_v32  ;;  %v7783_v48 = vld [vmem:[%s14102_s8 + $0x8] sm:$0xff] }
 0x78b   :  { %8935 = vmatpush1.bf16.msra.mxu0 %v8934_v36  ;;  %7191 = vst.msk [vmem:[#allocation6 + $0x44] ss:$8 sm:$0x3] %vm13375_vm10, %v7189_v26  ;;  %6994 = vst [vmem:[#allocation5 + $0x1a0] sm:$0xff] %v6929_v4  ;;  %v6775_v57 = vpop.permute.xlu1 %6774  ;;  %v8967_v36 = vpack.c.bf16 %v7694_v51, %v7693_v56  ;;  %v7698_v55 = vld [vmem:[%s14101_s7 + $0x58] sm:$0xff]  ;;  %v7699_v4 = vld [vmem:[%s14101_s7 + $0x60] sm:$0xff] }
 0x78c   :  { %8936 = vmatprep.subr.bf16.mxu0 %v14263_v8  ;;  %v6811_v43 = vsel %vm6780_vm8, %v6773_v49, %v6775_v57  ;;  %v6938_v50 = vmax.f32 %v13582_v37, %v6775_v57  ;;  %v7688_v49 = vld [vmem:[%s14101_s7 + $0x8] sm:$0xff]  ;;  %v8973_v0 = vpack.c.bf16 %v7698_v55, %v7697_v5  ;;  %v9587_v13 = vld [vmem:[#allocation2 + $0x200] sm:$0xff]  ;;  %v7784_v59 = vld [vmem:[%s14102_s8 + $0x10] sm:$0xff] }
 0x78d   :  { %v6937_v9 = vmax.f32 %v13322_v21, %v6811_v43  ;;  %v8480_v21 = vld [vmem:[%s14100_s5 + $0x288] sm:$0xff]  ;;  %v8958_v22 = vpack.c.bf16 %v7688_v49, %v7687_v17  ;;  %8554 = vmatprep.mubr.msk.f32.mxu1 %vm9592_vm11, %v9587_v13  ;;  %v7782_v57 = vld [vmem:[%s14102_s8] sm:$0xff]  ;;  %v7701_v43 = vld [vmem:[%s14101_s7 + $0x70] sm:$0xff] }
 0x78e   :  { %v7194_v44 = vld [vmem:[#allocation5 + $0x160] ss:$8 sm:$0x3]  ;;  %7003 = vst.msk [vmem:[#allocation5 + $0x1e8] sm:$0xff] %vm6942_vm9, %v6938_v50  ;;  %v6697_v34 = vpop.permute.xlu0 %6696  ;;  %v8943_v58 = vpack.c.bf16 %v8480_v21, %v8479_v2  ;;  %v7700_v26 = vld [vmem:[%s14101_s7 + $0x68] sm:$0xff]  ;;  %v8979_v50 = vpack.c.bf16 %v7783_v48, %v7782_v57 }
 0x78f   :  { %8938 = vmatpush1.bf16.msra.mxu0 %v8937_v23  ;;  %7196 = vst.msk [vmem:[#allocation6 + $0x45] ss:$8 sm:$0x3] %vm13375_vm10, %v7194_v44  ;;  %7002 = vst [vmem:[#allocation5 + $0x1e0] sm:$0xff] %v6937_v9  ;;  %v6667_v14 = vpop.permute.xlu1 %6666  ;;  %8959 = vmatpush3.bf16.msra.mxu1 %v8958_v22  ;;  %v8976_v23 = vpack.c.bf16 %v7700_v26, %v7699_v4  ;;  %v7785_v9 = vld [vmem:[%s14102_s8 + $0x18] sm:$0xff]  ;;  %v7787_v34 = vld [vmem:[%s14102_s8 + $0x28] sm:$0xff] }
 0x790   :  { %8939 = vmatprep.subr.bf16.mxu0 %v14263_v8  ;;  %8960 = vmatprep.subr.bf16.mxu1 %v14263_v8  ;;  %v8982_v44 = vpack.c.bf16 %v7785_v9, %v7784_v59  ;;  %v7788_v2 = vld [vmem:[%s14102_s8 + $0x30] sm:$0xff]  ;;  %v7789_v21 = vld [vmem:[%s14102_s8 + $0x38] sm:$0xff]  ;;  %v8491_v62 = vld [vmem:[%s14103_s6 + $0x1] ss:$0 sm:$0xff] }
 0x791   :  { %v7792_v12 = vld [vmem:[%s14102_s8 + $0x50] sm:$0xf] }
 0x792   :  { %v7199_v37 = vld [vmem:[#allocation5 + $0x1a0] ss:$8 sm:$0x3]  ;;  %v6713_v52 = vpop.permute.xlu0 %6712 }
 0x793   :  { %8941 = vmatpush1.bf16.msra.mxu0 %v8940_v29  ;;  %7201 = vst.msk [vmem:[#allocation6 + $0x46] ss:$8 sm:$0x3] %vm13375_vm10, %v7199_v37  ;;  %v6683_v63 = vpop.permute.xlu1 %6682  ;;  %8962 = vmatpush3.bf16.msra.mxu1 %v8961_v39  ;;  %v7786_v29 = vld [vmem:[%s14102_s8 + $0x20] sm:$0xff]  ;;  %v8988_v37 = vpack.c.bf16 %v7789_v21, %v7788_v2 }
 0x794   :  { %8942 = vmatprep.subr.bf16.mxu0 %v14263_v8  ;;  %8963 = vmatprep.subr.bf16.mxu1 %v14263_v8  ;;  %v8985_v14 = vpack.c.bf16 %v7787_v34, %v7786_v29 }
 0x796   :  { %v7204_v38 = vld [vmem:[#allocation5 + $0x1e0] ss:$8 sm:$0x3]  ;;  %v6729_v45 = vpop.permute.xlu0 %6728 }
 0x797   :  { %8944 = vmatpush1.bf16.msra.mxu0 %v8943_v58  ;;  %7206 = vst.msk [vmem:[#allocation6 + $0x47] ss:$8 sm:$0x3] %vm13375_vm10, %v7204_v38  ;;  %v6699_v31 = vpop.permute.xlu1 %6698  ;;  %8965 = vmatpush3.bf16.msra.mxu1 %v8964_v20 }
 0x798   :  { %8945 = vmatprep.subr.bf16.mxu0 %v14263_v8  ;;  %8966 = vmatprep.subr.bf16.mxu1 %v14263_v8 }
 0x79a   :  { %v6745_v1 = vpop.permute.xlu0 %6744 }
 0x79b   :  { %8947 = vmatpush1.bf16.msra.mxu0 %v8946_v16  ;;  %v6715_v24 = vpop.permute.xlu1 %6714  ;;  %8968 = vmatpush3.bf16.msra.mxu1 %v8967_v36 }
 0x79c   :  { %8948 = vmatprep.subr.bf16.mxu0 %v14263_v8  ;;  %8969 = vmatprep.subr.bf16.mxu1 %v14263_v8  ;;  %v8490_v24 = vld [vmem:[%s14103_s6] ss:$0 sm:$0xff] }
 0x79e   :  { %v7586_v25 = vld [vmem:[#allocation6 + $0x48] sm:$0xff]  ;;  %v6761_v46 = vpop.permute.xlu0 %6760  ;;  %v7585_v41 = vld [vmem:[#allocation6 + $0x40] sm:$0xff] }
 0x79f   :  { %8950 = vmatpush1.bf16.msra.mxu0 %v8949_v19  ;;  %8489 = vmatprep.mubr.msk.f32.mxu0 %vm6942_vm9, %v7586_v25  ;;  %v6731_v42 = vpop.permute.xlu1 %6730 }
 0x7a0   :  { %8951 = vmatprep.subr.bf16.mxu0 %v14263_v8  ;;  %8971 = vmatpush3.bf16.msra.mxu1 %v8970_v53  ;;  %v7791_v42 = vld [vmem:[%s14102_s8 + $0x48] sm:$0xff] }
 0x7a1   :  { %8972 = vmatprep.subr.bf16.mxu1 %v14263_v8 }
 0x7a2   :  { %v6777_v3 = vpop.permute.xlu0 %6776 }
 0x7a3   :  { %8953 = vmatpush1.bf16.msra.mxu0 %v8952_v61  ;;  %v6747_v10 = vpop.permute.xlu1 %6746  ;;  %v7790_v61 = vld [vmem:[%s14102_s8 + $0x40] sm:$0xff] }
 0x7a4   :  { %8954 = vmatprep.subr.bf16.mxu0 %v14263_v8  ;;  %8974 = vmatpush3.bf16.msra.mxu1 %v8973_v0  ;;  %v8991_v1 = vpack.c.bf16 %v7791_v42, %v7790_v61 }
 0x7a5   :  { %8975 = vmatprep.subr.bf16.mxu1 %v14263_v8 }
 0x7a7   :  { %8956 = vmatpush1.bf16.msra.mxu0 %v8955_v60  ;;  %v6763_v6 = vpop.permute.xlu1 %6762 }
 0x7a8   :  { %8978 = vmatprep.subr.bf16.mxu0 %v14263_v8  ;;  %8977 = vmatpush3.bf16.msra.mxu1 %v8976_v23 }
 0x7a9   :  { %8552 = vmatprep.subr.mxu1 %v9587_v13 }
 0x7aa   :  { %7674 = vmatmul.mubr.f32.vlgmr.msra.gmra.mrb[68].mxu0 %v7585_v41  ;;  %v8493_v41 = vld [vmem:[%s14103_s6 + $0x2] ss:$0 sm:$0xff] }
 0x7ab   :  { %v6779_v40 = vpop.permute.xlu1 %6778  ;;  %8579 = vmatprep.mubr.msk.f32.mxu0 %vm9592_vm11, %v9587_v13  ;;  %8980 = vmatpush3.bf16.msra.mxu0 %v8979_v50 }
 0x7ac   :  { %8553 = vmatpush3.msra.mxu1 %v7701_v43  ;;  %8981 = vmatprep.subr.bf16.mxu0 %v14263_v8 }
 0x7af   :  { %8983 = vmatpush3.bf16.msra.mxu0 %v8982_v44 }
 0x7b0   :  { %8984 = vmatprep.subr.bf16.mxu0 %v14263_v8 }
 0x7b3   :  { %8986 = vmatpush3.bf16.msra.mxu0 %v8985_v14 }
 0x7b4   :  { %8987 = vmatprep.subr.bf16.mxu0 %v14263_v8 }
 0x7b7   :  { %8989 = vmatpush3.bf16.msra.mxu0 %v8988_v37 }
 0x7b8   :  { %8990 = vmatprep.subr.bf16.mxu0 %v14263_v8 }
 0x7bb   :  { %8992 = vmatpush3.bf16.msra.mxu0 %v8991_v1 }
 0x7bc   :  { %8577 = vmatprep.subr.mxu0 %v9587_v13 }
 0x7bf   :  { %8578 = vmatpush3.msk.msra.mxu0 %vm4382_vm7, %v7792_v12 }
 0x835   :  { %v7318_v58 = vpop.f32.mrb[64].mxu0  ;;  %v7391_v63 = vpop.f32.mrb[64].mxu1 }
 0x836   :  { %v7392_v33 = vadd.f32 %v7391_v63, %v7318_v58  ;;  %v7320_v15 = vpop.f32.mrb[65].mxu0  ;;  %v7393_v52 = vpop.f32.mrb[65].mxu1 }
 0x859   :  { %v7485_v38 = vpop.f32.mrb[66].mxu0  ;;  %v7580_v16 = vpop.f32.mrb[66].mxu1 }
 0x85a   :  { %v7489_v31 = vadd.f32 %v7485_v38, %v7392_v33  ;;  %v7487_v35 = vpop.f32.mrb[67].mxu0  ;;  %v7582_v7 = vpop.f32.mrb[67].mxu1 }
 0x85c   :  { %v7584_v45 = vadd.f32 %v7580_v16, %v7489_v31 }
 0x87d   :  { %v7675_v19 = vpop.f32.mrb[68].mxu0 }
 0x87e   :  { %v7679_v47 = vadd.f32 %v7675_v19, %v7584_v45  ;;  %v7677_v18 = vpop.f32.mrb[69].mxu0 }
 0x880   :  { %v7685_v25 = vadd.f32 %v8490_v24, %v7679_v47 }
 0x882   :  { %v7686_v8 = vmax.f32 %v7685_v25, 0.0 }
 0x884   :  { %8555 = vmatmul.mubr.msk.f32.vlgmr.msra.gmra.mrb[68].mxu1 %vm7707_vm12, %v7686_v8 }
 0x957   :  { %v7777_v60 = vpop.f32.mrb[68].mxu1 }
 0x958   :  { %v7778_v10 = vadd.f32 %v8491_v62, %v7777_v60  ;;  %v8556_v46 = vpop.f32.mrb[69].mxu1 }
 0x95a   :  { %v7781_v6 = vmax.f32 %v7778_v10, 0.0 }
 0x95c   :  { %8580 = vmatmul.mubr.msk.f32.vlgmr.msra.gmra.mrb[70].mxu0 %vm7798_vm13, %v7781_v6 }
 0xa2f   :  { %v7871_v3 = vpop.f32.mrb[70].mxu0 }
 0xa30   :  { %v7872_v40 = vadd.f32 %v8493_v41, %v7871_v3  ;;  %v8581_v17 = vpop.f32.mrb[71].mxu0 }
 0xa32   :  { %7876 = vst.msk [vmem:[%s14104_s9] sm:$0xff] %vm7875_vm14, %v7872_v40 }

</bundles_post_ra>
